<compile_context>
chip_gen: v7x
topology: tpu7x:2x2x1
jax: 0.10.0
libtpu: 0.0.40
codegen_flags: <defaults>
</compile_context>

<pallas_src>
from functools import partial

import numpy as np
import jax
import jax.numpy as jnp
from jax.experimental import pallas as pl
from jax.experimental.pallas import tpu as pltpu

# ----------------------------- configuration --------------------------------
K = 4            # args.cond_modes
D = 16           # zd_dim == zc_dim
HID = D          # FF hidden dim (module uses self.d)
USE_TANH = True  # args.use_tanh
N = 128          # batch size
LOGC = float(-D / 2.0 * np.log(2.0 * np.pi))
EPS = 1e-8

LOG_D = D.bit_length() - 1
assert (1 << LOG_D) == D, "in-kernel iota constant generation assumes power-of-2 D"

_FF_ORDER = ("weight", "mu", "logvar", "tri")
# 128-lane-aligned output segments of the fused second-layer matmul.
SEG_W, SEG_MU, SEG_LV, SEG_TRI = 0, 128, 256, 384
W2_COLS = SEG_TRI + K * D * D            # 1408
_SEG_OFF = {"weight": SEG_W, "mu": SEG_MU, "logvar": SEG_LV, "tri": SEG_TRI}
_SEG_WID = {"weight": K, "mu": K * D, "logvar": K * D, "tri": K * D * D}


# ------------------------------- kernel -------------------------------------
def cond_kernel(zc_ref, zd_ref, w1_ref, b1_ref, w2_ref, b2_ref, out_ref):
    zc = zc_ref[...]                      # (TN, D)
    zd = zd_ref[...]                      # (TN, D)

    # Fused first layer of all four FF heads (shared input z_c): one MXU push.
    h = jnp.dot(zc, w1_ref[...], preferred_element_type=jnp.float32) + b1_ref[...]
    h = jnp.maximum(h, 0.0)               # ReLU (args.ff_activation == 'relu')

    # Fused second layer; output segments are 128-lane aligned so every slice
    # below starts on a vreg boundary (no lane realignment).
    y = jnp.dot(h, w2_ref[...], preferred_element_type=jnp.float32) + b2_ref[...]
    logits = y[:, :K]                                 # (TN, K)
    mu     = y[:, SEG_MU:SEG_MU + K * D]              # (TN, K*D)
    logvar = y[:, SEG_LV:SEG_LV + K * D]              # (TN, K*D)
    tri    = y[:, SEG_TRI:SEG_TRI + K * D * D]        # (TN, K*D*D); tril(-1) mask folded into W2/b2

    # mixture weights: log_softmax over K modes
    m = jnp.max(logits, axis=-1, keepdims=True)
    w = logits - m - jnp.log(jnp.sum(jnp.exp(logits - m), axis=-1, keepdims=True))

    if USE_TANH:
        logvar = jnp.tanh(logvar)
    var = jnp.exp(logvar)                                     # (TN, K*D)

    # ---- 0/1 structure matrices generated on the VPU (no HBM constants) ----
    #   rrep : (D, K*D)      zd -> zd replicated per mode
    #   ind  : (K*D, K)      per-mode sum indicator
    #   rtile: (K*D, K*D*D)  z -> z_tiled (within-mode column replication)
    #   ssum : (K*D*D, K*D)  per-(mode,row) sum over j
    r0 = jax.lax.broadcasted_iota(jnp.int32, (D, K * D), 0)
    c0 = jax.lax.broadcasted_iota(jnp.int32, (D, K * D), 1)
    rrep = jnp.where((c0 & (D - 1)) == r0, 1.0, 0.0)

    r1 = jax.lax.broadcasted_iota(jnp.int32, (K * D, K), 0)
    c1 = jax.lax.broadcasted_iota(jnp.int32, (K * D, K), 1)
    ind = jnp.where((r1 >> LOG_D) == c1, 1.0, 0.0)

    r2 = jax.lax.broadcasted_iota(jnp.int32, (K * D, K * D * D), 0)
    c2 = jax.lax.broadcasted_iota(jnp.int32, (K * D, K * D * D), 1)
    rtile = jnp.where(((r2 >> LOG_D) == (c2 >> (2 * LOG_D)))
                      & ((r2 & (D - 1)) == (c2 & (D - 1))), 1.0, 0.0)

    r3 = jax.lax.broadcasted_iota(jnp.int32, (K * D * D, K * D), 0)
    c3 = jax.lax.broadcasted_iota(jnp.int32, (K * D * D, K * D), 1)
    ssum = jnp.where(((r3 >> (2 * LOG_D)) == (c3 >> LOG_D))
                     & (((r3 >> LOG_D) & (D - 1)) == (c3 & (D - 1))), 1.0, 0.0)

    # ---- per-mode Gaussian --------------------------------------------------
    # z_d broadcast across modes as a replication matmul (no jnp.tile / XLU).
    zd_rep = jnp.dot(zd, rrep, preferred_element_type=jnp.float32)      # (TN, K*D)
    z = var * (zd_rep - mu)                                             # (TN, K*D)

    # Strictly-lower-triangular correction for ALL modes in one deep matmul:
    #   z_tiled[:, k*D*D + i*D + j] = z[:, k*D + j]           (via rtile)
    #   corr[:, k*D + i] = sum_j tri_masked[:,k,i,j] * z[:,k,j]  (via ssum)
    # TODO(synk): on v5e, chunk this path per mode (four 128-aligned 256-lane
    # segments) to relieve the single store slot; v6e/v7x keep the extra slot.
    z_tiled = jnp.dot(z, rtile, preferred_element_type=jnp.float32)     # (TN, K*D*D)
    corr = jnp.dot(tri * z_tiled, ssum, preferred_element_type=jnp.float32)  # (TN, K*D)
    z = z + corr

    # Per-mode quadratic form and log-determinant via indicator matmuls.
    sq = jnp.dot(z * z, ind, preferred_element_type=jnp.float32)        # (TN, K)
    if USE_TANH:
        # tanh keeps logvar in [-1,1] so log(exp(logvar)+1e-8) == logvar to <3e-8.
        logdet = jnp.dot(logvar, ind, preferred_element_type=jnp.float32)   # (TN, K)
    else:
        logdet = jnp.dot(jnp.log(jnp.abs(var) + EPS), ind,
                         preferred_element_type=jnp.float32)

    comp = -0.5 * sq + logdet + w                                        # (TN, K)
    cm = jnp.max(comp, axis=-1, keepdims=True)
    lse = cm + jnp.log(jnp.sum(jnp.exp(comp - cm), axis=-1, keepdims=True))  # (TN, 1)
    nll = -(LOGC + lse)                                                  # (TN, 1)

    # Per-tile partial SUM, written lane-dense (mean is finished in wrapper).
    out_ref[...] = jnp.broadcast_to(jnp.sum(nll, axis=0, keepdims=True), (1, 128))


# --------------------- one-time host-side parameter packing ------------------
def prepare_cond_params(params):
    """Build fused / padded weight matrices ONCE (not per step).

    Returns a pytree of device arrays to pass to the jitted forward:
      w1: (D, 4*HID), b1: (1, 4*HID)   -- fused first layers
      w2: (4*HID, 1408), b2: (1, 1408) -- fused second layers, 128-aligned
          segments, zero-row-padded per head, tril(-1) mask folded into tri.
    """
    w1 = np.concatenate([np.asarray(params[n]["w1"], np.float32) for n in _FF_ORDER], axis=1)
    b1 = np.concatenate([np.asarray(params[n]["b1"], np.float32) for n in _FF_ORDER], axis=1)

    # strict-lower-triangular column mask for the tri head (keep i > j)
    cols = np.arange(K * D * D)
    i_idx = (cols // D) % D
    j_idx = cols % D
    tri_mask = (i_idx > j_idx).astype(np.float32)[None, :]            # (1, K*D*D)

    w2 = np.zeros((len(_FF_ORDER) * HID, W2_COLS), np.float32)
    b2 = np.zeros((1, W2_COLS), np.float32)
    for idx, name in enumerate(_FF_ORDER):
        w2_blk = np.asarray(params[name]["w2"], np.float32)           # (HID, out)
        b2_blk = np.asarray(params[name]["b2"], np.float32)           # (1, out)
        if name == "tri":
            w2_blk = w2_blk * tri_mask
            b2_blk = b2_blk * tri_mask
        off, wid = _SEG_OFF[name], _SEG_WID[name]
        w2[idx * HID:(idx + 1) * HID, off:off + wid] = w2_blk
        b2[:, off:off + wid] = b2_blk
    return {"w1": jnp.asarray(w1), "b1": jnp.asarray(b1),
            "w2": jnp.asarray(w2), "b2": jnp.asarray(b2)}


# ------------------------------ jitted wrapper --------------------------------
@partial(jax.jit, static_argnames=("num_batch_tiles",))
def cond_kernel_forward(prep, z_c, z_d, num_batch_tiles=1):
    """mean(-logpdf(z_c, z_d)).  Set num_batch_tiles=2 on v7x to use both
    TensorCores; keep 1 on v5e/v6e (single TC, extra steps only add overhead)."""
    n, d = z_c.shape
    t = num_batch_tiles
    assert d == D and n % t == 0 and (n // t) % 8 == 0
    tn = n // t

    weight_args = (prep["w1"], prep["b1"], prep["w2"], prep["b2"])
    in_specs = ([pl.BlockSpec((tn, D), lambda i: (i, 0)),
                 pl.BlockSpec((tn, D), lambda i: (i, 0))]
                + [pl.BlockSpec(w.shape, lambda i: (0, 0)) for w in weight_args])

    out = pl.pallas_call(
        cond_kernel,
        out_shape=jax.ShapeDtypeStruct((1, 128 * t), jnp.float32),
        grid=(t,),
        in_specs=in_specs,
        out_specs=pl.BlockSpec((1, 128), lambda i: (0, i)),
        compiler_params=pltpu.CompilerParams(dimension_semantics=("parallel",)),
    )(z_c, z_d, *weight_args)

    # Each 128-lane segment holds that tile's partial sum broadcast over lanes.
    partial_sums = out.reshape(t, 128)[:, 0]
    return jnp.sum(partial_sums) / n


# -------------------------- pure-JAX reference -------------------------------
def ref_forward(params, z_c, z_d):
    hp = jax.lax.Precision.HIGHEST

    def ff(p, x):
        h = jnp.maximum(jnp.dot(x, p["w1"], precision=hp) + p["b1"], 0.0)
        return jnp.dot(h, p["w2"], precision=hp) + p["b2"]

    w = jax.nn.log_softmax(ff(params["weight"], z_c), axis=-1)
    mu = ff(params["mu"], z_c).reshape(-1, K, D)
    logvar = ff(params["logvar"], z_c)
    if USE_TANH:
        logvar = jnp.tanh(logvar)
    var = jnp.exp(logvar).reshape(-1, K, D)
    z = z_d[:, None, :] - mu
    z = var * z
    tri = ff(params["tri"], z_c).reshape(-1, K, D, D)
    mask = jnp.tril(jnp.ones((D, D), jnp.float32), -1)
    z = z + jnp.einsum("nkij,nkj->nki", tri * mask, z, precision=hp)
    sq = jnp.sum(z ** 2, -1)
    comp = -sq / 2.0 + jnp.sum(jnp.log(jnp.abs(var) + EPS), -1) + w
    lse = jax.scipy.special.logsumexp(comp, axis=-1)
    return jnp.mean(-(LOGC + lse))


# --------------------------- deterministic init -------------------------------
def init_ff(key, d_in, d_hid, d_out):
    k1, k2, k3, k4 = jax.random.split(key, 4)
    s1 = 1.0 / np.sqrt(d_in)
    s2 = 1.0 / np.sqrt(d_hid)
    return {
        "w1": jax.random.uniform(k1, (d_in, d_hid), jnp.float32, -s1, s1),
        "b1": jax.random.uniform(k2, (1, d_hid), jnp.float32, -s1, s1),
        "w2": jax.random.uniform(k3, (d_hid, d_out), jnp.float32, -s2, s2),
        "b2": jax.random.uniform(k4, (1, d_out), jnp.float32, -s2, s2),
    }


if __name__ == "__main__":
    key = jax.random.PRNGKey(0)
    kp, kz = jax.random.split(key)
    ks = jax.random.split(kp, 4)
    params = {
        "weight": init_ff(ks[0], D, HID, K),
        "mu": init_ff(ks[1], D, HID, K * D),
        "logvar": init_ff(ks[2], D, HID, K * D),
        "tri": init_ff(ks[3], D, HID, K * D * D),
    }
    kc, kd = jax.random.split(kz)
    z_c = jax.random.normal(kc, (N, D), jnp.float32)
    z_d = jax.random.normal(kd, (N, D), jnp.float32)

    prep = prepare_cond_params(params)        # one-time packing (outside the step)
    out = cond_kernel_forward(prep, z_c, z_d)
    jax.block_until_ready(out)

    ref = ref_forward(params, z_c, z_d)
    assert np.allclose(np.asarray(out), np.asarray(ref), rtol=2e-3, atol=2e-3), (
        float(out), float(ref))
    print("KERNEL_OK")
</pallas_src>

<mosaic_0001>
module attributes {stable_mosaic.version = 11 : i64} {
  func.func @cond_kernel(%arg0: i32, %arg1: memref<128x16xf32, #tpu.memory_space<vmem>>, %arg2: memref<128x16xf32, #tpu.memory_space<vmem>>, %arg3: memref<16x64xf32, #tpu.memory_space<vmem>>, %arg4: memref<1x64xf32, #tpu.memory_space<vmem>>, %arg5: memref<64x1408xf32, #tpu.memory_space<vmem>>, %arg6: memref<1x1408xf32, #tpu.memory_space<vmem>>, %arg7: memref<1x128xf32, #tpu.memory_space<vmem>>) attributes {dimension_semantics = [#tpu.dimension_semantics<parallel>], iteration_bounds = array<i64: 1>, scalar_prefetch = 0 : i64, scratch_operands = 0 : i64, tpu.core_type = #tpu.core_type<tc>, window_params = [{transform_indices = @transform_0, window_bounds = array<i64: 128, 16>}, {transform_indices = @transform_1, window_bounds = array<i64: 128, 16>}, {pipeline_mode = #tpu.pipeline_mode<synchronous>, transform_indices = @transform_2, window_bounds = array<i64: 16, 64>}, {pipeline_mode = #tpu.pipeline_mode<synchronous>, transform_indices = @transform_3, window_bounds = array<i64: 1, 64>}, {pipeline_mode = #tpu.pipeline_mode<synchronous>, transform_indices = @transform_4, window_bounds = array<i64: 64, 1408>}, {pipeline_mode = #tpu.pipeline_mode<synchronous>, transform_indices = @transform_5, window_bounds = array<i64: 1, 1408>}, {transform_indices = @transform_6, window_bounds = array<i64: 1, 128>}]} {
    %c0 = arith.constant 0 : index
    %c0_0 = arith.constant 0 : index
    %0 = vector.load %arg1[%c0, %c0_0] : memref<128x16xf32, #tpu.memory_space<vmem>>, vector<128x16xf32>
    %c0_1 = arith.constant 0 : index
    %c0_2 = arith.constant 0 : index
    %1 = vector.load %arg2[%c0_1, %c0_2] : memref<128x16xf32, #tpu.memory_space<vmem>>, vector<128x16xf32>
    %c0_3 = arith.constant 0 : index
    %c0_4 = arith.constant 0 : index
    %2 = vector.load %arg3[%c0_3, %c0_4] : memref<16x64xf32, #tpu.memory_space<vmem>>, vector<16x64xf32>
    %cst = arith.constant dense<0.000000e+00> : vector<128x64xf32>
    %3 = tpu.matmul %0, %2, %cst {dimension_numbers = #tpu.dot_dimension_numbers<[1], [0], [0], [1], [0, 0, 1, 1], [], []>} : vector<128x16xf32>, vector<16x64xf32>, vector<128x64xf32> -> vector<128x64xf32>
    %c0_5 = arith.constant 0 : index
    %c0_6 = arith.constant 0 : index
    %4 = vector.load %arg4[%c0_5, %c0_6] : memref<1x64xf32, #tpu.memory_space<vmem>>, vector<1x64xf32>
    %5 = vector.broadcast %4 : vector<1x64xf32> to vector<128x64xf32>
    %6 = arith.addf %3, %5 : vector<128x64xf32>
    %cst_7 = arith.constant 0.000000e+00 : f32
    %7 = vector.broadcast %cst_7 : f32 to vector<128x64xf32>
    %8 = arith.maximumf %6, %7 : vector<128x64xf32>
    %c0_8 = arith.constant 0 : index
    %c0_9 = arith.constant 0 : index
    %9 = vector.load %arg5[%c0_8, %c0_9] : memref<64x1408xf32, #tpu.memory_space<vmem>>, vector<64x1408xf32>
    %cst_10 = arith.constant dense<0.000000e+00> : vector<128x1408xf32>
    %10 = tpu.matmul %8, %9, %cst_10 {dimension_numbers = #tpu.dot_dimension_numbers<[1], [0], [0], [1], [0, 0, 1, 1], [], []>} : vector<128x64xf32>, vector<64x1408xf32>, vector<128x1408xf32> -> vector<128x1408xf32>
    %c0_11 = arith.constant 0 : index
    %c0_12 = arith.constant 0 : index
    %11 = vector.load %arg6[%c0_11, %c0_12] : memref<1x1408xf32, #tpu.memory_space<vmem>>, vector<1x1408xf32>
    %12 = vector.broadcast %11 : vector<1x1408xf32> to vector<128x1408xf32>
    %13 = arith.addf %10, %12 : vector<128x1408xf32>
    %14 = vector.extract_strided_slice %13 {offsets = [0, 0], sizes = [128, 4], strides = [1, 1]} : vector<128x1408xf32> to vector<128x4xf32>
    %15 = vector.extract_strided_slice %13 {offsets = [0, 128], sizes = [128, 64], strides = [1, 1]} : vector<128x1408xf32> to vector<128x64xf32>
    %16 = vector.extract_strided_slice %13 {offsets = [0, 256], sizes = [128, 64], strides = [1, 1]} : vector<128x1408xf32> to vector<128x64xf32>
    %17 = vector.extract_strided_slice %13 {offsets = [0, 384], sizes = [128, 1024], strides = [1, 1]} : vector<128x1408xf32> to vector<128x1024xf32>
    %cst_13 = arith.constant dense<0xFF800000> : vector<128xf32>
    %18 = vector.multi_reduction <maximumf>, %14, %cst_13 [1] : vector<128x4xf32> to vector<128xf32>
    %19 = vector.shape_cast %18 : vector<128xf32> to vector<128x1xf32>
    %20 = vector.broadcast %19 : vector<128x1xf32> to vector<128x4xf32>
    %21 = arith.subf %14, %20 : vector<128x4xf32>
    %22 = vector.broadcast %19 : vector<128x1xf32> to vector<128x4xf32>
    %23 = arith.subf %14, %22 : vector<128x4xf32>
    %24 = math.exp %23 : vector<128x4xf32>
    %cst_14 = arith.constant dense<0.000000e+00> : vector<128xf32>
    %25 = vector.multi_reduction <add>, %24, %cst_14 [1] : vector<128x4xf32> to vector<128xf32>
    %26 = vector.shape_cast %25 : vector<128xf32> to vector<128x1xf32>
    %27 = math.log %26 : vector<128x1xf32>
    %28 = vector.broadcast %27 : vector<128x1xf32> to vector<128x4xf32>
    %29 = arith.subf %21, %28 : vector<128x4xf32>
    %30 = math.tanh %16 : vector<128x64xf32>
    %31 = math.exp %30 : vector<128x64xf32>
    %32 = tpu.iota {dimensions = array<i32: 0>} : vector<16x64xi32>
    %33 = tpu.iota {dimensions = array<i32: 1>} : vector<16x64xi32>
    %c15_i32 = arith.constant 15 : i32
    %34 = vector.broadcast %c15_i32 : i32 to vector<16x64xi32>
    %35 = arith.andi %33, %34 : vector<16x64xi32>
    %36 = arith.cmpi eq, %35, %32 : vector<16x64xi32>
    %cst_15 = arith.constant 1.000000e+00 : f32
    %cst_16 = arith.constant 0.000000e+00 : f32
    %37 = vector.broadcast %cst_15 : f32 to vector<16x64xf32>
    %38 = vector.broadcast %cst_16 : f32 to vector<16x64xf32>
    %39 = arith.select %36, %37, %38 : vector<16x64xi1>, vector<16x64xf32>
    %40 = tpu.iota {dimensions = array<i32: 0>} : vector<64x4xi32>
    %41 = tpu.iota {dimensions = array<i32: 1>} : vector<64x4xi32>
    %c4_i32 = arith.constant 4 : i32
    %42 = vector.broadcast %c4_i32 : i32 to vector<64x4xi32>
    %43 = arith.shrsi %40, %42 : vector<64x4xi32>
    %44 = arith.cmpi eq, %43, %41 : vector<64x4xi32>
    %cst_17 = arith.constant 1.000000e+00 : f32
    %cst_18 = arith.constant 0.000000e+00 : f32
    %45 = vector.broadcast %cst_17 : f32 to vector<64x4xf32>
    %46 = vector.broadcast %cst_18 : f32 to vector<64x4xf32>
    %47 = arith.select %44, %45, %46 : vector<64x4xi1>, vector<64x4xf32>
    %48 = tpu.iota {dimensions = array<i32: 0>} : vector<64x1024xi32>
    %49 = tpu.iota {dimensions = array<i32: 1>} : vector<64x1024xi32>
    %c4_i32_19 = arith.constant 4 : i32
    %50 = vector.broadcast %c4_i32_19 : i32 to vector<64x1024xi32>
    %51 = arith.shrsi %48, %50 : vector<64x1024xi32>
    %c8_i32 = arith.constant 8 : i32
    %52 = vector.broadcast %c8_i32 : i32 to vector<64x1024xi32>
    %53 = arith.shrsi %49, %52 : vector<64x1024xi32>
    %54 = arith.cmpi eq, %51, %53 : vector<64x1024xi32>
    %c15_i32_20 = arith.constant 15 : i32
    %55 = vector.broadcast %c15_i32_20 : i32 to vector<64x1024xi32>
    %56 = arith.andi %48, %55 : vector<64x1024xi32>
    %c15_i32_21 = arith.constant 15 : i32
    %57 = vector.broadcast %c15_i32_21 : i32 to vector<64x1024xi32>
    %58 = arith.andi %49, %57 : vector<64x1024xi32>
    %59 = arith.cmpi eq, %56, %58 : vector<64x1024xi32>
    %60 = arith.andi %54, %59 : vector<64x1024xi1>
    %cst_22 = arith.constant 1.000000e+00 : f32
    %cst_23 = arith.constant 0.000000e+00 : f32
    %61 = vector.broadcast %cst_22 : f32 to vector<64x1024xf32>
    %62 = vector.broadcast %cst_23 : f32 to vector<64x1024xf32>
    %63 = arith.select %60, %61, %62 : vector<64x1024xi1>, vector<64x1024xf32>
    %64 = tpu.iota {dimensions = array<i32: 0>} : vector<1024x64xi32>
    %65 = tpu.iota {dimensions = array<i32: 1>} : vector<1024x64xi32>
    %c8_i32_24 = arith.constant 8 : i32
    %66 = vector.broadcast %c8_i32_24 : i32 to vector<1024x64xi32>
    %67 = arith.shrsi %64, %66 : vector<1024x64xi32>
    %c4_i32_25 = arith.constant 4 : i32
    %68 = vector.broadcast %c4_i32_25 : i32 to vector<1024x64xi32>
    %69 = arith.shrsi %65, %68 : vector<1024x64xi32>
    %70 = arith.cmpi eq, %67, %69 : vector<1024x64xi32>
    %c4_i32_26 = arith.constant 4 : i32
    %71 = vector.broadcast %c4_i32_26 : i32 to vector<1024x64xi32>
    %72 = arith.shrsi %64, %71 : vector<1024x64xi32>
    %c15_i32_27 = arith.constant 15 : i32
    %73 = vector.broadcast %c15_i32_27 : i32 to vector<1024x64xi32>
    %74 = arith.andi %72, %73 : vector<1024x64xi32>
    %c15_i32_28 = arith.constant 15 : i32
    %75 = vector.broadcast %c15_i32_28 : i32 to vector<1024x64xi32>
    %76 = arith.andi %65, %75 : vector<1024x64xi32>
    %77 = arith.cmpi eq, %74, %76 : vector<1024x64xi32>
    %78 = arith.andi %70, %77 : vector<1024x64xi1>
    %cst_29 = arith.constant 1.000000e+00 : f32
    %cst_30 = arith.constant 0.000000e+00 : f32
    %79 = vector.broadcast %cst_29 : f32 to vector<1024x64xf32>
    %80 = vector.broadcast %cst_30 : f32 to vector<1024x64xf32>
    %81 = arith.select %78, %79, %80 : vector<1024x64xi1>, vector<1024x64xf32>
    %cst_31 = arith.constant dense<0.000000e+00> : vector<128x64xf32>
    %82 = tpu.matmul %1, %39, %cst_31 {dimension_numbers = #tpu.dot_dimension_numbers<[1], [0], [0], [1], [0, 0, 1, 1], [], []>} : vector<128x16xf32>, vector<16x64xf32>, vector<128x64xf32> -> vector<128x64xf32>
    %83 = arith.subf %82, %15 : vector<128x64xf32>
    %84 = arith.mulf %31, %83 : vector<128x64xf32>
    %cst_32 = arith.constant dense<0.000000e+00> : vector<128x1024xf32>
    %85 = tpu.matmul %84, %63, %cst_32 {dimension_numbers = #tpu.dot_dimension_numbers<[1], [0], [0], [1], [0, 0, 1, 1], [], []>} : vector<128x64xf32>, vector<64x1024xf32>, vector<128x1024xf32> -> vector<128x1024xf32>
    %86 = arith.mulf %17, %85 : vector<128x1024xf32>
    %cst_33 = arith.constant dense<0.000000e+00> : vector<128x64xf32>
    %87 = tpu.matmul %86, %81, %cst_33 {dimension_numbers = #tpu.dot_dimension_numbers<[1], [0], [0], [1], [0, 0, 1, 1], [], []>} : vector<128x1024xf32>, vector<1024x64xf32>, vector<128x64xf32> -> vector<128x64xf32>
    %88 = arith.addf %84, %87 : vector<128x64xf32>
    %89 = arith.mulf %88, %88 : vector<128x64xf32>
    %cst_34 = arith.constant dense<0.000000e+00> : vector<128x4xf32>
    %90 = tpu.matmul %89, %47, %cst_34 {dimension_numbers = #tpu.dot_dimension_numbers<[1], [0], [0], [1], [0, 0, 1, 1], [], []>} : vector<128x64xf32>, vector<64x4xf32>, vector<128x4xf32> -> vector<128x4xf32>
    %cst_35 = arith.constant dense<0.000000e+00> : vector<128x4xf32>
    %91 = tpu.matmul %30, %47, %cst_35 {dimension_numbers = #tpu.dot_dimension_numbers<[1], [0], [0], [1], [0, 0, 1, 1], [], []>} : vector<128x64xf32>, vector<64x4xf32>, vector<128x4xf32> -> vector<128x4xf32>
    %cst_36 = arith.constant -5.000000e-01 : f32
    %92 = vector.broadcast %cst_36 : f32 to vector<128x4xf32>
    %93 = arith.mulf %92, %90 : vector<128x4xf32>
    %94 = arith.addf %93, %91 : vector<128x4xf32>
    %95 = arith.addf %94, %29 : vector<128x4xf32>
    %cst_37 = arith.constant dense<0xFF800000> : vector<128xf32>
    %96 = vector.multi_reduction <maximumf>, %95, %cst_37 [1] : vector<128x4xf32> to vector<128xf32>
    %97 = vector.shape_cast %96 : vector<128xf32> to vector<128x1xf32>
    %98 = vector.broadcast %97 : vector<128x1xf32> to vector<128x4xf32>
    %99 = arith.subf %95, %98 : vector<128x4xf32>
    %100 = math.exp %99 : vector<128x4xf32>
    %cst_38 = arith.constant dense<0.000000e+00> : vector<128xf32>
    %101 = vector.multi_reduction <add>, %100, %cst_38 [1] : vector<128x4xf32> to vector<128xf32>
    %102 = vector.shape_cast %101 : vector<128xf32> to vector<128x1xf32>
    %103 = math.log %102 : vector<128x1xf32>
    %104 = arith.addf %97, %103 : vector<128x1xf32>
    %cst_39 = arith.constant -14.7030163 : f32
    %105 = vector.broadcast %cst_39 : f32 to vector<128x1xf32>
    %106 = arith.addf %105, %104 : vector<128x1xf32>
    %cst_40 = arith.constant 0.000000e+00 : f32
    %107 = vector.broadcast %cst_40 : f32 to vector<128x1xf32>
    %108 = arith.subf %107, %106 : vector<128x1xf32>
    %cst_41 = arith.constant dense<0.000000e+00> : vector<1xf32>
    %109 = vector.multi_reduction <add>, %108, %cst_41 [0] : vector<128x1xf32> to vector<1xf32>
    %110 = vector.shape_cast %109 : vector<1xf32> to vector<1x1xf32>
    %111 = vector.shape_cast %110 : vector<1x1xf32> to vector<1x1xf32>
    %112 = vector.broadcast %111 : vector<1x1xf32> to vector<1x128xf32>
    %c0_42 = arith.constant 0 : index
    %c0_43 = arith.constant 0 : index
    %113 = vector.load %arg7[%c0_42, %c0_43] : memref<1x128xf32, #tpu.memory_space<vmem>>, vector<1x128xf32>
    tpu.vector_store %arg7[%c0_42, %c0_43], %112 {strides = array<i32>} : memref<1x128xf32, #tpu.memory_space<vmem>>, vector<1x128xf32>,
    return
  }
  func.func @transform_0(%arg0: i32) -> (i32, i32) {
    %c0_i32 = arith.constant 0 : i32
    %c0_i32_0 = arith.constant 0 : i32
    return %arg0, %c0_i32 : i32, i32
  }
  func.func @transform_1(%arg0: i32) -> (i32, i32) {
    %c0_i32 = arith.constant 0 : i32
    %c0_i32_0 = arith.constant 0 : i32
    return %arg0, %c0_i32 : i32, i32
  }
  func.func @transform_2(%arg0: i32) -> (i32, i32) {
    %c0_i32 = arith.constant 0 : i32
    %c0_i32_0 = arith.constant 0 : i32
    %c0_i32_1 = arith.constant 0 : i32
    return %c0_i32, %c0_i32_0 : i32, i32
  }
  func.func @transform_3(%arg0: i32) -> (i32, i32) {
    %c0_i32 = arith.constant 0 : i32
    %c0_i32_0 = arith.constant 0 : i32
    %c0_i32_1 = arith.constant 0 : i32
    return %c0_i32, %c0_i32_0 : i32, i32
  }
  func.func @transform_4(%arg0: i32) -> (i32, i32) {
    %c0_i32 = arith.constant 0 : i32
    %c0_i32_0 = arith.constant 0 : i32
    %c0_i32_1 = arith.constant 0 : i32
    return %c0_i32, %c0_i32_0 : i32, i32
  }
  func.func @transform_5(%arg0: i32) -> (i32, i32) {
    %c0_i32 = arith.constant 0 : i32
    %c0_i32_0 = arith.constant 0 : i32
    %c0_i32_1 = arith.constant 0 : i32
    return %c0_i32, %c0_i32_0 : i32, i32
  }
  func.func @transform_6(%arg0: i32) -> (i32, i32) {
    %c0_i32 = arith.constant 0 : i32
    %c0_i32_0 = arith.constant 0 : i32
    return %c0_i32, %arg0 : i32, i32
  }
}

</mosaic_0001>

<bundles_post_ra>
// kernel: cond_kernel_forward.1
= control target key start
LH: loop header
LB: loop body
LE: loop exit
PB: predicated region body
PF: predicated region fallthrough
CT: control target
= control target key end

     0   :  { %11 = vsyncpa [#allocation3], 0  ;;  %s6944_s21 = smov [#allocation2]   ;;  %s12638_s0 = inlined_call_operand.vmem [shape: f32[128,16], index: 0, kind: input, shape index: {}]   ;;  %s12639_s1 = inlined_call_operand.vmem [shape: f32[128,16], index: 1, kind: input, shape index: {}]   ;;  %s12640_s2 = inlined_call_operand.vmem [shape: f32[16,64], index: 2, kind: input, shape index: {}]   ;;  %s12641_s3 = inlined_call_operand.vmem [shape: f32[1,64], index: 3, kind: input, shape index: {}]   ;;  %s12642_s4 = inlined_call_operand.hbm [shape: f32[64,1408], index: 4, kind: input, shape index: {}]   ;;  %s12643_s5 = inlined_call_operand.vmem [shape: f32[1,1408], index: 5, kind: input, shape index: {}]   ;;  %s12644_s6 = inlined_call_operand.vmem [shape: f32[1,128], index: 6, kind: output, shape index: {}]  }
   0x1   :  { %s25_s22 = sshll.u32 %s6944_s21, 4  ;;  %s6920_s25 = scalar_lea.hbm %s12642_s4, 11264  ;;  %s26_s22 = int_to_ptr.vmem [resolvable:$true] %s25_s22 }
   0x2   :  { %p6921_p0 = scmp.ne.s32.totalorder %s12642_s4, %s6920_s25  ;;  %p6924_p1 = scmp.lt.u32.totalorder %s6920_s25, %s12642_s4 }
   0x4   :  { %p6926_p2 = pnand %p6924_p1, %p6921_p0 }
   0x6   :  { %6929 = shalt.err (!%p6926_p2)
}
   0x7   :  { %s6930_s30 = scalar_lea.vmem %s26_s22, 11264  ;;  %p6935_p4 = scmp.lt.s32.totalorder %s26_s22, %s26_s22 }
   0x8   :  { %p6931_p3 = scmp.ne.s32.totalorder %s26_s22, %s6930_s30  ;;  %p6936_p5 = scmp.lt.s32.totalorder %s6930_s30, %s6930_s30 }
   0xa   :  { %p6937_p6 = por %p6936_p5, %p6935_p4 }
   0xc   :  { %p6938_p7 = pnand %p6937_p6, %p6931_p3 }
   0xe   :  { %6941 = shalt.err (!%p6938_p7)
}
   0xf   :  { %s6945_s7 = smov 1408   ;;  %s6946_s8 = smov 88  }
  0x10   :  { %31 = dma.hbm_to_vmem [thread:$0]  %s12642_s4, 11264, %s26_s22, [#allocation3], %s6945_s7, %s6945_s7, %s6946_s8  }
  0x11   :  { %6942 = dma.done.wait [#allocation3], 11264  }
  0x12   :  { %6943 = vsyncadd [#allocation3], 4294956032  ;;  %vm78_vm0 = vcmask 130048   ;;  %v69_v0 = vld [vmem:[%s12640_s2] sm:$0xff]  ;;  %v70_v1 = vld [vmem:[%s12640_s2 + $0x8] sm:$0xff]  ;;  %vm12674_vm1 = vcmask 523264  }
  0x13   :  { %v37_v2 = vld [vmem:[%s12638_s0] sm:$0xff]  ;;  %v6391_v3 = vpack.c.bf16 %v70_v1, %v69_v0  ;;  %v38_v5 = vld [vmem:[%s12638_s0 + $0x8] sm:$0xff]  ;;  %v39_v7 = vld [vmem:[%s12638_s0 + $0x10] sm:$0xff] }
  0x14   :  { %6219 = vmatprep.mubr.msk.f32.mxu0 %vm78_vm0, %v37_v2  ;;  %v45_v4 = vld [vmem:[%s12638_s0 + $0x40] sm:$0xff]  ;;  %v46_v6 = vld [vmem:[%s12638_s0 + $0x48] sm:$0xff]  ;;  %v47_v8 = vld [vmem:[%s12638_s0 + $0x50] sm:$0xff] }
  0x15   :  { %6392 = vmatprep.subr.bf16.mxu0 %v6391_v3  ;;  %6719 = vmatprep.subr.bf16.mxu1 %v6391_v3  ;;  %v40_v9 = vld [vmem:[%s12638_s0 + $0x18] sm:$0xff]  ;;  %v302_v12 = vld [vmem:[#allocation2 + $0x70] sm:$0xff]  ;;  %v289_v13 = vld [vmem:[#allocation2 + $0x8] sm:$0xff] }
  0x16   :  { %6394 = vmatpush3.bf16.msra.mxu0 %v6391_v3  ;;  %6720 = vmatpush3.bf16.msra.mxu1 %v6391_v3  ;;  %v48_v10 = vld [vmem:[%s12638_s0 + $0x58] sm:$0xff]  ;;  %v41_v14 = vld [vmem:[%s12638_s0 + $0x20] sm:$0xff]  ;;  %v290_v18 = vld [vmem:[#allocation2 + $0x10] sm:$0xff] }
  0x17   :  { %6231 = vmatprep.mubr.msk.f32.mxu1 %vm78_vm0, %v45_v4  ;;  %v291_v11 = vld [vmem:[#allocation2 + $0x18] sm:$0xff]  ;;  %v49_v15 = vld [vmem:[%s12638_s0 + $0x60] sm:$0xff]  ;;  %v301_v19 = vld [vmem:[#allocation2 + $0x68] sm:$0xff] }
  0x18   :  { %v6411_v16 = vpack.c.bf16 %v302_v12, %v291_v11  ;;  %v300_v17 = vld [vmem:[#allocation2 + $0x60] sm:$0xff]  ;;  %v6413_v21 = vpack.c.bf16 %v301_v19, %v290_v18  ;;  %v299_v23 = vld [vmem:[#allocation2 + $0x58] sm:$0xff]  ;;  %v313_v24 = vld [vmem:[#allocation2 + $0xc8] sm:$0xff] }
  0x19   :  { %6220 = vmatmul.mubr.msk.f32.vlgmr.msra.gmra.mrb[0].mxu0 %vm78_vm0, %v38_v5  ;;  %6232 = vmatmul.mubr.msk.f32.vlgmr.msra.gmra.mrb[0].mxu1 %vm78_vm0, %v46_v6  ;;  %v6395_v20 = vpack.c.bf16 %v300_v17, %v289_v13  ;;  %v288_v22 = vld [vmem:[#allocation2] sm:$0xff]  ;;  %v311_v27 = vld [vmem:[#allocation2 + $0xb8] sm:$0xff]  ;;  %v322_v28 = vld [vmem:[#allocation2 + $0x110] sm:$0xff]  ;;  %v12646_v5 = vmov 0.0  }
  0x1a   :  { %6222 = vmatprep.mubr.msk.f32.mxu0 %vm78_vm0, %v39_v7  ;;  %6234 = vmatprep.mubr.msk.f32.mxu1 %vm78_vm0, %v47_v8  ;;  %v6397_v25 = vpack.c.bf16 %v299_v23, %v288_v22  ;;  %v324_v26 = vld [vmem:[#allocation2 + $0x120] sm:$0xff]  ;;  %v42_v29 = vld [vmem:[%s12638_s0 + $0x28] sm:$0xff]  ;;  %v6399_v32 = vpack.c.bf16 %v322_v28, %v311_v27  ;;  %v323_v34 = vld [vmem:[#allocation2 + $0x118] sm:$0xff] }
  0x1b   :  { %6412 = vmatprep.subr.bf16.mxu0 %v6411_v16  ;;  %v50_v30 = vld [vmem:[%s12638_s0 + $0x68] sm:$0xff]  ;;  %6396 = vmatprep.subr.bf16.mxu1 %v6395_v20  ;;  %v6415_v31 = vpack.c.bf16 %v324_v26, %v313_v24  ;;  %v312_v33 = vld [vmem:[#allocation2 + $0xc0] sm:$0xff]  ;;  %v310_v35 = vld [vmem:[#allocation2 + $0xb0] sm:$0xff] }
  0x1c   :  { %6414 = vmatpush1.bf16.msra.mxu0 %v6413_v21  ;;  %v6417_v36 = vpack.c.bf16 %v323_v34, %v312_v33  ;;  %v321_v37 = vld [vmem:[#allocation2 + $0x108] sm:$0xff]  ;;  %v335_v38 = vld [vmem:[#allocation2 + $0x178] sm:$0xff]  ;;  %v346_v39 = vld [vmem:[#allocation2 + $0x1d0] sm:$0xff]  ;;  %6398 = vmatpush1.bf16.msra.mxu1 %v6397_v25 }
  0x1d   :  { %6223 = vmatmul.mubr.msk.f32.gmra.mrb[2].mxu0 %vm78_vm0, %v40_v9  ;;  %6235 = vmatmul.mubr.msk.f32.gmra.mrb[2].mxu1 %vm78_vm0, %v48_v10  ;;  %v333_v40 = vld [vmem:[#allocation2 + $0x168] sm:$0xff]  ;;  %v344_v41 = vld [vmem:[#allocation2 + $0x1c0] sm:$0xff]  ;;  %v334_v42 = vld [vmem:[#allocation2 + $0x170] sm:$0xff]  ;;  %v6401_v45 = vpack.c.bf16 %v321_v37, %v310_v35  ;;  %v6419_v46 = vpack.c.bf16 %v346_v39, %v335_v38 }
  0x1e   :  { %6225 = vmatprep.mubr.msk.f32.mxu0 %vm78_vm0, %v41_v14  ;;  %6237 = vmatprep.mubr.msk.f32.mxu1 %vm78_vm0, %v49_v15  ;;  %v43_v43 = vld [vmem:[%s12638_s0 + $0x30] sm:$0xff]  ;;  %v345_v47 = vld [vmem:[#allocation2 + $0x1c8] sm:$0xff]  ;;  %v6403_v48 = vpack.c.bf16 %v344_v41, %v333_v40  ;;  %v332_v50 = vld [vmem:[#allocation2 + $0x160] sm:$0xff] }
  0x1f   :  { %v51_v44 = vld [vmem:[%s12638_s0 + $0x70] sm:$0xff]  ;;  %6416 = vmatprep.subr.bf16.mxu0 %v6415_v31  ;;  %6400 = vmatprep.subr.bf16.mxu1 %v6399_v32  ;;  %v6421_v49 = vpack.c.bf16 %v345_v47, %v334_v42  ;;  %v343_v51 = vld [vmem:[#allocation2 + $0x1b8] sm:$0xff]  ;;  %v357_v55 = vld [vmem:[#allocation2 + $0x228] sm:$0xff] }
  0x20   :  { %6418 = vmatpush1.bf16.msra.mxu0 %v6417_v36  ;;  %v44_v52 = vld [vmem:[%s12638_s0 + $0x38] sm:$0xff]  ;;  %6402 = vmatpush1.bf16.msra.mxu1 %v6401_v45  ;;  %v6405_v54 = vpack.c.bf16 %v343_v51, %v332_v50  ;;  %v368_v56 = vld [vmem:[#allocation2 + $0x280] sm:$0xff]  ;;  %v366_v59 = vld [vmem:[#allocation2 + $0x270] sm:$0xff] }
  0x21   :  { %6226 = vmatmul.mubr.msk.f32.gmra.mrb[4].mxu0 %vm78_vm0, %v42_v29  ;;  %6238 = vmatmul.mubr.msk.f32.gmra.mrb[4].mxu1 %vm78_vm0, %v50_v30  ;;  %v52_v53 = vld [vmem:[%s12638_s0 + $0x78] sm:$0xff]  ;;  %v6423_v58 = vpack.c.bf16 %v368_v56, %v357_v55  ;;  %v356_v60 = vld [vmem:[#allocation2 + $0x220] sm:$0xff]  ;;  %v354_v63 = vld [vmem:[#allocation2 + $0x210] sm:$0xff] }
  0x22   :  { %6228 = vmatprep.mubr.msk.f32.mxu0 %vm78_vm0, %v43_v43  ;;  %6240 = vmatprep.mubr.msk.f32.mxu1 %vm78_vm0, %v51_v44  ;;  %v355_v57 = vld [vmem:[#allocation2 + $0x218] sm:$0xff]  ;;  %v365_v0 = vld [vmem:[#allocation2 + $0x268] sm:$0xff]  ;;  %v306_v4 = vld [vmem:[#allocation2 + $0x90] sm:$0xff] }
  0x23   :  { %6420 = vmatprep.subr.bf16.mxu0 %v6419_v46  ;;  %6404 = vmatprep.subr.bf16.mxu1 %v6403_v48  ;;  %v6407_v61 = vpack.c.bf16 %v366_v59, %v355_v57  ;;  %v367_v62 = vld [vmem:[#allocation2 + $0x278] sm:$0xff]  ;;  %v6409_v2 = vpack.c.bf16 %v365_v0, %v354_v63  ;;  %v293_v7 = vld [vmem:[#allocation2 + $0x28] sm:$0xff]  ;;  %v304_v8 = vld [vmem:[#allocation2 + $0x80] sm:$0xff] }
  0x24   :  { %6422 = vmatpush1.bf16.msra.mxu0 %v6421_v49  ;;  %6406 = vmatpush1.bf16.msra.mxu1 %v6405_v54  ;;  %v6425_v1 = vpack.c.bf16 %v367_v62, %v356_v60  ;;  %v295_v3 = vld [vmem:[#allocation2 + $0x38] sm:$0xff]  ;;  %v6427_v9 = vpack.c.bf16 %v304_v8, %v293_v7  ;;  %v7071_v10 = vld [vmem:[%s12641_s3] ss:$0 sm:$0xff]  ;;  %v294_v12 = vld [vmem:[#allocation2 + $0x30] sm:$0xff] }
  0x25   :  { %6229 = vmatmul.mubr.msk.f32.gmra.mrb[6].mxu0 %vm78_vm0, %v44_v52  ;;  %6241 = vmatmul.mubr.msk.f32.gmra.mrb[6].mxu1 %vm78_vm0, %v52_v53  ;;  %v6443_v6 = vpack.c.bf16 %v306_v4, %v295_v3  ;;  %v305_v13 = vld [vmem:[#allocation2 + $0x88] sm:$0xff]  ;;  %v328_v17 = vld [vmem:[#allocation2 + $0x140] sm:$0xff]  ;;  %v303_v21 = vld [vmem:[#allocation2 + $0x78] sm:$0xff] }
  0x26   :  { %6424 = vmatprep.subr.bf16.mxu0 %v6423_v58  ;;  %6408 = vmatprep.subr.bf16.mxu1 %v6407_v61  ;;  %v317_v16 = vld [vmem:[#allocation2 + $0xe8] sm:$0xff]  ;;  %v292_v20 = vld [vmem:[#allocation2 + $0x20] sm:$0xff]  ;;  %v6445_v22 = vpack.c.bf16 %v305_v13, %v294_v12  ;;  %v327_v28 = vld [vmem:[#allocation2 + $0x138] sm:$0xff] }
  0x27   :  { %548 = vmatprep.mubr.f32.mxu1 %v12646_v5  ;;  %709 = vmatprep.mubr.f32.mxu0 %v12646_v5  ;;  %v6447_v26 = vpack.c.bf16 %v328_v17, %v317_v16  ;;  %v316_v27 = vld [vmem:[#allocation2 + $0xe0] sm:$0xff]  ;;  %v339_v31 = vld [vmem:[#allocation2 + $0x198] sm:$0xff]  ;;  %v6429_v33 = vpack.c.bf16 %v303_v21, %v292_v20  ;;  %v326_v35 = vld [vmem:[#allocation2 + $0x130] sm:$0xff] }
  0x28   :  { %6426 = vmatpush1.bf16.msra.mxu0 %v6425_v1  ;;  %6410 = vmatpush1.bf16.msra.mxu1 %v6409_v2  ;;  %v315_v34 = vld [vmem:[#allocation2 + $0xd8] sm:$0xff]  ;;  %v350_v37 = vld [vmem:[#allocation2 + $0x1f0] sm:$0xff]  ;;  %v325_v39 = vld [vmem:[#allocation2 + $0x128] sm:$0xff]  ;;  %v6449_v42 = vpack.c.bf16 %v327_v28, %v316_v27 }
  0x29   :  { %6444 = vmatprep.subr.bf16.mxu0 %v6443_v6  ;;  %6428 = vmatprep.subr.bf16.mxu1 %v6427_v9  ;;  %v314_v38 = vld [vmem:[#allocation2 + $0xd0] sm:$0xff]  ;;  %v349_v44 = vld [vmem:[#allocation2 + $0x1e8] sm:$0xff]  ;;  %v6431_v46 = vpack.c.bf16 %v326_v35, %v315_v34  ;;  %v6451_v48 = vpack.c.bf16 %v350_v37, %v339_v31  ;;  %v348_v53 = vld [vmem:[#allocation2 + $0x1e0] sm:$0xff] }
  0x2a   :  { %v338_v43 = vld [vmem:[#allocation2 + $0x190] sm:$0xff]  ;;  %v361_v50 = vld [vmem:[#allocation2 + $0x248] sm:$0xff]  ;;  %v6433_v51 = vpack.c.bf16 %v325_v39, %v314_v38  ;;  %v372_v55 = vld [vmem:[#allocation2 + $0x2a0] sm:$0xff] }
  0x2b   :  { %v337_v52 = vld [vmem:[#allocation2 + $0x188] sm:$0xff]  ;;  %v336_v56 = vld [vmem:[#allocation2 + $0x180] sm:$0xff]  ;;  %v347_v57 = vld [vmem:[#allocation2 + $0x1d8] sm:$0xff]  ;;  %v6453_v60 = vpack.c.bf16 %v349_v44, %v338_v43  ;;  %v6455_v2 = vpack.c.bf16 %v372_v55, %v361_v50  ;;  %v380_v50 = vlaneseq }
  0x2c   :  { %v360_v61 = vld [vmem:[#allocation2 + $0x240] sm:$0xff]  ;;  %v371_v62 = vld [vmem:[#allocation2 + $0x298] sm:$0xff]  ;;  %v6435_v0 = vpack.c.bf16 %v348_v53, %v337_v52  ;;  %v6437_v4 = vpack.c.bf16 %v347_v57, %v336_v56  ;;  %v370_v7 = vld [vmem:[#allocation2 + $0x290] sm:$0xff] }
  0x2d   :  { %v359_v6 = vld [vmem:[#allocation2 + $0x238] sm:$0xff]  ;;  %v358_v8 = vld [vmem:[#allocation2 + $0x230] sm:$0xff]  ;;  %v309_v13 = vld [vmem:[#allocation2 + $0xa8] sm:$0xff]  ;;  %v6457_v16 = vpack.c.bf16 %v371_v62, %v360_v61  ;;  %v7255_v61 = vand.u32 127, %v380_v50 }
  0x2e   :  { %v298_v12 = vld [vmem:[#allocation2 + $0x50] sm:$0xff]  ;;  %v6439_v17 = vpack.c.bf16 %v370_v7, %v359_v6  ;;  %v297_v21 = vld [vmem:[#allocation2 + $0x48] sm:$0xff]  ;;  %v319_v55 = vld [vmem:[#allocation2 + $0xf8] sm:$0xff] }
  0x2f   :  { %v7122_v20 = vpack.c.bf16 %v309_v13, %v298_v12  ;;  %v342_v52 = vld [vmem:[#allocation2 + $0x1b0] sm:$0xff]  ;;  %v353_v57 = vld [vmem:[#allocation2 + $0x208] sm:$0xff]  ;;  %12864 = vst [vmem:[#allocation5_spill] sm:$0xff] %v7255_v61  ;;  %v340_v6 = vld [vmem:[#allocation2 + $0x1a0] sm:$0xff] }
  0x30   :  { %v330_v56 = vld [vmem:[#allocation2 + $0x150] sm:$0xff]  ;;  %v351_v7 = vld [vmem:[#allocation2 + $0x1f8] sm:$0xff] }
  0x31   :  { %v6463_v62 = vpack.c.bf16 %v330_v56, %v319_v55  ;;  %v6469_v13 = vpack.c.bf16 %v351_v7, %v340_v6  ;;  %v1717_v7 = vadd.s32 384, %v7255_v61 }
  0xec   :  { %v6221_v11 = vpop.f32.mrb[0].mxu0  ;;  %v7073_v14 = vpop.f32.mrb[0].mxu1 }
  0xed   :  { %v193_v15 = vpop.f32.mrb[1].mxu0  ;;  %v7075_v18 = vpop.f32.mrb[1].mxu1  ;;  %v199_v23 = vadd.f32 %v6221_v11, %v7071_v10  ;;  %v369_v11 = vld [vmem:[#allocation2 + $0x288] sm:$0xff] }
  0xee   :  { %v194_v19 = vadd.f32 %v7071_v10, %v193_v15 }
  0xef   :  { %v7091_v40 = vmax.f32 %v199_v23, 0.0 }
  0xf0   :  { %v7079_v24 = vmax.f32 %v194_v19, 0.0  ;;  %v6224_v25 = vpop.f32.mrb[2].mxu0  ;;  %v7081_v29 = vpop.f32.mrb[2].mxu1  ;;  %v6441_v19 = vpack.c.bf16 %v369_v11, %v358_v8 }
  0xf1   :  { %v203_v30 = vpop.f32.mrb[3].mxu0  ;;  %v7083_v32 = vpop.f32.mrb[3].mxu1  ;;  %v209_v58 = vadd.f32 %v6224_v25, %v7071_v10 }
  0xf2   :  { %5369 = vmatmul.mubr.msk.f32.vlgmr.msra.gmra.mrb[8].mxu1 %vm12674_vm1, %v7079_v24  ;;  %5385 = vmatmul.mubr.msk.f32.vlgmr.msra.gmra.mrb[8].mxu0 %vm12674_vm1, %v7079_v24  ;;  %v204_v36 = vadd.f32 %v7071_v10, %v203_v30 }
  0xf3   :  { %6446 = vmatpush1.bf16.msra.mxu0 %v6445_v22  ;;  %554 = vmatprep.mubr.f32.mxu1 %v12646_v5  ;;  %v7120_v15 = vmax.f32 %v209_v58, 0.0  ;;  %v308_v22 = vld [vmem:[#allocation2 + $0xa0] sm:$0xff]  ;;  %v318_v58 = vld [vmem:[#allocation2 + $0xf0] sm:$0xff] }
  0xf4   :  { %715 = vmatprep.mubr.f32.mxu0 %v12646_v5  ;;  %v7094_v41 = vpop.f32.mrb[4].mxu0  ;;  %6448 = vmatprep.subr.bf16.mxu0 %v6447_v26  ;;  %v7096_v45 = vpop.f32.mrb[4].mxu1  ;;  %v7100_v54 = vmax.f32 %v204_v36, 0.0  ;;  %v6459_v26 = vpack.c.bf16 %v308_v22, %v297_v21  ;;  %v244_v36 = vadd.f32 %v7071_v10, %v7083_v32 }
  0xf5   :  { %v213_v47 = vpop.f32.mrb[5].mxu0  ;;  %v7098_v49 = vpop.f32.mrb[5].mxu1  ;;  %6430 = vmatpush1.bf16.msra.mxu1 %v6429_v33  ;;  %v219_v25 = vadd.f32 %v7094_v41, %v7071_v10  ;;  %v234_v33 = vadd.f32 %v7071_v10, %v7075_v18  ;;  %v239_v18 = vadd.f32 %v7073_v14, %v7071_v10  ;;  %v249_v14 = vadd.f32 %v7081_v29, %v7071_v10 }
  0xf6   :  { %5370 = vmatmul.mubr.msk.f32.gmra.mrb[10].mxu1 %vm12674_vm1, %v7091_v40  ;;  %5386 = vmatmul.mubr.msk.f32.gmra.mrb[10].mxu0 %vm12674_vm1, %v7091_v40  ;;  %v214_v9 = vadd.f32 %v7071_v10, %v213_v47  ;;  %v7183_v38 = vmax.f32 %v244_v36, 0.0  ;;  %v254_v32 = vadd.f32 %v7071_v10, %v7098_v49  ;;  %v259_v29 = vadd.f32 %v7096_v45, %v7071_v10  ;;  %v320_v47 = vld [vmem:[#allocation2 + $0x100] sm:$0xff]  ;;  %v307_v49 = vld [vmem:[#allocation2 + $0x98] sm:$0xff]  ;;  %v66_v36 = vld [vmem:[%s12639_s1 + $0x68] sm:$0xff] }
  0xf7   :  { %560 = vmatprep.mubr.f32.mxu1 %v12646_v5  ;;  %721 = vmatprep.mubr.f32.mxu0 %v12646_v5  ;;  %v7142_v28 = vmax.f32 %v219_v25, 0.0  ;;  %v7163_v35 = vmax.f32 %v234_v33, 0.0  ;;  %v7181_v37 = vmax.f32 %v239_v18, 0.0  ;;  %v7201_v39 = vmax.f32 %v249_v14, 0.0  ;;  %v62_v33 = vld [vmem:[%s12639_s1 + $0x48] sm:$0xff]  ;;  %v65_v18 = vld [vmem:[%s12639_s1 + $0x60] sm:$0xff] }
  0xf8   :  { %6450 = vmatpush1.bf16.msra.mxu0 %v6449_v42  ;;  %v6230_v59 = vpop.f32.mrb[6].mxu0  ;;  %v7109_v63 = vpop.f32.mrb[6].mxu1  ;;  %6432 = vmatprep.subr.bf16.mxu1 %v6431_v46  ;;  %v7124_v23 = vmax.f32 %v214_v9, 0.0  ;;  %v7203_v41 = vmax.f32 %v254_v32, 0.0  ;;  %v7221_v43 = vmax.f32 %v259_v29, 0.0  ;;  %v7268_v9 = vand.u32 15, %v7255_v61 }
  0xf9   :  { %v223_v1 = vpop.f32.mrb[7].mxu0  ;;  %6452 = vmatprep.subr.bf16.mxu0 %v6451_v48  ;;  %v7111_v3 = vpop.f32.mrb[7].mxu1  ;;  %6434 = vmatpush1.bf16.msra.mxu1 %v6433_v51  ;;  %v229_v31 = vadd.f32 %v6230_v59, %v7071_v10  ;;  %v269_v45 = vadd.f32 %v7109_v63, %v7071_v10  ;;  %v331_v48 = vld [vmem:[#allocation2 + $0x158] sm:$0xff]  ;;  %v329_v59 = vld [vmem:[#allocation2 + $0x148] sm:$0xff]  ;;  %v6483_v63 = vpack.c.bf16 %v353_v57, %v342_v52  ;;  %v7651_v25 = vshra.s32 %v1717_v7, 8 }
  0xfa   :  { %5371 = vmatmul.mubr.msk.f32.gmra.mrb[12].mxu1 %vm12674_vm1, %v7100_v54  ;;  %5387 = vmatmul.mubr.msk.f32.gmra.mrb[12].mxu0 %vm12674_vm1, %v7100_v54  ;;  %v224_v27 = vadd.f32 %v7071_v10, %v223_v1  ;;  %v264_v42 = vadd.f32 %v7071_v10, %v7111_v3  ;;  %v296_v10 = vld [vmem:[#allocation2 + $0x40] sm:$0xff]  ;;  %v6479_v51 = vpack.c.bf16 %v331_v48, %v320_v47  ;;  %v68_v32 = vld [vmem:[%s12639_s1 + $0x78] sm:$0xff] }
  0xfb   :  { %566 = vmatprep.mubr.f32.mxu1 %v12646_v5  ;;  %727 = vmatprep.mubr.f32.mxu0 %v12646_v5  ;;  %v7161_v34 = vmax.f32 %v229_v31, 0.0  ;;  %v7239_v46 = vmax.f32 %v269_v45, 0.0  ;;  %v6461_v53 = vpack.c.bf16 %v307_v49, %v296_v10  ;;  %v6465_v1 = vpack.c.bf16 %v329_v59, %v318_v58  ;;  %v352_v3 = vld [vmem:[#allocation2 + $0x200] sm:$0xff]  ;;  %12866 = vst [vmem:[#allocation7_spill] sm:$0xff] %v7268_v9 }
  0xfc   :  { %6454 = vmatpush1.bf16.msra.mxu0 %v6453_v60  ;;  %6436 = vmatprep.subr.bf16.mxu1 %v6435_v0  ;;  %v7144_v30 = vmax.f32 %v224_v27, 0.0  ;;  %v7223_v44 = vmax.f32 %v264_v42, 0.0  ;;  %v7253_v60 = vshrl.u32 %v380_v50, 7  ;;  %v364_v0 = vld [vmem:[#allocation2 + $0x260] sm:$0xff]  ;;  %v58_v27 = vld [vmem:[%s12639_s1 + $0x28] sm:$0xff]  ;;  %v7521_v42 = vshra.s32 %v7255_v61, 8 }
  0xfd   :  { %6456 = vmatprep.subr.bf16.mxu0 %v6455_v2  ;;  %6438 = vmatpush1.bf16.msra.mxu1 %v6437_v4  ;;  %v341_v2 = vld [vmem:[#allocation2 + $0x1a8] sm:$0xff]  ;;  %v375_v4 = vld [vmem:[#allocation2 + $0x2b8] sm:$0xff]  ;;  %v61_v31 = vld [vmem:[%s12639_s1 + $0x40] sm:$0xff] }
  0xfe   :  { %5372 = vmatmul.mubr.msk.f32.gmra.mrb[14].mxu1 %vm12674_vm1, %v7120_v15  ;;  %5388 = vmatmul.mubr.msk.f32.gmra.mrb[14].mxu0 %vm12674_vm1, %v7120_v15  ;;  %v7265_v8 = vadd.s32 8, %v7253_v60  ;;  %v6467_v11 = vpack.c.bf16 %v352_v3, %v341_v2  ;;  %v6487_v12 = vpack.c.bf16 %v375_v4, %v364_v0  ;;  %vm1681_vm2 = vcmp.eq.s32.totalorder %v7268_v9, %v7253_v60 }
  0xff   :  { %572 = vmatprep.mubr.f32.mxu1 %v12646_v5  ;;  %733 = vmatprep.mubr.f32.mxu0 %v12646_v5  ;;  %v7518_v29 = vand.u32 15, %v7253_v60  ;;  %v7551_v45 = vadd.s32 16, %v7253_v60  ;;  %v12645_v50 = vsub.s32 0, %v7253_v60  ;;  %v7618_v3 = vadd.s32 32, %v7253_v60 }
 0x100   :  { %6458 = vmatpush1.bf16.msra.mxu0 %v6457_v16  ;;  %6440 = vmatprep.subr.bf16.mxu1 %v6439_v17  ;;  %12865 = vst [vmem:[#allocation6_spill] sm:$0xff] %v7265_v8  ;;  %v363_v16 = vld [vmem:[#allocation2 + $0x258] sm:$0xff]  ;;  %v374_v17 = vld [vmem:[#allocation2 + $0x2b0] sm:$0xff]  ;;  %vm1682_vm3 = vcmp.eq.s32.totalorder %v7268_v9, %v7265_v8  ;;  %v7503_v14 = vshra.s32 %v7265_v8, 4  ;;  %v7621_v4 = vadd.s32 40, %v7253_v60 }
 0x101   :  { %6442 = vmatpush1.bf16.msra.mxu1 %v6441_v19  ;;  %6476 = vmatprep.subr.bf16.mxu0 %v7122_v20  ;;  %v362_v19 = vld [vmem:[#allocation2 + $0x250] sm:$0xff]  ;;  %v6471_v21 = vpack.c.bf16 %v374_v17, %v363_v16  ;;  %vm7284_vm4 = vmpackc.low %vm1682_vm3, %vm1681_vm2  ;;  %vm1809_vm8 = vcmp.eq.s32.totalorder %v7518_v29, %v7268_v9  ;;  %12871 = vst [vmem:[#allocation10_spill] sm:$0xff] %v7551_v45  ;;  %v7557_v47 = vshra.s32 %v7551_v45, 4  ;;  %v7563_v10 = vand.u32 15, %v7551_v45 }
 0x102   :  { %5373 = vmatmul.mubr.msk.f32.gmra.mrb[16].mxu1 %vm12674_vm1, %v7124_v23  ;;  %5389 = vmatmul.mubr.msk.f32.gmra.mrb[16].mxu0 %vm12674_vm1, %v7124_v23  ;;  %12869 = vst [vmem:[#allocation8_spill] sm:$0xff] %v7503_v14  ;;  %vm1738_vm7 = vcmp.eq.s32.totalorder %v7503_v14, %v7521_v42  ;;  %12877 = vst [vmem:[#allocation16_spill] sm:$0xff] %v7618_v3  ;;  %v7632_v16 = vshra.s32 %v7621_v4, 4  ;;  %v7635_v17 = vand.u32 15, %v7618_v3 }
 0x103   :  { %578 = vmatprep.mubr.f32.mxu1 %v12646_v5  ;;  %739 = vmatprep.mubr.f32.mxu0 %v12646_v5  ;;  %12873 = vst [vmem:[#allocation12_spill] sm:$0xff] %v7557_v47  ;;  %12878 = vst [vmem:[#allocation17_spill] sm:$0xff] %v7621_v4 }
 0x104   :  { %6460 = vmatprep.subr.bf16.mxu1 %v6459_v26  ;;  %v12648_v26 = vmov 1.0|1.0   ;;  %12880 = vst [vmem:[#allocation19_spill] sm:$0xff] %v7632_v16 }
 0x106   :  { %5374 = vmatmul.mubr.msk.f32.gmra.mrb[18].mxu1 %vm12674_vm1, %v7142_v28  ;;  %5390 = vmatmul.mubr.msk.f32.gmra.mrb[18].mxu0 %vm12674_vm1, %v7142_v28 }
 0x107   :  { %584 = vmatprep.mubr.f32.mxu1 %v12646_v5  ;;  %745 = vmatprep.mubr.f32.mxu0 %v12646_v5 }
 0x10a   :  { %5375 = vmatmul.mubr.msk.f32.gmra.mrb[20].mxu1 %vm12674_vm1, %v7144_v30  ;;  %5391 = vmatmul.mubr.msk.f32.gmra.mrb[20].mxu0 %vm12674_vm1, %v7144_v30 }
 0x10b   :  { %590 = vmatprep.mubr.f32.mxu1 %v12646_v5  ;;  %751 = vmatprep.mubr.f32.mxu0 %v12646_v5 }
 0x10e   :  { %5376 = vmatmul.mubr.msk.f32.gmra.mrb[22].mxu1 %vm12674_vm1, %v7161_v34  ;;  %5392 = vmatmul.mubr.msk.f32.gmra.mrb[22].mxu0 %vm12674_vm1, %v7161_v34 }
 0x10f   :  { %596 = vmatprep.mubr.f32.mxu1 %v12646_v5  ;;  %757 = vmatprep.mubr.f32.mxu0 %v12646_v5 }
 0x112   :  { %5377 = vmatmul.mubr.msk.f32.gmra.mrb[24].mxu1 %vm12674_vm1, %v7163_v35  ;;  %5393 = vmatmul.mubr.msk.f32.gmra.mrb[24].mxu0 %vm12674_vm1, %v7163_v35 }
 0x113   :  { %602 = vmatprep.mubr.f32.mxu1 %v12646_v5  ;;  %763 = vmatprep.mubr.f32.mxu0 %v12646_v5 }
 0x116   :  { %5378 = vmatmul.mubr.msk.f32.gmra.mrb[26].mxu1 %vm12674_vm1, %v7181_v37  ;;  %5394 = vmatmul.mubr.msk.f32.gmra.mrb[26].mxu0 %vm12674_vm1, %v7181_v37 }
 0x117   :  { %608 = vmatprep.mubr.f32.mxu1 %v12646_v5  ;;  %769 = vmatprep.mubr.f32.mxu0 %v12646_v5 }
 0x11a   :  { %5379 = vmatmul.mubr.msk.f32.gmra.mrb[28].mxu1 %vm12674_vm1, %v7183_v38  ;;  %5395 = vmatmul.mubr.msk.f32.gmra.mrb[28].mxu0 %vm12674_vm1, %v7183_v38 }
 0x11b   :  { %614 = vmatprep.mubr.f32.mxu1 %v12646_v5  ;;  %775 = vmatprep.mubr.f32.mxu0 %v12646_v5 }
 0x11e   :  { %5380 = vmatmul.mubr.msk.f32.gmra.mrb[30].mxu1 %vm12674_vm1, %v7201_v39  ;;  %5396 = vmatmul.mubr.msk.f32.gmra.mrb[30].mxu0 %vm12674_vm1, %v7201_v39 }
 0x11f   :  { %620 = vmatprep.mubr.f32.mxu1 %v12646_v5  ;;  %781 = vmatprep.mubr.f32.mxu0 %v12646_v5 }
 0x122   :  { %5381 = vmatmul.mubr.msk.f32.gmra.mrb[32].mxu1 %vm12674_vm1, %v7203_v41  ;;  %5397 = vmatmul.mubr.msk.f32.gmra.mrb[32].mxu0 %vm12674_vm1, %v7203_v41 }
 0x123   :  { %626 = vmatprep.mubr.f32.mxu1 %v12646_v5  ;;  %787 = vmatprep.mubr.f32.mxu0 %v12646_v5 }
 0x126   :  { %5382 = vmatmul.mubr.msk.f32.gmra.mrb[34].mxu1 %vm12674_vm1, %v7221_v43  ;;  %5398 = vmatmul.mubr.msk.f32.gmra.mrb[34].mxu0 %vm12674_vm1, %v7221_v43 }
 0x127   :  { %632 = vmatprep.mubr.f32.mxu1 %v12646_v5  ;;  %793 = vmatprep.mubr.f32.mxu0 %v12646_v5 }
 0x12a   :  { %5383 = vmatmul.mubr.msk.f32.gmra.mrb[36].mxu1 %vm12674_vm1, %v7223_v44  ;;  %5399 = vmatmul.mubr.msk.f32.gmra.mrb[36].mxu0 %vm12674_vm1, %v7223_v44 }
 0x12b   :  { %638 = vmatprep.mubr.f32.mxu1 %v12646_v5  ;;  %799 = vmatprep.mubr.f32.mxu0 %v12646_v5 }
 0x12e   :  { %5384 = vmatmul.mubr.msk.f32.gmra.mrb[38].mxu1 %vm12674_vm1, %v7239_v46  ;;  %5400 = vmatmul.mubr.msk.f32.gmra.mrb[38].mxu0 %vm12674_vm1, %v7239_v46 }
 0x12f   :  { %870 = vmatprep.mubr.f32.mxu1 %v12646_v5  ;;  %1031 = vmatprep.mubr.f32.mxu0 %v12646_v5 }
 0x132   :  { %5401 = vmatmul.mubr.msk.f32.vlgmr.msra.gmra.mrb[40].mxu1 %vm12674_vm1, %v7079_v24  ;;  %5417 = vmatmul.mubr.msk.f32.vlgmr.msra.gmra.mrb[40].mxu0 %vm12674_vm1, %v7079_v24 }
 0x133   :  { %6478 = vmatpush3.bf16.msra.mxu0 %v7122_v20  ;;  %876 = vmatprep.mubr.f32.mxu1 %v12646_v5  ;;  %v373_v20 = vld [vmem:[#allocation2 + $0x2a8] sm:$0xff] }
 0x134   :  { %1037 = vmatprep.mubr.f32.mxu0 %v12646_v5  ;;  %6480 = vmatprep.subr.bf16.mxu0 %v6479_v51  ;;  %v6473_v22 = vpack.c.bf16 %v373_v20, %v362_v19  ;;  %v7638_v19 = vand.u32 15, %v7621_v4  ;;  %v1719_v4 = vadd.s32 640, %v7255_v61 }
 0x135   :  { %6462 = vmatpush1.bf16.msra.mxu1 %v6461_v53 }
 0x136   :  { %5402 = vmatmul.mubr.msk.f32.gmra.mrb[42].mxu1 %vm12674_vm1, %v7091_v40  ;;  %5418 = vmatmul.mubr.msk.f32.gmra.mrb[42].mxu0 %vm12674_vm1, %v7091_v40 }
 0x137   :  { %882 = vmatprep.mubr.f32.mxu1 %v12646_v5  ;;  %1043 = vmatprep.mubr.f32.mxu0 %v12646_v5 }
 0x138   :  { %6482 = vmatpush3.bf16.msra.mxu0 %v6479_v51  ;;  %6464 = vmatprep.subr.bf16.mxu1 %v6463_v62  ;;  %v7572_v51 = vld [vmem:[%s12643_s5] sm:$0xff] }
 0x139   :  { %6484 = vmatprep.subr.bf16.mxu0 %v6483_v63  ;;  %6466 = vmatpush1.bf16.msra.mxu1 %v6465_v1  ;;  %v7593_v52 = vrot.slane %v7572_v51, %v12645_v50 }
 0x13a   :  { %5403 = vmatmul.mubr.msk.f32.gmra.mrb[44].mxu1 %vm12674_vm1, %v7100_v54  ;;  %5419 = vmatmul.mubr.msk.f32.gmra.mrb[44].mxu0 %vm12674_vm1, %v7100_v54 }
 0x13b   :  { %888 = vmatprep.mubr.f32.mxu1 %v12646_v5  ;;  %1049 = vmatprep.mubr.f32.mxu0 %v12646_v5 }
 0x13c   :  { %6486 = vmatpush3.bf16.msra.mxu0 %v6483_v63  ;;  %6468 = vmatprep.subr.bf16.mxu1 %v6467_v11 }
 0x13d   :  { %6488 = vmatprep.subr.bf16.mxu0 %v6487_v12  ;;  %6470 = vmatpush1.bf16.msra.mxu1 %v6469_v13  ;;  %v7629_v13 = vshra.s32 %v7618_v3, 4 }
 0x13e   :  { %5404 = vmatmul.mubr.msk.f32.gmra.mrb[46].mxu1 %vm12674_vm1, %v7120_v15  ;;  %5420 = vmatmul.mubr.msk.f32.gmra.mrb[46].mxu0 %vm12674_vm1, %v7120_v15 }
 0x13f   :  { %894 = vmatprep.mubr.f32.mxu1 %v12646_v5  ;;  %1055 = vmatprep.mubr.f32.mxu0 %v12646_v5  ;;  %12879 = vst [vmem:[#allocation18_spill] sm:$0xff] %v7629_v13 }
 0x140   :  { %6490 = vmatpush3.bf16.msra.mxu0 %v6487_v12  ;;  %6472 = vmatprep.subr.bf16.mxu1 %v6471_v21 }
 0x141   :  { %6474 = vmatpush1.bf16.msra.mxu1 %v6473_v22  ;;  %6492 = vmatprep.subr.msk.bf16.mxu0 %vm7284_vm4, %v12648_v26 }
 0x142   :  { %5405 = vmatmul.mubr.msk.f32.gmra.mrb[48].mxu1 %vm12674_vm1, %v7124_v23  ;;  %5421 = vmatmul.mubr.msk.f32.gmra.mrb[48].mxu0 %vm12674_vm1, %v7124_v23 }
 0x143   :  { %900 = vmatprep.mubr.f32.mxu1 %v12646_v5  ;;  %1061 = vmatprep.mubr.f32.mxu0 %v12646_v5 }
 0x146   :  { %5406 = vmatmul.mubr.msk.f32.gmra.mrb[50].mxu1 %vm12674_vm1, %v7142_v28  ;;  %5422 = vmatmul.mubr.msk.f32.gmra.mrb[50].mxu0 %vm12674_vm1, %v7142_v28 }
 0x147   :  { %906 = vmatprep.mubr.f32.mxu1 %v12646_v5  ;;  %1067 = vmatprep.mubr.f32.mxu0 %v12646_v5 }
 0x14a   :  { %5407 = vmatmul.mubr.msk.f32.gmra.mrb[52].mxu1 %vm12674_vm1, %v7144_v30  ;;  %5423 = vmatmul.mubr.msk.f32.gmra.mrb[52].mxu0 %vm12674_vm1, %v7144_v30 }
 0x14b   :  { %912 = vmatprep.mubr.f32.mxu1 %v12646_v5  ;;  %1073 = vmatprep.mubr.f32.mxu0 %v12646_v5 }
 0x14e   :  { %5408 = vmatmul.mubr.msk.f32.gmra.mrb[54].mxu1 %vm12674_vm1, %v7161_v34  ;;  %5424 = vmatmul.mubr.msk.f32.gmra.mrb[54].mxu0 %vm12674_vm1, %v7161_v34 }
 0x14f   :  { %918 = vmatprep.mubr.f32.mxu1 %v12646_v5  ;;  %1079 = vmatprep.mubr.f32.mxu0 %v12646_v5 }
 0x152   :  { %5409 = vmatmul.mubr.msk.f32.gmra.mrb[56].mxu1 %vm12674_vm1, %v7163_v35  ;;  %5425 = vmatmul.mubr.msk.f32.gmra.mrb[56].mxu0 %vm12674_vm1, %v7163_v35 }
 0x153   :  { %924 = vmatprep.mubr.f32.mxu1 %v12646_v5  ;;  %1085 = vmatprep.mubr.f32.mxu0 %v12646_v5 }
 0x156   :  { %5410 = vmatmul.mubr.msk.f32.gmra.mrb[58].mxu1 %vm12674_vm1, %v7181_v37  ;;  %5426 = vmatmul.mubr.msk.f32.gmra.mrb[58].mxu0 %vm12674_vm1, %v7181_v37 }
 0x157   :  { %930 = vmatprep.mubr.f32.mxu1 %v12646_v5  ;;  %1091 = vmatprep.mubr.f32.mxu0 %v12646_v5 }
 0x15a   :  { %5411 = vmatmul.mubr.msk.f32.gmra.mrb[60].mxu1 %vm12674_vm1, %v7183_v38  ;;  %5427 = vmatmul.mubr.msk.f32.gmra.mrb[60].mxu0 %vm12674_vm1, %v7183_v38 }
 0x15b   :  { %936 = vmatprep.mubr.f32.mxu1 %v12646_v5  ;;  %1097 = vmatprep.mubr.f32.mxu0 %v12646_v5 }
 0x15e   :  { %5412 = vmatmul.mubr.msk.f32.gmra.mrb[62].mxu1 %vm12674_vm1, %v7201_v39  ;;  %5428 = vmatmul.mubr.msk.f32.gmra.mrb[62].mxu0 %vm12674_vm1, %v7201_v39 }
 0x15f   :  { %942 = vmatprep.mubr.f32.mxu1 %v12646_v5  ;;  %1103 = vmatprep.mubr.f32.mxu0 %v12646_v5 }
 0x162   :  { %5413 = vmatmul.mubr.msk.f32.gmra.mrb[64].mxu1 %vm12674_vm1, %v7203_v41  ;;  %5429 = vmatmul.mubr.msk.f32.gmra.mrb[64].mxu0 %vm12674_vm1, %v7203_v41 }
 0x163   :  { %948 = vmatprep.mubr.f32.mxu1 %v12646_v5  ;;  %1109 = vmatprep.mubr.f32.mxu0 %v12646_v5 }
 0x166   :  { %5414 = vmatmul.mubr.msk.f32.gmra.mrb[66].mxu1 %vm12674_vm1, %v7221_v43  ;;  %5430 = vmatmul.mubr.msk.f32.gmra.mrb[66].mxu0 %vm12674_vm1, %v7221_v43 }
 0x167   :  { %954 = vmatprep.mubr.f32.mxu1 %v12646_v5  ;;  %1115 = vmatprep.mubr.f32.mxu0 %v12646_v5 }
 0x16a   :  { %5415 = vmatmul.mubr.msk.f32.gmra.mrb[68].mxu1 %vm12674_vm1, %v7223_v44  ;;  %5431 = vmatmul.mubr.msk.f32.gmra.mrb[68].mxu0 %vm12674_vm1, %v7223_v44 }
 0x16b   :  { %960 = vmatprep.mubr.f32.mxu1 %v12646_v5  ;;  %1121 = vmatprep.mubr.f32.mxu0 %v12646_v5 }
 0x16e   :  { %5416 = vmatmul.mubr.msk.f32.gmra.mrb[70].mxu1 %vm12674_vm1, %v7239_v46  ;;  %5432 = vmatmul.mubr.msk.f32.gmra.mrb[70].mxu0 %vm12674_vm1, %v7239_v46 }
 0x16f   :  { %6259 = vmatprep.mubr.msk.f32.mxu0 %vm12674_vm1, %v7079_v24  ;;  %1192 = vmatprep.mubr.f32.mxu1 %v12646_v5 }
 0x172   :  { %5433 = vmatmul.mubr.msk.f32.vlgmr.msra.gmra.mrb[72].mxu1 %vm12674_vm1, %v7079_v24  ;;  %6260 = vmatmul.mubr.msk.f32.vlgmr.msra.gmra.mrb[72].mxu0 %vm12674_vm1, %v7091_v40  ;;  %v53_v24 = vld [vmem:[%s12639_s1] sm:$0xff] }
 0x173   :  { %6494 = vmatpush3.bf16.msk.msra.mxu0 %vm7284_vm4, %v12648_v26  ;;  %6262 = vmatprep.mubr.msk.f32.mxu0 %vm12674_vm1, %v7100_v54 }
 0x174   :  { %1198 = vmatprep.mubr.f32.mxu1 %v12646_v5 }
 0x176   :  { %5434 = vmatmul.mubr.msk.f32.gmra.mrb[74].mxu1 %vm12674_vm1, %v7091_v40  ;;  %6263 = vmatmul.mubr.msk.f32.gmra.mrb[74].mxu0 %vm12674_vm1, %v7120_v15  ;;  %v54_v40 = vld [vmem:[%s12639_s1 + $0x8] sm:$0xff] }
 0x177   :  { %6265 = vmatprep.mubr.msk.f32.mxu0 %vm12674_vm1, %v7124_v23  ;;  %1204 = vmatprep.mubr.f32.mxu1 %v12646_v5 }
 0x17a   :  { %5435 = vmatmul.mubr.msk.f32.gmra.mrb[76].mxu1 %vm12674_vm1, %v7100_v54  ;;  %6266 = vmatmul.mubr.msk.f32.gmra.mrb[76].mxu0 %vm12674_vm1, %v7142_v28  ;;  %v55_v54 = vld [vmem:[%s12639_s1 + $0x10] sm:$0xff] }
 0x17b   :  { %6268 = vmatprep.mubr.msk.f32.mxu0 %vm12674_vm1, %v7144_v30  ;;  %1210 = vmatprep.mubr.f32.mxu1 %v12646_v5 }
 0x17e   :  { %5436 = vmatmul.mubr.msk.f32.gmra.mrb[78].mxu1 %vm12674_vm1, %v7120_v15  ;;  %6269 = vmatmul.mubr.msk.f32.gmra.mrb[78].mxu0 %vm12674_vm1, %v7161_v34  ;;  %v56_v15 = vld [vmem:[%s12639_s1 + $0x18] sm:$0xff] }
 0x17f   :  { %6271 = vmatprep.mubr.msk.f32.mxu0 %vm12674_vm1, %v7163_v35  ;;  %1216 = vmatprep.mubr.f32.mxu1 %v12646_v5 }
 0x182   :  { %5437 = vmatmul.mubr.msk.f32.gmra.mrb[80].mxu1 %vm12674_vm1, %v7124_v23  ;;  %6272 = vmatmul.mubr.msk.f32.gmra.mrb[80].mxu0 %vm12674_vm1, %v7181_v37  ;;  %v57_v23 = vld [vmem:[%s12639_s1 + $0x20] sm:$0xff] }
 0x183   :  { %6274 = vmatprep.mubr.msk.f32.mxu0 %vm12674_vm1, %v7183_v38  ;;  %1222 = vmatprep.mubr.f32.mxu1 %v12646_v5 }
 0x186   :  { %5438 = vmatmul.mubr.msk.f32.gmra.mrb[82].mxu1 %vm12674_vm1, %v7142_v28  ;;  %6275 = vmatmul.mubr.msk.f32.gmra.mrb[82].mxu0 %vm12674_vm1, %v7201_v39  ;;  %v59_v28 = vld [vmem:[%s12639_s1 + $0x30] sm:$0xff] }
 0x187   :  { %6277 = vmatprep.mubr.msk.f32.mxu0 %vm12674_vm1, %v7203_v41  ;;  %1228 = vmatprep.mubr.f32.mxu1 %v12646_v5 }
 0x18a   :  { %5439 = vmatmul.mubr.msk.f32.gmra.mrb[84].mxu1 %vm12674_vm1, %v7144_v30  ;;  %6278 = vmatmul.mubr.msk.f32.gmra.mrb[84].mxu0 %vm12674_vm1, %v7221_v43  ;;  %v60_v30 = vld [vmem:[%s12639_s1 + $0x38] sm:$0xff] }
 0x18b   :  { %6280 = vmatprep.mubr.msk.f32.mxu0 %vm12674_vm1, %v7223_v44  ;;  %1234 = vmatprep.mubr.f32.mxu1 %v12646_v5 }
 0x18e   :  { %5440 = vmatmul.mubr.msk.f32.gmra.mrb[86].mxu1 %vm12674_vm1, %v7161_v34  ;;  %6281 = vmatmul.mubr.msk.f32.gmra.mrb[86].mxu0 %vm12674_vm1, %v7239_v46  ;;  %v63_v34 = vld [vmem:[%s12639_s1 + $0x50] sm:$0xff] }
 0x18f   :  { %1240 = vmatprep.mubr.f32.mxu1 %v12646_v5  ;;  %6287 = vmatprep.mubr.msk.f32.mxu0 %vm78_vm0, %v53_v24 }
 0x192   :  { %5441 = vmatmul.mubr.msk.f32.gmra.mrb[88].mxu1 %vm12674_vm1, %v7163_v35  ;;  %6288 = vmatmul.mubr.msk.f32.vlgmr.msra.gmra.mrb[88].mxu0 %vm78_vm0, %v54_v40  ;;  %v64_v35 = vld [vmem:[%s12639_s1 + $0x58] sm:$0xff]  ;;  %v7659_v40 = vand.u32 15, %v1717_v7 }
 0x193   :  { %1246 = vmatprep.mubr.f32.mxu1 %v12646_v5  ;;  %6290 = vmatprep.mubr.msk.f32.mxu0 %vm78_vm0, %v55_v54 }
 0x196   :  { %5442 = vmatmul.mubr.msk.f32.gmra.mrb[90].mxu1 %vm12674_vm1, %v7181_v37  ;;  %6291 = vmatmul.mubr.msk.f32.gmra.mrb[90].mxu0 %vm78_vm0, %v56_v15  ;;  %v7497_v37 = vand.u32 15, %v7265_v8  ;;  %v1721_v8 = vadd.s32 896, %v7255_v61 }
 0x197   :  { %1252 = vmatprep.mubr.f32.mxu1 %v12646_v5  ;;  %6293 = vmatprep.mubr.msk.f32.mxu0 %vm78_vm0, %v57_v23 }
 0x198   :  { %vm1817_vm5 = vcmp.eq.s32.totalorder %v7497_v37, %v7268_v9 }
 0x199   :  { %vm1881_vm9 = vmand %vm1738_vm7, %vm1817_vm5 }
 0x19a   :  { %5443 = vmatmul.mubr.msk.f32.gmra.mrb[92].mxu1 %vm12674_vm1, %v7183_v38  ;;  %6294 = vmatmul.mubr.msk.f32.gmra.mrb[92].mxu0 %vm78_vm0, %v58_v27  ;;  %v67_v38 = vld [vmem:[%s12639_s1 + $0x70] sm:$0xff] }
 0x19b   :  { %1258 = vmatprep.mubr.f32.mxu1 %v12646_v5  ;;  %6296 = vmatprep.mubr.msk.f32.mxu0 %vm78_vm0, %v59_v28 }
 0x19e   :  { %5444 = vmatmul.mubr.msk.f32.gmra.mrb[94].mxu1 %vm12674_vm1, %v7201_v39  ;;  %6297 = vmatmul.mubr.msk.f32.gmra.mrb[94].mxu0 %vm78_vm0, %v60_v30  ;;  %v7514_v39 = vshra.s32 %v7253_v60, 4 }
 0x19f   :  { %1264 = vmatprep.mubr.f32.mxu1 %v12646_v5  ;;  %6299 = vmatprep.mubr.msk.f32.mxu0 %vm78_vm0, %v61_v31 }
 0x1a0   :  { %12870 = vst [vmem:[#allocation9_spill] sm:$0xff] %v7514_v39  ;;  %vm1730_vm6 = vcmp.eq.s32.totalorder %v7514_v39, %v7521_v42 }
 0x1a1   :  { %vm1873_vm14 = vmand %vm1730_vm6, %vm1809_vm8 }
 0x1a2   :  { %5445 = vmatmul.mubr.msk.f32.gmra.mrb[96].mxu1 %vm12674_vm1, %v7203_v41  ;;  %6300 = vmatmul.mubr.msk.f32.gmra.mrb[96].mxu0 %vm78_vm0, %v62_v33  ;;  %v1715_v41 = vadd.s32 128, %v7255_v61  ;;  %vm6497_vm3 = vmpackc.low %vm1881_vm9, %vm1873_vm14  ;;  %vm1746_vm9 = vcmp.eq.s32.totalorder %v7557_v47, %v7521_v42  ;;  %v1716_v33 = vadd.s32 256, %v7255_v61 }
 0x1a3   :  { %1270 = vmatprep.mubr.f32.mxu1 %v12646_v5  ;;  %6302 = vmatprep.mubr.msk.f32.mxu0 %vm78_vm0, %v63_v34 }
 0x1a6   :  { %5446 = vmatmul.mubr.msk.f32.gmra.mrb[98].mxu1 %vm12674_vm1, %v7221_v43  ;;  %6303 = vmatmul.mubr.msk.f32.gmra.mrb[98].mxu0 %vm78_vm0, %v64_v35  ;;  %v7525_v43 = vshra.s32 %v1715_v41, 8 }
 0x1a7   :  { %1276 = vmatprep.mubr.f32.mxu1 %v12646_v5  ;;  %6305 = vmatprep.mubr.msk.f32.mxu0 %vm78_vm0, %v65_v18 }
 0x1a8   :  { %vm1731_vm10 = vcmp.eq.s32.totalorder %v7514_v39, %v7525_v43  ;;  %vm1739_vm11 = vcmp.eq.s32.totalorder %v7503_v14, %v7525_v43  ;;  %vm1747_vm4 = vcmp.eq.s32.totalorder %v7557_v47, %v7525_v43 }
 0x1aa   :  { %5447 = vmatmul.mubr.msk.f32.gmra.mrb[100].mxu1 %vm12674_vm1, %v7223_v44  ;;  %6306 = vmatmul.mubr.msk.f32.gmra.mrb[100].mxu0 %vm78_vm0, %v66_v36  ;;  %v7527_v44 = vand.u32 15, %v1715_v41  ;;  %v7710_v41 = vand.u32 15, %v1716_v33 }
 0x1ab   :  { %1282 = vmatprep.mubr.f32.mxu1 %v12646_v5  ;;  %6308 = vmatprep.mubr.msk.f32.mxu0 %vm78_vm0, %v67_v38 }
 0x1ac   :  { %vm1810_vm12 = vcmp.eq.s32.totalorder %v7518_v29, %v7527_v44  ;;  %vm1818_vm13 = vcmp.eq.s32.totalorder %v7497_v37, %v7527_v44  ;;  %vm1826_vm6 = vcmp.eq.s32.totalorder %v7563_v10, %v7527_v44 }
 0x1ad   :  { %vm1874_vm15 = vmand %vm1731_vm10, %vm1810_vm12  ;;  %vm1825_vm10 = vcmp.eq.s32.totalorder %v7563_v10, %v7268_v9 }
 0x1ae   :  { %5448 = vmatmul.mubr.msk.f32.gmra.mrb[102].mxu1 %vm12674_vm1, %v7239_v46  ;;  %6309 = vmatmul.mubr.msk.f32.gmra.mrb[102].mxu0 %vm78_vm0, %v68_v32  ;;  %vm1882_vm0 = vmand %vm1739_vm11, %vm1818_vm13  ;;  %v7554_v46 = vadd.s32 24, %v7253_v60  ;;  %v7708_v32 = vshra.s32 %v1716_v33, 8 }
 0x1af   :  { %3347 = vmatprep.mubr.f32.mxu1 %v12646_v5  ;;  %3508 = vmatprep.mubr.f32.mxu0 %v12646_v5  ;;  %vm6495_vm2 = vmpackc.low %vm1882_vm0, %vm1874_vm15 }
 0x1b0   :  { %6496 = vmatprep.subr.msk.bf16.mxu1 %vm6495_vm2, %v12648_v26  ;;  %12872 = vst [vmem:[#allocation11_spill] sm:$0xff] %v7554_v46  ;;  %v7560_v48 = vshra.s32 %v7554_v46, 4  ;;  %v7566_v49 = vand.u32 15, %v7554_v46  ;;  %vm1890_vm8 = vmand %vm1747_vm4, %vm1826_vm6  ;;  %vm12675_vm2 = vcmask 31744   ;;  %vm1763_vm4 = vcmp.eq.s32.totalorder %v7629_v13, %v7525_v43 }
 0x1b1   :  { %6498 = vmatpush1.bf16.msk.msra.mxu1 %vm6497_vm3, %v12648_v26  ;;  %vm1889_vm15 = vmand %vm1746_vm9, %vm1825_vm10  ;;  %vm1842_vm6 = vcmp.eq.s32.totalorder %v7635_v17, %v7527_v44  ;;  %vm1762_vm9 = vcmp.eq.s32.totalorder %v7629_v13, %v7521_v42  ;;  %vm1841_vm10 = vcmp.eq.s32.totalorder %v7635_v17, %v7268_v9 }
 0x1b2   :  { %12874 = vst [vmem:[#allocation13_spill] sm:$0xff] %v7560_v48  ;;  %vm1755_vm5 = vcmp.eq.s32.totalorder %v7560_v48, %v7525_v43  ;;  %vm1834_vm7 = vcmp.eq.s32.totalorder %v7566_v49, %v7527_v44  ;;  %vm1754_vm12 = vcmp.eq.s32.totalorder %v7560_v48, %v7521_v42  ;;  %vm1833_vm13 = vcmp.eq.s32.totalorder %v7566_v49, %v7268_v9 }
 0x1b3   :  { %vm1898_vm11 = vmand %vm1755_vm5, %vm1834_vm7  ;;  %vm1771_vm5 = vcmp.eq.s32.totalorder %v7632_v16, %v7525_v43  ;;  %vm1850_vm7 = vcmp.eq.s32.totalorder %v7638_v19, %v7527_v44 }
 0x1b4   :  { %vm6499_vm14 = vmpackc.low %vm1898_vm11, %vm1890_vm8 }
 0x1b5   :  { %6500 = vmatprep.subr.msk.bf16.mxu1 %vm6499_vm14, %v12648_v26  ;;  %vm1897_vm0 = vmand %vm1754_vm12, %vm1833_vm13  ;;  %vm1770_vm12 = vcmp.eq.s32.totalorder %v7632_v16, %v7521_v42  ;;  %vm1849_vm13 = vcmp.eq.s32.totalorder %v7638_v19, %v7268_v9 }
 0x1b6   :  { %vm6501_vm3 = vmpackc.low %vm1897_vm0, %vm1889_vm15  ;;  %vm1733_vm0 = vcmp.eq.s32.totalorder %v7514_v39, %v7651_v25 }
 0x1b7   :  { %6502 = vmatpush1.bf16.msk.msra.mxu1 %vm6501_vm3, %v12648_v26  ;;  %vm1906_vm8 = vmand %vm1763_vm4, %vm1842_vm6  ;;  %vm1812_vm3 = vcmp.eq.s32.totalorder %v7518_v29, %v7659_v40  ;;  %vm1820_vm6 = vcmp.eq.s32.totalorder %v7497_v37, %v7659_v40 }
 0x1b8   :  { %vm1914_vm11 = vmand %vm1771_vm5, %vm1850_vm7  ;;  %vm1741_vm5 = vcmp.eq.s32.totalorder %v7503_v14, %v7651_v25 }
 0x1b9   :  { %vm6503_vm14 = vmpackc.low %vm1914_vm11, %vm1906_vm8  ;;  %vm1740_vm11 = vcmp.eq.s32.totalorder %v7503_v14, %v7708_v32 }
 0x1ba   :  { %6504 = vmatprep.subr.msk.bf16.mxu1 %vm6503_vm14, %v12648_v26  ;;  %vm7684_vm15 = vmand %vm1762_vm9, %vm1841_vm10  ;;  %vm1732_vm10 = vcmp.eq.s32.totalorder %v7514_v39, %v7708_v32  ;;  %vm1819_vm14 = vcmp.eq.s32.totalorder %v7497_v37, %v7710_v41 }
 0x1bb   :  { %vm1913_vm4 = vmand %vm1770_vm12, %vm1849_vm13  ;;  %vm1811_vm13 = vcmp.eq.s32.totalorder %v7518_v29, %v7710_v41 }
 0x1bc   :  { %vm6505_vm7 = vmpackc.low %vm1913_vm4, %vm7684_vm15 }
 0x1bd   :  { %6506 = vmatpush1.bf16.msk.msra.mxu1 %vm6505_vm7, %v12648_v26  ;;  %vm1876_vm8 = vmand %vm1733_vm0, %vm1812_vm3  ;;  %vm1749_vm0 = vcmp.eq.s32.totalorder %v7557_v47, %v7651_v25  ;;  %vm1828_vm3 = vcmp.eq.s32.totalorder %v7563_v10, %v7659_v40 }
 0x1be   :  { %vm1884_vm9 = vmand %vm1741_vm5, %vm1820_vm6  ;;  %vm1757_vm5 = vcmp.eq.s32.totalorder %v7560_v48, %v7651_v25  ;;  %vm1836_vm6 = vcmp.eq.s32.totalorder %v7566_v49, %v7659_v40 }
 0x1bf   :  { %vm6511_vm12 = vmpackc.low %vm1884_vm9, %vm1876_vm8  ;;  %vm1748_vm9 = vcmp.eq.s32.totalorder %v7557_v47, %v7708_v32 }
 0x1c0   :  { %6512 = vmatprep.subr.msk.bf16.mxu0 %vm6511_vm12, %v12648_v26  ;;  %vm1875_vm15 = vmand %vm1732_vm10, %vm1811_vm13  ;;  %vm1756_vm10 = vcmp.eq.s32.totalorder %v7560_v48, %v7708_v32  ;;  %vm1835_vm13 = vcmp.eq.s32.totalorder %v7566_v49, %v7710_v41 }
 0x1c1   :  { %vm1883_vm4 = vmand %vm1740_vm11, %vm1819_vm14  ;;  %vm1827_vm11 = vcmp.eq.s32.totalorder %v7563_v10, %v7710_v41 }
 0x1c2   :  { %vm6513_vm7 = vmpackc.low %vm1883_vm4, %vm1875_vm15 }
 0x1c3   :  { %6514 = vmatpush1.bf16.msk.msra.mxu0 %vm6513_vm7, %v12648_v26  ;;  %vm1892_vm8 = vmand %vm1749_vm0, %vm1828_vm3 }
 0x1c4   :  { %vm1900_vm12 = vmand %vm1757_vm5, %vm1836_vm6 }
 0x1c5   :  { %v550_v53 = vpop.f32.mrb[8].mxu1  ;;  %v7596_v55 = vpop.f32.mrb[8].mxu0  ;;  %vm6515_vm14 = vmpackc.low %vm1900_vm12, %vm1892_vm8 }
 0x1c6   :  { %v7599_v56 = vadd.f32 %v550_v53, %v7593_v52  ;;  %v7601_v57 = vpop.f32.mrb[9].mxu1  ;;  %v7603_v58 = vpop.f32.mrb[9].mxu0  ;;  %6516 = vmatprep.subr.msk.bf16.mxu0 %vm6515_vm14, %v12648_v26  ;;  %vm1891_vm15 = vmand %vm1748_vm9, %vm1827_vm11 }
 0x1c7   :  { %12875 = vst [vmem:[#allocation14_spill] sm:$0xff] %v7603_v58  ;;  %vm1899_vm3 = vmand %vm1756_vm10, %vm1835_vm13 }
 0x1c8   :  { %v1435_v59 = vsel %vm12675_vm2, %v7599_v56, -inf  ;;  %vm6517_vm6 = vmpackc.low %vm1899_vm3, %vm1891_vm15  ;;  %vm1844_vm3 = vcmp.eq.s32.totalorder %v7635_v17, %v7659_v40 }
 0x1c9   :  { %v556_v62 = vpop.f32.mrb[10].mxu1  ;;  %v7608_v63 = vpop.f32.mrb[10].mxu0  ;;  %1436 = vmax.xlane.f32.xlu0 %v1435_v59 }
 0x1ca   :  { %v7611_v0 = vadd.f32 %v556_v62, %v7593_v52  ;;  %v7613_v1 = vpop.f32.mrb[11].mxu1  ;;  %v7615_v2 = vpop.f32.mrb[11].mxu0 }
 0x1cb   :  { %12876 = vst [vmem:[#allocation15_spill] sm:$0xff] %v7615_v2 }
 0x1cc   :  { %v1438_v6 = vsel %vm12675_vm2, %v7611_v0, -inf }
 0x1cd   :  { %v562_v11 = vpop.f32.mrb[12].mxu1  ;;  %v7626_v12 = vpop.f32.mrb[12].mxu0  ;;  %1439 = vmax.xlane.f32.xlu0 %v1438_v6 }
 0x1ce   :  { %v7641_v20 = vadd.f32 %v562_v11, %v7593_v52  ;;  %v7643_v21 = vpop.f32.mrb[13].mxu1  ;;  %v7645_v22 = vpop.f32.mrb[13].mxu0 }
 0x1cf   :  { %12881 = vst [vmem:[#allocation20_spill] sm:$0xff] %v7645_v22 }
 0x1d0   :  { %v1441_v24 = vsel %vm12675_vm2, %v7641_v20, -inf }
 0x1d1   :  { %v568_v54 = vpop.f32.mrb[14].mxu1  ;;  %v7661_v15 = vpop.f32.mrb[14].mxu0  ;;  %1442 = vmax.xlane.f32.xlu1 %v1441_v24 }
 0x1d2   :  { %v7668_v23 = vadd.f32 %v568_v54, %v7593_v52  ;;  %v7670_v27 = vpop.f32.mrb[15].mxu1  ;;  %v7672_v28 = vpop.f32.mrb[15].mxu0  ;;  %v7750_v54 = vadd.s32 48, %v7253_v60 }
 0x1d3   :  { %12882 = vst [vmem:[#allocation21_spill] sm:$0xff] %v7672_v28 }
 0x1d4   :  { %v1444_v30 = vsel %vm12675_vm2, %v7668_v23, -inf  ;;  %12887 = vst [vmem:[#allocation24_spill] sm:$0xff] %v7750_v54  ;;  %v7786_v50 = vand.u32 15, %v7750_v54 }
 0x1d5   :  { %v574_v34 = vpop.f32.mrb[16].mxu1  ;;  %v7693_v35 = vpop.f32.mrb[16].mxu0  ;;  %1445 = vmax.xlane.f32.xlu1 %v1444_v30  ;;  %v7753_v30 = vadd.s32 56, %v7253_v60 }
 0x1d6   :  { %v7700_v18 = vadd.f32 %v574_v34, %v7593_v52  ;;  %v7702_v36 = vpop.f32.mrb[17].mxu1  ;;  %v7704_v38 = vpop.f32.mrb[17].mxu0  ;;  %vm1858_vm5 = vcmp.eq.s32.totalorder %v7786_v50, %v7527_v44  ;;  %vm1857_vm10 = vcmp.eq.s32.totalorder %v7786_v50, %v7268_v9 }
 0x1d7   :  { %12885 = vst [vmem:[#allocation22_spill] sm:$0xff] %v7704_v38  ;;  %12888 = vst [vmem:[#allocation25_spill] sm:$0xff] %v7753_v30  ;;  %v7801_v38 = vand.u32 15, %v7753_v30 }
 0x1d8   :  { %v1447_v53 = vsel %vm12675_vm2, %v7700_v18, -inf }
 0x1d9   :  { %v580_v59 = vpop.f32.mrb[18].mxu1  ;;  %v7725_v62 = vpop.f32.mrb[18].mxu0  ;;  %1448 = vmax.xlane.f32.xlu0 %v1447_v53  ;;  %vm1866_vm7 = vcmp.eq.s32.totalorder %v7801_v38, %v7527_v44  ;;  %vm1865_vm13 = vcmp.eq.s32.totalorder %v7801_v38, %v7268_v9 }
 0x1da   :  { %v7732_v6 = vadd.f32 %v580_v59, %v7593_v52  ;;  %v7734_v7 = vpop.f32.mrb[19].mxu1  ;;  %v7736_v11 = vpop.f32.mrb[19].mxu0 }
 0x1db   :  { %12886 = vst [vmem:[#allocation23_spill] sm:$0xff] %v7736_v11 }
 0x1dc   :  { %v1450_v24 = vsel %vm12675_vm2, %v7732_v6, -inf }
 0x1dd   :  { %v586_v31 = vpop.f32.mrb[20].mxu1  ;;  %v7755_v33 = vpop.f32.mrb[20].mxu0  ;;  %1451 = vmax.xlane.f32.xlu1 %v1450_v24  ;;  %v7780_v24 = vshra.s32 %v7750_v54, 4 }
 0x1de   :  { %v7765_v34 = vadd.f32 %v586_v31, %v7593_v52  ;;  %v7767_v53 = vpop.f32.mrb[21].mxu1  ;;  %v7769_v59 = vpop.f32.mrb[21].mxu0  ;;  %v7783_v31 = vshra.s32 %v7753_v30, 4 }
 0x1df   :  { %12889 = vst [vmem:[#allocation26_spill] sm:$0xff] %v7767_v53  ;;  %12890 = vst [vmem:[#allocation27_spill] sm:$0xff] %v7769_v59  ;;  %vm1779_vm0 = vcmp.eq.s32.totalorder %v7780_v24, %v7525_v43  ;;  %vm1778_vm9 = vcmp.eq.s32.totalorder %v7780_v24, %v7521_v42 }
 0x1e0   :  { %12891 = vst [vmem:[#allocation28_spill] sm:$0xff] %v7780_v24  ;;  %12892 = vst [vmem:[#allocation29_spill] sm:$0xff] %v7783_v31  ;;  %v1453_v5 = vsel %vm12675_vm2, %v7765_v34, -inf  ;;  %vm1787_vm4 = vcmp.eq.s32.totalorder %v7783_v31, %v7525_v43  ;;  %vm1786_vm12 = vcmp.eq.s32.totalorder %v7783_v31, %v7521_v42 }
 0x1e1   :  { %v592_v59 = vpop.f32.mrb[22].mxu1  ;;  %v7793_v11 = vpop.f32.mrb[22].mxu0  ;;  %1454 = vmax.xlane.f32.xlu0 %v1453_v5  ;;  %v12895_v5 = vmov 1.0|1.0   ;;  %vm1922_vm8 = vmand %vm1779_vm0, %vm1858_vm5  ;;  %vm1765_vm0 = vcmp.eq.s32.totalorder %v7629_v13, %v7651_v25  ;;  %vm1773_vm5 = vcmp.eq.s32.totalorder %v7632_v16, %v7651_v25 }
 0x1e2   :  { %v7806_v26 = vadd.f32 %v592_v59, %v7593_v52  ;;  %v7808_v28 = vpop.f32.mrb[23].mxu1  ;;  %v7810_v22 = vpop.f32.mrb[23].mxu0  ;;  %6518 = vmatpush1.bf16.msk.msra.mxu0 %vm6517_vm6, %v12895_v5  ;;  %vm1930_vm11 = vmand %vm1787_vm4, %vm1866_vm7  ;;  %vm1852_vm6 = vcmp.eq.s32.totalorder %v7638_v19, %v7659_v40 }
 0x1e3   :  { %12894 = vst [vmem:[#allocation31_spill] sm:$0xff] %v7810_v22  ;;  %vm6507_vm14 = vmpackc.low %vm1930_vm11, %vm1922_vm8 }
 0x1e4   :  { %12893 = vst [vmem:[#allocation30_spill] sm:$0xff] %v7806_v26  ;;  %v1456_v43 = vsel %vm12675_vm2, %v7806_v26, -inf  ;;  %6508 = vmatprep.subr.msk.bf16.mxu1 %vm6507_vm14, %v12895_v5  ;;  %vm1921_vm15 = vmand %vm1778_vm9, %vm1857_vm10  ;;  %vm1764_vm9 = vcmp.eq.s32.totalorder %v7629_v13, %v7708_v32  ;;  %vm1843_vm10 = vcmp.eq.s32.totalorder %v7635_v17, %v7710_v41 }
 0x1e5   :  { %v598_v59 = vpop.f32.mrb[24].mxu1  ;;  %v7825_v22 = vpop.f32.mrb[24].mxu0  ;;  %1457 = vmax.xlane.f32.xlu1 %v1456_v43  ;;  %vm1929_vm4 = vmand %vm1786_vm12, %vm1865_vm13  ;;  %vm1772_vm12 = vcmp.eq.s32.totalorder %v7632_v16, %v7708_v32  ;;  %vm1851_vm13 = vcmp.eq.s32.totalorder %v7638_v19, %v7710_v41 }
 0x1e6   :  { %v7828_v44 = vadd.f32 %v598_v59, %v7593_v52  ;;  %v7830_v2 = vpop.f32.mrb[25].mxu1  ;;  %v7832_v58 = vpop.f32.mrb[25].mxu0  ;;  %vm6509_vm7 = vmpackc.low %vm1929_vm4, %vm1921_vm15 }
 0x1e7   :  { %12897 = vst [vmem:[#allocation33_spill] sm:$0xff] %v7830_v2  ;;  %12898 = vst [vmem:[#allocation34_spill] sm:$0xff] %v7832_v58  ;;  %6510 = vmatpush1.bf16.msk.msra.mxu1 %vm6509_vm7, %v12895_v5 }
 0x1e8   :  { %12896 = vst [vmem:[#allocation32_spill] sm:$0xff] %v7828_v44  ;;  %v1459_v42 = vsel %vm12675_vm2, %v7828_v44, -inf  ;;  %vm1908_vm8 = vmand %vm1765_vm0, %vm1844_vm3  ;;  %vm1781_vm0 = vcmp.eq.s32.totalorder %v7780_v24, %v7651_v25  ;;  %vm1860_vm3 = vcmp.eq.s32.totalorder %v7786_v50, %v7659_v40 }
 0x1e9   :  { %v604_v43 = vpop.f32.mrb[26].mxu1  ;;  %v7845_v59 = vpop.f32.mrb[26].mxu0  ;;  %1460 = vmax.xlane.f32.xlu0 %v1459_v42  ;;  %vm1916_vm11 = vmand %vm1773_vm5, %vm1852_vm6  ;;  %vm1789_vm5 = vcmp.eq.s32.totalorder %v7783_v31, %v7651_v25  ;;  %vm1868_vm6 = vcmp.eq.s32.totalorder %v7801_v38, %v7659_v40  ;;  %v7893_v25 = vshra.s32 %v1719_v4, 8 }
 0x1ea   :  { %v7853_v58 = vadd.f32 %v604_v43, %v7593_v52  ;;  %v7855_v30 = vpop.f32.mrb[27].mxu1  ;;  %v7857_v54 = vpop.f32.mrb[27].mxu0  ;;  %vm6519_vm14 = vmpackc.low %vm1916_vm11, %vm1908_vm8 }
 0x1eb   :  { %12900 = vst [vmem:[#allocation36_spill] sm:$0xff] %v7855_v30  ;;  %12901 = vst [vmem:[#allocation37_spill] sm:$0xff] %v7857_v54  ;;  %6520 = vmatprep.subr.msk.bf16.mxu0 %vm6519_vm14, %v12895_v5 }
 0x1ec   :  { %12899 = vst [vmem:[#allocation35_spill] sm:$0xff] %v7853_v58  ;;  %v1462_v42 = vsel %vm12675_vm2, %v7853_v58, -inf  ;;  %vm1907_vm15 = vmand %vm1764_vm9, %vm1843_vm10  ;;  %vm1780_vm9 = vcmp.eq.s32.totalorder %v7780_v24, %v7708_v32  ;;  %vm1859_vm10 = vcmp.eq.s32.totalorder %v7786_v50, %v7710_v41 }
 0x1ed   :  { %v610_v43 = vpop.f32.mrb[28].mxu1  ;;  %v7870_v54 = vpop.f32.mrb[28].mxu0  ;;  %1463 = vmax.xlane.f32.xlu1 %v1462_v42  ;;  %vm1915_vm4 = vmand %vm1772_vm12, %vm1851_vm13  ;;  %vm1788_vm12 = vcmp.eq.s32.totalorder %v7783_v31, %v7708_v32  ;;  %vm1867_vm13 = vcmp.eq.s32.totalorder %v7801_v38, %v7710_v41  ;;  %v7940_v32 = vand.u32 15, %v1721_v8 }
 0x1ee   :  { %v7878_v3 = vadd.f32 %v610_v43, %v7593_v52  ;;  %v7880_v46 = vpop.f32.mrb[29].mxu1  ;;  %v7882_v45 = vpop.f32.mrb[29].mxu0  ;;  %vm6521_vm7 = vmpackc.low %vm1915_vm4, %vm1907_vm15  ;;  %v7901_v43 = vand.u32 15, %v1719_v4  ;;  %v7935_v4 = vshra.s32 %v1721_v8, 8 }
 0x1ef   :  { %12903 = vst [vmem:[#allocation39_spill] sm:$0xff] %v7880_v46  ;;  %12904 = vst [vmem:[#allocation40_spill] sm:$0xff] %v7882_v45  ;;  %6522 = vmatpush1.bf16.msk.msra.mxu0 %vm6521_vm7, %v12895_v5 }
 0x1f0   :  { %12902 = vst [vmem:[#allocation38_spill] sm:$0xff] %v7878_v3  ;;  %vm7885_vm8 = vmand %vm1781_vm0, %vm1860_vm3  ;;  %v1465_v40 = vsel %vm12675_vm2, %v7878_v3, -inf  ;;  %vm1735_vm0 = vcmp.eq.s32.totalorder %v7514_v39, %v7893_v25  ;;  %vm1814_vm3 = vcmp.eq.s32.totalorder %v7518_v29, %v7901_v43 }
 0x1f1   :  { %vm1932_vm11 = vmand %vm1789_vm5, %vm1868_vm6  ;;  %v616_v45 = vpop.f32.mrb[30].mxu1  ;;  %v7903_v9 = vpop.f32.mrb[30].mxu0  ;;  %1466 = vmax.xlane.f32.xlu0 %v1465_v40  ;;  %vm1743_vm5 = vcmp.eq.s32.totalorder %v7503_v14, %v7893_v25  ;;  %vm1822_vm6 = vcmp.eq.s32.totalorder %v7497_v37, %v7901_v43 }
 0x1f2   :  { %vm6523_vm14 = vmpackc.low %vm1932_vm11, %vm7885_vm8  ;;  %v7909_v3 = vadd.f32 %v616_v45, %v7593_v52  ;;  %v7911_v58 = vpop.f32.mrb[31].mxu1  ;;  %v7913_v46 = vpop.f32.mrb[31].mxu0  ;;  %vm1737_vm11 = vcmp.eq.s32.totalorder %v7514_v39, %v7935_v4 }
 0x1f3   :  { %12908 = vst [vmem:[#allocation42_spill] sm:$0xff] %v7911_v58  ;;  %12909 = vst [vmem:[#allocation43_spill] sm:$0xff] %v7913_v46  ;;  %6524 = vmatprep.subr.msk.bf16.mxu0 %vm6523_vm14, %v12895_v5  ;;  %vm1824_vm14 = vcmp.eq.s32.totalorder %v7497_v37, %v7940_v32 }
 0x1f4   :  { %12907 = vst [vmem:[#allocation41_spill] sm:$0xff] %v7909_v3  ;;  %vm1923_vm15 = vmand %vm1780_vm9, %vm1859_vm10  ;;  %v1468_v45 = vsel %vm12675_vm2, %v7909_v3, -inf }
 0x1f5   :  { %vm1931_vm4 = vmand %vm1788_vm12, %vm1867_vm13  ;;  %v622_v41 = vpop.f32.mrb[32].mxu1  ;;  %v7937_v42 = vpop.f32.mrb[32].mxu0  ;;  %1469 = vmax.xlane.f32.xlu1 %v1468_v45  ;;  %vm1816_vm12 = vcmp.eq.s32.totalorder %v7518_v29, %v7940_v32  ;;  %vm1745_vm13 = vcmp.eq.s32.totalorder %v7503_v14, %v7935_v4 }
 0x1f6   :  { %vm6525_vm7 = vmpackc.low %vm1931_vm4, %vm1923_vm15  ;;  %v7943_v40 = vadd.f32 %v622_v41, %v7593_v52  ;;  %v7945_v46 = vpop.f32.mrb[33].mxu1  ;;  %v7947_v44 = vpop.f32.mrb[33].mxu0  ;;  %vm1751_vm4 = vcmp.eq.s32.totalorder %v7557_v47, %v7893_v25 }
 0x1f7   :  { %6526 = vmatpush1.bf16.msk.msra.mxu0 %vm6525_vm7, %v12895_v5  ;;  %vm1878_vm8 = vmand %vm1735_vm0, %vm1814_vm3  ;;  %12911 = vst [vmem:[#allocation45_spill] sm:$0xff] %v7945_v46  ;;  %vm1838_vm7 = vcmp.eq.s32.totalorder %v7566_v49, %v7901_v43 }
 0x1f8   :  { %12910 = vst [vmem:[#allocation44_spill] sm:$0xff] %v7943_v40  ;;  %12912 = vst [vmem:[#allocation46_spill] sm:$0xff] %v7947_v44  ;;  %v1471_v3 = vsel %vm12675_vm2, %v7943_v40, -inf }
 0x1f9   :  { %vm1886_vm9 = vmand %vm1743_vm5, %vm1822_vm6  ;;  %v628_v8 = vpop.f32.mrb[34].mxu1  ;;  %v7956_v45 = vpop.f32.mrb[34].mxu0  ;;  %1472 = vmax.xlane.f32.xlu0 %v1471_v3  ;;  %vm1759_vm5 = vcmp.eq.s32.totalorder %v7560_v48, %v7893_v25  ;;  %vm1830_vm6 = vcmp.eq.s32.totalorder %v7563_v10, %v7901_v43 }
 0x1fa   :  { %vm6527_vm10 = vmpackc.low %vm1886_vm9, %vm1878_vm8  ;;  %v7963_v41 = vadd.f32 %v628_v8, %v7593_v52  ;;  %v7965_v44 = vpop.f32.mrb[35].mxu1  ;;  %v7967_v40 = vpop.f32.mrb[35].mxu0 }
 0x1fb   :  { %6528 = vmatprep.subr.msk.bf16.mxu1 %vm6527_vm10, %v12895_v5  ;;  %12914 = vst [vmem:[#allocation48_spill] sm:$0xff] %v7965_v44  ;;  %12915 = vst [vmem:[#allocation49_spill] sm:$0xff] %v7967_v40  ;;  %vm1862_vm10 = vcmp.eq.s32.totalorder %v7786_v50, %v7901_v43 }
 0x1fc   :  { %12913 = vst [vmem:[#allocation47_spill] sm:$0xff] %v7963_v41  ;;  %vm1880_vm15 = vmand %vm1737_vm11, %vm1816_vm12  ;;  %v1474_v46 = vsel %vm12675_vm2, %v7963_v41, -inf  ;;  %vm1753_vm11 = vcmp.eq.s32.totalorder %v7557_v47, %v7935_v4  ;;  %vm1832_vm12 = vcmp.eq.s32.totalorder %v7563_v10, %v7940_v32 }
 0x1fd   :  { %vm1888_vm0 = vmand %vm1745_vm13, %vm1824_vm14  ;;  %v634_v58 = vpop.f32.mrb[36].mxu1  ;;  %v7971_v3 = vpop.f32.mrb[36].mxu0  ;;  %1475 = vmax.xlane.f32.xlu1 %v1474_v46  ;;  %vm1761_vm13 = vcmp.eq.s32.totalorder %v7560_v48, %v7935_v4  ;;  %vm1840_vm14 = vcmp.eq.s32.totalorder %v7566_v49, %v7940_v32 }
 0x1fe   :  { %vm6543_vm3 = vmpackc.low %vm1888_vm0, %vm1880_vm15  ;;  %v7974_v2 = vadd.f32 %v634_v58, %v7593_v52  ;;  %v7976_v26 = vpop.f32.mrb[37].mxu1  ;;  %v7978_v8 = vpop.f32.mrb[37].mxu0 }
 0x1ff   :  { %12917 = vst [vmem:[#allocation51_spill] sm:$0xff] %v7976_v26  ;;  %12918 = vst [vmem:[#allocation52_spill] sm:$0xff] %v7978_v8  ;;  %6544 = vmatprep.subr.msk.bf16.mxu0 %vm6543_vm3, %v12895_v5 }
 0x200   :  { %12916 = vst [vmem:[#allocation50_spill] sm:$0xff] %v7974_v2  ;;  %v1477_v40 = vsel %vm12675_vm2, %v7974_v2, -inf  ;;  %vm8000_vm8 = vmand %vm1751_vm4, %vm1830_vm6  ;;  %vm1767_vm4 = vcmp.eq.s32.totalorder %v7629_v13, %v7893_v25  ;;  %vm1846_vm6 = vcmp.eq.s32.totalorder %v7635_v17, %v7901_v43 }
 0x201   :  { %v640_v46 = vpop.f32.mrb[38].mxu1  ;;  %v7987_v41 = vpop.f32.mrb[38].mxu0  ;;  %1478 = vmax.xlane.f32.xlu0 %v1477_v40  ;;  %vm8004_vm9 = vmand %vm1759_vm5, %vm1838_vm7  ;;  %vm1775_vm5 = vcmp.eq.s32.totalorder %v7632_v16, %v7893_v25  ;;  %vm1854_vm7 = vcmp.eq.s32.totalorder %v7638_v19, %v7901_v43 }
 0x202   :  { %v7994_v58 = vadd.f32 %v640_v46, %v7593_v52  ;;  %v7996_v8 = vpop.f32.mrb[39].mxu1  ;;  %v7998_v2 = vpop.f32.mrb[39].mxu0  ;;  %vm8030_vm15 = vmand %vm1753_vm11, %vm1832_vm12 }
 0x203   :  { %12920 = vst [vmem:[#allocation54_spill] sm:$0xff] %v7996_v8  ;;  %12921 = vst [vmem:[#allocation55_spill] sm:$0xff] %v7998_v2 }
 0x204   :  { %12919 = vst [vmem:[#allocation53_spill] sm:$0xff] %v7994_v58  ;;  %v1480_v40 = vsel %vm12675_vm2, %v7994_v58, -inf  ;;  %vm8038_vm0 = vmand %vm1761_vm13, %vm1840_vm14  ;;  %v12935_v58 = vmov 0  ;;  %vm1769_vm14 = vcmp.eq.s32.totalorder %v7629_v13, %v7935_v4 }
 0x205   :  { %v8014_v52 = vpop.f32.mrb[40].mxu1  ;;  %v8016_v46 = vpop.f32.mrb[40].mxu0  ;;  %1481 = vmax.xlane.f32.xlu1 %v1480_v40  ;;  %v12936_v58 = vsel %vm8038_vm0, 4294967295, %v12935_v58  ;;  %vm8070_vm11 = vmand %vm1767_vm4, %vm1846_vm6  ;;  %vm1848_vm4 = vcmp.eq.s32.totalorder %v7635_v17, %v7940_v32  ;;  %vm1856_vm6 = vcmp.eq.s32.totalorder %v7638_v19, %v7940_v32 }
 0x206   :  { %12926 = vst [vmem:[#allocation56_spill] sm:$0xff] %v8014_v52  ;;  %12927 = vst [vmem:[#allocation57_spill] sm:$0xff] %v8016_v46  ;;  %v8022_v2 = vpop.f32.mrb[41].mxu1  ;;  %v8024_v8 = vpop.f32.mrb[41].mxu0  ;;  %v12930_v52 = vmov 0 }
 0x207   :  { %12928 = vst [vmem:[#allocation58_spill] sm:$0xff] %v8022_v2  ;;  %12929 = vst [vmem:[#allocation59_spill] sm:$0xff] %v8024_v8  ;;  %v12931_v52 = vsel %vm8030_vm15, 4294967295, %v12930_v52 }
 0x208   :  { %12932 = vst [vmem:[#allocation60_spill] sm:$0xff] %v12931_v52  ;;  %12937 = vst [vmem:[#allocation63_spill] sm:$0xff] %v12936_v58 }
 0x209   :  { %v8034_v40 = vpop.f32.mrb[42].mxu1  ;;  %v8036_v46 = vpop.f32.mrb[42].mxu0  ;;  %vm8078_vm12 = vmand %vm1775_vm5, %vm1854_vm7  ;;  %vm1777_vm5 = vcmp.eq.s32.totalorder %v7632_v16, %v7935_v4 }
 0x20a   :  { %12933 = vst [vmem:[#allocation61_spill] sm:$0xff] %v8034_v40  ;;  %12934 = vst [vmem:[#allocation62_spill] sm:$0xff] %v8036_v46  ;;  %v8042_v2 = vpop.f32.mrb[43].mxu1  ;;  %v8044_v8 = vpop.f32.mrb[43].mxu0 }
 0x20b   :  { %12938 = vst [vmem:[#allocation64_spill] sm:$0xff] %v8042_v2  ;;  %12939 = vst [vmem:[#allocation65_spill] sm:$0xff] %v8044_v8  ;;  %v12951_v2 = vmov 0 }
 0x20c   :  { %v12952_v2 = vsel %vm8078_vm12, 4294967295, %v12951_v2  ;;  %vm8103_vm7 = vmand %vm1769_vm14, %vm1848_vm4  ;;  %vm1783_vm4 = vcmp.eq.s32.totalorder %v7780_v24, %v7893_v25  ;;  %vm12989_vm14 = vcmp.eq.s32.totalorder %v7786_v50, %v7940_v32 }
 0x20d   :  { %v8050_v30 = vpop.f32.mrb[44].mxu1  ;;  %v8052_v53 = vpop.f32.mrb[44].mxu0  ;;  %12953 = vst [vmem:[#allocation75_spill] sm:$0xff] %v12952_v2  ;;  %v12958_v2 = vmov 0  ;;  %vm8107_vm13 = vmand %vm1777_vm5, %vm1856_vm6  ;;  %vm1791_vm5 = vcmp.eq.s32.totalorder %v7783_v31, %v7893_v25 }
 0x20e   :  { %12940 = vst [vmem:[#allocation66_spill] sm:$0xff] %v8050_v30  ;;  %12941 = vst [vmem:[#allocation67_spill] sm:$0xff] %v8052_v53  ;;  %v8054_v40 = vpop.f32.mrb[45].mxu1  ;;  %v8056_v46 = vpop.f32.mrb[45].mxu0  ;;  %v12959_v2 = vsel %vm8103_vm7, 4294967295, %v12958_v2 }
 0x20f   :  { %12942 = vst [vmem:[#allocation68_spill] sm:$0xff] %v8054_v40  ;;  %12943 = vst [vmem:[#allocation69_spill] sm:$0xff] %v8056_v46  ;;  %v12946_v40 = vmov 0 }
 0x210   :  { %v12947_v40 = vsel %vm8070_vm11, 4294967295, %v12946_v40  ;;  %12960 = vst [vmem:[#allocation80_spill] sm:$0xff] %v12959_v2  ;;  %v1720_v2 = vadd.s32 768, %v7255_v61  ;;  %vm8140_vm6 = vmand %vm1783_vm4, %vm1862_vm10  ;;  %vm12975_vm10 = vcmp.eq.s32.totalorder %v7801_v38, %v7901_v43 }
 0x211   :  { %v8066_v8 = vpop.f32.mrb[46].mxu1  ;;  %v8068_v30 = vpop.f32.mrb[46].mxu0  ;;  %12948 = vst [vmem:[#allocation72_spill] sm:$0xff] %v12947_v40  ;;  %v1718_v40 = vadd.s32 512, %v7255_v61  ;;  %vm8159_vm4 = vmand %vm1791_vm5, %vm12975_vm10  ;;  %vm1785_vm5 = vcmp.eq.s32.totalorder %v7780_v24, %v7935_v4  ;;  %v12984_v61 = vmov 0 }
 0x212   :  { %12944 = vst [vmem:[#allocation70_spill] sm:$0xff] %v8066_v8  ;;  %12945 = vst [vmem:[#allocation71_spill] sm:$0xff] %v8068_v30  ;;  %v8074_v46 = vpop.f32.mrb[47].mxu1  ;;  %v8076_v53 = vpop.f32.mrb[47].mxu0 }
 0x213   :  { %12949 = vst [vmem:[#allocation73_spill] sm:$0xff] %v8074_v46  ;;  %12950 = vst [vmem:[#allocation74_spill] sm:$0xff] %v8076_v53 }
 0x215   :  { %v8090_v30 = vpop.f32.mrb[48].mxu1  ;;  %v8092_v46 = vpop.f32.mrb[48].mxu0 }
 0x216   :  { %12954 = vst [vmem:[#allocation76_spill] sm:$0xff] %v8090_v30  ;;  %12955 = vst [vmem:[#allocation77_spill] sm:$0xff] %v8092_v46  ;;  %v8098_v53 = vpop.f32.mrb[49].mxu1  ;;  %v8100_v8 = vpop.f32.mrb[49].mxu0  ;;  %v12961_v30 = vmov 0 }
 0x217   :  { %12956 = vst [vmem:[#allocation78_spill] sm:$0xff] %v8098_v53  ;;  %12957 = vst [vmem:[#allocation79_spill] sm:$0xff] %v8100_v8  ;;  %v12962_v30 = vsel %vm8107_vm13, 4294967295, %v12961_v30 }
 0x218   :  { %12963 = vst [vmem:[#allocation81_spill] sm:$0xff] %v12962_v30 }
 0x219   :  { %v8111_v46 = vpop.f32.mrb[50].mxu1  ;;  %v8113_v52 = vpop.f32.mrb[50].mxu0 }
 0x21a   :  { %12964 = vst [vmem:[#allocation82_spill] sm:$0xff] %v8111_v46  ;;  %12965 = vst [vmem:[#allocation83_spill] sm:$0xff] %v8113_v52  ;;  %v8123_v8 = vpop.f32.mrb[51].mxu1  ;;  %v8125_v53 = vpop.f32.mrb[51].mxu0  ;;  %v8129_v46 = vshra.s32 %v1718_v40, 8  ;;  %v8131_v52 = vand.u32 15, %v1718_v40 }
 0x21b   :  { %12966 = vst [vmem:[#allocation84_spill] sm:$0xff] %v8123_v8  ;;  %12967 = vst [vmem:[#allocation85_spill] sm:$0xff] %v8125_v53  ;;  %v12970_v8 = vmov 0  ;;  %v12976_v53 = vmov 0 }
 0x21c   :  { %v12971_v8 = vsel %vm8140_vm6, 4294967295, %v12970_v8  ;;  %vm1782_vm3 = vcmp.eq.s32.totalorder %v7780_v24, %v8129_v46  ;;  %vm1861_vm1 = vcmp.eq.s32.totalorder %v7786_v50, %v8131_v52  ;;  %v12977_v53 = vsel %vm8159_vm4, 4294967295, %v12976_v53  ;;  %vm8202_vm6 = vmand %vm1785_vm5, %vm12989_vm14 }
 0x21d   :  { %v8136_v30 = vpop.f32.mrb[52].mxu1  ;;  %v8138_v58 = vpop.f32.mrb[52].mxu0  ;;  %12972 = vst [vmem:[#allocation88_spill] sm:$0xff] %v12971_v8  ;;  %12978 = vst [vmem:[#allocation91_spill] sm:$0xff] %v12977_v53  ;;  %vm1790_vm7 = vcmp.eq.s32.totalorder %v7783_v31, %v8129_v46  ;;  %vm1869_vm2 = vcmp.eq.s32.totalorder %v7801_v38, %v8131_v52  ;;  %vm12992_vm4 = vcmp.eq.s32.totalorder %v7801_v38, %v7940_v32 }
 0x21e   :  { %12968 = vst [vmem:[#allocation86_spill] sm:$0xff] %v8136_v30  ;;  %12969 = vst [vmem:[#allocation87_spill] sm:$0xff] %v8138_v58  ;;  %v8152_v25 = vpop.f32.mrb[53].mxu1  ;;  %v8154_v40 = vpop.f32.mrb[53].mxu0  ;;  %v8181_v58 = vshra.s32 %v1720_v2, 8  ;;  %v8183_v30 = vand.u32 15, %v1720_v2  ;;  %vm1774_vm15 = vcmp.eq.s32.totalorder %v7632_v16, %v8129_v46 }
 0x21f   :  { %12973 = vst [vmem:[#allocation89_spill] sm:$0xff] %v8152_v25  ;;  %12974 = vst [vmem:[#allocation90_spill] sm:$0xff] %v8154_v40  ;;  %v12979_v40 = vmov 0  ;;  %v12990_v2 = vmov 0 }
 0x220   :  { %vm8171_vm13 = vmand %vm1782_vm3, %vm1861_vm1  ;;  %vm1793_vm1 = vcmp.eq.s32.totalorder %v7783_v31, %v7935_v4  ;;  %v12991_v2 = vsel %vm8202_vm6, 4294967295, %v12990_v2  ;;  %v12993_v4 = vmov 0  ;;  %vm1792_vm3 = vcmp.eq.s32.totalorder %v7783_v31, %v8181_v58 }
 0x221   :  { %v12980_v40 = vsel %vm8171_vm13, 4294967295, %v12979_v40  ;;  %v8177_v43 = vpop.f32.mrb[54].mxu1  ;;  %v8179_v25 = vpop.f32.mrb[54].mxu0  ;;  %vm8185_vm10 = vmand %vm1790_vm7, %vm1869_vm2  ;;  %vm1784_vm2 = vcmp.eq.s32.totalorder %v7780_v24, %v8181_v58  ;;  %vm1863_vm7 = vcmp.eq.s32.totalorder %v7786_v50, %v8183_v30  ;;  %vm1871_vm14 = vcmp.eq.s32.totalorder %v7801_v38, %v8183_v30 }
 0x222   :  { %12981 = vst [vmem:[#allocation92_spill] sm:$0xff] %v12980_v40  ;;  %12982 = vst [vmem:[#allocation93_spill] sm:$0xff] %v8177_v43  ;;  %v12985_v61 = vsel %vm8185_vm10, 4294967295, %v12984_v61  ;;  %v8191_v8 = vpop.f32.mrb[55].mxu1  ;;  %v8193_v53 = vpop.f32.mrb[55].mxu0  ;;  %v13002_v43 = vmov 0  ;;  %vm13097_vm10 = vcmp.eq.s32.totalorder %v7566_v49, %v8131_v52  ;;  %vm13098_vm6 = vcmp.eq.s32.totalorder %v7560_v48, %v8129_v46 }
 0x223   :  { %12983 = vst [vmem:[#allocation94_spill] sm:$0xff] %v8179_v25  ;;  %12986 = vst [vmem:[#allocation95_spill] sm:$0xff] %v12985_v61  ;;  %v12999_v25 = vmov 0 }
 0x224   :  { %12987 = vst [vmem:[#allocation96_spill] sm:$0xff] %v8191_v8  ;;  %12988 = vst [vmem:[#allocation97_spill] sm:$0xff] %v8193_v53 }
 0x225   :  { %vm8213_vm11 = vmand %vm1793_vm1, %vm12992_vm4  ;;  %v8221_v53 = vpop.f32.mrb[56].mxu1  ;;  %v8223_v8 = vpop.f32.mrb[56].mxu0 }
 0x226   :  { %v12994_v4 = vsel %vm8213_vm11, 4294967295, %v12993_v4  ;;  %12995 = vst [vmem:[#allocation98_spill] sm:$0xff] %v8221_v53  ;;  %12996 = vst [vmem:[#allocation99_spill] sm:$0xff] %v8223_v8  ;;  %v8229_v50 = vpop.f32.mrb[57].mxu1  ;;  %v8231_v32 = vpop.f32.mrb[57].mxu0 }
 0x227   :  { %12997 = vst [vmem:[#allocation100_spill] sm:$0xff] %v8229_v50  ;;  %12998 = vst [vmem:[#allocation101_spill] sm:$0xff] %v8231_v32 }
 0x228   :  { %vm8233_vm4 = vmand %vm1784_vm2, %vm1863_vm7  ;;  %vm1813_vm2 = vcmp.eq.s32.totalorder %v7518_v29, %v8131_v52  ;;  %vm13092_vm7 = vcmp.eq.s32.totalorder %v7563_v10, %v8131_v52 }
 0x229   :  { %v13000_v25 = vsel %vm8233_vm4, 4294967295, %v12999_v25  ;;  %vm8237_vm1 = vmand %vm1792_vm3, %vm1871_vm14  ;;  %v8245_v38 = vpop.f32.mrb[58].mxu1  ;;  %v8247_v8 = vpop.f32.mrb[58].mxu0  ;;  %vm1734_vm3 = vcmp.eq.s32.totalorder %v7514_v39, %v8129_v46  ;;  %vm1821_vm14 = vcmp.eq.s32.totalorder %v7497_v37, %v8131_v52  ;;  %vm13081_vm4 = vcmp.eq.s32.totalorder %v7518_v29, %v8183_v30 }
 0x22a   :  { %13001 = vst [vmem:[#allocation102_spill] sm:$0xff] %v13000_v25  ;;  %v13003_v43 = vsel %vm8237_vm1, 4294967295, %v13002_v43  ;;  %13005 = vst [vmem:[#allocation104_spill] sm:$0xff] %v8245_v38  ;;  %v8249_v53 = vpop.f32.mrb[59].mxu1  ;;  %v8251_v32 = vpop.f32.mrb[59].mxu0  ;;  %vm13096_vm1 = vcmask 31744  }
 0x22b   :  { %13004 = vst [vmem:[#allocation103_spill] sm:$0xff] %v13003_v43  ;;  %13006 = vst [vmem:[#allocation105_spill] sm:$0xff] %v8247_v8 }
 0x22c   :  { %13007 = vst [vmem:[#allocation106_spill] sm:$0xff] %v8249_v53  ;;  %13008 = vst [vmem:[#allocation107_spill] sm:$0xff] %v8251_v32 }
 0x22d   :  { %v8253_v50 = vpop.f32.mrb[60].mxu1  ;;  %v8255_v31 = vpop.f32.mrb[60].mxu0  ;;  %vm8452_vm13 = vmand %vm1734_vm3, %vm1813_vm2  ;;  %vm13077_vm3 = vcmp.eq.s32.totalorder %v7503_v14, %v8129_v46 }
 0x22e   :  { %13009 = vst [vmem:[#allocation108_spill] sm:$0xff] %v8253_v50  ;;  %13010 = vst [vmem:[#allocation109_spill] sm:$0xff] %v8255_v31  ;;  %v8257_v24 = vpop.f32.mrb[61].mxu1  ;;  %v8259_v40 = vpop.f32.mrb[61].mxu0 }
 0x22f   :  { %13011 = vst [vmem:[#allocation110_spill] sm:$0xff] %v8257_v24  ;;  %13012 = vst [vmem:[#allocation111_spill] sm:$0xff] %v8259_v40  ;;  %v12694_v40 = vsub.s32 2, %v7253_v60 }
 0x230   :  { %vm8470_vm2 = vmand %vm13077_vm3, %vm1821_vm14  ;;  %vm13082_vm14 = vcmp.eq.s32.totalorder %v7514_v39, %v8181_v58 }
 0x231   :  { %v8261_v25 = vpop.f32.mrb[62].mxu1  ;;  %v8263_v43 = vpop.f32.mrb[62].mxu0  ;;  %vm8489_vm3 = vmand %vm13082_vm14, %vm13081_vm4  ;;  %vm13087_vm4 = vcmp.eq.s32.totalorder %v7497_v37, %v8183_v30  ;;  %vm13088_vm14 = vcmp.eq.s32.totalorder %v7503_v14, %v8181_v58 }
 0x232   :  { %13013 = vst [vmem:[#allocation112_spill] sm:$0xff] %v8261_v25  ;;  %13014 = vst [vmem:[#allocation113_spill] sm:$0xff] %v8263_v43  ;;  %v8265_v61 = vpop.f32.mrb[63].mxu1  ;;  %v8267_v38 = vpop.f32.mrb[63].mxu0 }
 0x233   :  { %13015 = vst [vmem:[#allocation114_spill] sm:$0xff] %v8265_v61  ;;  %13016 = vst [vmem:[#allocation115_spill] sm:$0xff] %v8267_v38 }
 0x234   :  { %vm8513_vm5 = vmand %vm13088_vm14, %vm13087_vm4  ;;  %vm13093_vm4 = vcmp.eq.s32.totalorder %v7557_v47, %v8129_v46 }
 0x235   :  { %v8269_v8 = vpop.f32.mrb[64].mxu1  ;;  %v8271_v53 = vpop.f32.mrb[64].mxu0  ;;  %vm8531_vm14 = vmand %vm13093_vm4, %vm13092_vm7 }
 0x236   :  { %13017 = vst [vmem:[#allocation116_spill] sm:$0xff] %v8269_v8  ;;  %13018 = vst [vmem:[#allocation117_spill] sm:$0xff] %v8271_v53  ;;  %v8273_v32 = vpop.f32.mrb[65].mxu1  ;;  %v8275_v50 = vpop.f32.mrb[65].mxu0  ;;  %v8293_v53 = vrot.slane %v7572_v51, %v12694_v40 }
 0x237   :  { %13019 = vst [vmem:[#allocation118_spill] sm:$0xff] %v8273_v32  ;;  %13020 = vst [vmem:[#allocation119_spill] sm:$0xff] %v8275_v50 }
 0x238   :  { %v724_v40 = vadd.f32 %v7626_v12, %v8293_v53  ;;  %v736_v12 = vadd.f32 %v7693_v35, %v8293_v53  ;;  %vm8546_vm7 = vmand %vm13098_vm6, %vm13097_vm10  ;;  %vm13107_vm6 = vcmask 523264   ;;  %vm13110_vm10 = vcmp.eq.s32.totalorder %v7563_v10, %v8183_v30 }
 0x239   :  { %v8277_v31 = vpop.f32.mrb[66].mxu1  ;;  %v8279_v24 = vpop.f32.mrb[66].mxu0  ;;  %vm13108_vm11 = vmmov %vm13107_vm6 }
 0x23a   :  { %13021 = vst [vmem:[#allocation120_spill] sm:$0xff] %v8277_v31  ;;  %13022 = vst [vmem:[#allocation121_spill] sm:$0xff] %v8279_v24  ;;  %v8282_v25 = vpop.f32.mrb[67].mxu1  ;;  %v8284_v43 = vpop.f32.mrb[67].mxu0 }
 0x23b   :  { %13023 = vst [vmem:[#allocation122_spill] sm:$0xff] %v8282_v25  ;;  %13024 = vst [vmem:[#allocation123_spill] sm:$0xff] %v8284_v43  ;;  %v712_v43 = vadd.f32 %v7596_v55, %v8293_v53  ;;  %v730_v55 = vadd.f32 %v7661_v15, %v8293_v53 }
 0x23c   :  { %vm13109_vm12 = vmmov %vm13096_vm1 }
 0x23d   :  { %v8286_v61 = vpop.f32.mrb[68].mxu1  ;;  %v8288_v38 = vpop.f32.mrb[68].mxu0  ;;  %6726 = vtanh.f32 %v712_v43 }
 0x23e   :  { %13025 = vst [vmem:[#allocation124_spill] sm:$0xff] %v8286_v61  ;;  %13026 = vst [vmem:[#allocation125_spill] sm:$0xff] %v8288_v38  ;;  %v8295_v50 = vpop.f32.mrb[69].mxu1  ;;  %v8297_v31 = vpop.f32.mrb[69].mxu0  ;;  %v718_v38 = vadd.f32 %v7608_v63, %v8293_v53 }
 0x23f   :  { %13027 = vst [vmem:[#allocation126_spill] sm:$0xff] %v8295_v50  ;;  %13028 = vst [vmem:[#allocation127_spill] sm:$0xff] %v8297_v31 }
 0x240   :  { %6728 = vtanh.f32 %v718_v38 }
 0x241   :  { %v8299_v24 = vpop.f32.mrb[70].mxu1  ;;  %v8301_v8 = vpop.f32.mrb[70].mxu0  ;;  %6730 = vtanh.f32 %v724_v40 }
 0x242   :  { %13029 = vst [vmem:[#allocation128_spill] sm:$0xff] %v8299_v24  ;;  %13030 = vst [vmem:[#allocation129_spill] sm:$0xff] %v8301_v8  ;;  %v8305_v25 = vpop.f32.mrb[71].mxu1  ;;  %v8307_v61 = vpop.f32.mrb[71].mxu0  ;;  %6732 = vtanh.f32 %v730_v55 }
 0x243   :  { %13031 = vst [vmem:[#allocation130_spill] sm:$0xff] %v8305_v25  ;;  %13032 = vst [vmem:[#allocation131_spill] sm:$0xff] %v8307_v61  ;;  %6734 = vtanh.f32 %v736_v12 }
 0x245   :  { %v8313_v50 = vpop.f32.mrb[72].mxu1  ;;  %v8315_v31 = vpop.f32.mrb[72].mxu0 }
 0x246   :  { %13033 = vst [vmem:[#allocation132_spill] sm:$0xff] %v8313_v50  ;;  %13034 = vst [vmem:[#allocation133_spill] sm:$0xff] %v8315_v31  ;;  %v8317_v24 = vpop.f32.mrb[73].mxu1  ;;  %v8319_v8 = vpop.f32.mrb[73].mxu0 }
 0x247   :  { %13035 = vst [vmem:[#allocation134_spill] sm:$0xff] %v8317_v24  ;;  %13036 = vst [vmem:[#allocation135_spill] sm:$0xff] %v8319_v8  ;;  %v8341_v40 = vpop.eup %6726 }
 0x248   :  { %13045 = vst [vmem:[#allocation144_spill] sm:$0xff] %v8341_v40  ;;  %v1643_v12 = vmul.f32 1.442695, %v8341_v40  ;;  %v748_v40 = vadd.f32 %v7755_v33, %v8293_v53  ;;  %v754_v33 = vadd.f32 %v7793_v11, %v8293_v53  ;;  %v760_v11 = vadd.f32 %v7825_v22, %v8293_v53 }
 0x249   :  { %v8323_v61 = vpop.f32.mrb[74].mxu1  ;;  %v8325_v63 = vpop.f32.mrb[74].mxu0 }
 0x24a   :  { %13037 = vst [vmem:[#allocation136_spill] sm:$0xff] %v8323_v61  ;;  %13038 = vst [vmem:[#allocation137_spill] sm:$0xff] %v8325_v63  ;;  %v8329_v50 = vpop.f32.mrb[75].mxu1  ;;  %v8331_v31 = vpop.f32.mrb[75].mxu0  ;;  %6736 = vpow2.f32 %v1643_v12 }
 0x24b   :  { %13039 = vst [vmem:[#allocation138_spill] sm:$0xff] %v8329_v50  ;;  %13040 = vst [vmem:[#allocation139_spill] sm:$0xff] %v8331_v31  ;;  %v8343_v63 = vpop.eup %6728 }
 0x24c   :  { %13046 = vst [vmem:[#allocation145_spill] sm:$0xff] %v8343_v63 }
 0x24d   :  { %v8333_v43 = vpop.f32.mrb[76].mxu1  ;;  %v8335_v8 = vpop.f32.mrb[76].mxu0 }
 0x24e   :  { %13041 = vst [vmem:[#allocation140_spill] sm:$0xff] %v8333_v43  ;;  %13042 = vst [vmem:[#allocation141_spill] sm:$0xff] %v8335_v8  ;;  %v8337_v38 = vpop.f32.mrb[77].mxu1  ;;  %v8339_v15 = vpop.f32.mrb[77].mxu0  ;;  %v1645_v8 = vmul.f32 1.442695, %v8343_v63 }
 0x24f   :  { %13043 = vst [vmem:[#allocation142_spill] sm:$0xff] %v8337_v38  ;;  %13044 = vst [vmem:[#allocation143_spill] sm:$0xff] %v8339_v15  ;;  %v8353_v43 = vpop.eup %6730  ;;  %v742_v15 = vadd.f32 %v7725_v62, %v8293_v53 }
 0x250   :  { %13051 = vst [vmem:[#allocation150_spill] sm:$0xff] %v8353_v43  ;;  %6738 = vpow2.f32 %v1645_v8 }
 0x251   :  { %v8345_v61 = vpop.f32.mrb[78].mxu1  ;;  %v8347_v35 = vpop.f32.mrb[78].mxu0  ;;  %6740 = vtanh.f32 %v742_v15 }
 0x252   :  { %13047 = vst [vmem:[#allocation146_spill] sm:$0xff] %v8345_v61  ;;  %13048 = vst [vmem:[#allocation147_spill] sm:$0xff] %v8347_v35  ;;  %v8349_v50 = vpop.f32.mrb[79].mxu1  ;;  %v8351_v55 = vpop.f32.mrb[79].mxu0  ;;  %v1647_v35 = vmul.f32 1.442695, %v8353_v43 }
 0x253   :  { %13049 = vst [vmem:[#allocation148_spill] sm:$0xff] %v8349_v50  ;;  %13050 = vst [vmem:[#allocation149_spill] sm:$0xff] %v8351_v55  ;;  %v8363_v61 = vpop.eup %6732 }
 0x254   :  { %13054 = vst [vmem:[#allocation153_spill] sm:$0xff] %v8363_v61  ;;  %v8372_v24 = vpop.eup %6734  ;;  %6742 = vpow2.f32 %v1647_v35 }
 0x255   :  { %v8359_v31 = vpop.f32.mrb[80].mxu1  ;;  %v8361_v38 = vpop.f32.mrb[80].mxu0  ;;  %13057 = vst [vmem:[#allocation156_spill] sm:$0xff] %v8372_v24  ;;  %6744 = vtanh.f32 %v748_v40 }
 0x256   :  { %13052 = vst [vmem:[#allocation151_spill] sm:$0xff] %v8359_v31  ;;  %13053 = vst [vmem:[#allocation152_spill] sm:$0xff] %v8361_v38  ;;  %v8366_v50 = vpop.f32.mrb[81].mxu1  ;;  %v8368_v55 = vpop.f32.mrb[81].mxu0  ;;  %v1649_v31 = vmul.f32 1.442695, %v8363_v61 }
 0x257   :  { %13055 = vst [vmem:[#allocation154_spill] sm:$0xff] %v8366_v50  ;;  %13056 = vst [vmem:[#allocation155_spill] sm:$0xff] %v8368_v55  ;;  %v1437_v63 = vpop.xlane.xlu0 %1436 }
 0x258   :  { %v8376_v38 = vsub.f32 %v7599_v56, %v1437_v63  ;;  %v1651_v56 = vmul.f32 1.442695, %v8372_v24  ;;  %v13063_v63 = vsub.s32 1, %v7253_v60 }
 0x259   :  { %v8379_v43 = vpop.f32.mrb[82].mxu1  ;;  %v8381_v50 = vpop.f32.mrb[82].mxu0 }
 0x25a   :  { %13058 = vst [vmem:[#allocation157_spill] sm:$0xff] %v8376_v38  ;;  %13059 = vst [vmem:[#allocation158_spill] sm:$0xff] %v8379_v43  ;;  %v1499_v12 = vmul.f32 1.442695, %v8376_v38  ;;  %v8386_v55 = vpop.f32.mrb[83].mxu1  ;;  %v8388_v62 = vpop.f32.mrb[83].mxu0  ;;  %v8394_v15 = vrot.slane %v7572_v51, %v13063_v63 }
 0x25b   :  { %13060 = vst [vmem:[#allocation159_spill] sm:$0xff] %v8381_v50  ;;  %13061 = vst [vmem:[#allocation160_spill] sm:$0xff] %v8386_v55  ;;  %v1440_v8 = vpop.xlane.xlu0 %1439  ;;  %v13626_v43 = vld [vmem:[#allocation96_spill] sm:$0xff] }
 0x25c   :  { %13062 = vst [vmem:[#allocation161_spill] sm:$0xff] %v8388_v62  ;;  %6746 = vpow2.f32 %v1499_v12  ;;  %v8397_v35 = vsub.f32 %v7611_v0, %v1440_v8  ;;  %v8407_v40 = vadd.f32 %v7613_v1, %v8394_v15  ;;  %v766_v0 = vadd.f32 %v7845_v59, %v8293_v53 }
 0x25d   :  { %6748 = vpow2.f32 %v1649_v31  ;;  %v8401_v38 = vpop.f32.mrb[84].mxu1  ;;  %v8403_v61 = vpop.f32.mrb[84].mxu0  ;;  %v772_v59 = vadd.f32 %v7870_v54, %v8293_v53  ;;  %v778_v8 = vadd.f32 %v7903_v9, %v8293_v53  ;;  %v8503_v29 = vadd.f32 %v7643_v21, %v8394_v15 }
 0x25e   :  { %13064 = vst [vmem:[#allocation162_spill] sm:$0xff] %v8397_v35  ;;  %13065 = vst [vmem:[#allocation163_spill] sm:$0xff] %v8401_v38  ;;  %6750 = vtanh.f32 %v754_v33  ;;  %v1501_v51 = vmul.f32 1.442695, %v8397_v35  ;;  %v8410_v63 = vpop.f32.mrb[85].mxu1  ;;  %v8412_v12 = vpop.f32.mrb[85].mxu0  ;;  %v8622_v10 = vadd.f32 %v7734_v7, %v8394_v15  ;;  %v8648_v24 = vadd.f32 %v7808_v28, %v8394_v15 }
 0x25f   :  { %13066 = vst [vmem:[#allocation164_spill] sm:$0xff] %v8403_v61  ;;  %13067 = vst [vmem:[#allocation165_spill] sm:$0xff] %v8410_v63  ;;  %6752 = vpow2.f32 %v1651_v56  ;;  %v1443_v22 = vpop.xlane.xlu1 %1442  ;;  %v6737_v31 = vpop.eup %6736  ;;  %v796_v61 = vadd.f32 %v7971_v3, %v8293_v53  ;;  %v13183_v28 = vld [vmem:[#allocation39_spill] sm:$0xff]  ;;  %v13624_v38 = vld [vmem:[#allocation94_spill] sm:$0xff] }
 0x260   :  { %13068 = vst [vmem:[#allocation166_spill] sm:$0xff] %v8412_v12  ;;  %6754 = vpow2.f32 %v1501_v51  ;;  %v8421_v1 = vsub.f32 %v7641_v20, %v1443_v22  ;;  %v8437_v20 = vpop.eup %6738 }
 0x261   :  { %6756 = vtanh.f32 %v760_v11  ;;  %v8429_v33 = vpop.f32.mrb[86].mxu1  ;;  %v8431_v56 = vpop.f32.mrb[86].mxu0 }
 0x262   :  { %13069 = vst [vmem:[#allocation167_spill] sm:$0xff] %v8421_v1  ;;  %13070 = vst [vmem:[#allocation168_spill] sm:$0xff] %v8429_v33  ;;  %v1503_v11 = vmul.f32 1.442695, %v8421_v1  ;;  %v8442_v51 = vpop.f32.mrb[87].mxu1  ;;  %v8444_v54 = vpop.f32.mrb[87].mxu0  ;;  %6758 = vtanh.f32 %v766_v0  ;;  %v784_v1 = vadd.f32 %v7937_v42, %v8293_v53 }
 0x263   :  { %13071 = vst [vmem:[#allocation169_spill] sm:$0xff] %v8431_v56  ;;  %13072 = vst [vmem:[#allocation170_spill] sm:$0xff] %v8442_v51  ;;  %v8460_v9 = vpop.eup %6740  ;;  %v1446_v35 = vpop.xlane.xlu1 %1445  ;;  %v10422_v51 = vadd.s32 664, %v7253_v60 }
 0x264   :  { %13073 = vst [vmem:[#allocation171_spill] sm:$0xff] %v8444_v54  ;;  %13076 = vst [vmem:[#allocation172_spill] sm:$0xff] %v8460_v9  ;;  %v8478_v0 = vpop.eup %6742  ;;  %6760 = vpow2.f32 %v1503_v11  ;;  %v8481_v42 = vsub.f32 %v7668_v23, %v1446_v35  ;;  %v553_v23 = vadd.f32 %v7601_v57, %v8394_v15  ;;  %v8519_v57 = vadd.f32 %v7670_v27, %v8394_v15 }
 0x265   :  { %v8497_v11 = vpop.eup %6744  ;;  %6762 = vtanh.f32 %v772_v59  ;;  %v8505_v35 = vpop.f32.mrb[88].mxu1  ;;  %v1653_v7 = vmul.f32 1.442695, %v8460_v9  ;;  %v2453_v25 = vshra.s32 %v10422_v51, 4 }
 0x266   :  { %13080 = vst [vmem:[#allocation173_spill] sm:$0xff] %v8481_v42  ;;  %13085 = vst [vmem:[#allocation174_spill] sm:$0xff] %v8497_v11  ;;  %v6289_v54 = vpop.f32.mrb[88].mxu0  ;;  %v6747_v12 = vpop.eup %6746  ;;  %6764 = vtanh.f32 %v778_v8  ;;  %v1505_v21 = vmul.f32 1.442695, %v8481_v42  ;;  %v790_v8 = vadd.f32 %v7956_v45, %v8293_v53 }
 0x267   :  { %13086 = vst [vmem:[#allocation175_spill] sm:$0xff] %v8505_v35  ;;  %v3204_v59 = vsub.f32 %v6289_v54, %v8407_v40  ;;  %v8523_v50 = vpop.f32.mrb[89].mxu1  ;;  %v3124_v37 = vpop.f32.mrb[89].mxu0  ;;  %6766 = vtanh.f32 %v784_v1  ;;  %v1531_v42 = vsel %vm13096_vm1, %v6747_v12, 0.0  ;;  %v802_v12 = vadd.f32 %v7987_v41, %v8293_v53 }
 0x268   :  { %13091 = vst [vmem:[#allocation176_spill] sm:$0xff] %v8523_v50  ;;  %v8535_v27 = vpop.eup %6748  ;;  %v3203_v40 = vsub.f32 %v3124_v37, %v553_v23  ;;  %v1449_v54 = vpop.xlane.xlu0 %1448  ;;  %6768 = vpow2.f32 %v1505_v21  ;;  %1532 = vadd.xlane.f32.xlu0 %v1531_v42  ;;  %vm13111_vm1 = vcmp.eq.s32.totalorder %v7557_v47, %v8181_v58 }
 0x269   :  { %v8550_v50 = vpop.eup %6750  ;;  %v8553_v1 = vsub.f32 %v7700_v18, %v1449_v54  ;;  %v8569_v18 = vpop.f32.mrb[90].mxu1  ;;  %vm8608_vm4 = vmand %vm13111_vm1, %vm13110_vm10  ;;  %vm13117_vm1 = vcmp.eq.s32.totalorder %v7560_v48, %v8181_v58  ;;  %v8651_v22 = vmul.f32 %v8437_v20, %v3204_v59 }
 0x26a   :  { %13101 = vst [vmem:[#allocation177_spill] sm:$0xff] %v8550_v50  ;;  %v8563_v45 = vpop.eup %6752  ;;  %v8567_v23 = vmul.f32 %v6737_v31, %v3203_v40  ;;  %13104 = vst [vmem:[#allocation180_spill] sm:$0xff] %v8569_v18  ;;  %v8571_v42 = vpop.f32.mrb[90].mxu0 }
 0x26b   :  { %13102 = vst [vmem:[#allocation178_spill] sm:$0xff] %v8553_v1  ;;  %v6755_v21 = vpop.eup %6754  ;;  %v1507_v41 = vmul.f32 1.442695, %v8553_v1  ;;  %v8584_v37 = vpop.f32.mrb[91].mxu1  ;;  %13121 = vst [vmem:[#allocation185_spill] sm:$0xff] %v8651_v22 }
 0x26c   :  { %13103 = vst [vmem:[#allocation179_spill] sm:$0xff] %v8567_v23  ;;  %13105 = vst [vmem:[#allocation181_spill] sm:$0xff] %v8584_v37  ;;  %v3134_v40 = vpop.f32.mrb[91].mxu0  ;;  %v8594_v54 = vpop.eup %6756  ;;  %5499 = vmatmul.mubr.msk.f32.vlgmr.msra.gmra.mrb[104].mxu1 %vm13107_vm6, %v8567_v23  ;;  %5531 = vmatmul.mubr.msk.f32.vlgmr.msra.gmra.mrb[104].mxu0 %vm13108_vm11, %v8567_v23  ;;  %v1534_v31 = vsel %vm13109_vm12, %v6755_v21, 0.0  ;;  %vm1853_vm6 = vcmp.eq.s32.totalorder %v7638_v19, %v8131_v52  ;;  %vm13116_vm12 = vcmp.eq.s32.totalorder %v7566_v49, %v8183_v30  ;;  %v13170_v37 = vld [vmem:[#allocation81_spill] sm:$0xff] }
 0x26d   :  { %13106 = vst [vmem:[#allocation182_spill] sm:$0xff] %v8594_v54  ;;  %v3205_v1 = vsub.f32 %v3134_v40, %v8503_v29  ;;  %v1452_v18 = vpop.xlane.xlu1 %1451  ;;  %v8618_v29 = vadd.f32 %v7702_v36, %v8394_v15  ;;  %6770 = vpow2.f32 %v1507_v41  ;;  %vm13115_vm11 = vmpackc.low %vm8470_vm2, %vm8452_vm13  ;;  %1535 = vadd.xlane.f32.xlu1 %v1534_v31  ;;  %v8653_v49 = vpop.f32.mrb[92].mxu1  ;;  %v13124_v41 = vmov 0.0   ;;  %v13172_v36 = vld [vmem:[#allocation80_spill] sm:$0xff] }
 0x26e   :  { %v8625_v21 = vsub.f32 %v7732_v6, %v1452_v18  ;;  %6530 = vmatpush1.bf16.msk.msra.mxu1 %vm13115_vm11, %v12895_v5  ;;  %vm8639_vm10 = vmand %vm13117_vm1, %vm13116_vm12  ;;  %v8643_v6 = vpop.eup %6758  ;;  %6772 = vtanh.f32 %v790_v8  ;;  %13122 = vst [vmem:[#allocation186_spill] sm:$0xff] %v8653_v49  ;;  %v8655_v18 = vpop.f32.mrb[92].mxu0  ;;  %3353 = vmatprep.mubr.f32.mxu1 %v13124_v41  ;;  %vm13125_vm2 = vcmp.eq.s32.totalorder %v7635_v17, %v8131_v52  ;;  %vm13134_vm1 = vcmask 523264  }
 0x26f   :  { %13120 = vst [vmem:[#allocation184_spill] sm:$0xff] %v8643_v6  ;;  %vm13123_vm13 = vmpackc.low %vm8513_vm5, %vm8489_vm3  ;;  %vm13126_vm11 = vcmp.eq.s32.totalorder %v7629_v13, %v8129_v46  ;;  %v6761_v20 = vpop.eup %6760  ;;  %6774 = vtanh.f32 %v802_v12  ;;  %v8679_v8 = vpop.f32.mrb[93].mxu1  ;;  %3514 = vmatprep.mubr.f32.mxu0 %v13124_v41  ;;  %v10411_v49 = vadd.s32 656, %v7253_v60 }
 0x270   :  { %13114 = vst [vmem:[#allocation183_spill] sm:$0xff] %v8625_v21  ;;  %6546 = vmatpush1.bf16.msk.msra.mxu0 %vm13123_vm13, %v12895_v5  ;;  %vm8670_vm12 = vmand %vm13126_vm11, %vm13125_vm2  ;;  %v1509_v56 = vmul.f32 1.442695, %v8625_v21  ;;  %v8681_v31 = vpop.f32.mrb[93].mxu0  ;;  %v8700_v3 = vpop.eup %6762  ;;  %5500 = vmatmul.mubr.msk.f32.gmra.mrb[106].mxu1 %vm13134_vm1, %v8651_v22  ;;  %vm1776_vm2 = vcmp.eq.s32.totalorder %v7632_v16, %v8181_v58  ;;  %vm1855_vm11 = vcmp.eq.s32.totalorder %v7638_v19, %v8183_v30  ;;  %v13146_v21 = vld [vmem:[#allocation60_spill] sm:$0xff] }
 0x271   :  { %13129 = vst [vmem:[#allocation187_spill] sm:$0xff] %v8679_v8  ;;  %vm13130_vm5 = vmpackc.low %vm8004_vm9, %vm8000_vm8  ;;  %v1455_v44 = vpop.xlane.xlu0 %1454  ;;  %vm13136_vm9 = vcmask 31744   ;;  %v8713_v52 = vpop.eup %6764  ;;  %3359 = vmatprep.mubr.f32.mxu1 %v13124_v41  ;;  %v1659_v19 = vmul.f32 1.442695, %v8594_v54  ;;  %v1663_v53 = vmul.f32 1.442695, %v8700_v3 }
 0x272   :  { %6532 = vmatprep.subr.msk.bf16.mxu1 %vm13130_vm5, %v12895_v5  ;;  %vm8696_vm3 = vmand %vm1774_vm15, %vm1853_vm6  ;;  %13133 = vst [vmem:[#allocation188_spill] sm:$0xff] %v8700_v3  ;;  %v1537_v26 = vsel %vm13136_vm9, %v6761_v20, 0.0  ;;  %vm1768_vm15 = vcmp.eq.s32.totalorder %v7629_v13, %v8181_v58  ;;  %vm1847_vm6 = vcmp.eq.s32.totalorder %v7635_v17, %v8183_v30  ;;  %6776 = vpow2.f32 %v1509_v56  ;;  %v8727_v40 = vpop.eup %6766  ;;  %v13140_v20 = vld [vmem:[#allocation26_spill] sm:$0xff]  ;;  %v13164_v30 = vld [vmem:[#allocation33_spill] sm:$0xff] }
 0x273   :  { %vm13135_vm8 = vmmov %vm13134_vm1  ;;  %13137 = vst [vmem:[#allocation189_spill] sm:$0xff] %v8713_v52  ;;  %v8716_v46 = vsub.f32 %v7765_v34, %v1455_v44  ;;  %1538 = vadd.xlane.f32.xlu0 %v1537_v26  ;;  %v8731_v34 = vadd.f32 %v13140_v20, %v8394_v15  ;;  %v8734_v56 = vmul.f32 %v8478_v0, %v3205_v1  ;;  %v8736_v44 = vpop.f32.mrb[94].mxu1  ;;  %v8738_v26 = vpop.f32.mrb[94].mxu0  ;;  %6778 = vpow2.f32 %v1653_v7  ;;  %v13149_v7 = vld [vmem:[#allocation75_spill] sm:$0xff] }
 0x274   :  { %5532 = vmatmul.mubr.msk.f32.gmra.mrb[106].mxu0 %vm13135_vm8, %v8651_v22  ;;  %vm6549_vm13 = vmpackc.low %vm8639_vm10, %vm8608_vm4  ;;  %13139 = vst [vmem:[#allocation191_spill] sm:$0xff] %v8727_v40  ;;  %v6769_v0 = vpop.eup %6768  ;;  %v1655_v1 = vmul.f32 1.442695, %v8497_v11  ;;  %v8755_v12 = vpop.f32.mrb[95].mxu1  ;;  %vm13150_vm8 = vnez %v13149_v7  ;;  %v13151_v11 = vld [vmem:[#allocation72_spill] sm:$0xff]  ;;  %6780 = vtanh.f32 %v796_v61  ;;  %v8810_v58 = vadd.f32 %v13164_v30, %v8394_v15  ;;  %v13224_v54 = vld [vmem:[#allocation51_spill] sm:$0xff] }
 0x275   :  { %13138 = vst [vmem:[#allocation190_spill] sm:$0xff] %v8716_v46  ;;  %13141 = vst [vmem:[#allocation26_spill] sm:$0xff] %v8734_v56  ;;  %3520 = vmatprep.mubr.f32.mxu0 %v13124_v41  ;;  %v1511_v20 = vmul.f32 1.442695, %v8716_v46  ;;  %v8757_v35 = vpop.f32.mrb[95].mxu0  ;;  %vm13152_vm9 = vnez %v13151_v11  ;;  %v1458_v7 = vpop.xlane.xlu1 %1457  ;;  %v13161_v61 = vld [vmem:[#allocation36_spill] sm:$0xff]  ;;  %vm13171_vm10 = vnez %v13170_v37  ;;  %v8875_v3 = vadd.f32 %v13183_v28, %v8394_v15 }
 0x276   :  { %13142 = vst [vmem:[#allocation192_spill] sm:$0xff] %v8736_v44  ;;  %vm13143_vm5 = vmpackc.low %vm8546_vm7, %vm8531_vm14  ;;  %vm13147_vm14 = vnez %v13146_v21  ;;  %v1657_v21 = vmul.f32 1.442695, %v8550_v50  ;;  %v8801_v62 = vadd.f32 %v13161_v61, %v8394_v15  ;;  %v13162_v46 = vld [vmem:[#allocation30_spill] sm:$0xff]  ;;  %v8818_v61 = vpop.f32.mrb[96].mxu1  ;;  %v1461_v30 = vpop.xlane.xlu0 %1460  ;;  %v13190_v11 = vld [vmem:[#allocation88_spill] sm:$0xff] }
 0x277   :  { %6534 = vmatpush1.bf16.msk.msra.mxu1 %vm13143_vm5, %v12895_v5  ;;  %13144 = vst [vmem:[#allocation193_spill] sm:$0xff] %v8755_v12  ;;  %vm13148_vm7 = vmpackc.low %vm8038_vm0, %vm13147_vm14  ;;  %vm13156_vm0 = vcmask 523264   ;;  %6782 = vpow2.f32 %v1511_v20  ;;  %v8804_v50 = vsub.f32 %v13162_v46, %v1458_v7  ;;  %v8820_v20 = vpop.f32.mrb[96].mxu0  ;;  %v6771_v46 = vpop.eup %6770 }
 0x278   :  { %6548 = vmatprep.subr.msk.bf16.mxu0 %vm13148_vm7, %v12895_v5  ;;  %vm13153_vm5 = vmpackc.low %vm13150_vm8, %vm13152_vm9  ;;  %5501 = vmatmul.mubr.msk.f32.gmra.mrb[108].mxu1 %vm13156_vm0, %v8734_v56  ;;  %vm13158_vm7 = vcmask 31744   ;;  %13167 = vst [vmem:[#allocation75_spill] sm:$0xff] %v8818_v61  ;;  %6784 = vpow2.f32 %v1655_v1  ;;  %v8833_v7 = vpop.f32.mrb[97].mxu1  ;;  %v8853_v1 = vpop.eup %6772  ;;  %vm13191_vm9 = vnez %v13190_v11 }
 0x279   :  { %6536 = vmatprep.subr.msk.bf16.mxu1 %vm13153_vm5, %v12895_v5  ;;  %vm8777_vm1 = vmand %vm1768_vm15, %vm1847_vm6  ;;  %v1540_v17 = vsel %vm13158_vm7, %v6769_v0, 0.0  ;;  %13163 = vst [vmem:[#allocation63_spill] sm:$0xff] %v8804_v50  ;;  %3365 = vmatprep.mubr.f32.mxu1 %v13124_v41  ;;  %v13165_v0 = vsub.f32 %v8571_v42, %v8519_v57  ;;  %v1661_v57 = vmul.f32 1.442695, %v8643_v6  ;;  %vm13173_vm6 = vnez %v13172_v36  ;;  %v8863_v37 = vpop.eup %6774  ;;  %v13180_v36 = vld [vmem:[#allocation42_spill] sm:$0xff] }
 0x27a   :  { %vm13157_vm14 = vmmov %vm13156_vm0  ;;  %1541 = vadd.xlane.f32.xlu1 %v1540_v17  ;;  %6550 = vmatpush1.bf16.msk.msra.mxu0 %vm6549_vm13, %v12895_v5  ;;  %13168 = vst [vmem:[#allocation72_spill] sm:$0xff] %v8833_v7  ;;  %v8835_v17 = vpop.f32.mrb[97].mxu0  ;;  %6786 = vpow2.f32 %v1657_v21  ;;  %v8867_v42 = vadd.f32 %v13180_v36, %v8394_v15  ;;  %v13181_v21 = vld [vmem:[#allocation32_spill] sm:$0xff]  ;;  %v13184_v6 = vsub.f32 %v8681_v31, %v8618_v29  ;;  %v1667_v29 = vmul.f32 1.442695, %v8727_v40 }
 0x27b   :  { %5533 = vmatmul.mubr.msk.f32.gmra.mrb[108].mxu0 %vm13157_vm14, %v8734_v56  ;;  %vm8795_vm15 = vmand %vm1776_vm2, %vm1855_vm11  ;;  %v8816_v9 = vmul.f32 %v8535_v27, %v13165_v0  ;;  %v1513_v27 = vmul.f32 1.442695, %v8804_v50  ;;  %13175 = vst [vmem:[#allocation36_spill] sm:$0xff] %v8853_v1  ;;  %v8870_v50 = vsub.f32 %v13181_v21, %v1461_v30  ;;  %v8886_v30 = vpop.f32.mrb[98].mxu0  ;;  %vm13193_vm5 = vnez %v12994_v4  ;;  %v1464_v21 = vpop.xlane.xlu1 %1463 }
 0x27c   :  { %3526 = vmatprep.mubr.f32.mxu0 %v13124_v41  ;;  %vm13169_vm4 = vmpackc.low %vm8696_vm3, %vm8670_vm12  ;;  %13179 = vst [vmem:[#allocation30_spill] sm:$0xff] %v8863_v37  ;;  %v8882_v36 = vmul.f32 %v8563_v45, %v13184_v6  ;;  %v8901_v28 = vpop.f32.mrb[99].mxu0  ;;  %v1669_v59 = vmul.f32 1.442695, %v8853_v1 }
 0x27d   :  { %13166 = vst [vmem:[#allocation60_spill] sm:$0xff] %v8816_v9  ;;  %6538 = vmatpush1.bf16.msk.msra.mxu1 %vm13169_vm4, %v12895_v5  ;;  %vm13174_vm13 = vmpackc.low %vm13171_vm10, %vm13173_vm6  ;;  %6788 = vpow2.f32 %v1513_v27  ;;  %v8884_v27 = vpop.f32.mrb[98].mxu1  ;;  %v1515_v45 = vmul.f32 1.442695, %v8870_v50 }
 0x27e   :  { %6552 = vmatprep.subr.msk.bf16.mxu0 %vm13174_vm13, %v12895_v5  ;;  %vm6553_vm2 = vmpackc.low %vm8795_vm15, %vm8777_vm1  ;;  %13182 = vst [vmem:[#allocation33_spill] sm:$0xff] %v8870_v50  ;;  %6790 = vpow2.f32 %v1659_v19  ;;  %v6777_v19 = vpop.eup %6776  ;;  %v8899_v31 = vpop.f32.mrb[99].mxu1  ;;  %v13203_v50 = vld [vmem:[#allocation45_spill] sm:$0xff] }
 0x27f   :  { %vm13176_vm12 = vmmov %vm13156_vm0  ;;  %13185 = vst [vmem:[#allocation81_spill] sm:$0xff] %v8882_v36  ;;  %6554 = vmatpush1.bf16.msk.msra.mxu0 %vm6553_vm2, %v12895_v5  ;;  %6792 = vpow2.f32 %v1661_v57  ;;  %v6779_v4 = vpop.eup %6778  ;;  %v8935_v1 = vadd.f32 %v13203_v50, %v8394_v15 }
 0x280   :  { %5502 = vmatmul.mubr.msk.f32.gmra.mrb[110].mxu1 %vm13176_vm12, %v8816_v9  ;;  %vm13177_vm3 = vmmov %vm13156_vm0  ;;  %13186 = vst [vmem:[#allocation80_spill] sm:$0xff] %v8884_v27  ;;  %vm13194_vm0 = vnez %v12991_v2  ;;  %6794 = vpow2.f32 %v1663_v53  ;;  %v13199_v2 = vld [vmem:[#allocation48_spill] sm:$0xff]  ;;  %v13200_v53 = vld [vmem:[#allocation35_spill] sm:$0xff]  ;;  %v8931_v57 = vpop.eup %6780 }
 0x281   :  { %5534 = vmatmul.mubr.msk.f32.gmra.mrb[110].mxu0 %vm13177_vm3, %v8816_v9  ;;  %vm13178_vm11 = vmmov %vm13158_vm7  ;;  %3371 = vmatprep.mubr.f32.mxu1 %v13124_v41  ;;  %13187 = vst [vmem:[#allocation42_spill] sm:$0xff] %v8899_v31  ;;  %v8925_v11 = vadd.f32 %v13199_v2, %v8394_v15  ;;  %6796 = vpow2.f32 %v1515_v45  ;;  %v8928_v6 = vsub.f32 %v13200_v53, %v1464_v21  ;;  %v8943_v45 = vpop.f32.mrb[100].mxu1  ;;  %v8945_v21 = vpop.f32.mrb[100].mxu0  ;;  %v13236_v27 = vld [vmem:[#allocation44_spill] sm:$0xff] }
 0x282   :  { %v1543_v0 = vsel %vm13178_vm11, %v6771_v46, 0.0  ;;  %v1665_v46 = vmul.f32 1.442695, %v8713_v52  ;;  %3532 = vmatprep.mubr.f32.mxu0 %v13124_v41  ;;  %vm13195_vm14 = vmpackc.low %vm13193_vm5, %vm13194_vm0  ;;  %13202 = vst [vmem:[#allocation39_spill] sm:$0xff] %v8931_v57  ;;  %v13204_v2 = vsub.f32 %v8655_v18, %v8622_v10  ;;  %v6783_v50 = vpop.eup %6782  ;;  %v8957_v18 = vpop.f32.mrb[101].mxu1 }
 0x283   :  { %1544 = vadd.xlane.f32.xlu0 %v1543_v0  ;;  %v13188_v0 = vld [vmem:[#allocation91_spill] sm:$0xff]  ;;  %6556 = vmatprep.subr.msk.bf16.mxu0 %vm13195_vm14, %v12895_v5  ;;  %vm13196_vm7 = vmmov %vm13177_vm3  ;;  %13201 = vst [vmem:[#allocation32_spill] sm:$0xff] %v8928_v6  ;;  %v1517_v53 = vmul.f32 1.442695, %v8928_v6  ;;  %v6785_v10 = vpop.eup %6784  ;;  %v1671_v52 = vmul.f32 1.442695, %v8931_v57 }
 0x284   :  { %vm13189_vm8 = vnez %v13188_v0  ;;  %5503 = vmatmul.mubr.msk.f32.gmra.mrb[112].mxu1 %vm13196_vm7, %v8882_v36  ;;  %vm13197_vm15 = vmmov %vm13177_vm3  ;;  %6798 = vpow2.f32 %v1665_v46  ;;  %v8941_v40 = vmul.f32 %v6779_v4, %v13204_v2  ;;  %13206 = vst [vmem:[#allocation88_spill] sm:$0xff] %v8943_v45  ;;  %v13209_v46 = vld [vmem:[#allocation92_spill] sm:$0xff]  ;;  %v8959_v4 = vpop.f32.mrb[101].mxu0  ;;  %v13213_v2 = vld [vmem:[#allocation103_spill] sm:$0xff]  ;;  %v8985_v45 = vadd.f32 %v13224_v54, %v8394_v15 }
 0x285   :  { %vm13192_vm1 = vmpackc.low %vm13189_vm8, %vm13191_vm9  ;;  %5535 = vmatmul.mubr.msk.f32.gmra.mrb[112].mxu0 %vm13197_vm15, %v8882_v36  ;;  %3377 = vmatprep.mubr.f32.mxu1 %v13124_v41  ;;  %vm13210_vm6 = vnez %v13209_v46  ;;  %6800 = vpow2.f32 %v1667_v29  ;;  %13212 = vst [vmem:[#allocation48_spill] sm:$0xff] %v8957_v18  ;;  %vm13214_vm2 = vnez %v13213_v2  ;;  %v13221_v2 = vld [vmem:[#allocation54_spill] sm:$0xff]  ;;  %v6787_v29 = vpop.eup %6786 }
 0x286   :  { %6540 = vmatprep.subr.msk.bf16.mxu1 %vm13192_vm1, %v12895_v5  ;;  %vm13198_vm4 = vmmov %vm13178_vm11  ;;  %13205 = vst [vmem:[#allocation91_spill] sm:$0xff] %v8941_v40  ;;  %3538 = vmatprep.mubr.f32.mxu0 %v13124_v41  ;;  %6802 = vpow2.f32 %v1669_v59  ;;  %v8976_v6 = vadd.f32 %v13221_v2, %v8394_v15 }
 0x287   :  { %v1546_v0 = vsel %vm13198_vm4, %v6777_v19, 0.0  ;;  %v1673_v19 = vmul.f32 1.442695, %v8863_v37  ;;  %v13215_v37 = vld [vmem:[#allocation102_spill] sm:$0xff]  ;;  %vm13218_vm11 = vmmov %vm13196_vm7  ;;  %6804 = vpow2.f32 %v1517_v53  ;;  %v8992_v53 = vpop.f32.mrb[102].mxu1 }
 0x288   :  { %1547 = vadd.xlane.f32.xlu1 %v1546_v0  ;;  %v13207_v0 = vld [vmem:[#allocation95_spill] sm:$0xff]  ;;  %vm13216_vm12 = vnez %v13215_v37  ;;  %5504 = vmatmul.mubr.msk.f32.gmra.mrb[114].mxu1 %vm13218_vm11, %v8941_v40  ;;  %vm13219_vm8 = vmmov %vm13196_vm7  ;;  %v13222_v37 = vld [vmem:[#allocation38_spill] sm:$0xff]  ;;  %v8997_v18 = vpop.f32.mrb[103].mxu1 }
 0x289   :  { %vm13208_vm10 = vnez %v13207_v0  ;;  %vm13217_vm3 = vmpackc.low %vm13214_vm2, %vm13216_vm12  ;;  %v1467_v0 = vpop.xlane.xlu0 %1466  ;;  %5536 = vmatmul.mubr.msk.f32.gmra.mrb[114].mxu0 %vm13219_vm8, %v8941_v40  ;;  %3383 = vmatprep.mubr.f32.mxu1 %v13124_v41  ;;  %6806 = vpow2.f32 %v1673_v19  ;;  %13227 = vst [vmem:[#allocation95_spill] sm:$0xff] %v8992_v53 }
 0x28a   :  { %vm13211_vm13 = vmpackc.low %vm13208_vm10, %vm13210_vm6  ;;  %6558 = vmatpush1.bf16.msk.msra.mxu0 %vm13217_vm3, %v12895_v5  ;;  %v8979_v59 = vsub.f32 %v13222_v37, %v1467_v0  ;;  %v6310_v0 = vpop.f32.mrb[102].mxu0  ;;  %3544 = vmatprep.mubr.f32.mxu0 %v13124_v41  ;;  %13228 = vst [vmem:[#allocation92_spill] sm:$0xff] %v8997_v18 }
 0x28b   :  { %6542 = vmatpush1.bf16.msk.msra.mxu1 %vm13211_vm13, %v12895_v5  ;;  %vm13220_vm9 = vmmov %vm13198_vm4  ;;  %v3218_v57 = vsub.f32 %v6310_v0, %v8976_v6  ;;  %v8999_v15 = vpop.f32.mrb[103].mxu0  ;;  %v13232_v6 = vld [vmem:[#allocation41_spill] sm:$0xff] }
 0x28c   :  { %v1549_v46 = vsel %vm13220_vm9, %v6783_v50, 0.0  ;;  %13223 = vst [vmem:[#allocation35_spill] sm:$0xff] %v8979_v59  ;;  %v13225_v50 = vsub.f32 %v8757_v35, %v8731_v34  ;;  %v1519_v37 = vmul.f32 1.442695, %v8979_v59  ;;  %v1470_v35 = vpop.xlane.xlu1 %1469  ;;  %vm13229_vm1 = vmmov %vm13196_vm7  ;;  %v13234_v34 = vsub.f32 %v8738_v26, %v8648_v24 }
 0x28d   :  { %1550 = vadd.xlane.f32.xlu0 %v1549_v46  ;;  %v6789_v46 = vpop.eup %6788  ;;  %vm13230_vm5 = vmmov %vm13229_vm1  ;;  %v1473_v18 = vpop.xlane.xlu0 %1472 }
 0x28e   :  { %v8990_v2 = vmul.f32 %v6785_v10, %v13225_v50  ;;  %v6791_v54 = vpop.eup %6790  ;;  %vm13231_vm0 = vmmov %vm13198_vm4  ;;  %6808 = vpow2.f32 %v1519_v37  ;;  %v9009_v50 = vsub.f32 %v13232_v6, %v1470_v35  ;;  %v9015_v59 = vmul.f32 %v6787_v29, %v13234_v34 }
 0x28f   :  { %v1552_v19 = vsel %vm13231_vm0, %v6789_v46, 0.0  ;;  %v6793_v10 = vpop.eup %6792  ;;  %6810 = vpow2.f32 %v1671_v52  ;;  %v9020_v35 = vsub.f32 %v13236_v27, %v1473_v18  ;;  %vm13238_vm14 = vmmov %vm13229_vm1  ;;  %v13241_v29 = vsub.f32 %v8835_v17, %v8810_v58 }
 0x290   :  { %13226 = vst [vmem:[#allocation45_spill] sm:$0xff] %v8990_v2  ;;  %5505 = vmatmul.mubr.msk.f32.gmra.mrb[116].mxu1 %vm13229_vm1, %v8990_v2  ;;  %5537 = vmatmul.mubr.msk.f32.gmra.mrb[116].mxu0 %vm13230_vm5, %v8990_v2  ;;  %13233 = vst [vmem:[#allocation103_spill] sm:$0xff] %v9009_v50  ;;  %v6795_v0 = vpop.eup %6794  ;;  %v1521_v46 = vmul.f32 1.442695, %v9009_v50  ;;  %v13245_v6 = vsub.f32 %v8886_v30, %v8867_v42  ;;  %v13247_v58 = vsub.f32 %v8901_v28, %v8875_v3 }
 0x291   :  { %1553 = vadd.xlane.f32.xlu1 %v1552_v19  ;;  %3389 = vmatprep.mubr.f32.mxu1 %v13124_v41  ;;  %13235 = vst [vmem:[#allocation102_spill] sm:$0xff] %v9015_v59  ;;  %v6797_v53 = vpop.eup %6796  ;;  %13237 = vst [vmem:[#allocation54_spill] sm:$0xff] %v9020_v35  ;;  %v9031_v34 = vmul.f32 %v6791_v54, %v13241_v29  ;;  %v1523_v27 = vmul.f32 1.442695, %v9020_v35  ;;  %v13243_v19 = vsub.f32 %v8820_v20, %v8801_v62  ;;  %v13249_v54 = vld [vmem:[#allocation47_spill] sm:$0xff] }
 0x292   :  { %3550 = vmatprep.mubr.f32.mxu0 %v13124_v41  ;;  %v6799_v37 = vpop.eup %6798  ;;  %vm13239_vm7 = vmmov %vm13229_vm1  ;;  %6812 = vpow2.f32 %v1521_v46  ;;  %v9048_v17 = vmul.f32 %v6795_v0, %v13247_v58  ;;  %v13254_v20 = vsub.f32 %v8945_v21, %v8925_v11  ;;  %v13256_v3 = vsub.f32 %v8959_v4, %v8935_v1  ;;  %v13259_v21 = vld [vmem:[#allocation5_spill] sm:$0xff]  ;;  %v1479_v1 = vpop.xlane.xlu0 %1478 }
 0x293   :  { %vm13240_vm15 = vmmov %vm13231_vm0  ;;  %v6801_v52 = vpop.eup %6800  ;;  %13242 = vst [vmem:[#allocation38_spill] sm:$0xff] %v9031_v34  ;;  %v9043_v46 = vmul.f32 %v6799_v37, %v13245_v6  ;;  %6814 = vpow2.f32 %v1523_v27  ;;  %v2009_v0 = vadd.s32 128, %v7253_v60  ;;  %v2010_v11 = vadd.s32 136, %v7253_v60 }
 0x294   :  { %5506 = vmatmul.mubr.msk.f32.gmra.mrb[118].mxu1 %vm13238_vm14, %v9015_v59  ;;  %5538 = vmatmul.mubr.msk.f32.gmra.mrb[118].mxu0 %vm13239_vm7, %v9015_v59  ;;  %v1555_v24 = vsel %vm13240_vm15, %v6797_v53, 0.0  ;;  %v6803_v26 = vpop.eup %6802  ;;  %v9038_v53 = vmul.f32 %v6793_v10, %v13243_v19  ;;  %13248 = vst [vmem:[#allocation44_spill] sm:$0xff] %v9048_v17  ;;  %vm13251_vm4 = vmmov %vm13229_vm1  ;;  %v9066_v30 = vmul.f32 %v6801_v52, %v13256_v3  ;;  %v9076_v37 = vshra.s32 %v13259_v21, 4  ;;  %v13261_v19 = vld [vmem:[#allocation50_spill] sm:$0xff] }
 0x295   :  { %1556 = vadd.xlane.f32.xlu0 %v1555_v24  ;;  %3395 = vmatprep.mubr.f32.mxu1 %v13124_v41  ;;  %v6805_v18 = vpop.eup %6804  ;;  %13246 = vst [vmem:[#allocation41_spill] sm:$0xff] %v9043_v46  ;;  %v1476_v24 = vpop.xlane.xlu1 %1475  ;;  %vm13252_vm10 = vmmov %vm13229_vm1  ;;  %v9061_v42 = vmul.f32 %v6803_v26, %v13254_v20  ;;  %v2121_v4 = vshra.s32 %v7253_v60, 8  ;;  %v2498_v52 = vand.u32 15, %v7514_v39  ;;  %v2499_v27 = vand.u32 15, %v7503_v14 }
 0x296   :  { %3556 = vmatprep.mubr.f32.mxu0 %v13124_v41  ;;  %13244 = vst [vmem:[#allocation51_spill] sm:$0xff] %v9038_v53  ;;  %v6807_v50 = vpop.eup %6806  ;;  %v9051_v29 = vsub.f32 %v13249_v54, %v1476_v24  ;;  %vm13253_vm6 = vmmov %vm13231_vm0  ;;  %v9083_v6 = vsub.f32 %v13261_v19, %v1479_v1  ;;  %v2137_v58 = vshra.s32 %v2009_v0, 8  ;;  %v13266_v54 = vsub.f32 %v8999_v15, %v8985_v45  ;;  %v13272_v15 = vld [vmem:[#allocation7_spill] sm:$0xff] }
 0x297   :  { %v1558_v62 = vsel %vm13253_vm6, %v6805_v18, 0.0  ;;  %13255 = vst [vmem:[#allocation194_spill] sm:$0xff] %v9061_v42  ;;  %13257 = vst [vmem:[#allocation195_spill] sm:$0xff] %v9066_v30  ;;  %v9068_v28 = vmul.f32 %v6807_v50, %v3218_v57  ;;  %v13260_v57 = vld [vmem:[#allocation6_spill] sm:$0xff]  ;;  %v2138_v20 = vshra.s32 %v2010_v11, 8  ;;  %v2386_v3 = vshra.s32 %v2009_v0, 4 }
 0x298   :  { %13250 = vst [vmem:[#allocation47_spill] sm:$0xff] %v9051_v29  ;;  %5507 = vmatmul.mubr.msk.f32.gmra.mrb[120].mxu1 %vm13251_vm4, %v9031_v34  ;;  %5539 = vmatmul.mubr.msk.f32.gmra.mrb[120].mxu0 %vm13252_vm10, %v9031_v34  ;;  %v1525_v10 = vmul.f32 1.442695, %v9051_v29  ;;  %v6809_v26 = vpop.eup %6808  ;;  %v2122_v50 = vshra.s32 %v13260_v57, 8  ;;  %13262 = vst [vmem:[#allocation6_spill] sm:$0xff] %v9083_v6  ;;  %vm9099_vm3 = vcmp.eq.s32.totalorder %v2137_v58, %v9076_v37  ;;  %v13281_v58 = vld [vmem:[#allocation53_spill] sm:$0xff] }
 0x299   :  { %13258 = vst [vmem:[#allocation196_spill] sm:$0xff] %v9068_v28  ;;  %1559 = vadd.xlane.f32.xlu1 %v1558_v62  ;;  %3401 = vmatprep.mubr.f32.mxu1 %v13124_v41  ;;  %v6811_v18 = vpop.eup %6810  ;;  %vm13263_vm13 = vmmov %vm13229_vm1  ;;  %v1527_v1 = vmul.f32 1.442695, %v9083_v6  ;;  %vm9104_vm11 = vcmp.eq.s32.totalorder %v2121_v4, %v9076_v37  ;;  %vm9109_vm8 = vcmp.eq.s32.totalorder %v2498_v52, %v13272_v15  ;;  %v2514_v19 = vand.u32 15, %v2386_v3  ;;  %v13307_v29 = vld [vmem:[#allocation11_spill] sm:$0xff] }
 0x29a   :  { %3562 = vmatprep.mubr.f32.mxu0 %v13124_v41  ;;  %6816 = vpow2.f32 %v1525_v10  ;;  %vm13264_vm2 = vmmov %vm13229_vm1  ;;  %v9093_v62 = vmul.f32 %v6811_v18, %v13266_v54  ;;  %v2387_v10 = vshra.s32 %v2010_v11, 4  ;;  %v1482_v11 = vpop.xlane.xlu1 %1481  ;;  %vm9114_vm9 = vcmp.eq.s32.totalorder %v2138_v20, %v9076_v37 }
 0x29b   :  { %vm13265_vm12 = vmmov %vm13231_vm0  ;;  %vm9119_vm1 = vcmp.eq.s32.totalorder %v2122_v50, %v9076_v37  ;;  %vm9124_vm5 = vcmp.eq.s32.totalorder %v2499_v27, %v13272_v15  ;;  %6818 = vpow2.f32 %v1527_v1  ;;  %v9129_v54 = vsub.f32 %v13281_v58, %v1482_v11 }
 0x29c   :  { %5508 = vmatmul.mubr.msk.f32.gmra.mrb[122].mxu1 %vm13263_vm13, %v9038_v53  ;;  %5540 = vmatmul.mubr.msk.f32.gmra.mrb[122].mxu0 %vm13264_vm2, %v9038_v53  ;;  %v1561_v24 = vsel %vm13265_vm12, %v6809_v26, 0.0  ;;  %13267 = vst [vmem:[#allocation50_spill] sm:$0xff] %v9093_v62  ;;  %v6813_v0 = vpop.eup %6812  ;;  %vm13283_vm0 = vmmov %vm13264_vm2  ;;  %v2041_v20 = vadd.s32 384, %v7253_v60  ;;  %vm2642_vm15 = vcmp.eq.s32.totalorder %v2514_v19, %v13272_v15  ;;  %v2042_v27 = vadd.s32 392, %v7253_v60 }
 0x29d   :  { %1562 = vadd.xlane.f32.xlu0 %v1561_v24  ;;  %3407 = vmatprep.mubr.f32.mxu1 %v13124_v41  ;;  %v2515_v24 = vand.u32 15, %v2387_v10  ;;  %13282 = vst [vmem:[#allocation7_spill] sm:$0xff] %v9129_v54  ;;  %vm13284_vm14 = vmmov %vm13283_vm0  ;;  %v2025_v3 = vadd.s32 256, %v7253_v60  ;;  %v6815_v10 = vpop.eup %6814  ;;  %v1529_v1 = vmul.f32 1.442695, %v9129_v54  ;;  %v2026_v19 = vadd.s32 264, %v7253_v60 }
 0x29e   :  { %3568 = vmatprep.mubr.f32.mxu0 %v13124_v41  ;;  %vm13285_vm7 = vmmov %vm13253_vm6  ;;  %v2169_v11 = vshra.s32 %v2041_v20, 8  ;;  %v2418_v58 = vshra.s32 %v2041_v20, 4  ;;  %v2170_v6 = vshra.s32 %v2042_v27, 8  ;;  %v2419_v54 = vshra.s32 %v2042_v27, 4 }
 0x29f   :  { %v1564_v50 = vsel %vm13285_vm7, %v6813_v0, 0.0  ;;  %vm2643_vm4 = vcmp.eq.s32.totalorder %v2515_v24, %v13272_v15  ;;  %vm9146_vm10 = vmand %vm9099_vm3, %vm2642_vm15  ;;  %v1567_v24 = vsel %vm13253_vm6, %v6815_v10, 0.0  ;;  %v2153_v35 = vshra.s32 %v2025_v3, 8 }
 0x2a0   :  { %5509 = vmatmul.mubr.msk.f32.gmra.mrb[124].mxu1 %vm13283_vm0, %v9048_v17  ;;  %5541 = vmatmul.mubr.msk.f32.gmra.mrb[124].mxu0 %vm13284_vm14, %v9048_v17  ;;  %vm9154_vm13 = vmand %vm9114_vm9, %vm2643_vm4  ;;  %6820 = vpow2.f32 %v1529_v1  ;;  %vm9167_vm9 = vcmp.eq.s32.totalorder %v2169_v11, %v9076_v37  ;;  %v2546_v18 = vand.u32 15, %v2418_v58  ;;  %v2154_v20 = vshra.s32 %v2026_v19, 8 }
 0x2a1   :  { %1565 = vadd.xlane.f32.xlu1 %v1564_v50  ;;  %3413 = vmatprep.mubr.f32.mxu1 %v13124_v41  ;;  %vm13290_vm2 = vmmov %vm13283_vm0  ;;  %v2547_v10 = vand.u32 15, %v2419_v54  ;;  %vm9178_vm14 = vcmp.eq.s32.totalorder %v2153_v35, %v9076_v37  ;;  %v2402_v0 = vshra.s32 %v2025_v3, 4  ;;  %v2403_v35 = vshra.s32 %v2026_v19, 4 }
 0x2a2   :  { %3574 = vmatprep.mubr.f32.mxu0 %v13124_v41  ;;  %vm13291_vm12 = vmmov %vm13283_vm0  ;;  %1568 = vadd.xlane.f32.xlu0 %v1567_v24  ;;  %vm9173_vm0 = vcmp.eq.s32.totalorder %v2170_v6, %v9076_v37  ;;  %vm2674_vm15 = vcmp.eq.s32.totalorder %v2546_v18, %v13272_v15  ;;  %vm9190_vm4 = vcmp.eq.s32.totalorder %v2154_v20, %v9076_v37  ;;  %v2011_v54 = vadd.s32 144, %v7253_v60 }
 0x2a3   :  { %vm6559_vm3 = vmpackc.low %vm9154_vm13, %vm9146_vm10  ;;  %v2530_v24 = vand.u32 15, %v2402_v0  ;;  %v2012_v50 = vadd.s32 152, %v7253_v60  ;;  %v2531_v57 = vand.u32 15, %v2403_v35  ;;  %v2124_v31 = vshra.s32 %v13307_v29, 8 }
 0x2a4   :  { %5510 = vmatmul.mubr.msk.f32.gmra.mrb[126].mxu1 %vm13290_vm2, %v9043_v46  ;;  %5542 = vmatmul.mubr.msk.f32.gmra.mrb[126].mxu0 %vm13291_vm12, %v9043_v46  ;;  %v6817_v11 = vpop.eup %6816  ;;  %vm13300_vm10 = vmmov %vm13253_vm6  ;;  %vm2675_vm6 = vcmp.eq.s32.totalorder %v2547_v10, %v13272_v15  ;;  %v2139_v18 = vshra.s32 %v2011_v54, 8  ;;  %v2388_v20 = vshra.s32 %v2011_v54, 4  ;;  %v13306_v10 = vld [vmem:[#allocation10_spill] sm:$0xff]  ;;  %v2500_v1 = vand.u32 15, %v7557_v47 }
 0x2a5   :  { %3419 = vmatprep.mubr.f32.mxu1 %v13124_v41  ;;  %3580 = vmatprep.mubr.f32.mxu0 %v13124_v41  ;;  %v1570_v3 = vsel %vm13300_vm10, %v6817_v11, 0.0  ;;  %vm9199_vm13 = vmand %vm9167_vm9, %vm2674_vm15  ;;  %v2123_v11 = vshra.s32 %v13306_v10, 8  ;;  %vm2658_vm15 = vcmp.eq.s32.totalorder %v2530_v24, %v13272_v15  ;;  %v2140_v27 = vshra.s32 %v2012_v50, 8  ;;  %v6819_v61 = vpop.eup %6818 }
 0x2a6   :  { %6560 = vmatprep.subr.msk.bf16.mxu1 %vm6559_vm3, %v12895_v5  ;;  %vm13303_vm12 = vmmov %vm13290_vm2  ;;  %1571 = vadd.xlane.f32.xlu1 %v1570_v3  ;;  %v2389_v0 = vshra.s32 %v2012_v50, 4  ;;  %vm2659_vm10 = vcmp.eq.s32.totalorder %v2531_v57, %v13272_v15  ;;  %v2516_v54 = vand.u32 15, %v2388_v20  ;;  %v2043_v57 = vadd.s32 400, %v7253_v60 }
 0x2a7   :  { %vm9210_vm3 = vmand %vm9173_vm0, %vm2675_vm6  ;;  %vm9230_vm6 = vcmp.eq.s32.totalorder %v2139_v18, %v9076_v37  ;;  %vm13319_vm0 = vcmask 523264   ;;  %v2044_v18 = vadd.s32 408, %v7253_v60  ;;  %v2027_v6 = vadd.s32 272, %v7253_v60 }
 0x2a8   :  { %5511 = vmatmul.mubr.msk.f32.gmra.mrb[128].mxu1 %vm13290_vm2, %v9066_v30  ;;  %5543 = vmatmul.mubr.msk.f32.gmra.mrb[128].mxu0 %vm13303_vm12, %v9066_v30  ;;  %vm6591_vm9 = vmpackc.low %vm9210_vm3, %vm9199_vm13  ;;  %vm9235_vm13 = vcmp.eq.s32.totalorder %v2123_v11, %v9076_v37  ;;  %vm9247_vm3 = vcmp.eq.s32.totalorder %v2140_v27, %v9076_v37  ;;  %v2517_v50 = vand.u32 15, %v2389_v0  ;;  %v2028_v20 = vadd.s32 280, %v7253_v60 }
 0x2a9   :  { %3425 = vmatprep.mubr.f32.mxu1 %v13124_v41  ;;  %3586 = vmatprep.mubr.f32.mxu0 %v13124_v41  ;;  %vm13312_vm2 = vmmov %vm13285_vm7  ;;  %v13323_v11 = vmov 0  ;;  %v13333_v45 = vmov 0  ;;  %v2172_v26 = vshra.s32 %v2044_v18, 8  ;;  %v2421_v4 = vshra.s32 %v2044_v18, 4 }
 0x2aa   :  { %6592 = vmatprep.subr.msk.bf16.mxu0 %vm6591_vm9, %v12895_v5  ;;  %v1573_v3 = vsel %vm13312_vm2, %v6819_v61, 0.0  ;;  %vm9242_vm12 = vmand %vm9178_vm14, %vm2658_vm15  ;;  %vm9252_vm9 = vcmp.eq.s32.totalorder %v2124_v31, %v9076_v37  ;;  %vm2644_vm15 = vcmp.eq.s32.totalorder %v2516_v54, %v13272_v15  ;;  %v2501_v31 = vand.u32 15, %v7560_v48  ;;  %v6821_v10 = vpop.eup %6820 }
 0x2ab   :  { %vm13320_vm2 = vmmov %vm13319_vm0  ;;  %1574 = vadd.xlane.f32.xlu0 %v1573_v3  ;;  %v2171_v54 = vshra.s32 %v2043_v57, 8  ;;  %v2420_v3 = vshra.s32 %v2043_v57, 4  ;;  %v2404_v57 = vshra.s32 %v2027_v6, 4  ;;  %v2015_v35 = vadd.s32 176, %v7253_v60 }
 0x2ac   :  { %5512 = vmatmul.mubr.msk.f32.gmra.mrb[130].mxu1 %vm13319_vm0, %v9061_v42  ;;  %5544 = vmatmul.mubr.msk.f32.gmra.mrb[130].mxu0 %vm13320_vm2, %v9061_v42  ;;  %vm9262_vm14 = vmand %vm9190_vm4, %vm2659_vm10  ;;  %vm2645_vm0 = vcmp.eq.s32.totalorder %v2517_v50, %v13272_v15  ;;  %vm9283_vm10 = vcmp.eq.s32.totalorder %v2500_v1, %v13272_v15  ;;  %vm9288_vm2 = vcmp.eq.s32.totalorder %v2501_v31, %v13272_v15  ;;  %v1576_v50 = vsel %vm13285_vm7, %v6821_v10, 0.0 }
 0x2ad   :  { %3431 = vmatprep.mubr.f32.mxu1 %v13124_v41  ;;  %3592 = vmatprep.mubr.f32.mxu0 %v13124_v41  ;;  %vm9278_vm4 = vmand %vm9230_vm6, %vm2644_vm15  ;;  %v2155_v1 = vshra.s32 %v2027_v6, 8  ;;  %v2548_v24 = vand.u32 15, %v2420_v3  ;;  %v2156_v31 = vshra.s32 %v2028_v20, 8  ;;  %v2549_v10 = vand.u32 15, %v2421_v4 }
 0x2ae   :  { %v13324_v11 = vsel %vm9278_vm4, 4294967295, %v13323_v11  ;;  %vm13329_vm6 = vmand %vm9104_vm11, %vm9109_vm8  ;;  %vm13335_vm11 = vcmask 523264   ;;  %1577 = vadd.xlane.f32.xlu1 %v1576_v50  ;;  %v2405_v6 = vshra.s32 %v2028_v20, 4  ;;  %v2532_v0 = vand.u32 15, %v2404_v57 }
 0x2af   :  { %vm13330_vm15 = vmand %vm9119_vm1, %vm9124_vm5  ;;  %vm9326_vm5 = vcmp.eq.s32.totalorder %v2171_v54, %v9076_v37  ;;  %v2013_v3 = vadd.s32 160, %v7253_v60  ;;  %v13347_v20 = vmov 0  ;;  %v2014_v4 = vadd.s32 168, %v7253_v60 }
 0x2b0   :  { %vm9303_vm4 = vmpackc.low %vm13330_vm15, %vm13329_vm6  ;;  %5513 = vmatmul.mubr.msk.f32.gmra.mrb[132].mxu1 %vm13335_vm11, %v9093_v62  ;;  %vm9336_vm6 = vcmp.eq.s32.totalorder %v2172_v26, %v9076_v37  ;;  %vm9341_vm15 = vcmp.eq.s32.totalorder %v2155_v1, %v9076_v37  ;;  %v2533_v26 = vand.u32 15, %v2405_v6  ;;  %v13351_v1 = vld [vmem:[#allocation16_spill] sm:$0xff]  ;;  %v13365_v54 = vmov 0 }
 0x2b1   :  { %vm9313_vm7 = vmand %vm9247_vm3, %vm2645_vm0  ;;  %3437 = vmatprep.mubr.f32.mxu1 %v13124_v41  ;;  %v2125_v29 = vshra.s32 %v13351_v1, 8  ;;  %v2141_v52 = vshra.s32 %v2013_v3, 8  ;;  %v2142_v18 = vshra.s32 %v2014_v4, 8  ;;  %v2016_v19 = vadd.s32 184, %v7253_v60 }
 0x2b2   :  { %v13334_v45 = vsel %vm9313_vm7, 4294967295, %v13333_v45  ;;  %vm13336_vm8 = vmmov %vm13335_vm11  ;;  %vm13352_vm7 = vcmask 523264   ;;  %v2050_v27 = vadd.s32 456, %v7253_v60  ;;  %v10490_v21 = vadd.s32 544, %v7253_v60 }
 0x2b3   :  { %5545 = vmatmul.mubr.msk.f32.gmra.mrb[132].mxu0 %vm13336_vm8, %v9093_v62  ;;  %vm2756_vm1 = vmand %vm9235_vm13, %vm9283_vm10  ;;  %vm2677_vm8 = vcmp.eq.s32.totalorder %v2549_v10, %v13272_v15  ;;  %v2391_v10 = vshra.s32 %v2014_v4, 4  ;;  %v2502_v4 = vand.u32 15, %v7629_v13  ;;  %v10443_v13 = vadd.s32 912, %v7253_v60 }
 0x2b4   :  { %vm13339_vm3 = vmmov %vm9252_vm9  ;;  %3598 = vmatprep.mubr.f32.mxu0 %v13124_v41  ;;  %5514 = vmatmul.mubr.msk.f32.gmra.mrb[134].mxu1 %vm13352_vm7, %v9068_v28 }
 0x2b5   :  { %vm2757_vm0 = vmand %vm13339_vm3, %vm9288_vm2  ;;  %vm2676_vm2 = vcmp.eq.s32.totalorder %v2548_v24, %v13272_v15  ;;  %vm9352_vm3 = vcmp.eq.s32.totalorder %v2156_v31, %v9076_v37  ;;  %v2390_v24 = vshra.s32 %v2013_v3, 4  ;;  %v13356_v31 = vld [vmem:[#allocation17_spill] sm:$0xff]  ;;  %3669 = vmatprep.mubr.f32.mxu1 %v13124_v41  ;;  %v13406_v3 = vld [vmem:[#allocation24_spill] sm:$0xff] }
 0x2b6   :  { %vm9362_vm9 = vmpackc.low %vm2757_vm0, %vm2756_vm1  ;;  %vm2660_vm1 = vcmp.eq.s32.totalorder %v2532_v0, %v13272_v15  ;;  %v2126_v57 = vshra.s32 %v13356_v31, 8  ;;  %vm9395_vm0 = vcmp.eq.s32.totalorder %v2125_v29, %v9076_v37  ;;  %v13359_v0 = vmov 0 }
 0x2b7   :  { %v13348_v20 = vsel %vm9362_vm9, 4294967295, %v13347_v20  ;;  %vm9369_vm11 = vmand %vm9326_vm5, %vm2676_vm2  ;;  %vm2661_vm5 = vcmp.eq.s32.totalorder %v2533_v26, %v13272_v15  ;;  %v2518_v1 = vand.u32 15, %v2390_v24  ;;  %v2503_v24 = vand.u32 15, %v7632_v16 }
 0x2b8   :  { %vm13353_vm13 = vmmov %vm13352_vm7  ;;  %vm9411_vm2 = vcmp.eq.s32.totalorder %v2126_v57, %v9076_v37  ;;  %v2045_v31 = vadd.s32 416, %v7253_v60  ;;  %vm9439_vm9 = vcmp.eq.s32.totalorder %v2502_v4, %v13272_v15  ;;  %v2046_v57 = vadd.s32 424, %v7253_v60 }
 0x2b9   :  { %5546 = vmatmul.mubr.msk.f32.gmra.mrb[134].mxu0 %vm13353_vm13, %v9068_v28  ;;  %vm9381_vm10 = vmand %vm9336_vm6, %vm2677_vm8  ;;  %vm9406_vm8 = vcmp.eq.s32.totalorder %v2141_v52, %v9076_v37  ;;  %v2519_v52 = vand.u32 15, %v2391_v10  ;;  %v10440_v16 = vadd.s32 536, %v7253_v60 }
 0x2ba   :  { %3830 = vmatprep.mubr.f32.mxu0 %v13124_v41  ;;  %vm9401_vm6 = vmand %vm9341_vm15, %vm2660_vm1  ;;  %vm9423_vm15 = vcmp.eq.s32.totalorder %v2142_v18, %v9076_v37  ;;  %v2029_v18 = vadd.s32 288, %v7253_v60  ;;  %v2173_v4 = vshra.s32 %v2045_v31, 8 }
 0x2bb   :  { %v13360_v0 = vsel %vm9401_vm6, 4294967295, %v13359_v0  ;;  %vm9418_vm13 = vmand %vm9352_vm3, %vm2661_vm5  ;;  %vm2646_vm5 = vcmp.eq.s32.totalorder %v2518_v1, %v13272_v15  ;;  %vm9455_vm3 = vcmp.eq.s32.totalorder %v2503_v24, %v13272_v15  ;;  %v2423_v24 = vshra.s32 %v2046_v57, 4 }
 0x2bc   :  { %v13366_v54 = vsel %vm9418_vm13, 4294967295, %v13365_v54  ;;  %vm13369_vm1 = vmmov %vm13352_vm7  ;;  %v2157_v7 = vshra.s32 %v2029_v18, 8  ;;  %vm13381_vm6 = vnez %v13324_v11  ;;  %v2406_v11 = vshra.s32 %v2029_v18, 4 }
 0x2bd   :  { %5563 = vmatmul.mubr.msk.f32.vlgmr.msra.gmra.mrb[136].mxu1 %vm13369_vm1, %v8567_v23  ;;  %vm13370_vm7 = vmmov %vm13369_vm1  ;;  %v2144_v18 = vshra.s32 %v2016_v19, 8  ;;  %v2393_v1 = vshra.s32 %v2016_v19, 4  ;;  %v2018_v19 = vadd.s32 200, %v7253_v60 }
 0x2be   :  { %5595 = vmatmul.mubr.msk.f32.vlgmr.msra.gmra.mrb[136].mxu0 %vm13370_vm7, %v8567_v23  ;;  %3675 = vmatprep.mubr.f32.mxu1 %v13124_v41  ;;  %vm2647_vm7 = vcmp.eq.s32.totalorder %v2519_v52, %v13272_v15  ;;  %vm9450_vm1 = vmand %vm9406_vm8, %vm2646_vm5  ;;  %v2422_v23 = vshra.s32 %v2045_v31, 4  ;;  %v2174_v52 = vshra.s32 %v2046_v57, 8  ;;  %v2030_v31 = vadd.s32 296, %v7253_v60 }
 0x2bf   :  { %3836 = vmatprep.mubr.f32.mxu0 %v13124_v41  ;;  %6562 = vmatpush3.bf16.msk.msra.mxu1 %vm9303_vm4, %v12895_v5  ;;  %vm13377_vm8 = vmpackc.low %vm9262_vm14, %vm9242_vm12  ;;  %vm13380_vm4 = vnez %v13334_v45  ;;  %v2534_v29 = vand.u32 15, %v2406_v11  ;;  %v2392_v57 = vshra.s32 %v2015_v35, 4  ;;  %v13410_v11 = vld [vmem:[#allocation28_spill] sm:$0xff] }
 0x2c0   :  { %6594 = vmatpush3.bf16.msk.msra.mxu0 %vm13377_vm8, %v12895_v5  ;;  %vm9470_vm5 = vmand %vm9423_vm15, %vm2647_vm7  ;;  %vm9492_vm15 = vcmp.eq.s32.totalorder %v2173_v4, %v9076_v37  ;;  %v2550_v61 = vand.u32 15, %v2422_v23  ;;  %v2551_v23 = vand.u32 15, %v2423_v24  ;;  %v2158_v50 = vshra.s32 %v2030_v31, 8  ;;  %v13407_v24 = vld [vmem:[#allocation25_spill] sm:$0xff] }
 0x2c1   :  { %vm13382_vm13 = vmpackc.low %vm13380_vm4, %vm13381_vm6  ;;  %vm13386_vm6 = vcmask 523264   ;;  %vm9511_vm7 = vcmp.eq.s32.totalorder %v2157_v7, %v9076_v37  ;;  %v2407_v6 = vshra.s32 %v2030_v31, 4  ;;  %vm13392_vm8 = vnez %v13348_v20 }
 0x2c2   :  { %6564 = vmatprep.subr.msk.bf16.mxu1 %vm13382_vm13, %v12895_v5  ;;  %vm13383_vm12 = vmpackc.low %vm9381_vm10, %vm9369_vm11  ;;  %5564 = vmatmul.mubr.msk.f32.gmra.mrb[138].mxu1 %vm13386_vm6, %v8651_v22  ;;  %vm9506_vm13 = vcmp.eq.s32.totalorder %v2174_v52, %v9076_v37  ;;  %vm13393_vm4 = vnez %v13366_v54  ;;  %v2143_v20 = vshra.s32 %v2015_v35, 8  ;;  %v2520_v4 = vand.u32 15, %v2392_v57 }
 0x2c3   :  { %6596 = vmatprep.subr.msk.bf16.mxu0 %vm13383_vm12, %v12895_v5  ;;  %vm6567_vm14 = vmpackc.low %vm9470_vm5, %vm9450_vm1  ;;  %3681 = vmatprep.mubr.f32.mxu1 %v13124_v41  ;;  %vm13394_vm12 = vnez %v13360_v0  ;;  %v2535_v54 = vand.u32 15, %v2407_v6  ;;  %v2127_v52 = vshra.s32 %v13406_v3, 8  ;;  %v2128_v31 = vshra.s32 %v13407_v24, 8  ;;  %v13417_v6 = vld [vmem:[#allocation29_spill] sm:$0xff] }
 0x2c4   :  { %vm13387_vm11 = vmmov %vm13386_vm6  ;;  %6566 = vmatpush3.bf16.msk.msra.mxu1 %vm13392_vm8, %v12895_v5  ;;  %vm13402_vm8 = vcmask 523264   ;;  %vm9562_vm5 = vcmp.eq.s32.totalorder %v2143_v20, %v9076_v37  ;;  %v2504_v35 = vand.u32 15, %v13410_v11  ;;  %v2047_v7 = vadd.s32 432, %v7253_v60 }
 0x2c5   :  { %5596 = vmatmul.mubr.msk.f32.gmra.mrb[138].mxu0 %vm13387_vm11, %v8651_v22  ;;  %vm2758_vm10 = vmand %vm9395_vm0, %vm9439_vm9  ;;  %vm2678_vm0 = vcmp.eq.s32.totalorder %v2550_v61, %v13272_v15  ;;  %6568 = vmatprep.subr.msk.bf16.mxu1 %vm6567_vm14, %v12895_v5  ;;  %v2521_v61 = vand.u32 15, %v2393_v1  ;;  %v2048_v20 = vadd.s32 440, %v7253_v60  ;;  %v2031_v57 = vadd.s32 304, %v7253_v60 }
 0x2c6   :  { %3842 = vmatprep.mubr.f32.mxu0 %v13124_v41  ;;  %vm2759_vm9 = vmand %vm9411_vm2, %vm9455_vm3  ;;  %vm2679_vm2 = vcmp.eq.s32.totalorder %v2551_v23, %v13272_v15  ;;  %vm9538_vm3 = vcmp.eq.s32.totalorder %v2158_v50, %v9076_v37  ;;  %5565 = vmatmul.mubr.msk.f32.gmra.mrb[140].mxu1 %vm13402_vm8, %v8734_v56  ;;  %v2032_v0 = vadd.s32 312, %v7253_v60  ;;  %v2175_v1 = vshra.s32 %v2047_v7, 8 }
 0x2c7   :  { %vm13395_vm6 = vmpackc.low %vm13393_vm4, %vm13394_vm12  ;;  %3687 = vmatprep.mubr.f32.mxu1 %v13124_v41  ;;  %vm2648_vm12 = vcmp.eq.s32.totalorder %v2520_v4, %v13272_v15  ;;  %v2176_v3 = vshra.s32 %v2048_v20, 8  ;;  %v2425_v24 = vshra.s32 %v2048_v20, 4  ;;  %v2159_v4 = vshra.s32 %v2031_v57, 8 }
 0x2c8   :  { %6598 = vmatpush3.bf16.msk.msra.mxu0 %vm13395_vm6, %v12895_v5  ;;  %vm9532_vm11 = vmpackc.low %vm2759_vm9, %vm2758_vm10  ;;  %vm2662_vm9 = vcmp.eq.s32.totalorder %v2534_v29, %v13272_v15  ;;  %vm9593_vm6 = vcmp.eq.s32.totalorder %v2127_v52, %v9076_v37  ;;  %v2505_v29 = vand.u32 15, %v13417_v6  ;;  %v2424_v52 = vshra.s32 %v2047_v7, 4 }
 0x2c9   :  { %vm9550_vm10 = vmand %vm9492_vm15, %vm2678_vm0  ;;  %vm2663_vm15 = vcmp.eq.s32.totalorder %v2535_v54, %v13272_v15  ;;  %6570 = vmatpush3.bf16.msk.msra.mxu1 %vm9532_vm11, %v12895_v5  ;;  %vm2649_vm11 = vcmp.eq.s32.totalorder %v2521_v61, %v13272_v15  ;;  %v2017_v54 = vadd.s32 192, %v7253_v60  ;;  %v2160_v10 = vshra.s32 %v2032_v0, 8 }
 0x2ca   :  { %vm13403_vm4 = vmmov %vm13402_vm8  ;;  %v2409_v45 = vshra.s32 %v2032_v0, 4  ;;  %v2552_v61 = vand.u32 15, %v2424_v52  ;;  %v2553_v58 = vand.u32 15, %v2425_v24  ;;  %v2001_v0 = vadd.s32 64, %v7253_v60 }
 0x2cb   :  { %5597 = vmatmul.mubr.msk.f32.gmra.mrb[140].mxu0 %vm13403_vm4, %v8734_v56  ;;  %vm2807_vm1 = vmand %vm9506_vm13, %vm2679_vm2  ;;  %vm9574_vm13 = vcmp.eq.s32.totalorder %v2144_v18, %v9076_v37  ;;  %vm9598_vm2 = vcmp.eq.s32.totalorder %v2128_v31, %v9076_v37  ;;  %v2145_v50 = vshra.s32 %v2017_v54, 8  ;;  %v2394_v26 = vshra.s32 %v2017_v54, 4 }
 0x2cc   :  { %3848 = vmatprep.mubr.f32.mxu0 %v13124_v41  ;;  %vm6599_vm14 = vmpackc.low %vm2807_vm1, %vm9550_vm10  ;;  %vm9611_vm10 = vcmp.eq.s32.totalorder %v2504_v35, %v13272_v15  ;;  %v2408_v35 = vshra.s32 %v2031_v57, 4  ;;  %v2537_v57 = vand.u32 15, %v2409_v45  ;;  %v2146_v18 = vshra.s32 %v2018_v19, 8 }
 0x2cd   :  { %6600 = vmatprep.subr.msk.bf16.mxu0 %vm6599_vm14, %v12895_v5  ;;  %vm9587_vm0 = vmand %vm9511_vm7, %vm2662_vm9  ;;  %v2002_v52 = vadd.s32 72, %v7253_v60  ;;  %v2522_v54 = vand.u32 15, %v2394_v26  ;;  %v2129_v24 = vshra.s32 %v2001_v0, 8  ;;  %v2378_v31 = vshra.s32 %v2001_v0, 4 }
 0x2ce   :  { %vm9605_vm7 = vmand %vm9538_vm3, %vm2663_vm15  ;;  %vm9657_vm15 = vcmp.eq.s32.totalorder %v2175_v1, %v9076_v37  ;;  %v2536_v20 = vand.u32 15, %v2408_v35  ;;  %v2178_v23 = vshra.s32 %v2050_v27, 8  ;;  %v2427_v0 = vshra.s32 %v2050_v27, 4 }
 0x2cf   :  { %vm13422_vm9 = vmmov %vm13403_vm4  ;;  %v2130_v35 = vshra.s32 %v2002_v52, 8  ;;  %v2379_v45 = vshra.s32 %v2002_v52, 4  ;;  %v2034_v52 = vadd.s32 328, %v7253_v60  ;;  %v2052_v7 = vadd.s32 472, %v7253_v60 }
 0x2d0   :  { %5566 = vmatmul.mubr.msk.f32.gmra.mrb[142].mxu1 %vm13422_vm9, %v8816_v9  ;;  %vm13423_vm8 = vmmov %vm13403_vm4  ;;  %vm9626_vm4 = vcmp.eq.s32.totalorder %v2505_v29, %v13272_v15  ;;  %vm2681_vm9 = vcmp.eq.s32.totalorder %v2553_v58, %v13272_v15  ;;  %v2506_v58 = vand.u32 15, %v2378_v31  ;;  %v2555_v31 = vand.u32 15, %v2427_v0 }
 0x2d1   :  { %5598 = vmatmul.mubr.msk.f32.gmra.mrb[142].mxu0 %vm13423_vm8, %v8816_v9  ;;  %vm6601_vm3 = vmpackc.low %vm9605_vm7, %vm9587_vm0  ;;  %3693 = vmatprep.mubr.f32.mxu1 %v13124_v41  ;;  %vm9670_vm7 = vcmp.eq.s32.totalorder %v2176_v3, %v9076_v37  ;;  %v2395_v3 = vshra.s32 %v2018_v19, 4  ;;  %v2411_v29 = vshra.s32 %v2034_v52, 4  ;;  %v2056_v27 = vadd.s32 504, %v7253_v60 }
 0x2d2   :  { %3854 = vmatprep.mubr.f32.mxu0 %v13124_v41  ;;  %vm9639_vm1 = vmand %vm9562_vm5, %vm2648_vm12  ;;  %6602 = vmatpush3.bf16.msk.msra.mxu0 %vm6601_vm3, %v12895_v5  ;;  %v2039_v1 = vadd.s32 368, %v7253_v60 }
 0x2d3   :  { %vm9648_vm14 = vmand %vm9574_vm13, %vm2649_vm11  ;;  %vm9675_vm11 = vcmp.eq.s32.totalorder %v2159_v4, %v9076_v37  ;;  %v2049_v4 = vadd.s32 448, %v7253_v60  ;;  %v2539_v19 = vand.u32 15, %v2411_v29 }
 0x2d4   :  { %vm6571_vm5 = vmpackc.low %vm9648_vm14, %vm9639_vm1 }
 0x2d5   :  { %vm13432_vm13 = vmmov %vm13423_vm8  ;;  %6572 = vmatprep.subr.msk.bf16.mxu1 %vm6571_vm5, %v12895_v5  ;;  %v2426_v26 = vshra.s32 %v2049_v4, 4 }
 0x2d6   :  { %5567 = vmatmul.mubr.msk.f32.gmra.mrb[144].mxu1 %vm13432_vm13, %v8882_v36  ;;  %vm13433_vm0 = vmmov %vm13423_vm8  ;;  %vm9688_vm8 = vcmp.eq.s32.totalorder %v2160_v10, %v9076_v37  ;;  %vm2665_vm13 = vcmp.eq.s32.totalorder %v2537_v57, %v13272_v15  ;;  %v2523_v10 = vand.u32 15, %v2395_v3  ;;  %v2177_v57 = vshra.s32 %v2049_v4, 8 }
 0x2d7   :  { %5599 = vmatmul.mubr.msk.f32.gmra.mrb[144].mxu0 %vm13433_vm0, %v8882_v36  ;;  %vm2760_vm12 = vmand %vm9593_vm6, %vm9611_vm10  ;;  %3699 = vmatprep.mubr.f32.mxu1 %v13124_v41  ;;  %vm2680_vm10 = vcmp.eq.s32.totalorder %v2552_v61, %v13272_v15  ;;  %v2033_v3 = vadd.s32 320, %v7253_v60  ;;  %v2019_v4 = vadd.s32 208, %v7253_v60  ;;  %v10387_v36 = vadd.s32 768, %v7253_v60 }
 0x2d8   :  { %3860 = vmatprep.mubr.f32.mxu0 %v13124_v41  ;;  %vm2761_vm6 = vmand %vm9598_vm2, %vm9626_vm4  ;;  %vm2664_vm2 = vcmp.eq.s32.totalorder %v2536_v20, %v13272_v15 }
 0x2d9   :  { %vm6573_vm3 = vmpackc.low %vm2761_vm6, %vm2760_vm12  ;;  %vm9733_vm12 = vcmp.eq.s32.totalorder %v2145_v50, %v9076_v37  ;;  %v2507_v50 = vand.u32 15, %v2379_v45  ;;  %v2162_v45 = vshra.s32 %v2034_v52, 8  ;;  %v2004_v52 = vadd.s32 88, %v7253_v60 }
 0x2da   :  { %6574 = vmatpush3.bf16.msk.msra.mxu1 %vm6573_vm3, %v12895_v5  ;;  %vm9704_vm4 = vmand %vm9657_vm15, %vm2680_vm10  ;;  %vm2651_vm10 = vcmp.eq.s32.totalorder %v2523_v10, %v13272_v15  ;;  %v2410_v10 = vshra.s32 %v2033_v3, 4  ;;  %v2466_v6 = vshra.s32 %v10387_v36, 4 }
 0x2db   :  { %vm13442_vm1 = vmmov %vm13433_vm0 }
 0x2dc   :  { %5568 = vmatmul.mubr.msk.f32.gmra.mrb[146].mxu1 %vm13442_vm1, %v8941_v40  ;;  %vm13443_vm14 = vmmov %vm13433_vm0  ;;  %v2538_v20 = vand.u32 15, %v2410_v10 }
 0x2dd   :  { %5600 = vmatmul.mubr.msk.f32.gmra.mrb[146].mxu0 %vm13443_vm14, %v8941_v40  ;;  %vm2809_vm5 = vmand %vm9670_vm7, %vm2681_vm9  ;;  %3705 = vmatprep.mubr.f32.mxu1 %v13124_v41  ;;  %vm2650_vm7 = vcmp.eq.s32.totalorder %v2522_v54, %v13272_v15  ;;  %vm9754_vm9 = vcmp.eq.s32.totalorder %v2129_v24, %v9076_v37  ;;  %v2554_v24 = vand.u32 15, %v2426_v26  ;;  %v2396_v26 = vshra.s32 %v2019_v4, 4  ;;  %v13610_v40 = vld [vmem:[#allocation82_spill] sm:$0xff] }
 0x2de   :  { %3866 = vmatprep.mubr.f32.mxu0 %v13124_v41  ;;  %vm6603_vm15 = vmpackc.low %vm2809_vm5, %vm9704_vm4  ;;  %vm2635_vm5 = vcmp.eq.s32.totalorder %v2507_v50, %v13272_v15 }
 0x2df   :  { %6604 = vmatprep.subr.msk.bf16.mxu0 %vm6603_vm15, %v12895_v5  ;;  %vm9728_vm0 = vmand %vm9675_vm11, %vm2664_vm2  ;;  %vm9748_vm11 = vcmp.eq.s32.totalorder %v2146_v18, %v9076_v37  ;;  %v2524_v54 = vand.u32 15, %v2396_v26  ;;  %v2040_v18 = vadd.s32 376, %v7253_v60 }
 0x2e0   :  { %vm9743_vm6 = vmand %vm9688_vm8, %vm2665_vm13  ;;  %vm9777_vm13 = vcmp.eq.s32.totalorder %v2130_v35, %v9076_v37  ;;  %v2161_v35 = vshra.s32 %v2033_v3, 8  ;;  %v2003_v3 = vadd.s32 80, %v7253_v60 }
 0x2e1   :  { %vm13454_vm3 = vmmov %vm13442_vm1 }
 0x2e2   :  { %5569 = vmatmul.mubr.msk.f32.gmra.mrb[148].mxu1 %vm13454_vm3, %v8990_v2  ;;  %vm13455_vm8 = vmmov %vm13442_vm1  ;;  %vm2634_vm1 = vcmp.eq.s32.totalorder %v2506_v58, %v13272_v15  ;;  %v2020_v58 = vadd.s32 216, %v7253_v60  ;;  %v2380_v10 = vshra.s32 %v2003_v3, 4 }
 0x2e3   :  { %5601 = vmatmul.mubr.msk.f32.gmra.mrb[148].mxu0 %vm13455_vm8, %v8990_v2  ;;  %vm6605_vm2 = vmpackc.low %vm9743_vm6, %vm9728_vm0  ;;  %3711 = vmatprep.mubr.f32.mxu1 %v13124_v41  ;;  %vm9812_vm6 = vcmp.eq.s32.totalorder %v2177_v57, %v9076_v37  ;;  %v2147_v57 = vshra.s32 %v2019_v4, 8  ;;  %v2051_v4 = vadd.s32 464, %v7253_v60  ;;  %v13608_v2 = vld [vmem:[#allocation78_spill] sm:$0xff] }
 0x2e4   :  { %3872 = vmatprep.mubr.f32.mxu0 %v13124_v41  ;;  %vm9772_vm4 = vmand %vm9733_vm12, %vm2650_vm7  ;;  %6606 = vmatpush3.bf16.msk.msra.mxu0 %vm6605_vm2, %v12895_v5  ;;  %vm9839_vm2 = vcmp.eq.s32.totalorder %v2161_v35, %v9076_v37  ;;  %v2397_v0 = vshra.s32 %v2020_v58, 4  ;;  %v2131_v35 = vshra.s32 %v2003_v3, 8  ;;  %v2035_v3 = vadd.s32 336, %v7253_v60 }
 0x2e5   :  { %vm9789_vm14 = vmand %vm9748_vm11, %vm2651_vm10  ;;  %vm9817_vm11 = vcmp.eq.s32.totalorder %v2178_v23, %v9076_v37  ;;  %vm2682_vm10 = vcmp.eq.s32.totalorder %v2554_v24, %v13272_v15  ;;  %v2148_v23 = vshra.s32 %v2020_v58, 8  ;;  %v2179_v50 = vshra.s32 %v2051_v4, 8 }
 0x2e6   :  { %vm6575_vm15 = vmpackc.low %vm9789_vm14, %vm9772_vm4  ;;  %vm9853_vm4 = vcmp.eq.s32.totalorder %v2162_v45, %v9076_v37  ;;  %v2525_v24 = vand.u32 15, %v2397_v0  ;;  %v2132_v45 = vshra.s32 %v2004_v52, 8  ;;  %v2428_v26 = vshra.s32 %v2051_v4, 4 }
 0x2e7   :  { %vm13462_vm0 = vmmov %vm13454_vm3  ;;  %vm2683_vm3 = vcmp.eq.s32.totalorder %v2555_v31, %v13272_v15  ;;  %6576 = vmatprep.subr.msk.bf16.mxu1 %vm6575_vm15, %v12895_v5  ;;  %v2381_v31 = vshra.s32 %v2004_v52, 4  ;;  %v2429_v0 = vshra.s32 %v2052_v7, 4  ;;  %v2036_v52 = vadd.s32 344, %v7253_v60 }
 0x2e8   :  { %5570 = vmatmul.mubr.msk.f32.gmra.mrb[150].mxu1 %vm13462_vm0, %v9015_v59  ;;  %vm13463_vm12 = vmmov %vm13462_vm0  ;;  %v2556_v4 = vand.u32 15, %v2428_v26  ;;  %v2022_v58 = vadd.s32 232, %v7253_v60 }
 0x2e9   :  { %5602 = vmatmul.mubr.msk.f32.gmra.mrb[150].mxu0 %vm13463_vm12, %v9015_v59  ;;  %vm9807_vm7 = vmand %vm9754_vm9, %vm2634_vm1  ;;  %3717 = vmatprep.mubr.f32.mxu1 %v13124_v41  ;;  %vm2666_vm1 = vcmp.eq.s32.totalorder %v2538_v20, %v13272_v15  ;;  %v2508_v20 = vand.u32 15, %v2380_v10  ;;  %v2163_v10 = vshra.s32 %v2035_v3, 8  ;;  %v2413_v29 = vshra.s32 %v2036_v52, 4 }
 0x2ea   :  { %3878 = vmatprep.mubr.f32.mxu0 %v13124_v41  ;;  %vm2763_vm9 = vmand %vm9777_vm13, %vm2635_vm5 }
 0x2eb   :  { %vm6577_vm8 = vmpackc.low %vm2763_vm9, %vm9807_vm7 }
 0x2ec   :  { %6578 = vmatpush3.bf16.msk.msra.mxu1 %vm6577_vm8, %v12895_v5  ;;  %vm9848_vm13 = vmand %vm9812_vm6, %vm2682_vm10  ;;  %vm9884_vm6 = vcmp.eq.s32.totalorder %v2147_v57, %v9076_v37  ;;  %vm2652_vm10 = vcmp.eq.s32.totalorder %v2524_v54, %v13272_v15  ;;  %v2509_v57 = vand.u32 15, %v2381_v31  ;;  %v2164_v31 = vshra.s32 %v2036_v52, 8 }
 0x2ed   :  { %vm13476_vm14 = vmmov %vm13462_vm0  ;;  %v2006_v52 = vadd.s32 104, %v7253_v60 }
 0x2ee   :  { %5571 = vmatmul.mubr.msk.f32.gmra.mrb[152].mxu1 %vm13476_vm14, %v9031_v34  ;;  %vm13477_vm5 = vmmov %vm13462_vm0  ;;  %vm2667_vm0 = vcmp.eq.s32.totalorder %v2539_v19, %v13272_v15  ;;  %vm9928_vm14 = vcmp.eq.s32.totalorder %v2132_v45, %v9076_v37  ;;  %v2021_v45 = vadd.s32 224, %v7253_v60 }
 0x2ef   :  { %5603 = vmatmul.mubr.msk.f32.gmra.mrb[152].mxu0 %vm13477_vm5, %v9031_v34  ;;  %vm2811_vm15 = vmand %vm9817_vm11, %vm2683_vm3  ;;  %3723 = vmatprep.mubr.f32.mxu1 %v13124_v41  ;;  %vm9889_vm11 = vcmp.eq.s32.totalorder %v2148_v23, %v9076_v37  ;;  %vm2653_vm3 = vcmp.eq.s32.totalorder %v2525_v24, %v13272_v15  ;;  %v2180_v23 = vshra.s32 %v2052_v7, 8  ;;  %v2412_v24 = vshra.s32 %v2035_v3, 4  ;;  %v13606_v34 = vld [vmem:[#allocation77_spill] sm:$0xff] }
 0x2f0   :  { %3884 = vmatprep.mubr.f32.mxu0 %v13124_v41  ;;  %vm6607_vm12 = vmpackc.low %vm2811_vm15, %vm9848_vm13  ;;  %v2149_v19 = vshra.s32 %v2021_v45, 8  ;;  %v2398_v26 = vshra.s32 %v2021_v45, 4  ;;  %v2005_v3 = vadd.s32 96, %v7253_v60  ;;  %v2053_v45 = vadd.s32 480, %v7253_v60 }
 0x2f1   :  { %6608 = vmatprep.subr.msk.bf16.mxu0 %vm6607_vm12, %v12895_v5  ;;  %vm9879_vm7 = vmand %vm9839_vm2, %vm2666_vm1  ;;  %v2054_v7 = vadd.s32 488, %v7253_v60 }
 0x2f2   :  { %vm9899_vm9 = vmand %vm9853_vm4, %vm2667_vm0  ;;  %vm9913_vm4 = vcmp.eq.s32.totalorder %v2131_v35, %v9076_v37  ;;  %vm2637_vm0 = vcmp.eq.s32.totalorder %v2509_v57, %v13272_v15  ;;  %v2557_v35 = vand.u32 15, %v2429_v0  ;;  %v2399_v0 = vshra.s32 %v2022_v58, 4 }
 0x2f3   :  { %vm13486_vm8 = vmmov %vm13477_vm5  ;;  %v2526_v54 = vand.u32 15, %v2398_v26  ;;  %v2181_v57 = vshra.s32 %v2053_v45, 8  ;;  %v2430_v26 = vshra.s32 %v2053_v45, 4 }
 0x2f4   :  { %5572 = vmatmul.mubr.msk.f32.gmra.mrb[154].mxu1 %vm13486_vm8, %v9038_v53  ;;  %vm13487_vm2 = vmmov %vm13477_vm5  ;;  %vm2636_vm5 = vcmp.eq.s32.totalorder %v2508_v20, %v13272_v15  ;;  %v2540_v20 = vand.u32 15, %v2412_v24  ;;  %v2382_v24 = vshra.s32 %v2005_v3, 4 }
 0x2f5   :  { %5604 = vmatmul.mubr.msk.f32.gmra.mrb[154].mxu0 %vm13487_vm2, %v9038_v53  ;;  %vm6609_vm13 = vmpackc.low %vm9899_vm9, %vm9879_vm7  ;;  %3729 = vmatprep.mubr.f32.mxu1 %v13124_v41  ;;  %vm9968_vm9 = vcmp.eq.s32.totalorder %v2180_v23, %v9076_v37  ;;  %v2150_v23 = vshra.s32 %v2022_v58, 8  ;;  %v2558_v45 = vand.u32 15, %v2430_v26  ;;  %v2024_v58 = vadd.s32 248, %v7253_v60 }
 0x2f6   :  { %3890 = vmatprep.mubr.f32.mxu0 %v13124_v41  ;;  %vm9923_vm1 = vmand %vm9884_vm6, %vm2652_vm10  ;;  %6610 = vmatpush3.bf16.msk.msra.mxu0 %vm6609_vm13, %v12895_v5  ;;  %vm9963_vm10 = vcmp.eq.s32.totalorder %v2179_v50, %v9076_v37  ;;  %v2541_v50 = vand.u32 15, %v2413_v29 }
 0x2f7   :  { %vm9940_vm15 = vmand %vm9889_vm11, %vm2653_vm3  ;;  %vm2684_vm3 = vcmp.eq.s32.totalorder %v2556_v4, %v13272_v15  ;;  %v2527_v4 = vand.u32 15, %v2399_v0  ;;  %v2431_v0 = vshra.s32 %v2054_v7, 4 }
 0x2f8   :  { %vm6579_vm12 = vmpackc.low %vm9940_vm15, %vm9923_vm1  ;;  %vm10004_vm1 = vcmp.eq.s32.totalorder %v2164_v31, %v9076_v37  ;;  %v2134_v31 = vshra.s32 %v2006_v52, 8 }
 0x2f9   :  { %vm13496_vm7 = vmmov %vm13487_vm2  ;;  %6580 = vmatprep.subr.msk.bf16.mxu1 %vm6579_vm12, %v12895_v5 }
 0x2fa   :  { %5573 = vmatmul.mubr.msk.f32.gmra.mrb[156].mxu1 %vm13496_vm7, %v9048_v17  ;;  %vm13497_vm6 = vmmov %vm13487_vm2  ;;  %vm2685_vm2 = vcmp.eq.s32.totalorder %v2557_v35, %v13272_v15  ;;  %vm2669_vm7 = vcmp.eq.s32.totalorder %v2541_v50, %v13272_v15  ;;  %v2383_v35 = vshra.s32 %v2006_v52, 4  ;;  %v2038_v52 = vadd.s32 360, %v7253_v60 }
 0x2fb   :  { %5605 = vmatmul.mubr.msk.f32.gmra.mrb[156].mxu0 %vm13497_vm6, %v9048_v17  ;;  %vm9958_vm11 = vmand %vm9913_vm4, %vm2636_vm5  ;;  %3735 = vmatprep.mubr.f32.mxu1 %v13124_v41  ;;  %vm9990_vm4 = vcmp.eq.s32.totalorder %v2163_v10, %v9076_v37  ;;  %vm2668_vm5 = vcmp.eq.s32.totalorder %v2540_v20, %v13272_v15  ;;  %v2133_v10 = vshra.s32 %v2005_v3, 8  ;;  %v2510_v20 = vand.u32 15, %v2382_v24 }
 0x2fc   :  { %3896 = vmatprep.mubr.f32.mxu0 %v13124_v41  ;;  %vm2765_vm8 = vmand %vm9928_vm14, %vm2637_vm0  ;;  %v2037_v3 = vadd.s32 352, %v7253_v60  ;;  %v2415_v29 = vshra.s32 %v2038_v52, 4 }
 0x2fd   :  { %vm6581_vm13 = vmpackc.low %vm2765_vm8, %vm9958_vm11 }
 0x2fe   :  { %6582 = vmatpush3.bf16.msk.msra.mxu1 %vm6581_vm13, %v12895_v5  ;;  %vm9999_vm14 = vmand %vm9963_vm10, %vm2684_vm3  ;;  %vm10035_vm10 = vcmp.eq.s32.totalorder %v2149_v19, %v9076_v37  ;;  %vm2654_vm3 = vcmp.eq.s32.totalorder %v2526_v54, %v13272_v15  ;;  %v2511_v19 = vand.u32 15, %v2383_v35  ;;  %v2165_v24 = vshra.s32 %v2037_v3, 8 }
 0x2ff   :  { %vm13510_vm15 = vmmov %vm13497_vm6  ;;  %v2166_v35 = vshra.s32 %v2038_v52, 8  ;;  %v2008_v52 = vadd.s32 120, %v7253_v60 }
 0x300   :  { %5574 = vmatmul.mubr.msk.f32.gmra.mrb[158].mxu1 %vm13510_vm15, %v9043_v46  ;;  %vm13511_vm0 = vmmov %vm13497_vm6  ;;  %vm10079_vm15 = vcmp.eq.s32.totalorder %v2134_v31, %v9076_v37  ;;  %v2023_v31 = vadd.s32 240, %v7253_v60 }
 0x301   :  { %5606 = vmatmul.mubr.msk.f32.gmra.mrb[158].mxu0 %vm13511_vm0, %v9043_v46  ;;  %vm2813_vm12 = vmand %vm9968_vm9, %vm2685_vm2  ;;  %3741 = vmatprep.mubr.f32.mxu1 %v13124_v41  ;;  %vm10040_vm9 = vcmp.eq.s32.totalorder %v2150_v23, %v9076_v37  ;;  %vm2655_vm2 = vcmp.eq.s32.totalorder %v2527_v4, %v13272_v15  ;;  %v2182_v23 = vshra.s32 %v2054_v7, 8  ;;  %v2414_v4 = vshra.s32 %v2037_v3, 4 }
 0x302   :  { %3902 = vmatprep.mubr.f32.mxu0 %v13124_v41  ;;  %vm6611_vm6 = vmpackc.low %vm2813_vm12, %vm9999_vm14  ;;  %v2151_v50 = vshra.s32 %v2023_v31, 8  ;;  %v2400_v26 = vshra.s32 %v2023_v31, 4  ;;  %v2007_v3 = vadd.s32 112, %v7253_v60  ;;  %v2055_v31 = vadd.s32 496, %v7253_v60 }
 0x303   :  { %6612 = vmatprep.subr.msk.bf16.mxu0 %vm6611_vm6, %v12895_v5  ;;  %vm10030_vm11 = vmand %vm9990_vm4, %vm2668_vm5 }
 0x304   :  { %vm10050_vm8 = vmand %vm10004_vm1, %vm2669_vm7  ;;  %vm10064_vm1 = vcmp.eq.s32.totalorder %v2133_v10, %v9076_v37  ;;  %vm2639_vm7 = vcmp.eq.s32.totalorder %v2511_v19, %v13272_v15  ;;  %v2559_v10 = vand.u32 15, %v2431_v0  ;;  %v2401_v0 = vshra.s32 %v2024_v58, 4 }
 0x305   :  { %vm13520_vm13 = vmmov %vm13511_vm0  ;;  %v2528_v54 = vand.u32 15, %v2400_v26  ;;  %v2432_v19 = vshra.s32 %v2055_v31, 4 }
 0x306   :  { %5575 = vmatmul.mubr.msk.f32.gmra.mrb[160].mxu1 %vm13520_vm13, %v9066_v30  ;;  %vm13521_vm4 = vmmov %vm13511_vm0  ;;  %vm2638_vm0 = vcmp.eq.s32.totalorder %v2510_v20, %v13272_v15  ;;  %v2542_v20 = vand.u32 15, %v2414_v4  ;;  %v2384_v4 = vshra.s32 %v2007_v3, 4 }
 0x307   :  { %5607 = vmatmul.mubr.msk.f32.gmra.mrb[160].mxu0 %vm13521_vm4, %v9066_v30  ;;  %vm6613_vm14 = vmpackc.low %vm10050_vm8, %vm10030_vm11  ;;  %3747 = vmatprep.mubr.f32.mxu1 %v13124_v41  ;;  %vm10119_vm8 = vcmp.eq.s32.totalorder %v2182_v23, %v9076_v37  ;;  %v2152_v23 = vshra.s32 %v2024_v58, 8 }
 0x308   :  { %3908 = vmatprep.mubr.f32.mxu0 %v13124_v41  ;;  %vm10074_vm5 = vmand %vm10035_vm10, %vm2654_vm3  ;;  %6614 = vmatpush3.bf16.msk.msra.mxu0 %vm6613_vm14, %v12895_v5  ;;  %vm10114_vm3 = vcmp.eq.s32.totalorder %v2181_v57, %v9076_v37  ;;  %v2543_v57 = vand.u32 15, %v2415_v29  ;;  %v2512_v7 = vand.u32 15, %v2384_v4  ;;  %v2417_v4 = vshra.s32 %v2040_v18, 4 }
 0x309   :  { %vm10091_vm12 = vmand %vm10040_vm9, %vm2655_vm2  ;;  %vm2686_vm2 = vcmp.eq.s32.totalorder %v2558_v45, %v13272_v15  ;;  %v2529_v45 = vand.u32 15, %v2401_v0  ;;  %v2184_v0 = vshra.s32 %v2056_v27, 8 }
 0x30a   :  { %vm6583_vm6 = vmpackc.low %vm10091_vm12, %vm10074_vm5  ;;  %vm10155_vm5 = vcmp.eq.s32.totalorder %v2166_v35, %v9076_v37  ;;  %v2136_v35 = vshra.s32 %v2008_v52, 8  ;;  %v2545_v29 = vand.u32 15, %v2417_v4 }
 0x30b   :  { %vm13530_vm11 = vmmov %vm13521_vm4  ;;  %6584 = vmatprep.subr.msk.bf16.mxu1 %vm6583_vm6, %v12895_v5 }
 0x30c   :  { %5576 = vmatmul.mubr.msk.f32.gmra.mrb[162].mxu1 %vm13530_vm11, %v9061_v42  ;;  %vm13531_vm10 = vmmov %vm13521_vm4  ;;  %vm2687_vm4 = vcmp.eq.s32.totalorder %v2559_v10, %v13272_v15  ;;  %vm2671_vm11 = vcmp.eq.s32.totalorder %v2543_v57, %v13272_v15  ;;  %v2385_v10 = vshra.s32 %v2008_v52, 4  ;;  %v2105_v57 = vadd.s32 896, %v7253_v60 }
 0x30d   :  { %5608 = vmatmul.mubr.msk.f32.gmra.mrb[162].mxu0 %vm13531_vm10, %v9061_v42  ;;  %vm10109_vm9 = vmand %vm10064_vm1, %vm2638_vm0  ;;  %3753 = vmatprep.mubr.f32.mxu1 %v13124_v41  ;;  %vm10141_vm1 = vcmp.eq.s32.totalorder %v2165_v24, %v9076_v37  ;;  %vm2670_vm0 = vcmp.eq.s32.totalorder %v2542_v20, %v13272_v15  ;;  %v2135_v24 = vshra.s32 %v2007_v3, 8  ;;  %v2183_v20 = vshra.s32 %v2055_v31, 8 }
 0x30e   :  { %3914 = vmatprep.mubr.f32.mxu0 %v13124_v41  ;;  %vm2767_vm13 = vmand %vm10079_vm15, %vm2639_vm7  ;;  %v2513_v58 = vand.u32 15, %v2385_v10  ;;  %v2560_v3 = vand.u32 15, %v2432_v19  ;;  %v2167_v31 = vshra.s32 %v2039_v1, 8  ;;  %v2233_v19 = vshra.s32 %v2105_v57, 8 }
 0x30f   :  { %vm6585_vm14 = vmpackc.low %vm2767_vm13, %vm10109_vm9  ;;  %v10353_v42 = vadd.s32 512, %v7253_v60 }
 0x310   :  { %6586 = vmatpush3.bf16.msk.msra.mxu1 %vm6585_vm14, %v12895_v5  ;;  %vm10150_vm15 = vmand %vm10114_vm3, %vm2686_vm2  ;;  %vm10186_vm3 = vcmp.eq.s32.totalorder %v2151_v50, %v9076_v37  ;;  %vm2656_vm2 = vcmp.eq.s32.totalorder %v2528_v54, %v13272_v15  ;;  %v2073_v54 = vadd.s32 640, %v7253_v60  ;;  %v2106_v50 = vadd.s32 904, %v7253_v60 }
 0x311   :  { %vm13544_vm12 = vmmov %vm13531_vm10  ;;  %v2434_v12 = vshra.s32 %v10353_v42, 4 }
 0x312   :  { %5577 = vmatmul.mubr.msk.f32.gmra.mrb[164].mxu1 %vm13544_vm12, %v9093_v62  ;;  %vm13545_vm7 = vmmov %vm13531_vm10  ;;  %v2450_v61 = vshra.s32 %v2073_v54, 4  ;;  %v2483_v26 = vshra.s32 %v2106_v50, 4 }
 0x313   :  { %5609 = vmatmul.mubr.msk.f32.gmra.mrb[164].mxu0 %vm13545_vm7, %v9093_v62  ;;  %vm2815_vm6 = vmand %vm10119_vm8, %vm2687_vm4  ;;  %3759 = vmatprep.mubr.f32.mxu1 %v13124_v41  ;;  %vm10191_vm8 = vcmp.eq.s32.totalorder %v2152_v23, %v9076_v37  ;;  %vm2657_vm4 = vcmp.eq.s32.totalorder %v2529_v45, %v13272_v15  ;;  %v2433_v23 = vshra.s32 %v2056_v27, 4  ;;  %v2074_v45 = vadd.s32 648, %v7253_v60  ;;  %v13596_v62 = vld [vmem:[#allocation68_spill] sm:$0xff] }
 0x314   :  { %3920 = vmatprep.mubr.f32.mxu0 %v13124_v41  ;;  %vm6615_vm10 = vmpackc.low %vm2815_vm6, %vm10150_vm15  ;;  %v2201_v41 = vshra.s32 %v2073_v54, 8  ;;  %v406_v54 = vsub.s32 6, %v7253_v60 }
 0x315   :  { %6616 = vmatprep.subr.msk.bf16.mxu0 %vm6615_vm10, %v12895_v5  ;;  %vm10181_vm9 = vmand %vm10141_vm1, %vm2670_vm0  ;;  %vm10209_vm0 = vcmp.eq.s32.totalorder %v2135_v24, %v9076_v37  ;;  %v2561_v52 = vand.u32 15, %v2433_v23  ;;  %v2168_v24 = vshra.s32 %v2040_v18, 8  ;;  %v2451_v27 = vshra.s32 %v2074_v45, 4 }
 0x316   :  { %vm2799_vm13 = vmand %vm10155_vm5, %vm2671_vm11  ;;  %vm10214_vm5 = vcmp.eq.s32.totalorder %v2136_v35, %v9076_v37  ;;  %vm2641_vm11 = vcmp.eq.s32.totalorder %v2513_v58, %v13272_v15  ;;  %v2416_v35 = vshra.s32 %v2039_v1, 4  ;;  %v2578_v58 = vand.u32 15, %v2450_v61  ;;  %v13566_v61 = vld [vmem:[#allocation15_spill] sm:$0xff] }
 0x317   :  { %vm13552_vm14 = vmmov %vm13545_vm7  ;;  %v2482_v23 = vshra.s32 %v2105_v57, 4  ;;  %v2611_v18 = vand.u32 15, %v2483_v26 }
 0x318   :  { %5578 = vmatmul.mubr.msk.f32.gmra.mrb[166].mxu1 %vm13552_vm14, %v9068_v28  ;;  %vm13553_vm1 = vmmov %vm13545_vm7  ;;  %vm2640_vm7 = vcmp.eq.s32.totalorder %v2512_v7, %v13272_v15  ;;  %v2544_v10 = vand.u32 15, %v2416_v35  ;;  %v2202_v7 = vshra.s32 %v2074_v45, 8 }
 0x319   :  { %5610 = vmatmul.mubr.msk.f32.gmra.mrb[166].mxu0 %vm13553_vm1, %v9068_v28  ;;  %vm6617_vm15 = vmpackc.low %vm2799_vm13, %vm10181_vm9  ;;  %vm2313_vm13 = vcmp.eq.s32.totalorder %v2184_v0, %v9076_v37  ;;  %v2234_v0 = vshra.s32 %v2106_v50, 8  ;;  %v2610_v1 = vand.u32 15, %v2482_v23  ;;  %v13572_v50 = vld [vmem:[#allocation22_spill] sm:$0xff]  ;;  %v13574_v23 = vld [vmem:[#allocation23_spill] sm:$0xff] }
 0x31a   :  { %6618 = vmatpush3.bf16.msk.msra.mxu0 %vm6617_vm15, %v12895_v5  ;;  %vm10223_vm12 = vmand %vm10186_vm3, %vm2656_vm2  ;;  %vm2312_vm3 = vcmp.eq.s32.totalorder %v2183_v20, %v9076_v37  ;;  %vm2296_vm15 = vcmp.eq.s32.totalorder %v2167_v31, %v9076_v37  ;;  %v2579_v20 = vand.u32 15, %v2451_v27  ;;  %v402_v31 = vsub.s32 5, %v7253_v60  ;;  %v13594_v28 = vld [vmem:[#allocation67_spill] sm:$0xff] }
 0x31b   :  { %vm2785_vm6 = vmand %vm10191_vm8, %vm2657_vm4  ;;  %vm2688_vm8 = vcmp.eq.s32.totalorder %v2560_v3, %v13272_v15  ;;  %vm2689_vm4 = vcmp.eq.s32.totalorder %v2561_v52, %v13272_v15  ;;  %v394_v3 = vsub.s32 3, %v7253_v60  ;;  %v398_v52 = vsub.s32 4, %v7253_v60 }
 0x31c   :  { %vm6587_vm10 = vmpackc.low %vm2785_vm6, %vm10223_vm12  ;;  %vm2672_vm12 = vcmp.eq.s32.totalorder %v2544_v10, %v13272_v15 }
 0x31d   :  { %6588 = vmatprep.subr.msk.bf16.mxu1 %vm6587_vm10, %v12895_v5  ;;  %vm2768_vm9 = vmand %vm10209_vm0, %vm2640_vm7  ;;  %vm2297_vm0 = vcmp.eq.s32.totalorder %v2168_v24, %v9076_v37  ;;  %vm2673_vm7 = vcmp.eq.s32.totalorder %v2545_v29, %v13272_v15  ;;  %vm2330_vm10 = vcmp.eq.s32.totalorder %v2201_v41, %v9076_v37  ;;  %v6918_v24 = vld [vmem:[%s12643_s5] sm:$0xff]  ;;  %v13564_v29 = vld [vmem:[#allocation14_spill] sm:$0xff] }
 0x31e   :  { %vm2769_vm2 = vmand %vm10214_vm5, %vm2641_vm11  ;;  %v10276_v35 = vrot.slane %v6918_v24, %v394_v3  ;;  %v10278_v4 = vrot.slane %v6918_v24, %v398_v52  ;;  %v10280_v45 = vrot.slane %v6918_v24, %v406_v54  ;;  %v10282_v10 = vrot.slane %v6918_v24, %v402_v31  ;;  %v13580_v52 = vld [vmem:[#allocation56_spill] sm:$0xff]  ;;  %v13582_v31 = vld [vmem:[#allocation57_spill] sm:$0xff] }
 0x31f   :  { %vm6589_vm14 = vmpackc.low %vm2769_vm2, %vm2768_vm9  ;;  %vm2706_vm9 = vcmp.eq.s32.totalorder %v2578_v58, %v13272_v15  ;;  %vm2707_vm2 = vcmp.eq.s32.totalorder %v2579_v20, %v13272_v15  ;;  %v13570_v20 = vld [vmem:[#allocation21_spill] sm:$0xff] }
 0x320   :  { %6590 = vmatpush3.bf16.msk.msra.mxu1 %vm6589_vm14, %v12895_v5  ;;  %vm2816_vm1 = vmand %vm2312_vm3, %vm2688_vm8  ;;  %vm2331_vm8 = vcmp.eq.s32.totalorder %v2202_v7, %v9076_v37  ;;  %13560 = vst [vmem:[#allocation53_spill] sm:$0xff] %v10276_v35  ;;  %v10286_v41 = vadd.f32 %v13564_v29, %v10276_v35  ;;  %v10290_v27 = vadd.f32 %v13566_v61, %v10276_v35  ;;  %v13568_v7 = vld [vmem:[#allocation20_spill] sm:$0xff]  ;;  %v13584_v29 = vld [vmem:[#allocation58_spill] sm:$0xff] }
 0x321   :  { %vm2817_vm5 = vmand %vm2313_vm13, %vm2689_vm4  ;;  %13561 = vst [vmem:[#allocation10_spill] sm:$0xff] %v10278_v4  ;;  %v10294_v58 = vadd.f32 %v13568_v7, %v10276_v35  ;;  %v10298_v57 = vadd.f32 %v13570_v20, %v10276_v35  ;;  %v10306_v26 = vadd.f32 %v13574_v23, %v10276_v35  ;;  %v10318_v54 = vadd.f32 %v13580_v52, %v10278_v4  ;;  %v13586_v7 = vld [vmem:[#allocation61_spill] sm:$0xff]  ;;  %v13592_v52 = vld [vmem:[#allocation66_spill] sm:$0xff] }
 0x322   :  { %vm6619_vm6 = vmpackc.low %vm2817_vm5, %vm2816_vm1  ;;  %vm2739_vm5 = vcmp.eq.s32.totalorder %v2611_v18, %v13272_v15  ;;  %13562 = vst [vmem:[#allocation11_spill] sm:$0xff] %v10280_v45  ;;  %v13578_v18 = vld [vmem:[#allocation31_spill] sm:$0xff]  ;;  %v10322_v24 = vadd.f32 %v13582_v31, %v10280_v45  ;;  %v10326_v61 = vadd.f32 %v13584_v29, %v10282_v10  ;;  %v10330_v20 = vadd.f32 %v13586_v7, %v10278_v4 }
 0x323   :  { %6620 = vmatprep.subr.msk.bf16.mxu0 %vm6619_vm6, %v12895_v5  ;;  %vm2800_vm11 = vmand %vm2296_vm15, %vm2672_vm12  ;;  %vm2362_vm15 = vcmp.eq.s32.totalorder %v2233_v19, %v9076_v37  ;;  %vm2363_vm12 = vcmp.eq.s32.totalorder %v2234_v0, %v9076_v37  ;;  %13563 = vst [vmem:[#allocation16_spill] sm:$0xff] %v10282_v10  ;;  %v10302_v19 = vadd.f32 %v13572_v50, %v10276_v35  ;;  %v13576_v0 = vld [vmem:[#allocation27_spill] sm:$0xff]  ;;  %v13588_v50 = vld [vmem:[#allocation62_spill] sm:$0xff] }
 0x324   :  { %vm2801_vm3 = vmand %vm2297_vm0, %vm2673_vm7  ;;  %vm2738_vm0 = vcmp.eq.s32.totalorder %v2610_v1, %v13272_v15  ;;  %13565 = vst [vmem:[#allocation17_spill] sm:$0xff] %v10286_v41  ;;  %v10310_v1 = vadd.f32 %v13576_v0, %v10276_v35  ;;  %v10314_v3 = vadd.f32 %v13578_v18, %v10276_v35  ;;  %v10334_v23 = vadd.f32 %v13588_v50, %v10280_v45  ;;  %v13590_v0 = vld [vmem:[#allocation64_spill] sm:$0xff] }
 0x325   :  { %vm6621_vm13 = vmpackc.low %vm2801_vm3, %vm2800_vm11  ;;  %13567 = vst [vmem:[#allocation24_spill] sm:$0xff] %v10290_v27  ;;  %v10338_v18 = vadd.f32 %v13590_v0, %v10282_v10  ;;  %v10342_v31 = vadd.f32 %v13592_v52, %v10278_v4  ;;  %v10346_v29 = vadd.f32 %v13594_v28, %v10280_v45  ;;  %v10350_v7 = vadd.f32 %v13596_v62, %v10282_v10  ;;  %v13598_v0 = vld [vmem:[#allocation70_spill] sm:$0xff]  ;;  %v13600_v52 = vld [vmem:[#allocation71_spill] sm:$0xff] }
 0x326   :  { %6622 = vmatpush3.bf16.msk.msra.mxu0 %vm6621_vm13, %v12895_v5  ;;  %vm2834_vm4 = vmand %vm2330_vm10, %vm2706_vm9  ;;  %13569 = vst [vmem:[#allocation25_spill] sm:$0xff] %v10294_v58  ;;  %v10356_v50 = vadd.s32 520, %v7253_v60  ;;  %v10360_v30 = vadd.f32 %v13598_v0, %v10278_v4  ;;  %v10364_v46 = vadd.f32 %v13600_v52, %v10280_v45  ;;  %v13602_v28 = vld [vmem:[#allocation73_spill] sm:$0xff]  ;;  %v13604_v62 = vld [vmem:[#allocation76_spill] sm:$0xff]  ;;  %v10376_v59 = vadd.f32 %v13606_v34, %v10280_v45 }
 0x327   :  { %vm2835_vm14 = vmand %vm2331_vm8, %vm2707_vm2  ;;  %13571 = vst [vmem:[#allocation14_spill] sm:$0xff] %v10298_v57  ;;  %v10368_v17 = vadd.f32 %v13602_v28, %v10282_v10  ;;  %v10372_v53 = vadd.f32 %v13604_v62, %v10278_v4  ;;  %v10380_v0 = vadd.f32 %v13608_v2, %v10282_v10  ;;  %v10384_v52 = vadd.f32 %v13610_v40, %v10278_v4  ;;  %v13612_v28 = vld [vmem:[#allocation83_spill] sm:$0xff]  ;;  %v13614_v62 = vld [vmem:[#allocation84_spill] sm:$0xff] }
 0x328   :  { %vm6623_vm1 = vmpackc.low %vm2835_vm14, %vm2834_vm4  ;;  %13573 = vst [vmem:[#allocation15_spill] sm:$0xff] %v10302_v19  ;;  %v10391_v9 = vadd.f32 %v13612_v28, %v10280_v45  ;;  %v10395_v56 = vadd.f32 %v13614_v62, %v10282_v10  ;;  %v13616_v34 = vld [vmem:[#allocation86_spill] sm:$0xff]  ;;  %v10402_v2 = vadd.s32 776, %v7253_v60  ;;  %v13618_v40 = vld [vmem:[#allocation87_spill] sm:$0xff]  ;;  %v2435_v28 = vshra.s32 %v10356_v50, 4 }
 0x329   :  { %6624 = vmatprep.subr.msk.bf16.mxu1 %vm6623_vm1, %v12895_v5  ;;  %vm2866_vm7 = vmand %vm2362_vm15, %vm2738_vm0  ;;  %13575 = vst [vmem:[#allocation20_spill] sm:$0xff] %v10306_v26  ;;  %v10399_v22 = vadd.f32 %v13616_v34, %v10278_v4  ;;  %v10406_v44 = vadd.f32 %v13618_v40, %v10280_v45  ;;  %v13620_v62 = vld [vmem:[#allocation89_spill] sm:$0xff]  ;;  %v10425_v40 = vadd.s32 528, %v7253_v60  ;;  %v10429_v63 = vadd.f32 %v13624_v38, %v10280_v45 }
 0x32a   :  { %vm2867_vm6 = vmand %vm2363_vm12, %vm2739_vm5  ;;  %13577 = vst [vmem:[#allocation21_spill] sm:$0xff] %v10310_v1  ;;  %v10415_v8 = vadd.f32 %v13620_v62, %v10282_v10  ;;  %v13622_v34 = vld [vmem:[#allocation93_spill] sm:$0xff]  ;;  %v10433_v55 = vadd.f32 %v13626_v43, %v10282_v10  ;;  %v2467_v11 = vshra.s32 %v10402_v2, 4  ;;  %v10445_v38 = vand.u32 15, %v2434_v12 }
 0x32b   :  { %vm6655_vm11 = vmpackc.low %vm2867_vm6, %vm2866_vm7  ;;  %13579 = vst [vmem:[#allocation22_spill] sm:$0xff] %v10314_v3  ;;  %v10419_v33 = vadd.f32 %v13622_v34, %v10278_v4  ;;  %v10447_v48 = vand.u32 15, %v2435_v28  ;;  %v2452_v43 = vshra.s32 %v10411_v49, 4  ;;  %v10451_v62 = vadd.s32 920, %v7253_v60 }
 0x32c   :  { %6656 = vmatprep.subr.msk.bf16.mxu0 %vm6655_vm11, %v12895_v5  ;;  %13581 = vst [vmem:[#allocation23_spill] sm:$0xff] %v10318_v54  ;;  %13583 = vst [vmem:[#allocation27_spill] sm:$0xff] %v10322_v24  ;;  %v2436_v32 = vshra.s32 %v10425_v40, 4  ;;  %v10457_v45 = vand.u32 15, %v2466_v6  ;;  %v10461_v28 = vadd.s32 784, %v7253_v60  ;;  %v10464_v4 = vadd.s32 792, %v7253_v60 }
 0x32d   :  { %13585 = vst [vmem:[#allocation31_spill] sm:$0xff] %v10326_v61  ;;  %13587 = vst [vmem:[#allocation56_spill] sm:$0xff] %v10330_v20  ;;  %v10466_v10 = vand.u32 15, %v2467_v11  ;;  %v2437_v34 = vshra.s32 %v10440_v16, 4  ;;  %v2484_v35 = vshra.s32 %v10443_v13, 4  ;;  %v10471_v14 = vand.u32 15, %v2452_v43 }
 0x32e   :  { %13589 = vst [vmem:[#allocation57_spill] sm:$0xff] %v10334_v23  ;;  %13591 = vst [vmem:[#allocation58_spill] sm:$0xff] %v10338_v18  ;;  %v2485_v6 = vshra.s32 %v10451_v62, 4  ;;  %v10475_v12 = vadd.s32 672, %v7253_v60  ;;  %v2468_v43 = vshra.s32 %v10461_v28, 4  ;;  %v2469_v39 = vshra.s32 %v10464_v4, 4 }
 0x32f   :  { %13593 = vst [vmem:[#allocation61_spill] sm:$0xff] %v10342_v31  ;;  %13595 = vst [vmem:[#allocation62_spill] sm:$0xff] %v10346_v29  ;;  %v10498_v11 = vadd.s32 552, %v7253_v60  ;;  %v10573_v58 = vadd.s32 952, %v7253_v60  ;;  %v13634_v18 = vshra.s32 %v10353_v42, 8  ;;  %v13640_v42 = vshra.s32 %v10387_v36, 8 }
 0x330   :  { %13597 = vst [vmem:[#allocation64_spill] sm:$0xff] %v10350_v7  ;;  %13599 = vst [vmem:[#allocation66_spill] sm:$0xff] %v10360_v30  ;;  %v2454_v47 = vshra.s32 %v10475_v12, 4  ;;  %v10560_v30 = vadd.s32 944, %v7253_v60  ;;  %v13649_v27 = vshra.s32 %v10422_v51, 8  ;;  %v10645_v24 = vadd.s32 712, %v7253_v60 }
 0x331   :  { %13601 = vst [vmem:[#allocation67_spill] sm:$0xff] %v10364_v46  ;;  %13603 = vst [vmem:[#allocation68_spill] sm:$0xff] %v10368_v17  ;;  %v10541_v46 = vadd.s32 560, %v7253_v60  ;;  %v10548_v17 = vadd.s32 568, %v7253_v60  ;;  %vm10578_vm10 = vcmp.eq.s32.totalorder %v13634_v18, %v9076_v37  ;;  %vm10596_vm2 = vcmp.eq.s32.totalorder %v13640_v42, %v9076_v37 }
 0x332   :  { %13605 = vst [vmem:[#allocation70_spill] sm:$0xff] %v10372_v53  ;;  %13607 = vst [vmem:[#allocation71_spill] sm:$0xff] %v10376_v59  ;;  %v10527_v59 = vadd.s32 688, %v7253_v60  ;;  %v10529_v53 = vand.u32 15, %v2454_v47  ;;  %v10615_v42 = vadd.s32 816, %v7253_v60  ;;  %vm10630_vm15 = vcmp.eq.s32.totalorder %v13649_v27, %v9076_v37 }
 0x333   :  { %13609 = vst [vmem:[#allocation73_spill] sm:$0xff] %v10380_v0  ;;  %13611 = vst [vmem:[#allocation76_spill] sm:$0xff] %v10384_v52  ;;  %v2438_v52 = vshra.s32 %v10490_v21, 4  ;;  %v10535_v0 = vadd.s32 696, %v7253_v60  ;;  %v2440_v19 = vshra.s32 %v10541_v46, 4  ;;  %v2441_v20 = vshra.s32 %v10548_v17, 4 }
 0x334   :  { %13613 = vst [vmem:[#allocation77_spill] sm:$0xff] %v10391_v9  ;;  %13615 = vst [vmem:[#allocation78_spill] sm:$0xff] %v10395_v56  ;;  %v10515_v9 = vand.u32 15, %v2468_v43  ;;  %v10521_v56 = vadd.s32 808, %v7253_v60  ;;  %v2456_v31 = vshra.s32 %v10527_v59, 4  ;;  %v13653_v51 = vshra.s32 %v10443_v13, 8 }
 0x335   :  { %13617 = vst [vmem:[#allocation82_spill] sm:$0xff] %v10399_v22  ;;  %13619 = vst [vmem:[#allocation83_spill] sm:$0xff] %v10406_v44  ;;  %v10492_v44 = vand.u32 15, %v2437_v34  ;;  %v10495_v22 = vand.u32 15, %v2484_v35  ;;  %v10513_v35 = vadd.s32 800, %v7253_v60  ;;  %v2439_v34 = vshra.s32 %v10498_v11, 4 }
 0x336   :  { %13621 = vst [vmem:[#allocation84_spill] sm:$0xff] %v10415_v8  ;;  %13623 = vst [vmem:[#allocation86_spill] sm:$0xff] %v10419_v33  ;;  %v10480_v33 = vand.u32 15, %v2453_v25  ;;  %v10505_v8 = vadd.s32 928, %v7253_v60  ;;  %v10510_v25 = vadd.s32 936, %v7253_v60  ;;  %v10544_v47 = vand.u32 15, %v2438_v52 }
 0x337   :  { %13625 = vst [vmem:[#allocation87_spill] sm:$0xff] %v10429_v63  ;;  %13627 = vst [vmem:[#allocation89_spill] sm:$0xff] %v10433_v55  ;;  %v10478_v63 = vadd.s32 680, %v7253_v60  ;;  %v10484_v55 = vand.u32 15, %v2436_v32  ;;  %v10500_v32 = vand.u32 15, %v2485_v6  ;;  %v10517_v6 = vand.u32 15, %v2469_v39 }
 0x338   :  { %13628 = vst [vmem:[#allocation93_spill] sm:$0xff] %v10515_v9  ;;  %13630 = vst [vmem:[#allocation96_spill] sm:$0xff] %v10529_v53  ;;  %v2486_v39 = vshra.s32 %v10505_v8, 4  ;;  %v2487_v26 = vshra.s32 %v10510_v25, 4  ;;  %v2470_v1 = vshra.s32 %v10513_v35, 4  ;;  %v10550_v57 = vand.u32 15, %v2439_v34 }
 0x339   :  { %v2455_v3 = vshra.s32 %v10478_v63, 4  ;;  %13629 = vst [vmem:[#allocation94_spill] sm:$0xff] %v10517_v6  ;;  %v2457_v52 = vshra.s32 %v10535_v0, 4  ;;  %v10612_v36 = vand.u32 15, %v2456_v31  ;;  %v10618_v34 = vadd.s32 824, %v7253_v60 }
 0x33a   :  { %v10555_v7 = vand.u32 15, %v2486_v39  ;;  %v10562_v5 = vand.u32 15, %v2487_v26  ;;  %v10565_v23 = vand.u32 15, %v2470_v1  ;;  %v13637_v1 = vshra.s32 %v10356_v50, 8 }
 0x33b   :  { %v10531_v43 = vand.u32 15, %v2455_v3  ;;  %v2471_v3 = vshra.s32 %v10521_v56, 4  ;;  %v13643_v50 = vshra.s32 %v10402_v2, 8  ;;  %v13646_v2 = vshra.s32 %v10411_v49, 8 }
 0x33c   :  { %13632 = vst [vmem:[#allocation198_spill] sm:$0xff] %v10555_v7  ;;  %vm10585_vm9 = vcmp.eq.s32.totalorder %v13637_v1, %v9076_v37  ;;  %v13650_v39 = vmov 0  ;;  %v10638_v31 = vand.u32 15, %v2457_v52  ;;  %v2488_v49 = vshra.s32 %v10560_v30, 4 }
 0x33d   :  { %13631 = vst [vmem:[#allocation197_spill] sm:$0xff] %v10531_v43  ;;  %v10568_v29 = vand.u32 15, %v2471_v3  ;;  %vm10603_vm13 = vcmp.eq.s32.totalorder %v13643_v50, %v9076_v37  ;;  %vm10623_vm1 = vcmp.eq.s32.totalorder %v13646_v2, %v9076_v37  ;;  %v13651_v39 = vsel %vm10630_vm15, 4294967295, %v13650_v39 }
 0x33e   :  { %13652 = vst [vmem:[#allocation200_spill] sm:$0xff] %v13651_v39  ;;  %v10642_v2 = vadd.s32 704, %v7253_v60  ;;  %vm10650_vm5 = vcmp.eq.s32.totalorder %v13653_v51, %v9076_v37  ;;  %v13654_v27 = vmov 0  ;;  %v10658_v61 = vand.u32 15, %v2440_v19 }
 0x33f   :  { %13633 = vst [vmem:[#allocation199_spill] sm:$0xff] %v10568_v29  ;;  %v13655_v27 = vsel %vm10650_vm5, 4294967295, %v13654_v27  ;;  %v10661_v41 = vadd.s32 576, %v7253_v60  ;;  %v13657_v39 = vshra.s32 %v10451_v62, 8  ;;  %v10672_v51 = vand.u32 15, %v2441_v20 }
 0x340   :  { %13656 = vst [vmem:[#allocation201_spill] sm:$0xff] %v13655_v27  ;;  %v2239_v52 = vshra.s32 %v10560_v30, 8  ;;  %v2489_v19 = vshra.s32 %v10573_v58, 4  ;;  %v10677_v54 = vadd.s32 584, %v7253_v60  ;;  %v13660_v27 = vshra.s32 %v10425_v40, 8  ;;  %v13772_v62 = vld [vmem:[#allocation94_spill] sm:$0xff] }
 0x341   :  { %vm10666_vm6 = vcmp.eq.s32.totalorder %v13657_v39, %v9076_v37  ;;  %v13663_v39 = vshra.s32 %v10440_v16, 8  ;;  %v13664_v20 = vmov 0  ;;  %v13667_v30 = vshra.s32 %v10461_v28, 8 }
 0x342   :  { %vm10682_vm7 = vcmp.eq.s32.totalorder %v13660_v27, %v9076_v37  ;;  %v13668_v40 = vmov 0  ;;  %v13671_v16 = vshra.s32 %v10464_v4, 8  ;;  %v13672_v27 = vmov 0 }
 0x343   :  { %vm10689_vm11 = vcmp.eq.s32.totalorder %v13663_v39, %v9076_v37  ;;  %vm10700_vm14 = vcmp.eq.s32.totalorder %v13667_v30, %v9076_v37  ;;  %v2240_v39 = vshra.s32 %v10573_v58, 8  ;;  %v2472_v28 = vshra.s32 %v10615_v42, 4 }
 0x344   :  { %v13665_v20 = vsel %vm10689_vm11, 4294967295, %v13664_v20  ;;  %v13669_v40 = vsel %vm10700_vm14, 4294967295, %v13668_v40  ;;  %vm10707_vm4 = vcmp.eq.s32.totalorder %v13671_v16, %v9076_v37  ;;  %v2473_v30 = vshra.s32 %v10618_v34, 4 }
 0x345   :  { %13666 = vst [vmem:[#allocation202_spill] sm:$0xff] %v13665_v20  ;;  %13670 = vst [vmem:[#allocation203_spill] sm:$0xff] %v13669_v40  ;;  %v13673_v27 = vsel %vm10707_vm4, 4294967295, %v13672_v27  ;;  %v10719_v40 = vadd.s32 960, %v7253_v60  ;;  %v13675_v4 = vshra.s32 %v10475_v12, 8  ;;  %v13676_v16 = vmov 0 }
 0x346   :  { %13674 = vst [vmem:[#allocation204_spill] sm:$0xff] %v13673_v27  ;;  %v13679_v27 = vshra.s32 %v10478_v63, 8  ;;  %v13680_v6 = vmov 0  ;;  %v10739_v58 = vand.u32 15, %v2488_v49  ;;  %v2458_v12 = vshra.s32 %v10642_v2, 4 }
 0x347   :  { %vm10724_vm8 = vcmp.eq.s32.totalorder %v13675_v4, %v9076_v37  ;;  %v2459_v4 = vshra.s32 %v10645_v24, 4  ;;  %v13683_v63 = vshra.s32 %v10505_v8, 8  ;;  %v2223_v49 = vshra.s32 %v10615_v42, 8 }
 0x348   :  { %v13677_v16 = vsel %vm10724_vm8, 4294967295, %v13676_v16  ;;  %vm10731_vm0 = vcmp.eq.s32.totalorder %v13679_v27, %v9076_v37  ;;  %v13684_v27 = vmov 0  ;;  %v10758_v43 = vadd.s32 832, %v7253_v60 }
 0x349   :  { %13678 = vst [vmem:[#allocation205_spill] sm:$0xff] %v13677_v16  ;;  %v13681_v6 = vsel %vm10731_vm0, 4294967295, %v13680_v6  ;;  %v10744_v16 = vadd.s32 968, %v7253_v60  ;;  %vm10749_vm8 = vcmp.eq.s32.totalorder %v13683_v63, %v9076_v37  ;;  %v10761_v53 = vadd.s32 840, %v7253_v60 }
 0x34a   :  { %13682 = vst [vmem:[#allocation206_spill] sm:$0xff] %v13681_v6  ;;  %v13685_v27 = vsel %vm10749_vm8, 4294967295, %v13684_v27  ;;  %v2442_v6 = vshra.s32 %v10661_v41, 4  ;;  %v13687_v8 = vshra.s32 %v10510_v25, 8  ;;  %v13688_v63 = vmov 0 }
 0x34b   :  { %13686 = vst [vmem:[#allocation207_spill] sm:$0xff] %v13685_v27  ;;  %v10772_v27 = vand.u32 15, %v2489_v19  ;;  %v2224_v42 = vshra.s32 %v10618_v34, 8  ;;  %v2443_v7 = vshra.s32 %v10677_v54, 4  ;;  %v2490_v9 = vshra.s32 %v10719_v40, 4 }
 0x34c   :  { %vm10766_vm3 = vcmp.eq.s32.totalorder %v13687_v8, %v9076_v37  ;;  %v13691_v20 = vshra.s32 %v10490_v21, 8  ;;  %v13692_v25 = vmov 0  ;;  %v13694_v8 = vshra.s32 %v10498_v11, 8 }
 0x34d   :  { %v13689_v63 = vsel %vm10766_vm3, 4294967295, %v13688_v63  ;;  %v13697_v21 = vshra.s32 %v10513_v35, 8  ;;  %v13698_v34 = vmov 0  ;;  %v13700_v11 = vshra.s32 %v10521_v56, 8 }
 0x34e   :  { %13690 = vst [vmem:[#allocation208_spill] sm:$0xff] %v13689_v63  ;;  %vm10780_vm8 = vcmp.eq.s32.totalorder %v13691_v20, %v9076_v37  ;;  %vm10787_vm3 = vcmp.eq.s32.totalorder %v13694_v8, %v9076_v37  ;;  %v13695_v63 = vmov 0  ;;  %v13701_v19 = vmov 0 }
 0x34f   :  { %v13693_v25 = vsel %vm10780_vm8, 4294967295, %v13692_v25  ;;  %v13696_v63 = vsel %vm10787_vm3, 4294967295, %v13695_v63  ;;  %vm10798_vm4 = vcmp.eq.s32.totalorder %v13697_v21, %v9076_v37  ;;  %vm10805_vm8 = vcmp.eq.s32.totalorder %v13700_v11, %v9076_v37 }
 0x350   :  { %v13699_v34 = vsel %vm10798_vm4, 4294967295, %v13698_v34  ;;  %v13702_v19 = vsel %vm10805_vm8, 4294967295, %v13701_v19  ;;  %v10813_v20 = vand.u32 15, %v2472_v28  ;;  %v10815_v35 = vand.u32 15, %v2473_v30 }
 0x351   :  { %13703 = vst [vmem:[#allocation209_spill] sm:$0xff] %v13702_v19  ;;  %v2209_v8 = vshra.s32 %v10642_v2, 8  ;;  %v2491_v21 = vshra.s32 %v10744_v16, 4  ;;  %v13704_v56 = vshra.s32 %v10527_v59, 8  ;;  %v13705_v11 = vmov 0 }
 0x352   :  { %v13707_v19 = vshra.s32 %v10535_v0, 8  ;;  %v13708_v29 = vmov 0  ;;  %v2210_v2 = vshra.s32 %v10645_v24, 8  ;;  %v10838_v59 = vand.u32 15, %v2458_v12 }
 0x353   :  { %vm10822_vm4 = vcmp.eq.s32.totalorder %v13704_v56, %v9076_v37  ;;  %v10840_v28 = vand.u32 15, %v2459_v4  ;;  %v2193_v30 = vshra.s32 %v10661_v41, 8  ;;  %v13710_v0 = vmov 0  ;;  %v13774_v4 = vld [vmem:[#allocation204_spill] sm:$0xff] }
 0x354   :  { %v13706_v11 = vsel %vm10822_vm4, 4294967295, %v13705_v11  ;;  %vm10829_vm12 = vcmp.eq.s32.totalorder %v13707_v19, %v9076_v37  ;;  %vm10844_vm4 = vcmp.eq.s32.totalorder %v2239_v52, %v9076_v37  ;;  %v2194_v19 = vshra.s32 %v10677_v54, 8 }
 0x355   :  { %v13709_v29 = vsel %vm10829_vm12, 4294967295, %v13708_v29  ;;  %v13711_v0 = vsel %vm10844_vm4, 4294967295, %v13710_v0  ;;  %v10851_v56 = vand.u32 15, %v2442_v6  ;;  %v2474_v24 = vshra.s32 %v10758_v43, 4 }
 0x356   :  { %v2475_v12 = vshra.s32 %v10761_v53, 4  ;;  %vm13712_vm8 = vcmp.eq.s32.totalorder %v10445_v38, %v13272_v15  ;;  %v13713_v41 = vmov 0  ;;  %vm13715_vm12 = vcmp.eq.s32.totalorder %v10447_v48, %v13272_v15 }
 0x357   :  { %vm10860_vm0 = vmand %vm10578_vm10, %vm13712_vm8  ;;  %v13716_v54 = vmov 0  ;;  %vm13718_vm3 = vcmp.eq.s32.totalorder %v10457_v45, %v13272_v15  ;;  %v13719_v38 = vmov 0  ;;  %vm13721_vm10 = vcmp.eq.s32.totalorder %v10466_v10, %v13272_v15 }
 0x358   :  { %v13714_v41 = vsel %vm10860_vm0, 4294967295, %v13713_v41  ;;  %vm10869_vm4 = vmand %vm10585_vm9, %vm13715_vm12  ;;  %v13722_v48 = vmov 0  ;;  %vm10892_vm9 = vcmp.eq.s32.totalorder %v2240_v39, %v9076_v37  ;;  %v10898_v45 = vand.u32 15, %v2443_v7 }
 0x359   :  { %v13717_v54 = vsel %vm10869_vm4, 4294967295, %v13716_v54  ;;  %vm10878_vm14 = vmand %vm10596_vm2, %vm13718_vm3  ;;  %v2241_v26 = vshra.s32 %v10719_v40, 8  ;;  %v2242_v10 = vshra.s32 %v10744_v16, 8  ;;  %v10902_v3 = vand.u32 15, %v2490_v9 }
 0x35a   :  { %v13720_v38 = vsel %vm10878_vm14, 4294967295, %v13719_v38  ;;  %vm10887_vm8 = vmand %vm10603_vm13, %vm13721_vm10  ;;  %13726 = vst [vmem:[#allocation210_spill] sm:$0xff] %v10898_v45  ;;  %vm13728_vm2 = vcmp.eq.s32.totalorder %v10471_v14, %v13272_v15  ;;  %v13729_v18 = vmov 0  ;;  %vm13731_vm12 = vcmp.eq.s32.totalorder %v10480_v33, %v13272_v15 }
 0x35b   :  { %v13723_v48 = vsel %vm10887_vm8, 4294967295, %v13722_v48  ;;  %13727 = vst [vmem:[#allocation211_spill] sm:$0xff] %v10902_v3  ;;  %vm10909_vm13 = vmand %vm10623_vm1, %vm13728_vm2  ;;  %v13733_v1 = vmov 0  ;;  %v13735_v9 = vshra.s32 %v10541_v46, 8  ;;  %v13736_v14 = vmov 0 }
 0x35c   :  { %v13730_v18 = vsel %vm10909_vm13, 4294967295, %v13729_v18  ;;  %vm10918_vm10 = vmand %vm10630_vm15, %vm13731_vm12  ;;  %v13738_v50 = vshra.s32 %v10548_v17, 8  ;;  %v13739_v52 = vmov 0  ;;  %vm10941_vm12 = vcmp.eq.s32.totalorder %v2223_v49, %v9076_v37 }
 0x35d   :  { %v13734_v1 = vsel %vm10918_vm10, 4294967295, %v13733_v1  ;;  %vm10925_vm3 = vcmp.eq.s32.totalorder %v13735_v9, %v9076_v37  ;;  %v13741_v33 = vmov 0  ;;  %v13743_v46 = vmov 0 }
 0x35e   :  { %v13737_v14 = vsel %vm10925_vm3, 4294967295, %v13736_v14  ;;  %vm10932_vm1 = vcmp.eq.s32.totalorder %v13738_v50, %v9076_v37  ;;  %v13742_v33 = vsel %vm10941_vm12, 4294967295, %v13741_v33  ;;  %vm10946_vm3 = vcmp.eq.s32.totalorder %v2224_v42, %v9076_v37 }
 0x35f   :  { %v13740_v52 = vsel %vm10932_vm1, 4294967295, %v13739_v52  ;;  %v13744_v46 = vsel %vm10946_vm3, 4294967295, %v13743_v46  ;;  %v10954_v17 = vand.u32 15, %v2491_v21  ;;  %v2083_v40 = vadd.s32 720, %v7253_v60 }
 0x360   :  { %v2084_v39 = vadd.s32 728, %v7253_v60  ;;  %v10959_v16 = vadd.s32 592, %v7253_v60  ;;  %vm13746_vm2 = vcmp.eq.s32.totalorder %v10495_v22, %v13272_v15  ;;  %v13748_v49 = vmov 0 }
 0x361   :  { %13745 = vst [vmem:[#allocation200_spill] sm:$0xff] %v10954_v17  ;;  %vm10966_vm15 = vmand %vm10650_vm5, %vm13746_vm2  ;;  %vm10971_vm1 = vcmp.eq.s32.totalorder %v2209_v8, %v9076_v37  ;;  %v13750_v42 = vmov 0  ;;  %v2225_v21 = vshra.s32 %v10758_v43, 8  ;;  %v10979_v7 = vadd.s32 600, %v7253_v60 }
 0x362   :  { %v13749_v49 = vsel %vm10966_vm15, 4294967295, %v13748_v49  ;;  %v13751_v42 = vsel %vm10971_vm1, 4294967295, %v13750_v42  ;;  %vm13752_vm3 = vcmp.eq.s32.totalorder %v10500_v32, %v13272_v15  ;;  %v13753_v22 = vmov 0 }
 0x363   :  { %vm10986_vm5 = vmand %vm10666_vm6, %vm13752_vm3  ;;  %vm10991_vm2 = vcmp.eq.s32.totalorder %v2210_v2, %v9076_v37  ;;  %v13755_v8 = vmov 0  ;;  %v2226_v43 = vshra.s32 %v10761_v53, 8  ;;  %v10998_v9 = vand.u32 15, %v2474_v24  ;;  %v13765_v24 = vld [vmem:[#allocation93_spill] sm:$0xff] }
 0x364   :  { %v13754_v22 = vsel %vm10986_vm5, 4294967295, %v13753_v22  ;;  %v13756_v8 = vsel %vm10991_vm2, 4294967295, %v13755_v8  ;;  %v11000_v50 = vand.u32 15, %v2475_v12  ;;  %v2460_v32 = vshra.s32 %v2083_v40, 4  ;;  %v13767_v12 = vld [vmem:[#allocation203_spill] sm:$0xff] }
 0x365   :  { %vm13757_vm6 = vcmp.eq.s32.totalorder %v10484_v55, %v13272_v15  ;;  %v13758_v13 = vmov 0  ;;  %vm13760_vm2 = vcmp.eq.s32.totalorder %v10492_v44, %v13272_v15  ;;  %v13762_v53 = vmov 0 }
 0x366   :  { %vm11007_vm3 = vmand %vm10682_vm7, %vm13757_vm6  ;;  %vm13766_vm1 = vcmp.eq.s32.totalorder %v13765_v24, %v13272_v15  ;;  %vm13768_vm12 = vnez %v13767_v12  ;;  %v13769_v55 = vmov 0  ;;  %vm13773_vm7 = vcmp.eq.s32.totalorder %v13772_v62, %v13272_v15  ;;  %v13783_v62 = vld [vmem:[#allocation205_spill] sm:$0xff] }
 0x367   :  { %v13759_v13 = vsel %vm11007_vm3, 4294967295, %v13758_v13  ;;  %vm11016_vm10 = vmand %vm10689_vm11, %vm13760_vm2  ;;  %vm13775_vm6 = vnez %v13774_v4  ;;  %v13776_v44 = vmov 0  ;;  %vm11039_vm11 = vcmp.eq.s32.totalorder %v2241_v26, %v9076_v37  ;;  %v13788_v26 = vld [vmem:[#allocation197_spill] sm:$0xff] }
 0x368   :  { %v13763_v53 = vsel %vm11016_vm10, 4294967295, %v13762_v53  ;;  %vm11025_vm5 = vmand %vm13768_vm12, %vm13766_vm1  ;;  %v13778_v2 = vmov 0  ;;  %v2211_v24 = vshra.s32 %v2083_v40, 8  ;;  %v2461_v12 = vshra.s32 %v2084_v39, 4 }
 0x369   :  { %13764 = vst [vmem:[#allocation201_spill] sm:$0xff] %v13763_v53  ;;  %v13770_v55 = vsel %vm11025_vm5, 4294967295, %v13769_v55  ;;  %vm11034_vm3 = vmand %vm13775_vm6, %vm13773_vm7  ;;  %v13779_v2 = vsel %vm11039_vm11, 4294967295, %v13778_v2  ;;  %v13781_v53 = vld [vmem:[#allocation96_spill] sm:$0xff]  ;;  %vm13784_vm2 = vnez %v13783_v62  ;;  %v13785_v4 = vmov 0 }
 0x36a   :  { %13771 = vst [vmem:[#allocation202_spill] sm:$0xff] %v13770_v55  ;;  %v13777_v44 = vsel %vm11034_vm3, 4294967295, %v13776_v44  ;;  %13780 = vst [vmem:[#allocation93_spill] sm:$0xff] %v13779_v2  ;;  %v2115_v55 = vadd.s32 976, %v7253_v60  ;;  %vm13782_vm12 = vcmp.eq.s32.totalorder %v13781_v53, %v13272_v15  ;;  %vm13789_vm6 = vcmp.eq.s32.totalorder %v13788_v26, %v13272_v15  ;;  %v13790_v2 = vld [vmem:[#allocation206_spill] sm:$0xff] }
 0x36b   :  { %vm11051_vm7 = vmand %vm13784_vm2, %vm13782_vm12  ;;  %vm13791_vm11 = vnez %v13790_v2  ;;  %v13792_v3 = vmov 0  ;;  %vm11065_vm1 = vcmp.eq.s32.totalorder %v2193_v30, %v9076_v37  ;;  %v13795_v40 = vmov 0  ;;  %v13804_v26 = vld [vmem:[#allocation198_spill] sm:$0xff] }
 0x36c   :  { %v13786_v4 = vsel %vm11051_vm7, 4294967295, %v13785_v4  ;;  %vm11060_vm3 = vmand %vm13791_vm11, %vm13789_vm6  ;;  %v13796_v40 = vsel %vm11065_vm1, 4294967295, %v13795_v40  ;;  %vm11070_vm5 = vcmp.eq.s32.totalorder %v2194_v19, %v9076_v37  ;;  %v13798_v53 = vmov 0 }
 0x36d   :  { %13787 = vst [vmem:[#allocation203_spill] sm:$0xff] %v13786_v4  ;;  %v13793_v3 = vsel %vm11060_vm3, 4294967295, %v13792_v3  ;;  %13797 = vst [vmem:[#allocation204_spill] sm:$0xff] %v13796_v40  ;;  %v13799_v53 = vsel %vm11070_vm5, 4294967295, %v13798_v53  ;;  %vm11079_vm11 = vcmp.eq.s32.totalorder %v2242_v10, %v9076_v37  ;;  %v13801_v2 = vmov 0 }
 0x36e   :  { %13794 = vst [vmem:[#allocation94_spill] sm:$0xff] %v13793_v3  ;;  %13800 = vst [vmem:[#allocation96_spill] sm:$0xff] %v13799_v53  ;;  %v13802_v2 = vsel %vm11079_vm11, 4294967295, %v13801_v2  ;;  %v2212_v30 = vshra.s32 %v2084_v39, 8  ;;  %v2444_v19 = vshra.s32 %v10959_v16, 4  ;;  %v2116_v62 = vadd.s32 984, %v7253_v60 }
 0x36f   :  { %13803 = vst [vmem:[#allocation205_spill] sm:$0xff] %v13802_v2  ;;  %vm13805_vm5 = vcmp.eq.s32.totalorder %v13804_v26, %v13272_v15  ;;  %v13806_v53 = vld [vmem:[#allocation207_spill] sm:$0xff]  ;;  %v13808_v45 = vmov 0  ;;  %vm11097_vm2 = vcmp.eq.s32.totalorder %v2225_v21, %v9076_v37  ;;  %v13811_v10 = vmov 0 }
 0x370   :  { %vm13807_vm12 = vnez %v13806_v53  ;;  %v13812_v10 = vsel %vm11097_vm2, 4294967295, %v13811_v10  ;;  %v11101_v2 = vand.u32 15, %v2460_v32  ;;  %v11103_v39 = vand.u32 15, %v2461_v12  ;;  %v13814_v53 = vld [vmem:[#allocation208_spill] sm:$0xff] }
 0x371   :  { %vm11092_vm1 = vmand %vm13807_vm12, %vm13805_vm5  ;;  %v2195_v17 = vshra.s32 %v10959_v16, 8  ;;  %v2445_v40 = vshra.s32 %v10979_v7, 4  ;;  %vm13813_vm6 = vcmp.eq.s32.totalorder %v10562_v5, %v13272_v15  ;;  %vm13815_vm5 = vnez %v13814_v53 }
 0x372   :  { %v13809_v45 = vsel %vm11092_vm1, 4294967295, %v13808_v45  ;;  %vm11112_vm12 = vmand %vm13815_vm5, %vm13813_vm6  ;;  %v13816_v26 = vmov 0  ;;  %vm11117_vm11 = vcmp.eq.s32.totalorder %v2226_v43, %v9076_v37  ;;  %v13819_v21 = vmov 0 }
 0x373   :  { %13810 = vst [vmem:[#allocation197_spill] sm:$0xff] %v13809_v45  ;;  %v13817_v26 = vsel %vm11112_vm12, 4294967295, %v13816_v26  ;;  %v13820_v21 = vsel %vm11117_vm11, 4294967295, %v13819_v21  ;;  %v2196_v16 = vshra.s32 %v10979_v7, 8  ;;  %v11126_v5 = vand.u32 15, %v2444_v19  ;;  %v13835_v7 = vld [vmem:[#allocation209_spill] sm:$0xff] }
 0x374   :  { %13818 = vst [vmem:[#allocation206_spill] sm:$0xff] %v13817_v26  ;;  %vm13821_vm6 = vcmp.eq.s32.totalorder %v10544_v47, %v13272_v15  ;;  %vm13822_vm5 = vnez %v13693_v25  ;;  %v13823_v43 = vmov 0  ;;  %vm13825_vm11 = vcmp.eq.s32.totalorder %v10550_v57, %v13272_v15  ;;  %v13833_v25 = vld [vmem:[#allocation199_spill] sm:$0xff]  ;;  %v13930_v45 = vld [vmem:[#allocation200_spill] sm:$0xff] }
 0x375   :  { %vm11133_vm12 = vmand %vm13822_vm5, %vm13821_vm6  ;;  %vm13826_vm2 = vnez %v13696_v63  ;;  %v13827_v32 = vmov 0  ;;  %vm13829_vm1 = vcmp.eq.s32.totalorder %v10565_v23, %v13272_v15  ;;  %vm13830_vm7 = vnez %v13699_v34 }
 0x376   :  { %v13824_v43 = vsel %vm11133_vm12, 4294967295, %v13823_v43  ;;  %vm11142_vm3 = vmand %vm13826_vm2, %vm13825_vm11  ;;  %v13831_v47 = vmov 0  ;;  %vm13834_vm6 = vcmp.eq.s32.totalorder %v13833_v25, %v13272_v15  ;;  %vm13836_vm5 = vnez %v13835_v7  ;;  %v13932_v26 = vld [vmem:[#allocation205_spill] sm:$0xff] }
 0x377   :  { %v13828_v32 = vsel %vm11142_vm3, 4294967295, %v13827_v32  ;;  %vm11151_vm10 = vmand %vm13830_vm7, %vm13829_vm1  ;;  %v13837_v57 = vmov 0  ;;  %vm11165_vm2 = vcmp.eq.s32.totalorder %v2211_v24, %v9076_v37  ;;  %v13839_v63 = vmov 0 }
 0x378   :  { %v13832_v47 = vsel %vm11151_vm10, 4294967295, %v13831_v47  ;;  %vm11160_vm12 = vmand %vm13836_vm5, %vm13834_vm6  ;;  %v13840_v63 = vsel %vm11165_vm2, 4294967295, %v13839_v63  ;;  %v11169_v23 = vand.u32 15, %v2445_v40  ;;  %v2243_v34 = vshra.s32 %v2115_v55, 8 }
 0x379   :  { %v13838_v57 = vsel %vm11160_vm12, 4294967295, %v13837_v57  ;;  %v2492_v12 = vshra.s32 %v2115_v55, 4  ;;  %vm13841_vm1 = vcmp.eq.s32.totalorder %v10612_v36, %v13272_v15  ;;  %vm13842_vm7 = vnez %v13706_v11 }
 0x37a   :  { %vm11176_vm11 = vmand %vm13842_vm7, %vm13841_vm1  ;;  %v13843_v19 = vmov 0  ;;  %vm13846_vm6 = vcmp.eq.s32.totalorder %v10638_v31, %v13272_v15  ;;  %vm13847_vm5 = vnez %v13709_v29  ;;  %v13848_v24 = vmov 0 }
 0x37b   :  { %v13844_v19 = vsel %vm11176_vm11, 4294967295, %v13843_v19  ;;  %vm11185_vm12 = vmand %vm13847_vm5, %vm13846_vm6  ;;  %vm11190_vm2 = vcmp.eq.s32.totalorder %v2212_v30, %v9076_v37  ;;  %v13851_v55 = vmov 0  ;;  %v2244_v36 = vshra.s32 %v2116_v62, 8 }
 0x37c   :  { %13845 = vst [vmem:[#allocation198_spill] sm:$0xff] %v13844_v19  ;;  %v13849_v24 = vsel %vm11185_vm12, 4294967295, %v13848_v24  ;;  %v13852_v55 = vsel %vm11190_vm2, 4294967295, %v13851_v55  ;;  %v2493_v11 = vshra.s32 %v2116_v62, 4  ;;  %v2099_v40 = vadd.s32 848, %v7253_v60 }
 0x37d   :  { %13850 = vst [vmem:[#allocation207_spill] sm:$0xff] %v13849_v24  ;;  %vm13853_vm1 = vcmp.eq.s32.totalorder %v10739_v58, %v13272_v15  ;;  %vm13854_vm7 = vnez %v13711_v0  ;;  %v13855_v29 = vmov 0  ;;  %vm11209_vm2 = vcmp.eq.s32.totalorder %v2195_v17, %v9076_v37 }
 0x37e   :  { %vm11200_vm11 = vmand %vm13854_vm7, %vm13853_vm1  ;;  %v13858_v31 = vmov 0  ;;  %v11213_v30 = vand.u32 15, %v2492_v12  ;;  %v2100_v58 = vadd.s32 856, %v7253_v60  ;;  %vm13860_vm5 = vcmp.eq.s32.totalorder %v10772_v27, %v13272_v15 }
 0x37f   :  { %v13856_v29 = vsel %vm11200_vm11, 4294967295, %v13855_v29  ;;  %v13859_v31 = vsel %vm11209_vm2, 4294967295, %v13858_v31  ;;  %vm11229_vm6 = vmand %vm10892_vm9, %vm13860_vm5  ;;  %v13861_v0 = vmov 0  ;;  %vm11234_vm2 = vcmp.eq.s32.totalorder %v2196_v16, %v9076_v37 }
 0x380   :  { %13857 = vst [vmem:[#allocation208_spill] sm:$0xff] %v13856_v29  ;;  %v13862_v0 = vsel %vm11229_vm6, 4294967295, %v13861_v0  ;;  %v13864_v17 = vmov 0  ;;  %v11240_v62 = vand.u32 15, %v2493_v11  ;;  %v2227_v53 = vshra.s32 %v2099_v40, 8  ;;  %v13899_v11 = vld [vmem:[#allocation201_spill] sm:$0xff] }
 0x381   :  { %13863 = vst [vmem:[#allocation199_spill] sm:$0xff] %v13862_v0  ;;  %v13865_v17 = vsel %vm11234_vm2, 4294967295, %v13864_v17  ;;  %v2476_v25 = vshra.s32 %v2099_v40, 4  ;;  %vm13868_vm2 = vcmp.eq.s32.totalorder %v10658_v61, %v13272_v15  ;;  %vm13869_vm8 = vnez %v13737_v14  ;;  %v13906_v40 = vld [vmem:[#allocation93_spill] sm:$0xff]  ;;  %v13965_v29 = vld [vmem:[#allocation58_spill] sm:$0xff] }
 0x382   :  { %vm11255_vm1 = vmand %vm13869_vm8, %vm13868_vm2  ;;  %v13870_v27 = vmov 0  ;;  %vm13872_vm0 = vcmp.eq.s32.totalorder %v10672_v51, %v13272_v15  ;;  %vm13873_vm4 = vnez %v13740_v52  ;;  %v13874_v6 = vmov 0 }
 0x383   :  { %v13871_v27 = vsel %vm11255_vm1, 4294967295, %v13870_v27  ;;  %vm11264_vm9 = vmand %vm13873_vm4, %vm13872_vm0  ;;  %vm13876_vm14 = vcmp.eq.s32.totalorder %v10813_v20, %v13272_v15  ;;  %vm13877_vm15 = vnez %v13742_v33  ;;  %v13878_v61 = vmov 0 }
 0x384   :  { %v13875_v6 = vsel %vm11264_vm9, 4294967295, %v13874_v6  ;;  %vm11273_vm5 = vmand %vm13877_vm15, %vm13876_vm14  ;;  %vm13880_vm8 = vcmp.eq.s32.totalorder %v10815_v35, %v13272_v15  ;;  %vm13881_vm2 = vnez %v13744_v46  ;;  %v13882_v51 = vmov 0 }
 0x385   :  { %v13879_v61 = vsel %vm11273_vm5, 4294967295, %v13878_v61  ;;  %vm11282_vm1 = vmand %vm13881_vm2, %vm13880_vm8  ;;  %vm11289_vm0 = vcmp.eq.s32.totalorder %v2243_v34, %v9076_v37  ;;  %v13884_v20 = vmov 0  ;;  %v2228_v14 = vshra.s32 %v2100_v58, 8 }
 0x386   :  { %v13883_v51 = vsel %vm11282_vm1, 4294967295, %v13882_v51  ;;  %v13885_v20 = vsel %vm11289_vm0, 4294967295, %v13884_v20  ;;  %v2477_v52 = vshra.s32 %v2100_v58, 4  ;;  %v2085_v33 = vadd.s32 736, %v7253_v60 }
 0x387   :  { %vm13886_vm14 = vcmp.eq.s32.totalorder %v10838_v59, %v13272_v15  ;;  %vm13887_vm15 = vnez %v13751_v42  ;;  %v13888_v35 = vmov 0  ;;  %vm11304_vm2 = vcmp.eq.s32.totalorder %v2244_v36, %v9076_v37 }
 0x388   :  { %vm11299_vm8 = vmand %vm13887_vm15, %vm13886_vm14  ;;  %v13890_v46 = vmov 0  ;;  %v11312_v16 = vand.u32 15, %v2476_v25  ;;  %v2086_v59 = vadd.s32 744, %v7253_v60  ;;  %vm13892_vm14 = vcmp.eq.s32.totalorder %v10840_v28, %v13272_v15  ;;  %v3510_v28 = vpop.f32.mrb[104].mxu0 }
 0x389   :  { %v13889_v35 = vsel %vm11299_vm8, 4294967295, %v13888_v35  ;;  %v13891_v46 = vsel %vm11304_vm2, 4294967295, %v13890_v46  ;;  %vm13893_vm15 = vnez %v13756_v8  ;;  %v13894_v42 = vmov 0  ;;  %v13904_v8 = vld [vmem:[#allocation211_spill] sm:$0xff] }
 0x38a   :  { %vm11320_vm8 = vmand %vm13893_vm15, %vm13892_vm14  ;;  %vm11325_vm2 = vcmp.eq.s32.totalorder %v2227_v53, %v9076_v37  ;;  %v13896_v7 = vmov 0  ;;  %v11329_v34 = vand.u32 15, %v2477_v52  ;;  %v2213_v12 = vshra.s32 %v2085_v33, 8 }
 0x38b   :  { %v13895_v42 = vsel %vm11320_vm8, 4294967295, %v13894_v42  ;;  %v13897_v7 = vsel %vm11325_vm2, 4294967295, %v13896_v7  ;;  %v2462_v36 = vshra.s32 %v2085_v33, 4  ;;  %vm13905_vm8 = vcmp.eq.s32.totalorder %v13904_v8, %v13272_v15  ;;  %v3349_v33 = vpop.f32.mrb[104].mxu1 }
 0x38c   :  { %vm13907_vm9 = vnez %v13906_v40  ;;  %v13908_v58 = vmov 0  ;;  %vm11349_vm13 = vcmp.eq.s32.totalorder %v2228_v14, %v9076_v37  ;;  %v13910_v53 = vmov 0  ;;  %v13918_v14 = vld [vmem:[#allocation204_spill] sm:$0xff] }
 0x38d   :  { %vm11344_vm2 = vmand %vm13907_vm9, %vm13905_vm8  ;;  %v13911_v53 = vsel %vm11349_vm13, 4294967295, %v13910_v53  ;;  %v2214_v25 = vshra.s32 %v2086_v59, 8  ;;  %v2463_v52 = vshra.s32 %v2086_v59, 4  ;;  %vm13913_vm15 = vnez %v13786_v4  ;;  %v13923_v59 = vld [vmem:[#allocation210_spill] sm:$0xff]  ;;  %v13925_v40 = vld [vmem:[#allocation96_spill] sm:$0xff] }
 0x38e   :  { %v13909_v58 = vsel %vm11344_vm2, 4294967295, %v13908_v58  ;;  %13912 = vst [vmem:[#allocation209_spill] sm:$0xff] %v13911_v53  ;;  %vm13914_vm5 = vnez %v13793_v3  ;;  %vm13917_vm13 = vcmp.eq.s32.totalorder %v10851_v56, %v13272_v15  ;;  %vm13919_vm4 = vnez %v13918_v14  ;;  %v3351_v3 = vpop.f32.mrb[105].mxu1  ;;  %v3512_v53 = vpop.f32.mrb[105].mxu0 }
 0x38f   :  { %vm11368_vm1 = vmand %vm13919_vm4, %vm13917_vm13  ;;  %v13920_v8 = vmov 0  ;;  %vm13924_vm2 = vcmp.eq.s32.totalorder %v13923_v59, %v13272_v15  ;;  %vm13926_vm7 = vnez %v13925_v40  ;;  %v13927_v4 = vmov 0 }
 0x390   :  { %v13921_v8 = vsel %vm11368_vm1, 4294967295, %v13920_v8  ;;  %vm11377_vm9 = vmand %vm13926_vm7, %vm13924_vm2  ;;  %vm13931_vm0 = vcmp.eq.s32.totalorder %v13930_v45, %v13272_v15  ;;  %vm13933_vm8 = vnez %v13932_v26  ;;  %v13934_v56 = vmov 0 }
 0x391   :  { %13922 = vst [vmem:[#allocation201_spill] sm:$0xff] %v13921_v8  ;;  %v13928_v4 = vsel %vm11377_vm9, 4294967295, %v13927_v4  ;;  %vm11386_vm14 = vmand %vm13933_vm8, %vm13931_vm0  ;;  %vm11393_vm4 = vcmp.eq.s32.totalorder %v2213_v12, %v9076_v37  ;;  %v13936_v14 = vmov 0  ;;  %v11397_v59 = vand.u32 15, %v2462_v36  ;;  %v13940_v8 = vld [vmem:[#allocation31_spill] sm:$0xff] }
 0x392   :  { %13929 = vst [vmem:[#allocation211_spill] sm:$0xff] %v13928_v4  ;;  %v13935_v56 = vsel %vm11386_vm14, 4294967295, %v13934_v56  ;;  %v13937_v14 = vsel %vm11393_vm4, 4294967295, %v13936_v14  ;;  %v2069_v40 = vadd.s32 608, %v7253_v60  ;;  %v13939_v4 = vld [vmem:[#allocation17_spill] sm:$0xff]  ;;  %v3929_v26 = vmul.f32 %v3510_v28, %v13940_v8 }
 0x393   :  { %13938 = vst [vmem:[#allocation93_spill] sm:$0xff] %v13937_v14  ;;  %v3927_v45 = vmul.f32 %v3349_v33, %v13939_v4  ;;  %vm13941_vm7 = vcmp.eq.s32.totalorder %v10998_v9, %v13272_v15  ;;  %vm13942_vm0 = vnez %v13812_v10  ;;  %v13943_v12 = vmov 0  ;;  %v13947_v4 = vld [vmem:[#allocation23_spill] sm:$0xff] }
 0x394   :  { %vm11407_vm2 = vmand %vm13942_vm0, %vm13941_vm7  ;;  %vm11412_vm8 = vcmp.eq.s32.totalorder %v2214_v25, %v9076_v37  ;;  %v13945_v36 = vmov 0  ;;  %v11416_v14 = vand.u32 15, %v2463_v52  ;;  %v3928_v28 = vmul.f32 %v3351_v3, %v13947_v4  ;;  %v13948_v33 = vld [vmem:[#allocation27_spill] sm:$0xff]  ;;  %v3355_v25 = vpop.f32.mrb[106].mxu1  ;;  %v3516_v52 = vpop.f32.mrb[106].mxu0 }
 0x395   :  { %v13944_v12 = vsel %vm11407_vm2, 4294967295, %v13943_v12  ;;  %v13946_v36 = vsel %vm11412_vm8, 4294967295, %v13945_v36  ;;  %v3930_v8 = vmul.f32 %v3512_v53, %v13948_v33  ;;  %vm13949_vm13 = vcmp.eq.s32.totalorder %v11000_v50, %v13272_v15  ;;  %v13964_v33 = vld [vmem:[#allocation24_spill] sm:$0xff]  ;;  %v3357_v19 = vpop.f32.mrb[107].mxu1  ;;  %v3518_v24 = vpop.f32.mrb[107].mxu0 }
 0x396   :  { %vm13950_vm4 = vnez %v13820_v21  ;;  %v13951_v9 = vmov 0  ;;  %v2070_v10 = vadd.s32 616, %v7253_v60  ;;  %v13957_v3 = vmov 0  ;;  %4119 = vmatprep.mubr.f32.mxu1 %v3928_v28 }
 0x397   :  { %vm11425_vm7 = vmand %vm13950_vm4, %vm13949_vm13  ;;  %vm13955_vm13 = vcmp.eq.s32.totalorder %v11101_v2, %v13272_v15  ;;  %vm13956_vm4 = vnez %v13840_v63  ;;  %v2197_v50 = vshra.s32 %v2069_v40, 8  ;;  %v2446_v21 = vshra.s32 %v2069_v40, 4  ;;  %4264 = vmatprep.mubr.f32.mxu0 %v3930_v8  ;;  %4120 = vmatmul.mubr.f32.vlgmr.msra.gmra.mrb[168].mxu1 %v3927_v45  ;;  %v13973_v45 = vld [vmem:[#allocation57_spill] sm:$0xff] }
 0x398   :  { %v13952_v9 = vsel %vm11425_vm7, 4294967295, %v13951_v9  ;;  %vm11445_vm7 = vmand %vm13956_vm4, %vm13955_vm13  ;;  %v2117_v53 = vadd.s32 992, %v7253_v60  ;;  %vm13960_vm4 = vcmp.eq.s32.totalorder %v11103_v39, %v13272_v15  ;;  %vm13961_vm0 = vnez %v13852_v55  ;;  %4265 = vmatmul.mubr.f32.vlgmr.msra.gmra.mrb[168].mxu0 %v3929_v26 }
 0x399   :  { %v13958_v3 = vsel %vm11445_vm7, 4294967295, %v13957_v3  ;;  %vm11465_vm10 = vmand %vm13961_vm0, %vm13960_vm4  ;;  %v13962_v2 = vmov 0  ;;  %v2198_v63 = vshra.s32 %v2070_v10, 8  ;;  %v2447_v40 = vshra.s32 %v2070_v10, 4 }
 0x39a   :  { %v13963_v2 = vsel %vm11465_vm10, 4294967295, %v13962_v2  ;;  %v2118_v4 = vadd.s32 1000, %v7253_v60  ;;  %v11471_v28 = vadd.s32 864, %v7253_v60  ;;  %v3935_v8 = vmul.f32 %v3355_v25, %v13964_v33  ;;  %v14017_v33 = vld [vmem:[#allocation62_spill] sm:$0xff] }
 0x39b   :  { %v3937_v0 = vmul.f32 %v3516_v52, %v13965_v29  ;;  %vm13966_vm0 = vcmp.eq.s32.totalorder %v11126_v5, %v13272_v15  ;;  %vm13967_vm4 = vnez %v13859_v31  ;;  %v13968_v39 = vmov 0  ;;  %v13972_v29 = vld [vmem:[#allocation56_spill] sm:$0xff] }
 0x39c   :  { %vm11480_vm13 = vmand %vm13967_vm4, %vm13966_vm0  ;;  %vm11485_vm2 = vcmp.eq.s32.totalorder %v2197_v50, %v9076_v37  ;;  %v13970_v55 = vmov 0  ;;  %v11489_v10 = vand.u32 15, %v2446_v21  ;;  %v3936_v25 = vmul.f32 %v3357_v19, %v13972_v29 }
 0x39d   :  { %v13969_v39 = vsel %vm11480_vm13, 4294967295, %v13968_v39  ;;  %v13971_v55 = vsel %vm11485_vm2, 4294967295, %v13970_v55  ;;  %v3938_v26 = vmul.f32 %v3518_v24, %v13973_v45  ;;  %v13974_v52 = vmov 1.0|1.0   ;;  %v14040_v45 = vld [vmem:[#allocation201_spill] sm:$0xff] }
 0x39e   :  { %vm13975_vm11 = vnez %v13717_v54  ;;  %vm13976_vm6 = vnez %v13714_v41  ;;  %vm13978_vm4 = vnez %v13723_v48  ;;  %vm13979_vm13 = vnez %v13720_v38  ;;  %4124 = vmatprep.mubr.f32.mxu1 %v3936_v25  ;;  %v14037_v25 = vld [vmem:[#allocation197_spill] sm:$0xff] }
 0x39f   :  { %vm13977_vm0 = vmpackc.low %vm13975_vm11, %vm13976_vm6  ;;  %vm13981_vm12 = vcmp.eq.s32.totalorder %v11169_v23, %v13272_v15  ;;  %vm13982_vm9 = vnez %v13865_v17  ;;  %v13983_v5 = vmov 0  ;;  %vm11515_vm3 = vcmp.eq.s32.totalorder %v2198_v63, %v9076_v37  ;;  %4269 = vmatprep.mubr.f32.mxu0 %v3938_v26  ;;  %4125 = vmatmul.mubr.f32.gmra.mrb[170].mxu1 %v3935_v8  ;;  %v14042_v26 = vld [vmem:[#allocation211_spill] sm:$0xff] }
 0x3a0   :  { %6626 = vmatpush3.bf16.msk.msra.mxu1 %vm13977_vm0, %v13974_v52  ;;  %vm13980_vm1 = vmpackc.low %vm13978_vm4, %vm13979_vm13  ;;  %v13985_v41 = vmov 0  ;;  %v11519_v54 = vand.u32 15, %v2447_v40  ;;  %vm13987_vm11 = vnez %v13734_v1  ;;  %vm13988_vm6 = vnez %v13730_v18  ;;  %4270 = vmatmul.mubr.f32.gmra.mrb[170].mxu0 %v3937_v0  ;;  %v14016_v40 = vld [vmem:[#allocation61_spill] sm:$0xff]  ;;  %v14022_v0 = vld [vmem:[#allocation202_spill] sm:$0xff] }
 0x3a1   :  { %6658 = vmatpush3.bf16.msk.msra.mxu0 %vm13980_vm1, %v13974_v52  ;;  %vm11510_vm8 = vmand %vm13982_vm9, %vm13981_vm12  ;;  %v13986_v41 = vsel %vm11515_vm3, 4294967295, %v13985_v41  ;;  %vm13990_vm12 = vnez %v13754_v22  ;;  %vm13991_vm9 = vnez %v13749_v49  ;;  %v13999_v38 = vmov 0  ;;  %v3361_v49 = vpop.f32.mrb[108].mxu1  ;;  %v3522_v22 = vpop.f32.mrb[108].mxu0 }
 0x3a2   :  { %v13984_v5 = vsel %vm11510_vm8, 4294967295, %v13983_v5  ;;  %vm13989_vm1 = vmpackc.low %vm13987_vm11, %vm13988_vm6  ;;  %vm13997_vm11 = vcmp.eq.s32.totalorder %v11213_v30, %v13272_v15  ;;  %vm13998_vm6 = vnez %v13885_v20  ;;  %v2245_v48 = vshra.s32 %v2117_v53, 8  ;;  %v14008_v30 = vld [vmem:[#allocation25_spill] sm:$0xff]  ;;  %v14009_v20 = vld [vmem:[#allocation64_spill] sm:$0xff]  ;;  %v3363_v21 = vpop.f32.mrb[109].mxu1 }
 0x3a3   :  { %6628 = vmatprep.subr.msk.bf16.mxu1 %vm13989_vm1, %v13974_v52  ;;  %vm13992_vm13 = vmpackc.low %vm13990_vm12, %vm13991_vm9  ;;  %v2246_v18 = vshra.s32 %v2118_v4, 8  ;;  %v2494_v1 = vshra.s32 %v2117_v53, 4  ;;  %vm14004_vm8 = vcmp.eq.s32.totalorder %v11240_v62, %v13272_v15  ;;  %vm14005_vm12 = vnez %v13891_v46  ;;  %v3524_v62 = vpop.f32.mrb[109].mxu0 }
 0x3a4   :  { %6660 = vmatprep.subr.msk.bf16.mxu0 %vm13992_vm13, %v13974_v52  ;;  %vm11546_vm1 = vmand %vm13998_vm6, %vm13997_vm11  ;;  %v14006_v23 = vmov 0  ;;  %v2495_v19 = vshra.s32 %v2118_v4, 4  ;;  %v2102_v24 = vadd.s32 872, %v7253_v60  ;;  %v2229_v31 = vshra.s32 %v11471_v28, 8 }
 0x3a5   :  { %v14000_v38 = vsel %vm11546_vm1, 4294967295, %v13999_v38  ;;  %vm11565_vm3 = vmand %vm14005_vm12, %vm14004_vm8  ;;  %v3943_v17 = vmul.f32 %v3361_v49, %v14008_v30  ;;  %v3945_v50 = vmul.f32 %v3522_v22, %v14009_v20  ;;  %vm14010_vm8 = vcmp.eq.s32.totalorder %v11312_v16, %v13272_v15  ;;  %v14026_v16 = vld [vmem:[#allocation209_spill] sm:$0xff]  ;;  %v3528_v30 = vpop.f32.mrb[110].mxu0 }
 0x3a6   :  { %v14007_v23 = vsel %vm11565_vm3, 4294967295, %v14006_v23  ;;  %vm14011_vm12 = vnez %v13897_v7  ;;  %v14012_v46 = vmov 0  ;;  %vm11585_vm10 = vcmp.eq.s32.totalorder %v2245_v48, %v9076_v37  ;;  %v14047_v48 = vld [vmem:[#allocation93_spill] sm:$0xff] }
 0x3a7   :  { %vm11580_vm6 = vmand %vm14011_vm12, %vm14010_vm8  ;;  %v14014_v53 = vmov 0  ;;  %v2622_v63 = vand.u32 15, %v2494_v1  ;;  %v3944_v4 = vmul.f32 %v3363_v21, %v14016_v40  ;;  %v3946_v8 = vmul.f32 %v3524_v62, %v14017_v33  ;;  %v14058_v21 = vld [vmem:[#allocation14_spill] sm:$0xff]  ;;  %v14059_v40 = vld [vmem:[#allocation68_spill] sm:$0xff] }
 0x3a8   :  { %v14013_v46 = vsel %vm11580_vm6, 4294967295, %v14012_v46  ;;  %v14015_v53 = vsel %vm11585_vm10, 4294967295, %v14014_v53  ;;  %vm14018_vm2 = vnez %v13899_v11  ;;  %vm14019_vm11 = vnez %v13759_v13 }
 0x3a9   :  { %vm14020_vm14 = vmpackc.low %vm14018_vm2, %vm14019_vm11  ;;  %vm14021_vm8 = vnez %v13777_v44  ;;  %vm14023_vm12 = vnez %v14022_v0  ;;  %vm14025_vm13 = vcmp.eq.s32.totalorder %v11329_v34, %v13272_v15  ;;  %vm14027_vm0 = vnez %v14026_v16  ;;  %v14035_v34 = vld [vmem:[#allocation206_spill] sm:$0xff]  ;;  %4129 = vmatprep.mubr.f32.mxu1 %v3944_v4  ;;  %4274 = vmatprep.mubr.f32.mxu0 %v3946_v8  ;;  %v3530_v8 = vpop.f32.mrb[111].mxu0  ;;  %v14067_v44 = vld [vmem:[#allocation67_spill] sm:$0xff] }
 0x3aa   :  { %6630 = vmatpush3.bf16.msk.msra.mxu1 %vm14020_vm14, %v13974_v52  ;;  %vm14024_vm9 = vmpackc.low %vm14021_vm8, %vm14023_vm12  ;;  %v14028_v7 = vmov 0  ;;  %vm11613_vm10 = vcmp.eq.s32.totalorder %v2246_v18, %v9076_v37  ;;  %v14030_v13 = vmov 0  ;;  %v2623_v11 = vand.u32 15, %v2495_v19  ;;  %v3367_v19 = vpop.f32.mrb[110].mxu1  ;;  %4275 = vmatmul.mubr.f32.gmra.mrb[172].mxu0 %v3945_v50  ;;  %v14066_v0 = vld [vmem:[#allocation66_spill] sm:$0xff] }
 0x3ab   :  { %6662 = vmatpush3.bf16.msk.msra.mxu0 %vm14024_vm9, %v13974_v52  ;;  %vm11608_vm4 = vmand %vm14027_vm0, %vm14025_vm13  ;;  %v14031_v13 = vsel %vm11613_vm10, 4294967295, %v14030_v13  ;;  %vm14036_vm2 = vnez %v14035_v34  ;;  %vm14038_vm0 = vnez %v14037_v25  ;;  %v14049_v18 = vmov 0  ;;  %v3369_v33 = vpop.f32.mrb[111].mxu1  ;;  %4130 = vmatmul.mubr.f32.gmra.mrb[172].mxu1 %v3943_v17  ;;  %v14080_v50 = vld [vmem:[#allocation198_spill] sm:$0xff] }
 0x3ac   :  { %v14029_v7 = vsel %vm11608_vm4, 4294967295, %v14028_v7  ;;  %vm14034_vm14 = vmpackc.low %vm13914_vm5, %vm13913_vm15  ;;  %vm14046_vm5 = vcmp.eq.s32.totalorder %v11397_v59, %v13272_v15  ;;  %vm14048_vm15 = vnez %v14047_v48  ;;  %v2230_v1 = vshra.s32 %v2102_v24, 8  ;;  %v3373_v25 = vpop.f32.mrb[112].mxu1  ;;  %v3534_v48 = vpop.f32.mrb[112].mxu0 }
 0x3ad   :  { %6632 = vmatprep.subr.msk.bf16.mxu1 %vm14034_vm14, %v13974_v52  ;;  %vm14039_vm9 = vmpackc.low %vm14036_vm2, %vm14038_vm0  ;;  %vm11648_vm0 = vcmp.eq.s32.totalorder %v2229_v31, %v9076_v37  ;;  %v2478_v22 = vshra.s32 %v11471_v28, 4  ;;  %vm14054_vm4 = vcmp.eq.s32.totalorder %v11416_v14, %v13272_v15  ;;  %vm14055_vm8 = vnez %v13946_v36  ;;  %v14128_v36 = vld [vmem:[#allocation20_spill] sm:$0xff] }
 0x3ae   :  { %6664 = vmatprep.subr.msk.bf16.mxu0 %vm14039_vm9, %v13974_v52  ;;  %vm11642_vm14 = vmand %vm14048_vm15, %vm14046_vm5  ;;  %v14056_v59 = vmov 0  ;;  %v2479_v28 = vshra.s32 %v2102_v24, 4  ;;  %v2087_v31 = vadd.s32 752, %v7253_v60  ;;  %v2088_v20 = vadd.s32 760, %v7253_v60 }
 0x3af   :  { %v14050_v18 = vsel %vm11642_vm14, 4294967295, %v14049_v18  ;;  %vm11666_vm2 = vmand %vm14055_vm8, %vm14054_vm4  ;;  %v3951_v62 = vmul.f32 %v3367_v19, %v14058_v21  ;;  %v3953_v4 = vmul.f32 %v3528_v30, %v14059_v40  ;;  %vm14060_vm4 = vcmp.eq.s32.totalorder %v11489_v10, %v13272_v15  ;;  %v14078_v10 = vld [vmem:[#allocation207_spill] sm:$0xff] }
 0x3b0   :  { %v14057_v59 = vsel %vm11666_vm2, 4294967295, %v14056_v59  ;;  %vm14061_vm8 = vnez %v13971_v55  ;;  %v14062_v14 = vmov 0  ;;  %vm11685_vm5 = vcmp.eq.s32.totalorder %v2230_v1, %v9076_v37  ;;  %v14101_v19 = vld [vmem:[#allocation15_spill] sm:$0xff] }
 0x3b1   :  { %vm11680_vm15 = vmand %vm14061_vm8, %vm14060_vm4  ;;  %v2606_v24 = vand.u32 15, %v2478_v22  ;;  %v3952_v16 = vmul.f32 %v3369_v33, %v14066_v0  ;;  %v3954_v17 = vmul.f32 %v3530_v8, %v14067_v44  ;;  %vm14068_vm12 = vnez %v13828_v32  ;;  %v14107_v33 = vld [vmem:[#allocation70_spill] sm:$0xff]  ;;  %v14108_v0 = vld [vmem:[#allocation71_spill] sm:$0xff] }
 0x3b2   :  { %v14063_v14 = vsel %vm11680_vm15, 4294967295, %v14062_v14  ;;  %vm14069_vm1 = vnez %v13824_v43  ;;  %vm14071_vm4 = vnez %v13838_v57  ;;  %vm14072_vm8 = vnez %v13832_v47  ;;  %v14083_v47 = vld [vmem:[#allocation199_spill] sm:$0xff]  ;;  %v14085_v57 = vld [vmem:[#allocation208_spill] sm:$0xff]  ;;  %v14129_v44 = vld [vmem:[#allocation78_spill] sm:$0xff] }
 0x3b3   :  { %vm14070_vm3 = vmpackc.low %vm14068_vm12, %vm14069_vm1  ;;  %vm14074_vm9 = vcmp.eq.s32.totalorder %v11519_v54, %v13272_v15  ;;  %vm14075_vm10 = vnez %v13986_v41  ;;  %v14076_v55 = vmov 0  ;;  %v2607_v32 = vand.u32 15, %v2479_v28  ;;  %4134 = vmatprep.mubr.f32.mxu1 %v3952_v16  ;;  %4279 = vmatprep.mubr.f32.mxu0 %v3954_v17 }
 0x3b4   :  { %6634 = vmatpush3.bf16.msk.msra.mxu1 %vm14070_vm3, %v13974_v52  ;;  %vm14073_vm7 = vmpackc.low %vm14071_vm4, %vm14072_vm8  ;;  %v2215_v43 = vshra.s32 %v2087_v31, 8  ;;  %vm14079_vm3 = vnez %v14078_v10  ;;  %vm14081_vm1 = vnez %v14080_v50  ;;  %vm14086_vm4 = vnez %v14085_v57  ;;  %4280 = vmatmul.mubr.f32.gmra.mrb[174].mxu0 %v3953_v4  ;;  %v14193_v10 = vld [vmem:[#allocation53_spill] sm:$0xff] }
 0x3b5   :  { %6666 = vmatpush3.bf16.msk.msra.mxu0 %vm14073_vm7, %v13974_v52  ;;  %vm11708_vm13 = vmand %vm14075_vm10, %vm14074_vm9  ;;  %vm14084_vm7 = vnez %v14083_v47  ;;  %v2216_v54 = vshra.s32 %v2088_v20, 8  ;;  %v2464_v29 = vshra.s32 %v2087_v31, 4  ;;  %v2465_v34 = vshra.s32 %v2088_v20, 4  ;;  %v3536_v31 = vpop.f32.mrb[113].mxu0  ;;  %4135 = vmatmul.mubr.f32.gmra.mrb[174].mxu1 %v3951_v62  ;;  %v14132_v47 = vld [vmem:[#allocation76_spill] sm:$0xff] }
 0x3b6   :  { %v14077_v55 = vsel %vm11708_vm13, 4294967295, %v14076_v55  ;;  %vm14082_vm12 = vmpackc.low %vm14079_vm3, %vm14081_vm1  ;;  %vm14091_vm3 = vcmp.eq.s32.totalorder %v2622_v63, %v13272_v15  ;;  %vm14092_vm1 = vnez %v14015_v53  ;;  %vm11755_vm11 = vcmp.eq.s32.totalorder %v2215_v43, %v9076_v37  ;;  %v14178_v53 = vld [vmem:[#allocation5_spill] sm:$0xff] }
 0x3b7   :  { %6636 = vmatprep.subr.msk.bf16.mxu1 %vm14082_vm12, %v13974_v52  ;;  %vm14087_vm8 = vmpackc.low %vm14084_vm7, %vm14086_vm4  ;;  %vm2734_vm7 = vcmp.eq.s32.totalorder %v2606_v24, %v13272_v15  ;;  %v2071_v1 = vadd.s32 624, %v7253_v60  ;;  %v2072_v22 = vadd.s32 632, %v7253_v60  ;;  %v3959_v30 = vmul.f32 %v3373_v25, %v14101_v19 }
 0x3b8   :  { %6668 = vmatprep.subr.msk.bf16.mxu0 %vm14087_vm8, %v13974_v52  ;;  %vm11736_vm12 = vmand %vm14092_vm1, %vm14091_vm3  ;;  %vm14095_vm8 = vcmp.eq.s32.totalorder %v2623_v11, %v13272_v15  ;;  %vm14096_vm3 = vnez %v14031_v13  ;;  %v14102_v11 = vld [vmem:[#allocation73_spill] sm:$0xff]  ;;  %v3375_v13 = vpop.f32.mrb[113].mxu1  ;;  %v14103_v20 = vmov 0  ;;  %v2592_v40 = vand.u32 15, %v2464_v29 }
 0x3b9   :  { %vm11749_vm1 = vmand %vm14096_vm3, %vm14095_vm8  ;;  %v3961_v28 = vmul.f32 %v3534_v48, %v14102_v11  ;;  %vm11772_vm3 = vcmp.eq.s32.totalorder %v2216_v54, %v9076_v37  ;;  %v3960_v8 = vmul.f32 %v3375_v13, %v14107_v33  ;;  %v3962_v16 = vmul.f32 %v3536_v31, %v14108_v0  ;;  %v14133_v54 = vld [vmem:[#allocation77_spill] sm:$0xff]  ;;  %v14162_v33 = vld [vmem:[#allocation82_spill] sm:$0xff] }
 0x3ba   :  { %vm11767_vm8 = vmand %vm11648_vm0, %vm2734_vm7  ;;  %vm14109_vm4 = vnez %v13875_v6  ;;  %vm14110_vm15 = vnez %v13871_v27  ;;  %vm14112_vm0 = vnez %v13883_v51  ;;  %vm14113_vm7 = vnez %v13879_v61  ;;  %v14163_v0 = vld [vmem:[#allocation83_spill] sm:$0xff] }
 0x3bb   :  { %v14104_v20 = vsel %vm11767_vm8, 4294967295, %v14103_v20  ;;  %vm14111_vm14 = vmpackc.low %vm14109_vm4, %vm14110_vm15  ;;  %vm14115_vm6 = vcmp.eq.s32.totalorder %v2607_v32, %v13272_v15  ;;  %v14116_v49 = vmov 0  ;;  %v2593_v6 = vand.u32 15, %v2465_v34  ;;  %4139 = vmatprep.mubr.f32.mxu1 %v3960_v8  ;;  %4284 = vmatprep.mubr.f32.mxu0 %v3962_v16 }
 0x3bc   :  { %6638 = vmatpush3.bf16.msk.msra.mxu1 %vm14111_vm14, %v13974_v52  ;;  %vm14114_vm2 = vmpackc.low %vm14112_vm0, %vm14113_vm7  ;;  %v2199_v62 = vshra.s32 %v2071_v1, 8  ;;  %vm14118_vm14 = vnez %v13895_v42  ;;  %vm14119_vm15 = vnez %v13889_v35  ;;  %vm14122_vm0 = vnez %v13909_v58  ;;  %v3379_v35 = vpop.f32.mrb[114].mxu1  ;;  %v3540_v42 = vpop.f32.mrb[114].mxu0  ;;  %4285 = vmatmul.mubr.f32.gmra.mrb[176].mxu0 %v3961_v28 }
 0x3bd   :  { %6670 = vmatpush3.bf16.msk.msra.mxu0 %vm14114_vm2, %v13974_v52  ;;  %vm11794_vm13 = vmand %vm11685_vm5, %vm14115_vm6  ;;  %vm14121_vm2 = vnez %v13935_v56  ;;  %v2200_v27 = vshra.s32 %v2072_v22, 8  ;;  %v2448_v61 = vshra.s32 %v2071_v1, 4  ;;  %v2449_v51 = vshra.s32 %v2072_v22, 4  ;;  %v3381_v32 = vpop.f32.mrb[115].mxu1  ;;  %v3542_v43 = vpop.f32.mrb[115].mxu0  ;;  %4140 = vmatmul.mubr.f32.gmra.mrb[176].mxu1 %v3959_v30  ;;  %v14156_v22 = vld [vmem:[#allocation21_spill] sm:$0xff] }
 0x3be   :  { %v14117_v49 = vsel %vm11794_vm13, 4294967295, %v14116_v49  ;;  %vm14120_vm4 = vmpackc.low %vm14118_vm14, %vm14119_vm15  ;;  %v2119_v56 = vadd.s32 1008, %v7253_v60  ;;  %v2120_v4 = vadd.s32 1016, %v7253_v60  ;;  %v3967_v24 = vmul.f32 %v3379_v35, %v14128_v36  ;;  %v3546_v48 = vpop.f32.mrb[116].mxu0  ;;  %v14157_v30 = vld [vmem:[#allocation84_spill] sm:$0xff]  ;;  %v14181_v35 = vld [vmem:[#allocation89_spill] sm:$0xff] }
 0x3bf   :  { %6640 = vmatprep.subr.msk.bf16.mxu1 %vm14120_vm4, %v13974_v52  ;;  %vm14123_vm7 = vmpackc.low %vm14121_vm2, %vm14122_vm0  ;;  %vm11821_vm4 = vcmp.eq.s32.totalorder %v2199_v62, %v9076_v37  ;;  %v3969_v17 = vmul.f32 %v3540_v42, %v14129_v44  ;;  %vm11834_vm0 = vcmp.eq.s32.totalorder %v2200_v27, %v9076_v37  ;;  %v2576_v50 = vand.u32 15, %v2448_v61  ;;  %v3548_v13 = vpop.f32.mrb[117].mxu0  ;;  %v14179_v27 = vld [vmem:[#allocation9_spill] sm:$0xff]  ;;  %v14180_v61 = vld [vmem:[#allocation22_spill] sm:$0xff] }
 0x3c0   :  { %6672 = vmatprep.subr.msk.bf16.mxu0 %vm14123_vm7, %v13974_v52  ;;  %v3968_v57 = vmul.f32 %v3381_v32, %v14132_v47  ;;  %v3970_v29 = vmul.f32 %v3542_v43, %v14133_v54  ;;  %vm14134_vm7 = vnez %v14042_v26  ;;  %vm14135_vm10 = vnez %v14040_v45  ;;  %v3385_v45 = vpop.f32.mrb[116].mxu1  ;;  %v14192_v43 = vld [vmem:[#allocation8_spill] sm:$0xff]  ;;  %v14202_v54 = vld [vmem:[#allocation98_spill] sm:$0xff] }
 0x3c1   :  { %vm14136_vm14 = vmpackc.low %vm14134_vm7, %vm14135_vm10  ;;  %vm14137_vm2 = vnez %v13952_v9  ;;  %vm14138_vm15 = vnez %v13944_v12  ;;  %vm14140_vm8 = vcmp.eq.s32.totalorder %v2592_v40, %v13272_v15  ;;  %v2577_v26 = vand.u32 15, %v2449_v51  ;;  %v3387_v28 = vpop.f32.mrb[117].mxu1  ;;  %v14196_v47 = vld [vmem:[#allocation100_spill] sm:$0xff] }
 0x3c2   :  { %6642 = vmatpush3.bf16.msk.msra.mxu1 %vm14136_vm14, %v13974_v52  ;;  %vm14139_vm9 = vmpackc.low %vm14137_vm2, %vm14138_vm15  ;;  %v2247_v25 = vshra.s32 %v2119_v56, 8  ;;  %vm14143_vm10 = vnez %v13963_v2  ;;  %vm14144_vm14 = vnez %v13958_v3  ;;  %vm14147_vm15 = vnez %v14000_v38  ;;  %4144 = vmatprep.mubr.f32.mxu1 %v3968_v57  ;;  %v14209_v38 = vld [vmem:[#allocation105_spill] sm:$0xff] }
 0x3c3   :  { %6674 = vmatpush3.bf16.msk.msra.mxu0 %vm14139_vm9, %v13974_v52  ;;  %vm11856_vm13 = vmand %vm11755_vm11, %vm14140_vm8  ;;  %vm14146_vm9 = vnez %v14007_v23  ;;  %vm14149_vm11 = vcmp.eq.s32.totalorder %v2593_v6, %v13272_v15  ;;  %vm2704_vm6 = vcmp.eq.s32.totalorder %v2576_v50, %v13272_v15  ;;  %v2248_v9 = vshra.s32 %v2120_v4, 8  ;;  %4289 = vmatprep.mubr.f32.mxu0 %v3970_v29 }
 0x3c4   :  { %vm14145_vm7 = vmpackc.low %vm14143_vm10, %vm14144_vm14  ;;  %v2496_v3 = vshra.s32 %v2119_v56, 4  ;;  %v2497_v2 = vshra.s32 %v2120_v4, 4  ;;  %vm2705_vm10 = vcmp.eq.s32.totalorder %v2577_v26, %v13272_v15  ;;  %v2103_v63 = vadd.s32 880, %v7253_v60  ;;  %4145 = vmatmul.mubr.f32.gmra.mrb[178].mxu1 %v3967_v24  ;;  %4290 = vmatmul.mubr.f32.gmra.mrb[178].mxu0 %v3969_v17  ;;  %v14184_v24 = vld [vmem:[#allocation86_spill] sm:$0xff]  ;;  %v14185_v17 = vld [vmem:[#allocation87_spill] sm:$0xff] }
 0x3c5   :  { %6644 = vmatprep.subr.msk.bf16.mxu1 %vm14145_vm7, %v13974_v52  ;;  %vm14148_vm2 = vmpackc.low %vm14146_vm9, %vm14147_vm15  ;;  %v2104_v1 = vadd.s32 888, %v7253_v60  ;;  %v3975_v19 = vmul.f32 %v3385_v45, %v14156_v22  ;;  %v3977_v11 = vmul.f32 %v3546_v48, %v14157_v30  ;;  %v3976_v8 = vmul.f32 %v3387_v28, %v14162_v33  ;;  %v14203_v26 = vld [vmem:[#allocation11_spill] sm:$0xff]  ;;  %v14207_v22 = vld [vmem:[#allocation106_spill] sm:$0xff] }
 0x3c6   :  { %6676 = vmatprep.subr.msk.bf16.mxu0 %vm14148_vm2, %v13974_v52  ;;  %vm11876_vm8 = vmand %vm11772_vm3, %vm14149_vm11  ;;  %vm11889_vm3 = vcmp.eq.s32.totalorder %v2247_v25, %v9076_v37  ;;  %v2624_v40 = vand.u32 15, %v2496_v3  ;;  %v3978_v16 = vmul.f32 %v3548_v13, %v14163_v0  ;;  %vm14164_vm7 = vnez %v13984_v5  ;;  %v14204_v25 = vld [vmem:[#allocation99_spill] sm:$0xff]  ;;  %v14208_v30 = vld [vmem:[#allocation104_spill] sm:$0xff] }
 0x3c7   :  { %vm11884_vm14 = vmand %vm11821_vm4, %vm2704_vm6  ;;  %vm11904_vm4 = vcmp.eq.s32.totalorder %v2248_v9, %v9076_v37  ;;  %vm14165_vm9 = vnez %v13969_v39  ;;  %vm14168_vm2 = vnez %v14013_v46  ;;  %v2625_v6 = vand.u32 15, %v2497_v2  ;;  %4149 = vmatprep.mubr.f32.mxu1 %v3976_v8  ;;  %v14214_v4 = vld [vmem:[#allocation43_spill] sm:$0xff] }
 0x3c8   :  { %vm11899_vm6 = vmand %vm11834_vm0, %vm2705_vm10  ;;  %vm14167_vm0 = vnez %v14029_v7  ;;  %v2231_v62 = vshra.s32 %v2103_v63, 8  ;;  %vm14170_vm5 = vnez %v14057_v59  ;;  %v2232_v39 = vshra.s32 %v2104_v1, 8  ;;  %v3391_v7 = vpop.f32.mrb[118].mxu1  ;;  %4294 = vmatprep.mubr.f32.mxu0 %v3978_v16  ;;  %4150 = vmatmul.mubr.f32.gmra.mrb[180].mxu1 %v3975_v19 }
 0x3c9   :  { %vm14166_vm15 = vmpackc.low %vm14164_vm7, %vm14165_vm9  ;;  %vm14171_vm7 = vnez %v14050_v18  ;;  %v2480_v5 = vshra.s32 %v2103_v63, 4  ;;  %v2481_v46 = vshra.s32 %v2104_v1, 4  ;;  %v3552_v18 = vpop.f32.mrb[118].mxu0  ;;  %v3983_v51 = vmul.f32 %v3391_v7, %v14180_v61  ;;  %v3393_v58 = vpop.f32.mrb[119].mxu1  ;;  %4295 = vmatmul.mubr.f32.gmra.mrb[180].mxu0 %v3977_v11 }
 0x3ca   :  { %6646 = vmatpush3.bf16.msk.msra.mxu1 %vm14166_vm15, %v13974_v52  ;;  %vm14169_vm11 = vmpackc.low %vm14167_vm0, %vm14168_vm2  ;;  %vm2752_vm2 = vcmp.eq.s32.totalorder %v2624_v40, %v13272_v15  ;;  %v3985_v42 = vmul.f32 %v3552_v18, %v14181_v35  ;;  %v3554_v56 = vpop.f32.mrb[119].mxu0  ;;  %v3984_v44 = vmul.f32 %v3393_v58, %v14184_v24  ;;  %vm1700_vm10 = vcmp.eq.s32.totalorder %v14192_v43, %v14178_v53  ;;  %v3397_v34 = vpop.f32.mrb[120].mxu1  ;;  %v14213_v18 = vld [vmem:[#allocation109_spill] sm:$0xff]  ;;  %v14215_v24 = vld [vmem:[#allocation114_spill] sm:$0xff] }
 0x3cb   :  { %6678 = vmatpush3.bf16.msk.msra.mxu0 %vm14169_vm11, %v13974_v52  ;;  %vm14172_vm9 = vmpackc.low %vm14170_vm5, %vm14171_vm7  ;;  %vm2753_vm5 = vcmp.eq.s32.totalorder %v2625_v6, %v13272_v15  ;;  %vm11962_vm7 = vcmp.eq.s32.totalorder %v2232_v39, %v9076_v37  ;;  %v2608_v36 = vand.u32 15, %v2480_v5  ;;  %v3986_v32 = vmul.f32 %v3554_v56, %v14185_v17  ;;  %v3558_v9 = vpop.f32.mrb[120].mxu0  ;;  %v3399_v45 = vpop.f32.mrb[121].mxu1  ;;  %v14210_v6 = vld [vmem:[#allocation40_spill] sm:$0xff]  ;;  %v14211_v39 = vld [vmem:[#allocation110_spill] sm:$0xff] }
 0x3cc   :  { %6648 = vmatprep.subr.msk.bf16.mxu1 %vm14172_vm9, %v13974_v52  ;;  %vm14173_vm15 = vmpackc.low %vm11749_vm1, %vm11736_vm12  ;;  %vm11951_vm1 = vcmp.eq.s32.totalorder %v2231_v62, %v9076_v37  ;;  %vm14186_vm9 = vnez %v14077_v55  ;;  %v2609_v37 = vand.u32 15, %v2481_v46  ;;  %v14194_v55 = vld [vmem:[#allocation34_spill] sm:$0xff]  ;;  %v1082_v12 = vadd.f32 %v14204_v25, %v14203_v26  ;;  %4154 = vmatprep.mubr.f32.mxu1 %v3984_v44  ;;  %v3560_v48 = vpop.f32.mrb[121].mxu0  ;;  %v3403_v13 = vpop.f32.mrb[122].mxu1  ;;  %v14212_v46 = vld [vmem:[#allocation108_spill] sm:$0xff] }
 0x3cd   :  { %6680 = vmatprep.subr.msk.bf16.mxu0 %vm14173_vm15, %v13974_v52  ;;  %vm11946_vm12 = vmand %vm11889_vm3, %vm2752_vm2  ;;  %vm14187_vm15 = vnez %v14063_v14  ;;  %v762_v50 = vadd.f32 %v14194_v55, %v14193_v10  ;;  %v14195_v14 = vld [vmem:[#allocation16_spill] sm:$0xff]  ;;  %4299 = vmatprep.mubr.f32.mxu0 %v3986_v32  ;;  %v1088_v28 = vadd.f32 %v14209_v38, %v14203_v26  ;;  %v3564_v31 = vpop.f32.mrb[122].mxu0  ;;  %v3405_v33 = vpop.f32.mrb[123].mxu1  ;;  %v774_v62 = vadd.f32 %v14210_v6, %v14193_v10 }
 0x3ce   :  { %vm2881_vm3 = vmand %vm11904_vm4, %vm2753_vm5  ;;  %vm14189_vm4 = vnez %v14117_v49  ;;  %vm14190_vm5 = vnez %v14104_v20  ;;  %v923_v57 = vadd.f32 %v14196_v47, %v14195_v14  ;;  %v14201_v49 = vld [vmem:[#allocation10_spill] sm:$0xff]  ;;  %4155 = vmatmul.mubr.f32.gmra.mrb[182].mxu1 %v3983_v51  ;;  %4300 = vmatmul.mubr.f32.gmra.mrb[182].mxu0 %v3985_v42  ;;  %v3994_v63 = vmul.f32 %v3560_v48, %v1082_v12  ;;  %v3566_v8 = vpop.f32.mrb[123].mxu0  ;;  %v3409_v41 = vpop.f32.mrb[124].mxu1  ;;  %v14216_v17 = vld [vmem:[#allocation112_spill] sm:$0xff] }
 0x3cf   :  { %vm14188_vm2 = vmpackc.low %vm14186_vm9, %vm14187_vm15  ;;  %v921_v29 = vadd.f32 %v14202_v54, %v14201_v49  ;;  %v3991_v3 = vmul.f32 %v3397_v34, %v762_v50  ;;  %v929_v19 = vadd.f32 %v14207_v22, %v14195_v14  ;;  %v927_v11 = vadd.f32 %v14208_v30, %v14201_v49  ;;  %v3411_v35 = vpop.f32.mrb[125].mxu1  ;;  %v14218_v34 = vld [vmem:[#allocation46_spill] sm:$0xff]  ;;  %v14254_v20 = vld [vmem:[#allocation140_spill] sm:$0xff] }
 0x3d0   :  { %6650 = vmatpush3.bf16.msk.msra.mxu1 %vm14188_vm2, %v13974_v52  ;;  %vm14191_vm0 = vmpackc.low %vm14189_vm4, %vm14190_vm5  ;;  %v3993_v2 = vmul.f32 %v3558_v9, %v923_v57  ;;  %4304 = vmatprep.mubr.f32.mxu0 %v3994_v63  ;;  %v4002_v16 = vmul.f32 %v3566_v8, %v1088_v28  ;;  %v935_v5 = vadd.f32 %v14211_v39, %v14195_v14  ;;  %v3415_v55 = vpop.f32.mrb[126].mxu1 }
 0x3d1   :  { %6682 = vmatpush3.bf16.msk.msra.mxu0 %vm14191_vm0, %v13974_v52  ;;  %vm6683_vm11 = vmpackc.low %vm2881_vm3, %vm11946_vm12  ;;  %vm2736_vm0 = vcmp.eq.s32.totalorder %v2608_v36, %v13272_v15  ;;  %vm14198_vm12 = vcmp.eq.s32.totalorder %v14179_v27, %v14178_v53  ;;  %v3992_v23 = vmul.f32 %v3399_v45, %v921_v29  ;;  %v4001_v40 = vmul.f32 %v3564_v31, %v929_v19  ;;  %v3570_v27 = vpop.f32.mrb[124].mxu0  ;;  %v3417_v54 = vpop.f32.mrb[127].mxu1  ;;  %v14220_v45 = vld [vmem:[#allocation116_spill] sm:$0xff] }
 0x3d2   :  { %vm14197_vm9 = vmpackc.low %vm11876_vm8, %vm11856_vm13  ;;  %6684 = vmatprep.subr.msk.bf16.mxu0 %vm6683_vm11, %v13974_v52  ;;  %vm2737_vm13 = vcmp.eq.s32.totalorder %v2609_v37, %v13272_v15  ;;  %v14206_v15 = vld [vmem:[#allocation37_spill] sm:$0xff]  ;;  %4305 = vmatmul.mubr.f32.gmra.mrb[184].mxu0 %v3993_v2  ;;  %v4000_v0 = vmul.f32 %v3405_v33, %v927_v11  ;;  %v933_v7 = vadd.f32 %v14212_v46, %v14201_v49  ;;  %v3572_v42 = vpop.f32.mrb[125].mxu0  ;;  %v14224_v33 = vld [vmem:[#allocation120_spill] sm:$0xff] }
 0x3d3   :  { %6652 = vmatprep.subr.msk.bf16.mxu1 %vm14197_vm9, %v13974_v52  ;;  %vm11999_vm3 = vmpackc.low %vm1700_vm10, %vm14198_vm12  ;;  %v768_v1 = vadd.f32 %v14206_v15, %v14193_v10  ;;  %4159 = vmatprep.mubr.f32.mxu1 %v3992_v23  ;;  %v1094_v59 = vadd.f32 %v14213_v18, %v14203_v26  ;;  %v4007_v61 = vmul.f32 %v3409_v41, %v774_v62  ;;  %v14217_v37 = vld [vmem:[#allocation113_spill] sm:$0xff]  ;;  %v3576_v50 = vpop.f32.mrb[126].mxu0  ;;  %v3421_v15 = vpop.f32.mrb[128].mxu1  ;;  %v410_v18 = vsub.s32 7, %v7253_v60 }
 0x3d4   :  { %vm2864_vm8 = vmand %vm11951_vm1, %vm2736_vm0  ;;  %4160 = vmatmul.mubr.f32.gmra.mrb[184].mxu1 %v3991_v3  ;;  %4309 = vmatprep.mubr.f32.mxu0 %v4002_v16  ;;  %v4009_v51 = vmul.f32 %v3570_v27, %v935_v5  ;;  %v4008_v58 = vmul.f32 %v3411_v35, %v933_v7  ;;  %v780_v36 = vadd.f32 %v14214_v4, %v14193_v10  ;;  %v3578_v29 = vpop.f32.mrb[127].mxu0  ;;  %v14219_v3 = vld [vmem:[#allocation118_spill] sm:$0xff]  ;;  %v14221_v23 = vld [vmem:[#allocation117_spill] sm:$0xff]  ;;  %v3423_v30 = vpop.f32.mrb[129].mxu1  ;;  %vm14314_vm12 = vcmask 523264  }
 0x3d5   :  { %vm2865_vm10 = vmand %vm11962_vm7, %vm2737_vm13  ;;  %v3999_v21 = vmul.f32 %v3403_v13, %v768_v1  ;;  %4164 = vmatprep.mubr.f32.mxu1 %v4000_v0  ;;  %v4010_v56 = vmul.f32 %v3572_v42, %v1094_v59  ;;  %v941_v44 = vadd.f32 %v14215_v24, %v14195_v14  ;;  %v939_v32 = vadd.f32 %v14216_v17, %v14201_v49  ;;  %v3582_v1 = vpop.f32.mrb[128].mxu0  ;;  %v14222_v13 = vld [vmem:[#allocation49_spill] sm:$0xff]  ;;  %v3427_v6 = vpop.f32.mrb[130].mxu1  ;;  %v14226_v27 = vld [vmem:[#allocation52_spill] sm:$0xff] }
 0x3d6   :  { %vm14205_vm11 = vmpackc.low %vm11899_vm6, %vm11884_vm14  ;;  %4310 = vmatmul.mubr.f32.gmra.mrb[186].mxu0 %v4001_v40  ;;  %v1100_v43 = vadd.f32 %v14217_v37, %v14203_v26  ;;  %v4015_v47 = vmul.f32 %v3415_v55, %v780_v36  ;;  %v786_v9 = vadd.f32 %v14218_v34, %v14193_v10  ;;  %v947_v2 = vadd.f32 %v14219_v3, %v14195_v14  ;;  %v3584_v11 = vpop.f32.mrb[129].mxu0  ;;  %v14225_v0 = vld [vmem:[#allocation121_spill] sm:$0xff]  ;;  %v3429_v46 = vpop.f32.mrb[131].mxu1  ;;  %v14228_v42 = vld [vmem:[#allocation124_spill] sm:$0xff] }
 0x3d7   :  { %6654 = vmatpush3.bf16.msk.msra.mxu1 %vm14205_vm11, %v13974_v52  ;;  %vm6685_vm15 = vmpackc.low %vm2865_vm10, %vm2864_vm8  ;;  %4314 = vmatprep.mubr.f32.mxu0 %v4010_v56  ;;  %v4017_v57 = vmul.f32 %v3576_v50, %v941_v44  ;;  %v4016_v25 = vmul.f32 %v3417_v54, %v939_v32  ;;  %v945_v48 = vadd.f32 %v14220_v45, %v14201_v49  ;;  %v3588_v62 = vpop.f32.mrb[130].mxu0  ;;  %v14229_v56 = vld [vmem:[#allocation125_spill] sm:$0xff]  ;;  %v377_v36 = vld [vmem:[%s12643_s5 + $0x8] sm:$0x7]  ;;  %v3433_v24 = vpop.f32.mrb[132].mxu1  ;;  %v14232_v34 = vsub.s32 0, %v7253_v60 }
 0x3d8   :  { %6686 = vmatpush3.bf16.msk.msra.mxu0 %vm6685_vm15, %v13974_v52  ;;  %6688 = vmatprep.subr.msk.bf16.mxu1 %vm11999_vm3, %v13974_v52  ;;  %v4018_v12 = vmul.f32 %v3578_v29, %v1100_v43  ;;  %v1106_v63 = vadd.f32 %v14221_v23, %v14203_v26  ;;  %v4023_v22 = vmul.f32 %v3421_v15, %v786_v9  ;;  %v3590_v7 = vpop.f32.mrb[131].mxu0  ;;  %v3435_v37 = vpop.f32.mrb[133].mxu1  ;;  %v6919_v55 = vld [vmem:[%s12643_s5] sm:$0xff]  ;;  %v14230_v54 = vld [vmem:[#allocation55_spill] sm:$0xff]  ;;  %v14233_v3 = vsub.s32 1, %v7253_v60  ;;  %v14234_v45 = vld [vmem:[#allocation128_spill] sm:$0xff] }
 0x3d9   :  { %6704 = vmatprep.subr.msk.bf16.mxu0 %vm11999_vm3, %v13974_v52  ;;  %4165 = vmatmul.mubr.f32.gmra.mrb[186].mxu1 %v3999_v21  ;;  %v4025_v19 = vmul.f32 %v3582_v1, %v947_v2  ;;  %v4024_v38 = vmul.f32 %v3423_v30, %v945_v48  ;;  %v792_v31 = vadd.f32 %v14222_v13, %v14193_v10  ;;  %v14223_v21 = vld [vmem:[#allocation122_spill] sm:$0xff]  ;;  %v3594_v44 = vpop.f32.mrb[132].mxu0  ;;  %v14235_v23 = vld [vmem:[#allocation129_spill] sm:$0xff]  ;;  %v14236_v15 = vsub.s32 2, %v7253_v60  ;;  %v3439_v1 = vpop.f32.mrb[134].mxu1 }
 0x3da   :  { %4169 = vmatprep.mubr.f32.mxu1 %v4008_v58  ;;  %4315 = vmatmul.mubr.f32.gmra.mrb[188].mxu0 %v4009_v51  ;;  %v4026_v28 = vmul.f32 %v3584_v11, %v1106_v63  ;;  %v953_v40 = vadd.f32 %v14223_v21, %v14195_v14  ;;  %v951_v8 = vadd.f32 %v14224_v33, %v14201_v49  ;;  %v14227_v51 = vld [vmem:[#allocation126_spill] sm:$0xff]  ;;  %v3596_v43 = vpop.f32.mrb[133].mxu0  ;;  %v3441_v30 = vpop.f32.mrb[135].mxu1 }
 0x3db   :  { %4319 = vmatprep.mubr.f32.mxu0 %v4018_v12  ;;  %v1112_v16 = vadd.f32 %v14225_v0, %v14203_v26  ;;  %v4031_v39 = vmul.f32 %v3427_v6, %v792_v31  ;;  %v959_v35 = vadd.f32 %v14227_v51, %v14195_v14  ;;  %v957_v58 = vadd.f32 %v14228_v42, %v14201_v49  ;;  %v14239_v31 = vld [vmem:[#allocation132_spill] sm:$0xff]  ;;  %v14245_v51 = vld [vmem:[#allocation133_spill] sm:$0xff] }
 0x3dc   :  { %v4033_v5 = vmul.f32 %v3588_v62, %v953_v40  ;;  %v4032_v59 = vmul.f32 %v3429_v46, %v951_v8  ;;  %v1118_v4 = vadd.f32 %v14229_v56, %v14203_v26  ;;  %v12080_v50 = vrot.slane %v6919_v55, %v410_v18  ;;  %v14240_v40 = vld [vmem:[#allocation135_spill] sm:$0xff]  ;;  %v3671_v8 = vpop.f32.mrb[136].mxu1  ;;  %v14242_v46 = vld [vmem:[#allocation13_spill] sm:$0xff]  ;;  %v14246_v42 = vld [vmem:[#allocation136_spill] sm:$0xff] }
 0x3dd   :  { %4170 = vmatmul.mubr.f32.gmra.mrb[188].mxu1 %v4007_v61  ;;  %v4034_v41 = vmul.f32 %v3590_v7, %v1112_v16  ;;  %v798_v61 = vadd.f32 %v14226_v27, %v14193_v10  ;;  %v4041_v32 = vmul.f32 %v3594_v44, %v959_v35  ;;  %v804_v29 = vadd.f32 %v14230_v54, %v14193_v10  ;;  %v14241_v16 = vld [vmem:[#allocation12_spill] sm:$0xff]  ;;  %v14244_v27 = vld [vmem:[#allocation138_spill] sm:$0xff] }
 0x3de   :  { %4174 = vmatprep.mubr.f32.mxu1 %v4016_v25  ;;  %4320 = vmatmul.mubr.f32.gmra.mrb[190].mxu0 %v4017_v57  ;;  %v4042_v57 = vmul.f32 %v3596_v43, %v1118_v4  ;;  %v14231_v25 = vld [vmem:[#allocation130_spill] sm:$0xff]  ;;  %v12088_v9 = vrot.slane %v377_v36, %v14232_v34  ;;  %v12092_v2 = vrot.slane %v377_v36, %v14233_v3  ;;  %v14250_v43 = vld [vmem:[#allocation19_spill] sm:$0xff] }
 0x3df   :  { %4324 = vmatprep.mubr.f32.mxu0 %v4026_v28  ;;  %v4039_v17 = vmul.f32 %v3433_v24, %v798_v61  ;;  %v965_v12 = vadd.f32 %v14231_v25, %v14195_v14  ;;  %v963_v48 = vadd.f32 %v14234_v45, %v14201_v49  ;;  %v1124_v63 = vadd.f32 %v14235_v23, %v14203_v26  ;;  %v3600_v14 = vpop.f32.mrb[134].mxu0  ;;  %v14237_v49 = vld [vmem:[#allocation59_spill] sm:$0xff]  ;;  %v14238_v26 = vld [vmem:[#allocation134_spill] sm:$0xff]  ;;  %v14274_v23 = vld [vmem:[#allocation165_spill] sm:$0xff] }
 0x3e0   :  { %v12100_v10 = vrot.slane %v377_v36, %v14236_v15  ;;  %v3602_v11 = vpop.f32.mrb[135].mxu0  ;;  %v1036_v13 = vadd.f32 %v14237_v49, %v12080_v50  ;;  %v1197_v60 = vadd.f32 %v14238_v26, %v12092_v2  ;;  %v1195_v21 = vadd.f32 %v14239_v31, %v12088_v9  ;;  %v14249_v24 = vld [vmem:[#allocation18_spill] sm:$0xff]  ;;  %v14260_v49 = vld [vmem:[#allocation148_spill] sm:$0xff]  ;;  %v14261_v26 = vld [vmem:[#allocation137_spill] sm:$0xff] }
 0x3e1   :  { %4175 = vmatmul.mubr.f32.gmra.mrb[190].mxu1 %v4015_v47  ;;  %v4040_v47 = vmul.f32 %v3435_v37, %v957_v58  ;;  %v4050_v28 = vmul.f32 %v3602_v11, %v1124_v63  ;;  %v3832_v0 = vpop.f32.mrb[136].mxu0  ;;  %vm1701_vm14 = vcmp.eq.s32.totalorder %v14241_v16, %v14178_v53  ;;  %vm1702_vm6 = vcmp.eq.s32.totalorder %v14242_v46, %v14178_v53  ;;  %v14257_v63 = vld [vmem:[#allocation28_spill] sm:$0xff]  ;;  %v14262_v31 = vld [vmem:[#allocation146_spill] sm:$0xff] }
 0x3e2   :  { %4179 = vmatprep.mubr.f32.mxu1 %v4024_v38  ;;  %4325 = vmatmul.mubr.f32.gmra.mrb[192].mxu0 %v4025_v19  ;;  %v4049_v19 = vmul.f32 %v3600_v14, %v965_v12  ;;  %v4048_v38 = vmul.f32 %v3441_v30, %v963_v48  ;;  %v1356_v33 = vadd.f32 %v14240_v40, %v12100_v10  ;;  %vm12125_vm1 = vmpackc.low %vm1702_vm6, %vm1701_vm14  ;;  %v14253_v12 = vld [vmem:[#allocation139_spill] sm:$0xff] }
 0x3e3   :  { %4329 = vmatprep.mubr.f32.mxu0 %v4034_v41  ;;  %v3931_v6 = vmul.f32 %v3671_v8, %v1036_v13  ;;  %v3933_v62 = vmul.f32 %v3832_v0, %v1197_v60  ;;  %v1203_v61 = vadd.f32 %v14244_v27, %v12092_v2  ;;  %v1361_v35 = vadd.f32 %v14245_v51, %v12100_v10  ;;  %v14268_v27 = vld [vmem:[#allocation151_spill] sm:$0xff] }
 0x3e4   :  { %v1201_v58 = vadd.f32 %v14246_v42, %v12088_v9  ;;  %vm1703_vm7 = vcmp.eq.s32.totalorder %v14249_v24, %v14178_v53  ;;  %vm1704_vm2 = vcmp.eq.s32.totalorder %v14250_v43, %v14178_v53  ;;  %v1366_v34 = vadd.f32 %v14253_v12, %v12100_v10  ;;  %v14271_v43 = vld [vmem:[#allocation141_spill] sm:$0xff] }
 0x3e5   :  { %4180 = vmatmul.mubr.f32.gmra.mrb[192].mxu1 %v4023_v22  ;;  %v4047_v22 = vmul.f32 %v3439_v1, %v804_v29  ;;  %v14252_v29 = vld [vmem:[#allocation142_spill] sm:$0xff]  ;;  %v1207_v3 = vadd.f32 %v14254_v20, %v12088_v9  ;;  %vm12159_vm4 = vmpackc.low %vm1704_vm2, %vm1703_vm7  ;;  %vm1705_vm5 = vcmp.eq.s32.totalorder %v14257_v63, %v14178_v53  ;;  %v1215_v13 = vadd.f32 %v14260_v49, %v12092_v2 }
 0x3e6   :  { %4184 = vmatprep.mubr.f32.mxu1 %v4032_v59  ;;  %4330 = vmatmul.mubr.f32.gmra.mrb[194].mxu0 %v4033_v5  ;;  %v3834_v5 = vpop.f32.mrb[137].mxu0  ;;  %v14243_v59 = vld [vmem:[#allocation65_spill] sm:$0xff]  ;;  %v1209_v25 = vadd.f32 %v14252_v29, %v12092_v2  ;;  %v1371_v60 = vadd.f32 %v14261_v26, %v12100_v10  ;;  %v1233_v63 = vadd.f32 %v14274_v23, %v12092_v2 }
 0x3e7   :  { %4334 = vmatprep.mubr.f32.mxu0 %v4042_v57  ;;  %v3934_v18 = vmul.f32 %v3834_v5, %v1356_v33  ;;  %v1042_v41 = vadd.f32 %v14243_v59, %v12080_v50  ;;  %v3838_v4 = vpop.f32.mrb[138].mxu0  ;;  %v14251_v57 = vld [vmem:[#allocation69_spill] sm:$0xff]  ;;  %v14267_v59 = vld [vmem:[#allocation143_spill] sm:$0xff] }
 0x3e8   :  { %v3840_v37 = vpop.f32.mrb[139].mxu0  ;;  %v1048_v54 = vadd.f32 %v14251_v57, %v12080_v50 }
 0x3e9   :  { %4185 = vmatmul.mubr.f32.gmra.mrb[194].mxu1 %v4031_v39  ;;  %v3673_v39 = vpop.f32.mrb[137].mxu1  ;;  %v3844_v48 = vpop.f32.mrb[140].mxu0 }
 0x3ea   :  { %4189 = vmatprep.mubr.f32.mxu1 %v4040_v47  ;;  %4335 = vmatmul.mubr.f32.gmra.mrb[196].mxu0 %v4041_v32  ;;  %v3932_v7 = vmul.f32 %v3673_v39, %v1195_v21  ;;  %v3677_v56 = vpop.f32.mrb[138].mxu1  ;;  %v3942_v47 = vmul.f32 %v3840_v37, %v1361_v35  ;;  %v3949_v1 = vmul.f32 %v3844_v48, %v1209_v25 }
 0x3eb   :  { %4339 = vmatprep.mubr.f32.mxu0 %v4050_v28  ;;  %v3939_v44 = vmul.f32 %v3677_v56, %v1042_v41  ;;  %v3679_v32 = vpop.f32.mrb[139].mxu1  ;;  %v1213_v21 = vadd.f32 %v14262_v31, %v12088_v9  ;;  %v1376_v41 = vadd.f32 %v14267_v59, %v12100_v10  ;;  %v14281_v59 = vld [vmem:[#allocation101_spill] sm:$0xff] }
 0x3ec   :  { %v3940_v55 = vmul.f32 %v3679_v32, %v1201_v58  ;;  %v3683_v45 = vpop.f32.mrb[140].mxu1  ;;  %v14270_v32 = vld [vmem:[#allocation160_spill] sm:$0xff] }
 0x3ed   :  { %4190 = vmatmul.mubr.f32.gmra.mrb[196].mxu1 %v4039_v17  ;;  %v3941_v17 = vmul.f32 %v3838_v4, %v1203_v61  ;;  %v3947_v15 = vmul.f32 %v3683_v45, %v1048_v54  ;;  %v3685_v14 = vpop.f32.mrb[141].mxu1  ;;  %v1219_v61 = vadd.f32 %v14268_v27, %v12088_v9  ;;  %v1227_v37 = vadd.f32 %v14270_v32, %v12092_v2  ;;  %v14273_v45 = vld [vmem:[#allocation90_spill] sm:$0xff]  ;;  %v14282_v27 = vld [vmem:[#allocation176_spill] sm:$0xff] }
 0x3ee   :  { %4194 = vmatprep.mubr.f32.mxu1 %v4048_v38  ;;  %4340 = vmatmul.mubr.f32.gmra.mrb[198].mxu0 %v4049_v19  ;;  %v14258_v19 = vld [vmem:[#allocation29_spill] sm:$0xff]  ;;  %v3948_v30 = vmul.f32 %v3685_v14, %v1207_v3  ;;  %v14259_v38 = vld [vmem:[#allocation74_spill] sm:$0xff]  ;;  %v3689_v40 = vpop.f32.mrb[142].mxu1  ;;  %v1072_v48 = vadd.f32 %v14273_v45, %v12080_v50  ;;  %v14276_v14 = vld [vmem:[#allocation163_spill] sm:$0xff] }
 0x3ef   :  { %4554 = vmatprep.mubr.f32.mxu0 %v3934_v18  ;;  %vm1706_vm9 = vcmp.eq.s32.totalorder %v14258_v19, %v14178_v53  ;;  %v1054_v28 = vadd.f32 %v14259_v38, %v12080_v50  ;;  %v14265_v53 = vld [vmem:[#allocation79_spill] sm:$0xff] }
 0x3f0   :  { %vm12193_vm0 = vmpackc.low %vm1706_vm9, %vm1705_vm5  ;;  %v1060_v46 = vadd.f32 %v14265_v53, %v12080_v50 }
 0x3f1   :  { %4195 = vmatmul.mubr.f32.gmra.mrb[198].mxu1 %v4047_v22  ;;  %v3846_v22 = vpop.f32.mrb[141].mxu0  ;;  %v3955_v0 = vmul.f32 %v3689_v40, %v1054_v28 }
 0x3f2   :  { %4409 = vmatprep.mubr.f32.mxu1 %v3932_v7  ;;  %4555 = vmatmul.mubr.f32.vlgmr.msra.gmra.mrb[200].mxu0 %v3933_v62  ;;  %v3950_v11 = vmul.f32 %v3846_v22, %v1366_v34  ;;  %v3850_v33 = vpop.f32.mrb[142].mxu0  ;;  %v14266_v7 = vld [vmem:[#allocation154_spill] sm:$0xff]  ;;  %v1231_v22 = vadd.f32 %v14276_v14, %v12088_v9  ;;  %v14290_v14 = vld [vmem:[#allocation187_spill] sm:$0xff] }
 0x3f3   :  { %6706 = vmatpush3.bf16.msk.msra.mxu0 %vm11999_vm3, %v13974_v52  ;;  %4559 = vmatprep.mubr.f32.mxu0 %v3942_v47  ;;  %v3957_v16 = vmul.f32 %v3850_v33, %v1215_v13  ;;  %v3852_v62 = vpop.f32.mrb[143].mxu0  ;;  %v1221_v18 = vadd.f32 %v14266_v7, %v12092_v2  ;;  %v14272_v47 = vld [vmem:[#allocation158_spill] sm:$0xff]  ;;  %v14279_v33 = vld [vmem:[#allocation147_spill] sm:$0xff] }
 0x3f4   :  { %6708 = vmatprep.subr.msk.bf16.mxu0 %vm12125_vm1, %v13974_v52  ;;  %v3958_v5 = vmul.f32 %v3852_v62, %v1371_v60  ;;  %v3856_v35 = vpop.f32.mrb[144].mxu0  ;;  %v1225_v57 = vadd.f32 %v14272_v47, %v12088_v9  ;;  %v14277_v60 = vld [vmem:[#allocation97_spill] sm:$0xff]  ;;  %v1391_v8 = vadd.f32 %v14279_v33, %v12100_v10  ;;  %v14293_v33 = vld [vmem:[#allocation115_spill] sm:$0xff] }
 0x3f5   :  { %4410 = vmatmul.mubr.f32.vlgmr.msra.gmra.mrb[200].mxu1 %v3931_v6  ;;  %v3691_v6 = vpop.f32.mrb[143].mxu1  ;;  %v3965_v58 = vmul.f32 %v3856_v35, %v1221_v18  ;;  %v3858_v4 = vpop.f32.mrb[145].mxu0  ;;  %v1078_v31 = vadd.f32 %v14277_v60, %v12080_v50  ;;  %v14286_v47 = vld [vmem:[#allocation181_spill] sm:$0xff] }
 0x3f6   :  { %6690 = vmatpush3.bf16.msk.msra.mxu1 %vm11999_vm3, %v13974_v52  ;;  %4414 = vmatprep.mubr.f32.mxu1 %v3940_v55  ;;  %v3956_v39 = vmul.f32 %v3691_v6, %v1213_v21  ;;  %v3695_v51 = vpop.f32.mrb[144].mxu1  ;;  %v3966_v24 = vmul.f32 %v3858_v4, %v1376_v41  ;;  %v1381_v55 = vadd.f32 %v14271_v43, %v12100_v10  ;;  %v3862_v29 = vpop.f32.mrb[146].mxu0  ;;  %v14278_v21 = vld [vmem:[#allocation170_spill] sm:$0xff]  ;;  %v14285_v43 = vld [vmem:[#allocation107_spill] sm:$0xff]  ;;  %vm14316_vm3 = vmmov %vm14314_vm12 }
 0x3f7   :  { %6692 = vmatprep.subr.msk.bf16.mxu1 %vm12125_vm1, %v13974_v52  ;;  %4560 = vmatmul.mubr.f32.gmra.mrb[202].mxu0 %v3941_v17  ;;  %v3963_v42 = vmul.f32 %v3695_v51, %v1060_v46  ;;  %v3697_v56 = vpop.f32.mrb[145].mxu1  ;;  %v3973_v12 = vmul.f32 %v3862_v29, %v1227_v37  ;;  %v1239_v40 = vadd.f32 %v14278_v21, %v12092_v2  ;;  %v14283_v51 = vld [vmem:[#allocation155_spill] sm:$0xff]  ;;  %vm14318_vm13 = vmmov %vm14316_vm3 }
 0x3f8   :  { %6710 = vmatpush3.bf16.msk.msra.mxu0 %vm12125_vm1, %v13974_v52  ;;  %4564 = vmatprep.mubr.f32.mxu0 %v3950_v11  ;;  %v3964_v36 = vmul.f32 %v3697_v56, %v1219_v61  ;;  %v3701_v54 = vpop.f32.mrb[146].mxu1  ;;  %v1084_v41 = vadd.f32 %v14281_v59, %v12080_v50  ;;  %v1245_v61 = vadd.f32 %v14282_v27, %v12092_v2  ;;  %vm14320_vm8 = vmmov %vm14316_vm3 }
 0x3f9   :  { %4415 = vmatmul.mubr.f32.gmra.mrb[202].mxu1 %v3939_v44  ;;  %6712 = vmatprep.subr.msk.bf16.mxu0 %vm12159_vm4, %v13974_v52  ;;  %v14269_v44 = vld [vmem:[#allocation85_spill] sm:$0xff]  ;;  %v3703_v34 = vpop.f32.mrb[147].mxu1  ;;  %v1396_v35 = vadd.f32 %v14283_v51, %v12100_v10  ;;  %v14297_v51 = vld [vmem:[#allocation119_spill] sm:$0xff]  ;;  %vm14322_vm10 = vmmov %vm14316_vm3 }
 0x3fa   :  { %6694 = vmatpush3.bf16.msk.msra.mxu1 %vm12125_vm1, %v13974_v52  ;;  %4419 = vmatprep.mubr.f32.mxu1 %v3948_v30  ;;  %v1066_v17 = vadd.f32 %v14269_v44, %v12080_v50  ;;  %v3972_v20 = vmul.f32 %v3703_v34, %v1225_v57  ;;  %v3707_v19 = vpop.f32.mrb[148].mxu1  ;;  %v1251_v57 = vadd.f32 %v14286_v47, %v12092_v2  ;;  %vm14324_vm11 = vmmov %vm14316_vm3 }
 0x3fb   :  { %6696 = vmatprep.subr.msk.bf16.mxu1 %vm12159_vm4, %v13974_v52  ;;  %4565 = vmatmul.mubr.f32.gmra.mrb[204].mxu0 %v3949_v1  ;;  %v3979_v11 = vmul.f32 %v3707_v19, %v1072_v48  ;;  %v3709_v28 = vpop.f32.mrb[149].mxu1  ;;  %v14291_v19 = vld [vmem:[#allocation161_spill] sm:$0xff]  ;;  %vm14326_vm15 = vmmov %vm14316_vm3 }
 0x3fc   :  { %6714 = vmatpush3.bf16.msk.msra.mxu0 %vm12159_vm4, %v13974_v52  ;;  %4569 = vmatprep.mubr.f32.mxu0 %v3958_v5  ;;  %v3971_v25 = vmul.f32 %v3701_v54, %v1066_v17  ;;  %v3980_v13 = vmul.f32 %v3709_v28, %v1231_v22  ;;  %v3713_v6 = vpop.f32.mrb[150].mxu1  ;;  %v14287_v54 = vld [vmem:[#allocation152_spill] sm:$0xff]  ;;  %v1257_v22 = vadd.f32 %v14290_v14, %v12092_v2  ;;  %vm14328_vm14 = vmmov %vm14316_vm3 }
 0x3fd   :  { %4420 = vmatmul.mubr.f32.gmra.mrb[204].mxu1 %v3947_v15  ;;  %6716 = vmatprep.subr.msk.bf16.mxu0 %vm12193_vm0, %v13974_v52  ;;  %v14275_v15 = vld [vmem:[#allocation149_spill] sm:$0xff]  ;;  %v3715_v53 = vpop.f32.mrb[151].mxu1  ;;  %v1401_v29 = vadd.f32 %v14287_v54, %v12100_v10  ;;  %v14301_v54 = vld [vmem:[#allocation123_spill] sm:$0xff]  ;;  %vm14330_vm6 = vmmov %vm14316_vm3 }
 0x3fe   :  { %6698 = vmatpush3.bf16.msk.msra.mxu1 %vm12159_vm4, %v13974_v52  ;;  %4424 = vmatprep.mubr.f32.mxu1 %v3956_v39  ;;  %v1386_v1 = vadd.f32 %v14275_v15, %v12100_v10  ;;  %v3987_v39 = vmul.f32 %v3713_v6, %v1078_v31  ;;  %v3719_v56 = vpop.f32.mrb[152].mxu1  ;;  %v14289_v15 = vld [vmem:[#allocation111_spill] sm:$0xff]  ;;  %vm14332_vm1 = vmmov %vm14316_vm3 }
 0x3ff   :  { %6700 = vmatprep.subr.msk.bf16.mxu1 %vm12193_vm0, %v13974_v52  ;;  %4570 = vmatmul.mubr.f32.gmra.mrb[206].mxu0 %v3957_v16  ;;  %v3721_v44 = vpop.f32.mrb[153].mxu1  ;;  %v14295_v6 = vld [vmem:[#allocation159_spill] sm:$0xff]  ;;  %vm14334_vm7 = vmmov %vm14332_vm1 }
 0x400   :  { %6718 = vmatpush3.bf16.msk.msra.mxu0 %vm12193_vm0, %v13974_v52  ;;  %4574 = vmatprep.mubr.f32.mxu0 %v3966_v24  ;;  %v3725_v34 = vpop.f32.mrb[154].mxu1  ;;  %vm14336_vm2 = vmmov %vm14332_vm1 }
 0x401   :  { %4425 = vmatmul.mubr.f32.gmra.mrb[206].mxu1 %v3955_v0  ;;  %v14280_v0 = vld [vmem:[#allocation168_spill] sm:$0xff]  ;;  %v3727_v45 = vpop.f32.mrb[155].mxu1  ;;  %vm14338_vm4 = vmmov %vm14332_vm1 }
 0x402   :  { %6702 = vmatpush3.bf16.msk.msra.mxu1 %vm12193_vm0, %v13974_v52  ;;  %4429 = vmatprep.mubr.f32.mxu1 %v3964_v36  ;;  %v3864_v52 = vpop.f32.mrb[147].mxu0  ;;  %v1237_v16 = vadd.f32 %v14280_v0, %v12088_v9  ;;  %v3995_v36 = vmul.f32 %v3719_v56, %v1084_v41  ;;  %v3731_v28 = vpop.f32.mrb[156].mxu1  ;;  %v14294_v0 = vld [vmem:[#allocation193_spill] sm:$0xff]  ;;  %v14299_v56 = vld [vmem:[#allocation166_spill] sm:$0xff]  ;;  %vm14340_vm5 = vmmov %vm14332_vm1 }
 0x403   :  { %4575 = vmatmul.mubr.f32.gmra.mrb[208].mxu0 %v3965_v58  ;;  %v3974_v3 = vmul.f32 %v3864_v52, %v1381_v55  ;;  %v3868_v30 = vpop.f32.mrb[148].mxu0  ;;  %v1090_v55 = vadd.f32 %v14285_v43, %v12080_v50  ;;  %v3733_v60 = vpop.f32.mrb[157].mxu1  ;;  %vm14342_vm9 = vmmov %vm14332_vm1 }
 0x404   :  { %v3981_v38 = vmul.f32 %v3868_v30, %v1233_v63  ;;  %v3870_v49 = vpop.f32.mrb[149].mxu0  ;;  %v3988_v7 = vmul.f32 %v3715_v53, %v1237_v16  ;;  %v1406_v30 = vadd.f32 %v14291_v19, %v12100_v10  ;;  %v1263_v16 = vadd.f32 %v14294_v0, %v12092_v2  ;;  %v3737_v53 = vpop.f32.mrb[158].mxu1  ;;  %v14305_v19 = vld [vmem:[#allocation127_spill] sm:$0xff]  ;;  %vm14344_vm0 = vmmov %vm14332_vm1 }
 0x405   :  { %4430 = vmatmul.mubr.f32.gmra.mrb[208].mxu1 %v3963_v42  ;;  %4579 = vmatprep.mubr.f32.mxu0 %v3974_v3  ;;  %v3982_v26 = vmul.f32 %v3870_v49, %v1386_v1  ;;  %v3874_v62 = vpop.f32.mrb[150].mxu0  ;;  %v14284_v42 = vld [vmem:[#allocation175_spill] sm:$0xff]  ;;  %v1096_v1 = vadd.f32 %v14289_v15, %v12080_v50  ;;  %v3739_v59 = vpop.f32.mrb[159].mxu1 }
 0x406   :  { %4434 = vmatprep.mubr.f32.mxu1 %v3972_v20  ;;  %v3989_v5 = vmul.f32 %v3874_v62, %v1239_v40  ;;  %v3876_v46 = vpop.f32.mrb[151].mxu0  ;;  %v1243_v58 = vadd.f32 %v14284_v42, %v12088_v9  ;;  %v4003_v20 = vmul.f32 %v3725_v34, %v1090_v55  ;;  %v1411_v62 = vadd.f32 %v14295_v6, %v12100_v10  ;;  %v14298_v42 = vld [vmem:[#allocation72_spill] sm:$0xff]  ;;  %v14309_v6 = vld [vmem:[#allocation131_spill] sm:$0xff] }
 0x407   :  { %4580 = vmatmul.mubr.f32.gmra.mrb[210].mxu0 %v3973_v12  ;;  %v3990_v18 = vmul.f32 %v3876_v46, %v1391_v8  ;;  %v3880_v4 = vpop.f32.mrb[152].mxu0  ;;  %v1102_v8 = vadd.f32 %v14293_v33, %v12080_v50  ;;  %v14303_v34 = vld [vmem:[#allocation164_spill] sm:$0xff] }
 0x408   :  { %4584 = vmatprep.mubr.f32.mxu0 %v3982_v26  ;;  %v3997_v24 = vmul.f32 %v3880_v4, %v1245_v61  ;;  %v3882_v17 = vpop.f32.mrb[153].mxu0  ;;  %v3996_v32 = vmul.f32 %v3721_v44, %v1243_v58  ;;  %v1269_v58 = vadd.f32 %v14298_v42, %v12092_v2  ;;  %v1416_v4 = vadd.f32 %v14299_v56, %v12100_v10  ;;  %v3743_v44 = vpop.f32.mrb[160].mxu1  ;;  %v14321_v56 = vld [vmem:[#allocation156_spill] sm:$0xff] }
 0x409   :  { %4435 = vmatmul.mubr.f32.gmra.mrb[210].mxu1 %v3971_v25  ;;  %v3998_v37 = vmul.f32 %v3882_v17, %v1396_v35  ;;  %v14288_v25 = vld [vmem:[#allocation180_spill] sm:$0xff]  ;;  %v3886_v52 = vpop.f32.mrb[154].mxu0  ;;  %v1108_v35 = vadd.f32 %v14297_v51, %v12080_v50  ;;  %v3745_v43 = vpop.f32.mrb[161].mxu1 }
 0x40a   :  { %4439 = vmatprep.mubr.f32.mxu1 %v3980_v13  ;;  %v1249_v12 = vadd.f32 %v14288_v25, %v12088_v9  ;;  %v4005_v3 = vmul.f32 %v3886_v52, %v1251_v57  ;;  %v3888_v48 = vpop.f32.mrb[155].mxu0  ;;  %v4011_v13 = vmul.f32 %v3731_v28, %v1096_v1  ;;  %v14302_v25 = vld [vmem:[#allocation42_spill] sm:$0xff]  ;;  %v1421_v52 = vadd.f32 %v14303_v34, %v12100_v10  ;;  %v14307_v28 = vld [vmem:[#allocation171_spill] sm:$0xff] }
 0x40b   :  { %4585 = vmatmul.mubr.f32.gmra.mrb[212].mxu0 %v3981_v38  ;;  %v4006_v63 = vmul.f32 %v3888_v48, %v1401_v29  ;;  %v3892_v49 = vpop.f32.mrb[156].mxu0  ;;  %v1114_v29 = vadd.f32 %v14301_v54, %v12080_v50 }
 0x40c   :  { %4589 = vmatprep.mubr.f32.mxu0 %v3990_v18  ;;  %v4004_v23 = vmul.f32 %v3727_v45, %v1249_v12  ;;  %v4013_v26 = vmul.f32 %v3892_v49, %v1257_v22  ;;  %v3894_v31 = vpop.f32.mrb[157].mxu0  ;;  %v1275_v12 = vadd.f32 %v14302_v25, %v12092_v2  ;;  %v3749_v45 = vpop.f32.mrb[162].mxu1  ;;  %v1426_v49 = vadd.f32 %v14307_v28, %v12100_v10 }
 0x40d   :  { %4440 = vmatmul.mubr.f32.gmra.mrb[212].mxu1 %v3979_v11  ;;  %v14292_v11 = vld [vmem:[#allocation186_spill] sm:$0xff]  ;;  %v4014_v40 = vmul.f32 %v3894_v31, %v1406_v30  ;;  %v3898_v46 = vpop.f32.mrb[158].mxu0  ;;  %v3751_v15 = vpop.f32.mrb[163].mxu1  ;;  %v1120_v30 = vadd.f32 %v14305_v19, %v12080_v50 }
 0x40e   :  { %4444 = vmatprep.mubr.f32.mxu1 %v3988_v7  ;;  %v1255_v38 = vadd.f32 %v14292_v11, %v12088_v9  ;;  %v4019_v7 = vmul.f32 %v3737_v53, %v1102_v8  ;;  %v4021_v18 = vmul.f32 %v3898_v46, %v1263_v16  ;;  %v3900_v41 = vpop.f32.mrb[159].mxu0  ;;  %v14306_v11 = vld [vmem:[#allocation48_spill] sm:$0xff]  ;;  %v14311_v53 = vld [vmem:[#allocation169_spill] sm:$0xff] }
 0x40f   :  { %4590 = vmatmul.mubr.f32.gmra.mrb[214].mxu0 %v3989_v5  ;;  %v4022_v61 = vmul.f32 %v3900_v41, %v1411_v62  ;;  %v3904_v17 = vpop.f32.mrb[160].mxu0  ;;  %v1126_v62 = vadd.f32 %v14309_v6, %v12080_v50  ;;  %v1431_v46 = vadd.f32 %v14311_v53, %v12100_v10  ;;  %v14317_v10 = vld [vmem:[#allocation150_spill] sm:$0xff] }
 0x410   :  { %4594 = vmatprep.mubr.f32.mxu0 %v3998_v37  ;;  %v4012_v21 = vmul.f32 %v3733_v60, %v1255_v38  ;;  %v4029_v37 = vmul.f32 %v3904_v17, %v1269_v58  ;;  %v3906_v55 = vpop.f32.mrb[161].mxu0  ;;  %v1281_v38 = vadd.f32 %v14306_v11, %v12092_v2  ;;  %v3755_v60 = vpop.f32.mrb[164].mxu1  ;;  %v14319_v58 = vld [vmem:[#allocation153_spill] sm:$0xff]  ;;  %v14331_v17 = vld [vmem:[#allocation184_spill] sm:$0xff] }
 0x411   :  { %4445 = vmatmul.mubr.f32.gmra.mrb[214].mxu1 %v3987_v39  ;;  %v14296_v39 = vld [vmem:[#allocation192_spill] sm:$0xff]  ;;  %v4030_v57 = vmul.f32 %v3906_v55, %v1416_v4  ;;  %v3910_v48 = vpop.f32.mrb[162].mxu0  ;;  %v3757_v33 = vpop.f32.mrb[165].mxu1 }
 0x412   :  { %4449 = vmatprep.mubr.f32.mxu1 %v3996_v32  ;;  %v1261_v5 = vadd.f32 %v14296_v39, %v12088_v9  ;;  %v4027_v32 = vmul.f32 %v3743_v44, %v1108_v35  ;;  %v3912_v1 = vpop.f32.mrb[163].mxu0  ;;  %v14310_v39 = vld [vmem:[#allocation92_spill] sm:$0xff]  ;;  %v14329_v44 = vld [vmem:[#allocation182_spill] sm:$0xff] }
 0x413   :  { %4595 = vmatmul.mubr.f32.gmra.mrb[216].mxu0 %v3997_v24  ;;  %v4038_v22 = vmul.f32 %v3912_v1, %v1421_v52  ;;  %v3916_v31 = vpop.f32.mrb[164].mxu0  ;;  %v14323_v4 = vld [vmem:[#allocation172_spill] sm:$0xff] }
 0x414   :  { %4599 = vmatprep.mubr.f32.mxu0 %v4006_v63  ;;  %v4020_v27 = vmul.f32 %v3739_v59, %v1261_v5  ;;  %v4037_v63 = vmul.f32 %v3910_v48, %v1275_v12  ;;  %v3918_v8 = vpop.f32.mrb[165].mxu0  ;;  %v1287_v5 = vadd.f32 %v14310_v39, %v12092_v2  ;;  %v3761_v59 = vpop.f32.mrb[166].mxu1  ;;  %v14313_v2 = vld [vmem:[#allocation144_spill] sm:$0xff] }
 0x415   :  { %4450 = vmatmul.mubr.f32.gmra.mrb[216].mxu1 %v3995_v36  ;;  %v14300_v36 = vld [vmem:[#allocation75_spill] sm:$0xff]  ;;  %v4046_v16 = vmul.f32 %v3918_v8, %v1426_v49  ;;  %v3922_v41 = vpop.f32.mrb[166].mxu0  ;;  %v3763_v51 = vpop.f32.mrb[167].mxu1  ;;  %v14339_v55 = vld [vmem:[#allocation36_spill] sm:$0xff] }
 0x416   :  { %4454 = vmatprep.mubr.f32.mxu1 %v4004_v23  ;;  %v1267_v24 = vadd.f32 %v14300_v36, %v12088_v9  ;;  %v4035_v23 = vmul.f32 %v3749_v45, %v1114_v29  ;;  %v3924_v35 = vpop.f32.mrb[167].mxu0  ;;  %v14325_v36 = vld [vmem:[#allocation174_spill] sm:$0xff] }
 0x417   :  { %4600 = vmatmul.mubr.f32.gmra.mrb[218].mxu0 %v4005_v3  ;;  %v4054_v42 = vmul.f32 %v3924_v35, %v1431_v46 }
 0x418   :  { %4604 = vmatprep.mubr.f32.mxu0 %v4014_v40  ;;  %v4028_v47 = vmul.f32 %v3745_v43, %v1267_v24  ;;  %v4045_v40 = vmul.f32 %v3916_v31, %v1281_v38  ;;  %v14327_v24 = vld [vmem:[#allocation177_spill] sm:$0xff]  ;;  %v14337_v43 = vld [vmem:[#allocation191_spill] sm:$0xff] }
 0x419   :  { %4455 = vmatmul.mubr.f32.gmra.mrb[218].mxu1 %v4003_v20  ;;  %v14304_v20 = vld [vmem:[#allocation80_spill] sm:$0xff] }
 0x41a   :  { %4459 = vmatprep.mubr.f32.mxu1 %v4012_v21  ;;  %v1273_v3 = vadd.f32 %v14304_v20, %v12088_v9  ;;  %v4043_v21 = vmul.f32 %v3755_v60, %v1120_v30 }
 0x41b   :  { %4605 = vmatmul.mubr.f32.gmra.mrb[220].mxu0 %v4013_v26 }
 0x41c   :  { %4609 = vmatprep.mubr.f32.mxu0 %v4022_v61  ;;  %v4036_v14 = vmul.f32 %v3751_v15, %v1273_v3  ;;  %v4053_v61 = vmul.f32 %v3922_v41, %v1287_v5 }
 0x41d   :  { %4460 = vmatmul.mubr.f32.gmra.mrb[220].mxu1 %v4011_v13  ;;  %v14308_v13 = vld [vmem:[#allocation88_spill] sm:$0xff] }
 0x41e   :  { %4464 = vmatprep.mubr.f32.mxu1 %v4020_v27  ;;  %v1279_v26 = vadd.f32 %v14308_v13, %v12088_v9  ;;  %v4051_v27 = vmul.f32 %v3761_v59, %v1126_v62 }
 0x41f   :  { %4610 = vmatmul.mubr.f32.gmra.mrb[222].mxu0 %v4021_v18 }
 0x420   :  { %4614 = vmatprep.mubr.f32.mxu0 %v4030_v57  ;;  %v4044_v0 = vmul.f32 %v3757_v33, %v1279_v26  ;;  %v14343_v57 = vld [vmem:[#allocation30_spill] sm:$0xff] }
 0x421   :  { %4465 = vmatmul.mubr.f32.gmra.mrb[222].mxu1 %v4019_v7  ;;  %v14312_v7 = vld [vmem:[#allocation95_spill] sm:$0xff] }
 0x422   :  { %4469 = vmatprep.mubr.f32.mxu1 %v4028_v47  ;;  %v1285_v18 = vadd.f32 %v14312_v7, %v12088_v9  ;;  %v14315_v9 = vld [vmem:[#allocation145_spill] sm:$0xff]  ;;  %v14341_v47 = vld [vmem:[#allocation39_spill] sm:$0xff] }
 0x423   :  { %4615 = vmatmul.mubr.f32.gmra.mrb[224].mxu0 %v4029_v37  ;;  %v14335_v37 = vld [vmem:[#allocation189_spill] sm:$0xff] }
 0x424   :  { %4619 = vmatprep.mubr.f32.mxu0 %v4038_v22  ;;  %v4052_v50 = vmul.f32 %v3763_v51, %v1285_v18 }
 0x425   :  { %4470 = vmatmul.mubr.f32.gmra.mrb[224].mxu1 %v4027_v32  ;;  %v14333_v32 = vld [vmem:[#allocation188_spill] sm:$0xff] }
 0x426   :  { %4474 = vmatprep.mubr.f32.mxu1 %v4036_v14 }
 0x427   :  { %4620 = vmatmul.mubr.f32.gmra.mrb[226].mxu0 %v4037_v63 }
 0x428   :  { %4624 = vmatprep.mubr.f32.mxu0 %v4046_v16 }
 0x429   :  { %4475 = vmatmul.mubr.f32.gmra.mrb[226].mxu1 %v4035_v23 }
 0x42a   :  { %4479 = vmatprep.mubr.f32.mxu1 %v4044_v0 }
 0x42b   :  { %4625 = vmatmul.mubr.f32.gmra.mrb[228].mxu0 %v4045_v40 }
 0x42c   :  { %4629 = vmatprep.mubr.f32.mxu0 %v4054_v42 }
 0x42d   :  { %4480 = vmatmul.mubr.f32.gmra.mrb[228].mxu1 %v4043_v21 }
 0x42e   :  { %4484 = vmatprep.mubr.f32.mxu1 %v4052_v50 }
 0x42f   :  { %4630 = vmatmul.mubr.f32.gmra.mrb[230].mxu0 %v4053_v61 }
 0x430   :  { %6367 = vmatprep.mubr.msk.f32.mxu0 %vm14314_vm12, %v14313_v2  ;;  %vm14347_vm12 = vmmov %vm14344_vm0 }
 0x431   :  { %4485 = vmatmul.mubr.f32.gmra.mrb[230].mxu1 %v4051_v27 }
 0x433   :  { %6368 = vmatmul.mubr.msk.f32.vlgmr.msra.gmra.mrb[232].mxu0 %vm14316_vm3, %v14315_v9  ;;  %vm14349_vm3 = vmmov %vm14344_vm0 }
 0x434   :  { %6370 = vmatprep.mubr.msk.f32.mxu0 %vm14318_vm13, %v14317_v10  ;;  %vm14351_vm13 = vmmov %vm14344_vm0 }
 0x437   :  { %6371 = vmatmul.mubr.msk.f32.gmra.mrb[234].mxu0 %vm14320_vm8, %v14319_v58  ;;  %vm14353_vm8 = vmmov %vm14344_vm0 }
 0x438   :  { %6373 = vmatprep.mubr.msk.f32.mxu0 %vm14322_vm10, %v14321_v56  ;;  %vm14355_vm10 = vmmov %vm14344_vm0 }
 0x43b   :  { %6374 = vmatmul.mubr.msk.f32.gmra.mrb[236].mxu0 %vm14324_vm11, %v14323_v4  ;;  %vm14357_vm11 = vmmov %vm14344_vm0 }
 0x43c   :  { %6376 = vmatprep.mubr.msk.f32.mxu0 %vm14326_vm15, %v14325_v36  ;;  %vm14359_vm15 = vmmov %vm14344_vm0 }
 0x43f   :  { %6377 = vmatmul.mubr.msk.f32.gmra.mrb[238].mxu0 %vm14328_vm14, %v14327_v24  ;;  %vm14361_vm14 = vmmov %vm14344_vm0 }
 0x440   :  { %6379 = vmatprep.mubr.msk.f32.mxu0 %vm14330_vm6, %v14329_v44  ;;  %vm14363_vm6 = vmmov %vm14344_vm0 }
 0x443   :  { %6380 = vmatmul.mubr.msk.f32.gmra.mrb[240].mxu0 %vm14332_vm1, %v14331_v17  ;;  %vm14365_vm1 = vmmov %vm14344_vm0 }
 0x444   :  { %6382 = vmatprep.mubr.msk.f32.mxu0 %vm14334_vm7, %v14333_v32  ;;  %vm14367_vm7 = vmmov %vm14344_vm0 }
 0x447   :  { %6383 = vmatmul.mubr.msk.f32.gmra.mrb[242].mxu0 %vm14336_vm2, %v14335_v37  ;;  %vm14369_vm2 = vmmov %vm14344_vm0 }
 0x448   :  { %6385 = vmatprep.mubr.msk.f32.mxu0 %vm14338_vm4, %v14337_v43  ;;  %vm14371_vm4 = vmmov %vm14344_vm0 }
 0x44b   :  { %6386 = vmatmul.mubr.msk.f32.gmra.mrb[244].mxu0 %vm14340_vm5, %v14339_v55  ;;  %vm14373_vm5 = vmmov %vm14344_vm0 }
 0x44c   :  { %6388 = vmatprep.mubr.msk.f32.mxu0 %vm14342_vm9, %v14341_v47  ;;  %vm14375_vm9 = vmmov %vm14344_vm0 }
 0x44f   :  { %6389 = vmatmul.mubr.msk.f32.gmra.mrb[246].mxu0 %vm14344_vm0, %v14343_v57 }
 0x46a   :  { %v5879_v54 = vpop.f32.mrb[168].mxu1 }
 0x46b   :  { %v5959_v29 = vpop.f32.mrb[168].mxu0  ;;  %v5880_v25 = vpop.f32.mrb[169].mxu1 }
 0x46c   :  { %v5960_v12 = vpop.f32.mrb[169].mxu0  ;;  %v5881_v34 = vadd.f32 %v5880_v25, %v5879_v54 }
 0x46d   :  { %v5961_v52 = vadd.f32 %v5960_v12, %v5959_v29 }
 0x46f   :  { %v12343_v20 = vadd.f32 %v5961_v52, %v5881_v34 }
 0x472   :  { %v5882_v3 = vpop.f32.mrb[170].mxu1 }
 0x473   :  { %v5962_v45 = vpop.f32.mrb[170].mxu0  ;;  %v5883_v48 = vpop.f32.mrb[171].mxu1 }
 0x474   :  { %v5963_v23 = vpop.f32.mrb[171].mxu0  ;;  %v5884_v63 = vadd.f32 %v5883_v48, %v5882_v3 }
 0x475   :  { %v5964_v15 = vadd.f32 %v5963_v23, %v5962_v45 }
 0x477   :  { %v12345_v1 = vadd.f32 %v5964_v15, %v5884_v63 }
 0x47d   :  { %v5965_v22 = vpop.f32.mrb[172].mxu0 }
 0x47e   :  { %v5885_v14 = vpop.f32.mrb[172].mxu1  ;;  %v5966_v30 = vpop.f32.mrb[173].mxu0 }
 0x47f   :  { %v5886_v19 = vpop.f32.mrb[173].mxu1  ;;  %v5967_v38 = vadd.f32 %v5966_v30, %v5965_v22 }
 0x480   :  { %v5887_v11 = vadd.f32 %v5886_v19, %v5885_v14 }
 0x482   :  { %v12347_v28 = vadd.f32 %v5967_v38, %v5887_v11 }
 0x487   :  { %v5968_v13 = vpop.f32.mrb[174].mxu0 }
 0x488   :  { %v5888_v49 = vpop.f32.mrb[174].mxu1  ;;  %v5969_v60 = vpop.f32.mrb[175].mxu0 }
 0x489   :  { %v5889_v26 = vpop.f32.mrb[175].mxu1  ;;  %v5970_v21 = vadd.f32 %v5969_v60, %v5968_v13 }
 0x48a   :  { %v5890_v31 = vadd.f32 %v5889_v26, %v5888_v49 }
 0x48c   :  { %v12349_v40 = vadd.f32 %v5970_v21, %v5890_v31 }
 0x48f   :  { %v5971_v8 = vpop.f32.mrb[176].mxu0 }
 0x490   :  { %v5891_v33 = vpop.f32.mrb[176].mxu1  ;;  %v5972_v16 = vpop.f32.mrb[177].mxu0 }
 0x491   :  { %v5892_v0 = vpop.f32.mrb[177].mxu1  ;;  %v5973_v62 = vadd.f32 %v5972_v16, %v5971_v8 }
 0x492   :  { %v5893_v6 = vadd.f32 %v5892_v0, %v5891_v33 }
 0x494   :  { %v12351_v39 = vadd.f32 %v5973_v62, %v5893_v6 }
 0x497   :  { %v5894_v5 = vpop.f32.mrb[178].mxu1  ;;  %v5974_v53 = vpop.f32.mrb[178].mxu0 }
 0x498   :  { %v5895_v46 = vpop.f32.mrb[179].mxu1  ;;  %v5975_v7 = vpop.f32.mrb[179].mxu0 }
 0x499   :  { %v5896_v18 = vadd.f32 %v5895_v46, %v5894_v5  ;;  %v5976_v59 = vadd.f32 %v5975_v7, %v5974_v53 }
 0x49b   :  { %v12353_v41 = vadd.f32 %v5976_v59, %v5896_v18  ;;  %v5897_v27 = vpop.f32.mrb[180].mxu1 }
 0x49c   :  { %v5977_v61 = vpop.f32.mrb[180].mxu0  ;;  %v5898_v51 = vpop.f32.mrb[181].mxu1 }
 0x49d   :  { %v5978_v35 = vpop.f32.mrb[181].mxu0  ;;  %v5899_v50 = vadd.f32 %v5898_v51, %v5897_v27 }
 0x49e   :  { %v5979_v42 = vadd.f32 %v5978_v35, %v5977_v61 }
 0x4a0   :  { %v12355_v2 = vadd.f32 %v5979_v42, %v5899_v50 }
 0x4a1   :  { %v5900_v9 = vpop.f32.mrb[182].mxu1  ;;  %v5980_v10 = vpop.f32.mrb[182].mxu0 }
 0x4a2   :  { %v5901_v58 = vpop.f32.mrb[183].mxu1  ;;  %v5981_v56 = vpop.f32.mrb[183].mxu0 }
 0x4a3   :  { %v5902_v4 = vadd.f32 %v5901_v58, %v5900_v9  ;;  %v5982_v36 = vadd.f32 %v5981_v56, %v5980_v10 }
 0x4a5   :  { %v12357_v24 = vadd.f32 %v5982_v36, %v5902_v4  ;;  %v5983_v17 = vpop.f32.mrb[184].mxu0 }
 0x4a6   :  { %v5984_v37 = vpop.f32.mrb[185].mxu0 }
 0x4a7   :  { %v5903_v44 = vpop.f32.mrb[184].mxu1  ;;  %v5985_v55 = vadd.f32 %v5984_v37, %v5983_v17 }
 0x4a8   :  { %v5904_v32 = vpop.f32.mrb[185].mxu1 }
 0x4a9   :  { %v5905_v43 = vadd.f32 %v5904_v32, %v5903_v44  ;;  %v5986_v54 = vpop.f32.mrb[186].mxu0 }
 0x4aa   :  { %v5987_v25 = vpop.f32.mrb[187].mxu0 }
 0x4ab   :  { %v12359_v47 = vadd.f32 %v5985_v55, %v5905_v43  ;;  %v5988_v34 = vadd.f32 %v5987_v25, %v5986_v54 }
 0x4ac   :  { %v5906_v57 = vpop.f32.mrb[186].mxu1 }
 0x4ad   :  { %v5907_v29 = vpop.f32.mrb[187].mxu1  ;;  %v5989_v45 = vpop.f32.mrb[188].mxu0 }
 0x4ae   :  { %v5908_v12 = vadd.f32 %v5907_v29, %v5906_v57  ;;  %v5990_v23 = vpop.f32.mrb[189].mxu0 }
 0x4af   :  { %v5991_v15 = vadd.f32 %v5990_v23, %v5989_v45 }
 0x4b0   :  { %v12361_v52 = vadd.f32 %v5988_v34, %v5908_v12  ;;  %v5909_v3 = vpop.f32.mrb[188].mxu1 }
 0x4b1   :  { %v5910_v48 = vpop.f32.mrb[189].mxu1  ;;  %v5992_v19 = vpop.f32.mrb[190].mxu0 }
 0x4b2   :  { %v5911_v63 = vadd.f32 %v5910_v48, %v5909_v3  ;;  %v5993_v11 = vpop.f32.mrb[191].mxu0  ;;  %v14345_v48 = vld [vmem:[#allocation179_spill] sm:$0xff] }
 0x4b3   :  { %v5994_v49 = vadd.f32 %v5993_v11, %v5992_v19 }
 0x4b4   :  { %v12363_v14 = vadd.f32 %v5991_v15, %v5911_v63  ;;  %v5912_v22 = vpop.f32.mrb[190].mxu1 }
 0x4b5   :  { %v5913_v30 = vpop.f32.mrb[191].mxu1  ;;  %v5995_v60 = vpop.f32.mrb[192].mxu0 }
 0x4b6   :  { %v5914_v38 = vadd.f32 %v5913_v30, %v5912_v22  ;;  %v5996_v21 = vpop.f32.mrb[193].mxu0 }
 0x4b7   :  { %v5997_v8 = vadd.f32 %v5996_v21, %v5995_v60 }
 0x4b8   :  { %v12365_v13 = vadd.f32 %v5994_v49, %v5914_v38  ;;  %v5915_v26 = vpop.f32.mrb[192].mxu1 }
 0x4b9   :  { %v5916_v31 = vpop.f32.mrb[193].mxu1  ;;  %v5998_v6 = vpop.f32.mrb[194].mxu0 }
 0x4ba   :  { %v5917_v33 = vadd.f32 %v5916_v31, %v5915_v26  ;;  %v5999_v5 = vpop.f32.mrb[195].mxu0 }
 0x4bb   :  { %v6000_v46 = vadd.f32 %v5999_v5, %v5998_v6 }
 0x4bc   :  { %v12367_v0 = vadd.f32 %v5997_v8, %v5917_v33  ;;  %v5918_v16 = vpop.f32.mrb[194].mxu1 }
 0x4bd   :  { %v5919_v62 = vpop.f32.mrb[195].mxu1  ;;  %v6001_v59 = vpop.f32.mrb[196].mxu0 }
 0x4be   :  { %v5920_v53 = vadd.f32 %v5919_v62, %v5918_v16  ;;  %v6002_v61 = vpop.f32.mrb[197].mxu0 }
 0x4bf   :  { %v6003_v35 = vadd.f32 %v6002_v61, %v6001_v59 }
 0x4c0   :  { %v12369_v7 = vadd.f32 %v6000_v46, %v5920_v53  ;;  %v5921_v18 = vpop.f32.mrb[196].mxu1  ;;  %v14348_v53 = vld [vmem:[#allocation26_spill] sm:$0xff] }
 0x4c1   :  { %v5922_v27 = vpop.f32.mrb[197].mxu1  ;;  %v6004_v9 = vpop.f32.mrb[198].mxu0 }
 0x4c2   :  { %v5923_v51 = vadd.f32 %v5922_v27, %v5921_v18  ;;  %v6005_v58 = vpop.f32.mrb[199].mxu0 }
 0x4c3   :  { %v6006_v4 = vadd.f32 %v6005_v58, %v6004_v9 }
 0x4c4   :  { %v12371_v50 = vadd.f32 %v6003_v35, %v5923_v51  ;;  %v5924_v42 = vpop.f32.mrb[198].mxu1 }
 0x4c5   :  { %v5925_v10 = vpop.f32.mrb[199].mxu1  ;;  %v6119_v17 = vpop.f32.mrb[200].mxu0 }
 0x4c6   :  { %v5926_v56 = vadd.f32 %v5925_v10, %v5924_v42  ;;  %v6120_v37 = vpop.f32.mrb[201].mxu0  ;;  %v14350_v10 = vld [vmem:[#allocation60_spill] sm:$0xff] }
 0x4c7   :  { %v6121_v55 = vadd.f32 %v6120_v37, %v6119_v17 }
 0x4c8   :  { %v12373_v36 = vadd.f32 %v6006_v4, %v5926_v56  ;;  %v6039_v44 = vpop.f32.mrb[200].mxu1 }
 0x4c9   :  { %v6040_v32 = vpop.f32.mrb[201].mxu1 }
 0x4ca   :  { %v6041_v43 = vadd.f32 %v6040_v32, %v6039_v44  ;;  %v6122_v29 = vpop.f32.mrb[202].mxu0 }
 0x4cb   :  { %v6123_v12 = vpop.f32.mrb[203].mxu0 }
 0x4cc   :  { %v4412_v57 = vadd.f32 %v6041_v43, %v12343_v20  ;;  %v6042_v54 = vpop.f32.mrb[202].mxu1  ;;  %v6124_v45 = vadd.f32 %v6123_v12, %v6122_v29  ;;  %v14346_v20 = vld [vmem:[#allocation185_spill] sm:$0xff] }
 0x4cd   :  { %v6043_v25 = vpop.f32.mrb[203].mxu1 }
 0x4ce   :  { %v4557_v34 = vadd.f32 %v6121_v55, %v4412_v57  ;;  %v6044_v3 = vadd.f32 %v6043_v25, %v6042_v54  ;;  %v6125_v22 = vpop.f32.mrb[204].mxu0  ;;  %v14352_v57 = vld [vmem:[#allocation81_spill] sm:$0xff] }
 0x4cf   :  { %v6126_v30 = vpop.f32.mrb[205].mxu0 }
 0x4d0   :  { %v4635_v23 = vadd.f32 %v4557_v34, %v14345_v48  ;;  %v4417_v63 = vadd.f32 %v6044_v3, %v12345_v1  ;;  %v6045_v15 = vpop.f32.mrb[204].mxu1  ;;  %v6127_v26 = vadd.f32 %v6126_v30, %v6125_v22 }
 0x4d1   :  { %v6046_v19 = vpop.f32.mrb[205].mxu1 }
 0x4d2   :  { %v4651_v11 = vmul.f32 %v4635_v23, %v4635_v23  ;;  %v4562_v38 = vadd.f32 %v6124_v45, %v4417_v63  ;;  %v6047_v49 = vadd.f32 %v6046_v19, %v6045_v15  ;;  %v6128_v33 = vpop.f32.mrb[206].mxu0  ;;  %v14354_v63 = vld [vmem:[#allocation91_spill] sm:$0xff] }
 0x4d3   :  { %v6129_v16 = vpop.f32.mrb[207].mxu0 }
 0x4d4   :  { %v4636_v60 = vadd.f32 %v4562_v38, %v14346_v20  ;;  %v4422_v31 = vadd.f32 %v6047_v49, %v12347_v28  ;;  %v6048_v21 = vpop.f32.mrb[206].mxu1  ;;  %6327 = vmatprep.mubr.msk.f32.mxu1 %vm14347_vm12, %v4651_v11  ;;  %v6130_v5 = vadd.f32 %v6129_v16, %v6128_v33  ;;  %vm14378_vm12 = vcmask 31744  }
 0x4d5   :  { %v6049_v8 = vpop.f32.mrb[207].mxu1 }
 0x4d6   :  { %v4652_v6 = vmul.f32 %v4636_v60, %v4636_v60  ;;  %v4567_v1 = vadd.f32 %v6127_v26, %v4422_v31  ;;  %v6050_v62 = vadd.f32 %v6049_v8, %v6048_v21  ;;  %v6131_v27 = vpop.f32.mrb[208].mxu0  ;;  %v14356_v60 = vld [vmem:[#allocation45_spill] sm:$0xff] }
 0x4d7   :  { %v6132_v28 = vpop.f32.mrb[209].mxu0 }
 0x4d8   :  { %v4637_v46 = vadd.f32 %v4567_v1, %v14348_v53  ;;  %v4427_v18 = vadd.f32 %v6050_v62, %v12349_v40  ;;  %v6051_v59 = vpop.f32.mrb[208].mxu1  ;;  %6328 = vmatmul.mubr.msk.f32.vlgmr.msra.gmra.mrb[232].mxu1 %vm14349_vm3, %v4652_v6  ;;  %v6133_v9 = vadd.f32 %v6132_v28, %v6131_v27  ;;  %v14358_v53 = vld [vmem:[#allocation102_spill] sm:$0xff]  ;;  %vm14379_vm3 = vmmov %vm14378_vm12 }
 0x4d9   :  { %v6052_v61 = vpop.f32.mrb[209].mxu1 }
 0x4da   :  { %v4653_v51 = vmul.f32 %v4637_v46, %v4637_v46  ;;  %v4572_v35 = vadd.f32 %v6130_v5, %v4427_v18  ;;  %v6053_v42 = vadd.f32 %v6052_v61, %v6051_v59  ;;  %v6134_v44 = vpop.f32.mrb[210].mxu0 }
 0x4db   :  { %v6135_v40 = vpop.f32.mrb[211].mxu0 }
 0x4dc   :  { %v4638_v58 = vadd.f32 %v4572_v35, %v14350_v10  ;;  %v4432_v56 = vadd.f32 %v6053_v42, %v12351_v39  ;;  %v6054_v4 = vpop.f32.mrb[210].mxu1  ;;  %6330 = vmatprep.mubr.msk.f32.mxu1 %vm14351_vm13, %v4653_v51  ;;  %v6136_v55 = vadd.f32 %v6135_v40, %v6134_v44  ;;  %vm14382_vm13 = vmmov %vm14379_vm3 }
 0x4dd   :  { %v6055_v17 = vpop.f32.mrb[211].mxu1 }
 0x4de   :  { %v4654_v32 = vmul.f32 %v4638_v58, %v4638_v58  ;;  %v4577_v37 = vadd.f32 %v6133_v9, %v4432_v56  ;;  %v6056_v43 = vadd.f32 %v6055_v17, %v6054_v4  ;;  %v6137_v12 = vpop.f32.mrb[212].mxu0  ;;  %v14360_v9 = vld [vmem:[#allocation38_spill] sm:$0xff] }
 0x4df   :  { %v6138_v39 = vpop.f32.mrb[213].mxu0 }
 0x4e0   :  { %v4639_v54 = vadd.f32 %v4577_v37, %v14352_v57  ;;  %v4437_v29 = vadd.f32 %v6056_v43, %v12353_v41  ;;  %v6057_v25 = vpop.f32.mrb[212].mxu1  ;;  %6331 = vmatmul.mubr.msk.f32.gmra.mrb[234].mxu1 %vm14353_vm8, %v4654_v32  ;;  %v6139_v23 = vadd.f32 %v6138_v39, %v6137_v12  ;;  %v14362_v43 = vld [vmem:[#allocation51_spill] sm:$0xff]  ;;  %vm14383_vm8 = vmmov %vm14379_vm3 }
 0x4e1   :  { %v6058_v34 = vpop.f32.mrb[213].mxu1 }
 0x4e2   :  { %v4655_v3 = vmul.f32 %v4639_v54, %v4639_v54  ;;  %v4582_v45 = vadd.f32 %v6136_v55, %v4437_v29  ;;  %v6059_v48 = vadd.f32 %v6058_v34, %v6057_v25  ;;  %v6140_v30 = vpop.f32.mrb[214].mxu0 }
 0x4e3   :  { %v6141_v41 = vpop.f32.mrb[215].mxu0 }
 0x4e4   :  { %v4640_v15 = vadd.f32 %v4582_v45, %v14354_v63  ;;  %v4442_v22 = vadd.f32 %v6059_v48, %v12355_v2  ;;  %v6060_v19 = vpop.f32.mrb[214].mxu1  ;;  %6333 = vmatprep.mubr.msk.f32.mxu1 %vm14355_vm10, %v4655_v3  ;;  %v6142_v20 = vadd.f32 %v6141_v41, %v6140_v30  ;;  %v14364_v45 = vld [vmem:[#allocation44_spill] sm:$0xff]  ;;  %vm14386_vm10 = vmmov %vm14379_vm3 }
 0x4e5   :  { %v6061_v11 = vpop.f32.mrb[215].mxu1 }
 0x4e6   :  { %v4656_v38 = vmul.f32 %v4640_v15, %v4640_v15  ;;  %v4587_v49 = vadd.f32 %v6139_v23, %v4442_v22  ;;  %v6062_v26 = vadd.f32 %v6061_v11, %v6060_v19  ;;  %v6143_v8 = vpop.f32.mrb[216].mxu0 }
 0x4e7   :  { %v6144_v2 = vpop.f32.mrb[217].mxu0 }
 0x4e8   :  { %v4641_v31 = vadd.f32 %v4587_v49, %v14356_v60  ;;  %v4447_v21 = vadd.f32 %v6062_v26, %v12357_v24  ;;  %v6063_v33 = vpop.f32.mrb[216].mxu1  ;;  %6334 = vmatmul.mubr.msk.f32.gmra.mrb[236].mxu1 %vm14357_vm11, %v4656_v38  ;;  %v6145_v5 = vadd.f32 %v6144_v2, %v6143_v8  ;;  %v14366_v38 = vld [vmem:[#allocation41_spill] sm:$0xff]  ;;  %v14368_v2 = vld [vmem:[#allocation195_spill] sm:$0xff]  ;;  %vm14387_vm11 = vmmov %vm14379_vm3 }
 0x4e9   :  { %v6064_v16 = vpop.f32.mrb[217].mxu1 }
 0x4ea   :  { %v4657_v6 = vmul.f32 %v4641_v31, %v4641_v31  ;;  %v4592_v1 = vadd.f32 %v6142_v20, %v4447_v21  ;;  %v6065_v62 = vadd.f32 %v6064_v16, %v6063_v33  ;;  %v6146_v27 = vpop.f32.mrb[218].mxu0 }
 0x4eb   :  { %v6147_v24 = vpop.f32.mrb[219].mxu0 }
 0x4ec   :  { %v4642_v46 = vadd.f32 %v4592_v1, %v14358_v53  ;;  %v4452_v18 = vadd.f32 %v6065_v62, %v12359_v47  ;;  %v6066_v59 = vpop.f32.mrb[218].mxu1  ;;  %6336 = vmatprep.mubr.msk.f32.mxu1 %vm14359_vm15, %v4657_v6  ;;  %v6148_v42 = vadd.f32 %v6147_v24, %v6146_v27  ;;  %vm14390_vm15 = vmmov %vm14379_vm3 }
 0x4ed   :  { %v6067_v61 = vpop.f32.mrb[219].mxu1 }
 0x4ee   :  { %v4658_v28 = vmul.f32 %v4642_v46, %v4642_v46  ;;  %v4597_v51 = vadd.f32 %v6145_v5, %v4452_v18  ;;  %v6068_v35 = vadd.f32 %v6067_v61, %v6066_v59  ;;  %v6149_v4 = vpop.f32.mrb[220].mxu0  ;;  %v14370_v61 = vld [vmem:[#allocation194_spill] sm:$0xff] }
 0x4ef   :  { %v6150_v47 = vpop.f32.mrb[221].mxu0 }
 0x4f0   :  { %v4643_v10 = vadd.f32 %v4597_v51, %v14360_v9  ;;  %v4457_v58 = vadd.f32 %v6068_v35, %v12361_v52  ;;  %v6069_v56 = vpop.f32.mrb[220].mxu1  ;;  %6337 = vmatmul.mubr.msk.f32.gmra.mrb[238].mxu1 %vm14361_vm14, %v4658_v28  ;;  %v6151_v37 = vadd.f32 %v6150_v47, %v6149_v4  ;;  %v14372_v4 = vld [vmem:[#allocation50_spill] sm:$0xff]  ;;  %vm14391_vm14 = vmmov %vm14379_vm3 }
 0x4f1   :  { %v6070_v44 = vpop.f32.mrb[221].mxu1 }
 0x4f2   :  { %v4659_v17 = vmul.f32 %v4643_v10, %v4643_v10  ;;  %v4602_v40 = vadd.f32 %v6148_v42, %v4457_v58  ;;  %v6071_v32 = vadd.f32 %v6070_v44, %v6069_v56  ;;  %v6152_v29 = vpop.f32.mrb[222].mxu0 }
 0x4f3   :  { %v6153_v52 = vpop.f32.mrb[223].mxu0 }
 0x4f4   :  { %v4644_v55 = vadd.f32 %v4602_v40, %v14362_v43  ;;  %v4462_v57 = vadd.f32 %v6071_v32, %v12363_v14  ;;  %v6072_v54 = vpop.f32.mrb[222].mxu1  ;;  %6339 = vmatprep.mubr.msk.f32.mxu1 %vm14363_vm6, %v4659_v17  ;;  %v6154_v3 = vadd.f32 %v6153_v52, %v6152_v29  ;;  %vm14394_vm6 = vmmov %vm14379_vm3 }
 0x4f5   :  { %v6073_v25 = vpop.f32.mrb[223].mxu1 }
 0x4f6   :  { %v4660_v12 = vmul.f32 %v4644_v55, %v4644_v55  ;;  %v4607_v34 = vadd.f32 %v6151_v37, %v4462_v57  ;;  %v6074_v39 = vadd.f32 %v6073_v25, %v6072_v54  ;;  %v6155_v15 = vpop.f32.mrb[224].mxu0  ;;  %v14374_v37 = vld [vmem:[#allocation196_spill] sm:$0xff] }
 0x4f7   :  { %v6156_v14 = vpop.f32.mrb[225].mxu0 }
 0x4f8   :  { %v4645_v48 = vadd.f32 %v4607_v34, %v14364_v45  ;;  %v4467_v23 = vadd.f32 %v6074_v39, %v12365_v13  ;;  %v6075_v63 = vpop.f32.mrb[224].mxu1  ;;  %6340 = vmatmul.mubr.msk.f32.gmra.mrb[240].mxu1 %vm14365_vm1, %v4660_v12  ;;  %v6157_v41 = vadd.f32 %v6156_v14, %v6155_v15  ;;  %v1536_v15 = vpop.xlane.xlu1 %1535  ;;  %vm14395_vm1 = vmmov %vm14379_vm3 }
 0x4f9   :  { %v6076_v22 = vpop.f32.mrb[225].mxu1  ;;  %6822 = vlog2.f32 %v1536_v15 }
 0x4fa   :  { %v4661_v19 = vmul.f32 %v4645_v48, %v4645_v48  ;;  %v4612_v30 = vadd.f32 %v6154_v3, %v4467_v23  ;;  %v6077_v11 = vadd.f32 %v6076_v22, %v6075_v63  ;;  %v6158_v60 = vpop.f32.mrb[226].mxu0  ;;  %v1533_v22 = vpop.xlane.xlu0 %1532 }
 0x4fb   :  { %v6159_v13 = vpop.f32.mrb[227].mxu0  ;;  %6824 = vlog2.f32 %v1533_v22 }
 0x4fc   :  { %v4646_v49 = vadd.f32 %v4612_v30, %v14366_v38  ;;  %v4472_v26 = vadd.f32 %v6077_v11, %v12367_v0  ;;  %v6078_v20 = vpop.f32.mrb[226].mxu1  ;;  %6342 = vmatprep.mubr.msk.f32.mxu1 %vm14367_vm7, %v4661_v19  ;;  %v6160_v16 = vadd.f32 %v6159_v13, %v6158_v60  ;;  %v1542_v14 = vpop.xlane.xlu1 %1541  ;;  %vm14398_vm7 = vmmov %vm14395_vm1 }
 0x4fd   :  { %v6079_v31 = vpop.f32.mrb[227].mxu1  ;;  %6826 = vlog2.f32 %v1542_v14 }
 0x4fe   :  { %v4662_v21 = vmul.f32 %v4646_v49, %v4646_v49  ;;  %v4617_v33 = vadd.f32 %v6157_v41, %v4472_v26  ;;  %v6080_v8 = vadd.f32 %v6079_v31, %v6078_v20  ;;  %v6161_v5 = vpop.f32.mrb[228].mxu0  ;;  %v1539_v19 = vpop.xlane.xlu0 %1538 }
 0x4ff   :  { %v6162_v0 = vpop.f32.mrb[229].mxu0  ;;  %6828 = vlog2.f32 %v1539_v19  ;;  %v14384_v19 = vld [vmem:[#allocation183_spill] sm:$0xff] }
 0x500   :  { %v4647_v6 = vadd.f32 %v4617_v33, %v14368_v2  ;;  %v4477_v1 = vadd.f32 %v6080_v8, %v12369_v7  ;;  %v6081_v62 = vpop.f32.mrb[228].mxu1  ;;  %6343 = vmatmul.mubr.msk.f32.gmra.mrb[242].mxu1 %vm14369_vm2, %v4662_v21  ;;  %v6163_v27 = vadd.f32 %v6162_v0, %v6161_v5  ;;  %v1548_v38 = vpop.xlane.xlu1 %1547  ;;  %v14376_v33 = vld [vmem:[#allocation162_spill] sm:$0xff]  ;;  %vm14399_vm2 = vmmov %vm14395_vm1 }
 0x501   :  { %v6082_v53 = vpop.f32.mrb[229].mxu1  ;;  %6830 = vlog2.f32 %v1548_v38  ;;  %v14385_v38 = vld [vmem:[#allocation178_spill] sm:$0xff] }
 0x502   :  { %v4663_v46 = vmul.f32 %v4647_v6, %v4647_v6  ;;  %v4622_v18 = vadd.f32 %v6160_v16, %v4477_v1  ;;  %v6083_v59 = vadd.f32 %v6082_v53, %v6081_v62  ;;  %v6164_v35 = vpop.f32.mrb[230].mxu0  ;;  %v1545_v26 = vpop.xlane.xlu0 %1544  ;;  %v14377_v6 = vld [vmem:[#allocation157_spill] sm:$0xff] }
 0x503   :  { %v6165_v7 = vpop.f32.mrb[231].mxu0  ;;  %v6823_v30 = vpop.eup %6822  ;;  %6832 = vlog2.f32 %v1545_v26 }
 0x504   :  { %v4648_v24 = vadd.f32 %v4622_v18, %v14370_v61  ;;  %v4482_v28 = vadd.f32 %v6083_v59, %v12371_v50  ;;  %v6084_v51 = vpop.f32.mrb[230].mxu1  ;;  %6345 = vmatprep.mubr.msk.f32.mxu1 %vm14371_vm4, %v4663_v46  ;;  %v6166_v56 = vadd.f32 %v6165_v7, %v6164_v35  ;;  %v1582_v41 = vmul.f32 0.6931472, %v6823_v30  ;;  %v1554_v46 = vpop.xlane.xlu1 %1553  ;;  %v14380_v7 = vld [vmem:[#allocation173_spill] sm:$0xff]  ;;  %vm14402_vm4 = vmmov %vm14395_vm1 }
 0x505   :  { %v6085_v42 = vpop.f32.mrb[231].mxu1  ;;  %v6825_v11 = vpop.eup %6824  ;;  %6834 = vlog2.f32 %v1554_v46 }
 0x506   :  { %v4664_v9 = vmul.f32 %v4648_v24, %v4648_v24  ;;  %v4627_v10 = vadd.f32 %v6163_v27, %v4482_v28  ;;  %v6086_v58 = vadd.f32 %v6085_v42, %v6084_v51  ;;  %v6369_v17 = vpop.f32.mrb[232].mxu0  ;;  %v1580_v49 = vmul.f32 0.6931472, %v6825_v11  ;;  %v1551_v27 = vpop.xlane.xlu0 %1550 }
 0x507   :  { %v4974_v40 = vpop.f32.mrb[233].mxu0  ;;  %v1612_v8 = vsub.f32 %v14376_v33, %v1582_v41  ;;  %v6827_v16 = vpop.eup %6826  ;;  %6836 = vlog2.f32 %v1551_v27 }
 0x508   :  { %v4649_v44 = vadd.f32 %v4627_v10, %v14372_v4  ;;  %v4487_v47 = vadd.f32 %v6086_v58, %v12373_v36  ;;  %6346 = vmatmul.mubr.msk.f32.gmra.mrb[244].mxu1 %vm14373_vm5, %v4664_v9  ;;  %v1611_v1 = vsub.f32 %v14377_v6, %v1580_v49  ;;  %v1586_v0 = vmul.f32 0.6931472, %v6827_v16  ;;  %vm14403_vm5 = vmmov %vm14395_vm1 }
 0x509   :  { %v6829_v62 = vpop.eup %6828 }
 0x50a   :  { %v4665_v32 = vmul.f32 %v4649_v44, %v4649_v44  ;;  %v4632_v50 = vadd.f32 %v6166_v56, %v4487_v47  ;;  %v6372_v55 = vpop.f32.mrb[234].mxu0  ;;  %v1584_v59 = vmul.f32 0.6931472, %v6829_v62  ;;  %v1614_v9 = vsub.f32 %v14380_v7, %v1586_v0  ;;  %v14381_v56 = vld [vmem:[#allocation167_spill] sm:$0xff] }
 0x50b   :  { %v4984_v57 = vpop.f32.mrb[235].mxu0  ;;  %v6831_v10 = vpop.eup %6830  ;;  %v14388_v62 = vld [vmem:[#allocation63_spill] sm:$0xff] }
 0x50c   :  { %v4650_v43 = vadd.f32 %v4632_v50, %v14374_v37  ;;  %6348 = vmatprep.mubr.msk.f32.mxu1 %vm14375_vm9, %v4665_v32  ;;  %v1613_v4 = vsub.f32 %v14381_v56, %v1584_v59  ;;  %v1560_v32 = vpop.xlane.xlu1 %1559  ;;  %v14389_v59 = vld [vmem:[#allocation190_spill] sm:$0xff]  ;;  %vm14406_vm9 = vmmov %vm14395_vm1 }
 0x50d   :  { %v6833_v44 = vpop.eup %6832  ;;  %6838 = vlog2.f32 %v1560_v32 }
 0x50e   :  { %v4666_v54 = vmul.f32 %v4650_v43, %v4650_v43  ;;  %v12423_v29 = vpop.f32.mrb[236].mxu0  ;;  %v1588_v37 = vmul.f32 0.6931472, %v6833_v44  ;;  %v1557_v43 = vpop.xlane.xlu0 %1556  ;;  %v14392_v44 = vld [vmem:[#allocation32_spill] sm:$0xff] }
 0x50f   :  { %v12425_v25 = vpop.f32.mrb[237].mxu0  ;;  %6840 = vlog2.f32 %v1557_v43  ;;  %v6835_v11 = vpop.eup %6834 }
 0x510   :  { %6349 = vmatmul.mubr.msk.f32.gmra.mrb[246].mxu1 %vm14344_vm0, %v4666_v54  ;;  %v1615_v49 = vsub.f32 %v14385_v38, %v1588_v37  ;;  %v14393_v37 = vld [vmem:[#allocation33_spill] sm:$0xff]  ;;  %vm14407_vm0 = vmmov %vm14395_vm1 }
 0x511   :  { %v6837_v26 = vpop.eup %6836 }
 0x512   :  { %v12427_v36 = vpop.f32.mrb[238].mxu0  ;;  %v1592_v33 = vmul.f32 0.6931472, %v6837_v26  ;;  %v14396_v26 = vld [vmem:[#allocation103_spill] sm:$0xff] }
 0x513   :  { %v12429_v52 = vpop.f32.mrb[239].mxu0 }
 0x514   :  { %v1617_v27 = vsub.f32 %v14389_v59, %v1592_v33  ;;  %v14397_v33 = vld [vmem:[#allocation35_spill] sm:$0xff] }
 0x515   :  { %v14400_v59 = vld [vmem:[#allocation47_spill] sm:$0xff] }
 0x516   :  { %v12431_v12 = vpop.f32.mrb[240].mxu0 }
 0x517   :  { %v12433_v34 = vpop.f32.mrb[241].mxu0  ;;  %v6839_v46 = vpop.eup %6838 }
 0x51a   :  { %v12435_v39 = vpop.f32.mrb[242].mxu0 }
 0x51b   :  { %v12437_v3 = vpop.f32.mrb[243].mxu0 }
 0x51e   :  { %v12439_v45 = vpop.f32.mrb[244].mxu0 }
 0x51f   :  { %v12441_v48 = vpop.f32.mrb[245].mxu0 }
 0x522   :  { %v12443_v23 = vpop.f32.mrb[246].mxu0 }
 0x523   :  { %v12445_v63 = vpop.f32.mrb[247].mxu0 }
 0x5ab   :  { %v6329_v20 = vpop.f32.mrb[232].mxu1 }
 0x5ac   :  { %v5054_v60 = vmul.f32 -0.5, %v6329_v20  ;;  %v4781_v31 = vpop.f32.mrb[233].mxu1 }
 0x5ad   :  { %v5053_v13 = vmul.f32 -0.5, %v4781_v31  ;;  %v1594_v31 = vmul.f32 0.6931472, %v6835_v11 }
 0x5ae   :  { %v5070_v21 = vadd.f32 %v6369_v17, %v5054_v60 }
 0x5af   :  { %v5069_v2 = vadd.f32 %v5053_v13, %v4974_v40  ;;  %v1590_v40 = vmul.f32 0.6931472, %v6831_v10  ;;  %v1566_v13 = vpop.xlane.xlu1 %1565  ;;  %v1618_v0 = vsub.f32 %v14388_v62, %v1594_v31 }
 0x5b0   :  { %v12449_v5 = vadd.f32 %v5070_v21, %v1612_v8  ;;  %v1563_v8 = vpop.xlane.xlu0 %1562  ;;  %6842 = vlog2.f32 %v1566_v13 }
 0x5b1   :  { %v12451_v53 = vadd.f32 %v5069_v2, %v1611_v1  ;;  %v1616_v30 = vsub.f32 %v14384_v19, %v1590_v40  ;;  %6844 = vlog2.f32 %v1563_v8 }
 0x5b2   :  { %v5104_v18 = vsel %vm14378_vm12, %v12449_v5, -inf  ;;  %vm14408_vm12 = vmmov %vm14407_vm0 }
 0x5b3   :  { %v6332_v61 = vpop.f32.mrb[234].mxu1  ;;  %5105 = vmax.xlane.f32.xlu1 %v5104_v18  ;;  %v5101_v24 = vsel %vm14379_vm3, %v12451_v53, -inf  ;;  %vm14409_vm3 = vmmov %vm14407_vm0 }
 0x5b4   :  { %v5056_v28 = vmul.f32 -0.5, %v6332_v61  ;;  %v4791_v51 = vpop.f32.mrb[235].mxu1  ;;  %5102 = vmax.xlane.f32.xlu0 %v5101_v24  ;;  %v6841_v61 = vpop.eup %6840 }
 0x5b5   :  { %v5055_v35 = vmul.f32 -0.5, %v4791_v51  ;;  %v1598_v51 = vmul.f32 0.6931472, %v6839_v46  ;;  %v1596_v7 = vmul.f32 0.6931472, %v6841_v61 }
 0x5b6   :  { %v5072_v42 = vadd.f32 %v6372_v55, %v5056_v28 }
 0x5b7   :  { %v5071_v58 = vadd.f32 %v5055_v35, %v4984_v57  ;;  %v1572_v35 = vpop.xlane.xlu1 %1571  ;;  %v1620_v40 = vsub.f32 %v14392_v44, %v1598_v51  ;;  %v1619_v43 = vsub.f32 %v14393_v37, %v1596_v7 }
 0x5b8   :  { %v12459_v47 = vadd.f32 %v5072_v42, %v1614_v9  ;;  %v1569_v9 = vpop.xlane.xlu0 %1568  ;;  %6846 = vlog2.f32 %v1572_v35  ;;  %v14401_v35 = vld [vmem:[#allocation54_spill] sm:$0xff] }
 0x5b9   :  { %v12461_v17 = vadd.f32 %v5071_v58, %v1613_v4  ;;  %6848 = vlog2.f32 %v1569_v9 }
 0x5ba   :  { %v5110_v50 = vsel %vm14382_vm13, %v12459_v47, -inf  ;;  %v6843_v32 = vpop.eup %6842  ;;  %vm14410_vm13 = vmmov %vm14407_vm0 }
 0x5bb   :  { %v6335_v54 = vpop.f32.mrb[236].mxu1  ;;  %5111 = vmax.xlane.f32.xlu1 %v5110_v50  ;;  %v5107_v55 = vsel %vm14383_vm8, %v12461_v17, -inf  ;;  %vm14411_vm8 = vmmov %vm14407_vm0 }
 0x5bc   :  { %v5058_v57 = vmul.f32 -0.5, %v6335_v54  ;;  %v4801_v15 = vpop.f32.mrb[237].mxu1  ;;  %5108 = vmax.xlane.f32.xlu0 %v5107_v55  ;;  %v6845_v54 = vpop.eup %6844 }
 0x5bd   :  { %v5057_v22 = vmul.f32 -0.5, %v4801_v15  ;;  %v1602_v15 = vmul.f32 0.6931472, %v6843_v32  ;;  %v1600_v19 = vmul.f32 0.6931472, %v6845_v54  ;;  %v14404_v32 = vld [vmem:[#allocation7_spill] sm:$0xff] }
 0x5be   :  { %v5074_v14 = vadd.f32 %v12423_v29, %v5058_v57 }
 0x5bf   :  { %v5073_v41 = vadd.f32 %v5057_v22, %v12425_v25  ;;  %v1578_v22 = vpop.xlane.xlu1 %1577  ;;  %v1622_v31 = vsub.f32 %v14396_v26, %v1602_v15  ;;  %v1621_v8 = vsub.f32 %v14397_v33, %v1600_v19 }
 0x5c0   :  { %v12471_v20 = vadd.f32 %v5074_v14, %v1616_v30  ;;  %v1575_v30 = vpop.xlane.xlu0 %1574  ;;  %6850 = vlog2.f32 %v1578_v22 }
 0x5c1   :  { %v12473_v60 = vadd.f32 %v5073_v41, %v1615_v49  ;;  %6852 = vlog2.f32 %v1575_v30 }
 0x5c2   :  { %v5116_v21 = vsel %vm14386_vm10, %v12471_v20, -inf  ;;  %v6847_v13 = vpop.eup %6846  ;;  %vm14412_vm10 = vmmov %vm14407_vm0 }
 0x5c3   :  { %v6338_v29 = vpop.f32.mrb[238].mxu1  ;;  %5117 = vmax.xlane.f32.xlu1 %v5116_v21  ;;  %v5113_v16 = vsel %vm14387_vm11, %v12473_v60, -inf  ;;  %vm14413_vm11 = vmmov %vm14407_vm0 }
 0x5c4   :  { %v5060_v25 = vmul.f32 -0.5, %v6338_v29  ;;  %v4811_v2 = vpop.f32.mrb[239].mxu1  ;;  %5114 = vmax.xlane.f32.xlu0 %v5113_v16  ;;  %v6849_v29 = vpop.eup %6848 }
 0x5c5   :  { %v5059_v6 = vmul.f32 -0.5, %v4811_v2  ;;  %v1606_v2 = vmul.f32 0.6931472, %v6847_v13 }
 0x5c6   :  { %v5076_v1 = vadd.f32 %v12427_v36, %v5060_v25 }
 0x5c7   :  { %v5075_v18 = vadd.f32 %v5059_v6, %v12429_v52 }
 0x5c8   :  { %v12483_v24 = vadd.f32 %v5076_v1, %v1618_v0  ;;  %v1604_v1 = vmul.f32 0.6931472, %v6849_v29 }
 0x5c9   :  { %v12485_v28 = vadd.f32 %v5075_v18, %v1617_v27  ;;  %v1624_v27 = vsub.f32 %v14400_v59, %v1606_v2 }
 0x5ca   :  { %v5122_v42 = vsel %vm14390_vm15, %v12483_v24, -inf  ;;  %v6851_v61 = vpop.eup %6850  ;;  %vm14414_vm15 = vmmov %vm14407_vm0 }
 0x5cb   :  { %v6341_v36 = vpop.f32.mrb[240].mxu1  ;;  %5123 = vmax.xlane.f32.xlu1 %v5122_v42  ;;  %v5119_v10 = vsel %vm14391_vm14, %v12485_v28, -inf  ;;  %v1623_v42 = vsub.f32 %v14401_v35, %v1604_v1  ;;  %v6853_v7 = vpop.eup %6852  ;;  %vm14415_vm14 = vmmov %vm14407_vm0 }
 0x5cc   :  { %v5062_v52 = vmul.f32 -0.5, %v6341_v36  ;;  %v4821_v58 = vpop.f32.mrb[241].mxu1  ;;  %5120 = vmax.xlane.f32.xlu0 %v5119_v10  ;;  %v1610_v10 = vmul.f32 0.6931472, %v6851_v61 }
 0x5cd   :  { %v5061_v56 = vmul.f32 -0.5, %v4821_v58  ;;  %v1608_v58 = vmul.f32 0.6931472, %v6853_v7 }
 0x5ce   :  { %v5078_v4 = vadd.f32 %v12431_v12, %v5062_v52 }
 0x5cf   :  { %v5077_v50 = vadd.f32 %v5061_v56, %v12433_v34 }
 0x5d0   :  { %v12495_v55 = vadd.f32 %v5078_v4, %v1620_v40 }
 0x5d1   :  { %v12497_v57 = vadd.f32 %v5077_v50, %v1619_v43  ;;  %v1626_v50 = vsub.f32 %v14404_v32, %v1610_v10  ;;  %v14405_v43 = vld [vmem:[#allocation6_spill] sm:$0xff] }
 0x5d2   :  { %v5128_v14 = vsel %vm14394_vm6, %v12495_v55, -inf  ;;  %v1625_v54 = vsub.f32 %v14405_v43, %v1608_v58  ;;  %vm14416_vm6 = vmmov %vm14407_vm0 }
 0x5d3   :  { %v6344_v12 = vpop.f32.mrb[242].mxu1  ;;  %5129 = vmax.xlane.f32.xlu1 %v5128_v14  ;;  %v5125_v11 = vsel %vm14395_vm1, %v12497_v57, -inf  ;;  %vm14417_vm1 = vmmov %vm14407_vm0 }
 0x5d4   :  { %v5064_v34 = vmul.f32 -0.5, %v6344_v12  ;;  %v4831_v41 = vpop.f32.mrb[243].mxu1  ;;  %5126 = vmax.xlane.f32.xlu0 %v5125_v11 }
 0x5d5   :  { %v5063_v38 = vmul.f32 -0.5, %v4831_v41 }
 0x5d6   :  { %v5080_v49 = vadd.f32 %v12435_v39, %v5064_v34 }
 0x5d7   :  { %v5079_v21 = vadd.f32 %v5063_v38, %v12437_v3 }
 0x5d8   :  { %v12507_v16 = vadd.f32 %v5080_v49, %v1622_v31 }
 0x5d9   :  { %v12509_v25 = vadd.f32 %v5079_v21, %v1621_v8 }
 0x5da   :  { %v5134_v6 = vsel %vm14398_vm7, %v12507_v16, -inf  ;;  %vm14418_vm7 = vmmov %vm14407_vm0 }
 0x5db   :  { %v6347_v62 = vpop.f32.mrb[244].mxu1  ;;  %5135 = vmax.xlane.f32.xlu1 %v5134_v6  ;;  %v5131_v39 = vsel %vm14399_vm2, %v12509_v25, -inf  ;;  %vm14419_vm2 = vmmov %vm14407_vm0 }
 0x5dc   :  { %v5066_v0 = vmul.f32 -0.5, %v6347_v62  ;;  %v4841_v46 = vpop.f32.mrb[245].mxu1  ;;  %5132 = vmax.xlane.f32.xlu0 %v5131_v39 }
 0x5dd   :  { %v5065_v3 = vmul.f32 -0.5, %v4841_v46 }
 0x5de   :  { %v5082_v18 = vadd.f32 %v12439_v45, %v5066_v0 }
 0x5df   :  { %v5081_v51 = vadd.f32 %v5065_v3, %v12441_v48 }
 0x5e0   :  { %v12519_v9 = vadd.f32 %v5082_v18, %v1624_v27 }
 0x5e1   :  { %v12521_v36 = vadd.f32 %v5081_v51, %v1623_v42 }
 0x5e2   :  { %v5140_v52 = vsel %vm14402_vm4, %v12519_v9, -inf  ;;  %vm14420_vm4 = vmmov %vm14407_vm0 }
 0x5e3   :  { %v6350_v56 = vpop.f32.mrb[246].mxu1  ;;  %5141 = vmax.xlane.f32.xlu1 %v5140_v52  ;;  %v5137_v45 = vsel %vm14403_vm5, %v12521_v36, -inf  ;;  %vm14421_vm5 = vmmov %vm14407_vm0 }
 0x5e4   :  { %v5068_v4 = vmul.f32 -0.5, %v6350_v56  ;;  %v4851_v44 = vpop.f32.mrb[247].mxu1  ;;  %5138 = vmax.xlane.f32.xlu0 %v5137_v45 }
 0x5e5   :  { %v5067_v48 = vmul.f32 -0.5, %v4851_v44 }
 0x5e6   :  { %v5084_v40 = vadd.f32 %v12443_v23, %v5068_v4 }
 0x5e7   :  { %v5083_v37 = vadd.f32 %v5067_v48, %v12445_v63 }
 0x5e8   :  { %v12531_v15 = vadd.f32 %v5084_v40, %v1626_v50 }
 0x5e9   :  { %v12533_v22 = vadd.f32 %v5083_v37, %v1625_v54 }
 0x5ea   :  { %v5146_v14 = vsel %vm14406_vm9, %v12531_v15, -inf  ;;  %vm14422_vm9 = vmmov %vm14407_vm0 }
 0x5eb   :  { %5147 = vmax.xlane.f32.xlu1 %v5146_v14  ;;  %v5143_v19 = vsel %vm14407_vm0, %v12533_v22, -inf }
 0x5ec   :  { %5144 = vmax.xlane.f32.xlu0 %v5143_v19 }
 0x640   :  { %v12539_v30 = vpop.xlane.xlu1 %5105 }
 0x641   :  { %v5150_v23 = vsub.f32 %v12449_v5, %v12539_v30  ;;  %v12543_v63 = vpop.xlane.xlu0 %5102 }
 0x642   :  { %v5149_v12 = vsub.f32 %v12451_v53, %v12543_v63 }
 0x643   :  { %v5167_v11 = vmul.f32 1.442695, %v5150_v23 }
 0x644   :  { %v5165_v34 = vmul.f32 1.442695, %v5149_v12 }
 0x645   :  { %6854 = vpow2.f32 %v5167_v11 }
 0x646   :  { %6856 = vpow2.f32 %v5165_v34 }
 0x648   :  { %v12547_v41 = vpop.xlane.xlu1 %5111 }
 0x649   :  { %v5152_v38 = vsub.f32 %v12459_v47, %v12547_v41  ;;  %v12551_v49 = vpop.xlane.xlu0 %5108 }
 0x64a   :  { %v5151_v26 = vsub.f32 %v12461_v17, %v12551_v49 }
 0x64b   :  { %v5171_v5 = vmul.f32 1.442695, %v5152_v38 }
 0x64c   :  { %v5169_v31 = vmul.f32 1.442695, %v5151_v26 }
 0x64d   :  { %6858 = vpow2.f32 %v5171_v5 }
 0x64e   :  { %6860 = vpow2.f32 %v5169_v31 }
 0x64f   :  { %v6855_v13 = vpop.eup %6854 }
 0x650   :  { %v6857_v53 = vpop.eup %6856  ;;  %v12555_v21 = vpop.xlane.xlu1 %5117  ;;  %v5200_v33 = vsel %vm14408_vm12, %v6855_v13, 0.0 }
 0x651   :  { %v5154_v8 = vsub.f32 %v12471_v20, %v12555_v21  ;;  %5201 = vadd.xlane.f32.xlu1 %v5200_v33  ;;  %v12560_v47 = vpop.xlane.xlu0 %5114  ;;  %v5197_v29 = vsel %vm14409_vm3, %v6857_v53, 0.0 }
 0x652   :  { %v5153_v17 = vsub.f32 %v12473_v60, %v12560_v47  ;;  %5198 = vadd.xlane.f32.xlu0 %v5197_v29 }
 0x653   :  { %v5175_v2 = vmul.f32 1.442695, %v5154_v8 }
 0x654   :  { %v5173_v6 = vmul.f32 1.442695, %v5153_v17 }
 0x655   :  { %6862 = vpow2.f32 %v5175_v2 }
 0x656   :  { %6864 = vpow2.f32 %v5173_v6 }
 0x657   :  { %v6859_v1 = vpop.eup %6858 }
 0x658   :  { %v6861_v62 = vpop.eup %6860  ;;  %v12565_v39 = vpop.xlane.xlu1 %5123  ;;  %v5206_v0 = vsel %vm14410_vm13, %v6859_v1, 0.0 }
 0x659   :  { %v5156_v20 = vsub.f32 %v12483_v24, %v12565_v39  ;;  %5207 = vadd.xlane.f32.xlu1 %v5206_v0  ;;  %v12570_v46 = vpop.xlane.xlu0 %5120  ;;  %v5203_v3 = vsel %vm14411_vm8, %v6861_v62, 0.0 }
 0x65a   :  { %v5155_v60 = vsub.f32 %v12485_v28, %v12570_v46  ;;  %5204 = vadd.xlane.f32.xlu0 %v5203_v3 }
 0x65b   :  { %v5179_v18 = vmul.f32 1.442695, %v5156_v20 }
 0x65c   :  { %v5177_v59 = vmul.f32 1.442695, %v5155_v60 }
 0x65d   :  { %6866 = vpow2.f32 %v5179_v18 }
 0x65e   :  { %6868 = vpow2.f32 %v5177_v59 }
 0x65f   :  { %v6863_v27 = vpop.eup %6862 }
 0x660   :  { %v6865_v61 = vpop.eup %6864  ;;  %v12575_v51 = vpop.xlane.xlu1 %5129  ;;  %v5212_v35 = vsel %vm14412_vm10, %v6863_v27, 0.0 }
 0x661   :  { %v5158_v24 = vsub.f32 %v12495_v55, %v12575_v51  ;;  %5213 = vadd.xlane.f32.xlu1 %v5212_v35  ;;  %v12580_v42 = vpop.xlane.xlu0 %5126  ;;  %v5209_v7 = vsel %vm14413_vm11, %v6865_v61, 0.0 }
 0x662   :  { %v5157_v28 = vsub.f32 %v12497_v57, %v12580_v42  ;;  %5210 = vadd.xlane.f32.xlu0 %v5209_v7 }
 0x663   :  { %v5183_v10 = vmul.f32 1.442695, %v5158_v24 }
 0x664   :  { %v5181_v52 = vmul.f32 1.442695, %v5157_v28 }
 0x665   :  { %6870 = vpow2.f32 %v5183_v10 }
 0x666   :  { %6872 = vpow2.f32 %v5181_v52 }
 0x667   :  { %v6867_v58 = vpop.eup %6866 }
 0x668   :  { %v6869_v56 = vpop.eup %6868  ;;  %v12585_v45 = vpop.xlane.xlu1 %5135  ;;  %v5218_v4 = vsel %vm14414_vm15, %v6867_v58, 0.0 }
 0x669   :  { %v5160_v55 = vsub.f32 %v12507_v16, %v12585_v45  ;;  %5219 = vadd.xlane.f32.xlu1 %v5218_v4  ;;  %v12590_v44 = vpop.xlane.xlu0 %5132  ;;  %v5215_v48 = vsel %vm14415_vm14, %v6869_v56, 0.0 }
 0x66a   :  { %v5159_v57 = vsub.f32 %v12509_v25, %v12590_v44  ;;  %5216 = vadd.xlane.f32.xlu0 %v5215_v48 }
 0x66b   :  { %v5187_v40 = vmul.f32 1.442695, %v5160_v55 }
 0x66c   :  { %v5185_v32 = vmul.f32 1.442695, %v5159_v57 }
 0x66d   :  { %6874 = vpow2.f32 %v5187_v40 }
 0x66e   :  { %6876 = vpow2.f32 %v5185_v32 }
 0x66f   :  { %v6871_v50 = vpop.eup %6870 }
 0x670   :  { %v6873_v37 = vpop.eup %6872  ;;  %v12595_v43 = vpop.xlane.xlu1 %5141  ;;  %v5224_v54 = vsel %vm14416_vm6, %v6871_v50, 0.0 }
 0x671   :  { %v5162_v16 = vsub.f32 %v12519_v9, %v12595_v43  ;;  %5225 = vadd.xlane.f32.xlu1 %v5224_v54  ;;  %v12600_v14 = vpop.xlane.xlu0 %5138  ;;  %v5221_v19 = vsel %vm14417_vm1, %v6873_v37, 0.0 }
 0x672   :  { %v5161_v25 = vsub.f32 %v12521_v36, %v12600_v14  ;;  %5222 = vadd.xlane.f32.xlu0 %v5221_v19 }
 0x673   :  { %v5191_v23 = vmul.f32 1.442695, %v5162_v16 }
 0x674   :  { %v5189_v12 = vmul.f32 1.442695, %v5161_v25 }
 0x675   :  { %6878 = vpow2.f32 %v5191_v23 }
 0x676   :  { %6880 = vpow2.f32 %v5189_v12 }
 0x677   :  { %v6875_v11 = vpop.eup %6874 }
 0x678   :  { %v6877_v34 = vpop.eup %6876  ;;  %v12605_v38 = vpop.xlane.xlu1 %5147  ;;  %v5230_v26 = vsel %vm14418_vm7, %v6875_v11, 0.0 }
 0x679   :  { %v5164_v9 = vsub.f32 %v12531_v15, %v12605_v38  ;;  %5231 = vadd.xlane.f32.xlu1 %v5230_v26  ;;  %v12610_v5 = vpop.xlane.xlu0 %5144  ;;  %v5227_v31 = vsel %vm14419_vm2, %v6877_v34, 0.0 }
 0x67a   :  { %v5163_v36 = vsub.f32 %v12533_v22, %v12610_v5  ;;  %5228 = vadd.xlane.f32.xlu0 %v5227_v31 }
 0x67b   :  { %v5195_v13 = vmul.f32 1.442695, %v5164_v9 }
 0x67c   :  { %v5193_v53 = vmul.f32 1.442695, %v5163_v36 }
 0x67d   :  { %6882 = vpow2.f32 %v5195_v13 }
 0x67e   :  { %6884 = vpow2.f32 %v5193_v53 }
 0x67f   :  { %v6879_v33 = vpop.eup %6878 }
 0x680   :  { %v6881_v8 = vpop.eup %6880  ;;  %v5236_v29 = vsel %vm14420_vm4, %v6879_v33, 0.0 }
 0x681   :  { %5237 = vadd.xlane.f32.xlu1 %v5236_v29  ;;  %v5233_v15 = vsel %vm14421_vm5, %v6881_v8, 0.0 }
 0x682   :  { %5234 = vadd.xlane.f32.xlu0 %v5233_v15 }
 0x687   :  { %v6883_v17 = vpop.eup %6882 }
 0x688   :  { %v6885_v2 = vpop.eup %6884  ;;  %v5242_v6 = vsel %vm14422_vm9, %v6883_v17, 0.0 }
 0x689   :  { %5243 = vadd.xlane.f32.xlu1 %v5242_v6  ;;  %v5239_v22 = vsel %vm14407_vm0, %v6885_v2, 0.0 }
 0x68a   :  { %5240 = vadd.xlane.f32.xlu0 %v5239_v22 }
 0x6de   :  { %v5202_v62 = vpop.xlane.xlu1 %5201 }
 0x6df   :  { %v5199_v1 = vpop.xlane.xlu0 %5198  ;;  %6886 = vlog2.f32 %v5202_v62 }
 0x6e0   :  { %6888 = vlog2.f32 %v5199_v1 }
 0x6e6   :  { %v5208_v20 = vpop.xlane.xlu1 %5207 }
 0x6e7   :  { %v5205_v0 = vpop.xlane.xlu0 %5204 }
 0x6e8   :  { %6890 = vlog2.f32 %v5205_v0 }
 0x6e9   :  { %6892 = vlog2.f32 %v5208_v20  ;;  %v6887_v60 = vpop.eup %6886 }
 0x6ea   :  { %v6889_v18 = vpop.eup %6888  ;;  %v5248_v61 = vmul.f32 0.6931472, %v6887_v60 }
 0x6eb   :  { %v5246_v35 = vmul.f32 0.6931472, %v6889_v18 }
 0x6ec   :  { %v5278_v28 = vadd.f32 %v5248_v61, %v12539_v30 }
 0x6ed   :  { %v5277_v52 = vadd.f32 %v5246_v35, %v12543_v63 }
 0x6ee   :  { %v5214_v59 = vpop.xlane.xlu1 %5213  ;;  %v5294_v55 = vadd.f32 -14.703016, %v5278_v28 }
 0x6ef   :  { %v5211_v3 = vpop.xlane.xlu0 %5210  ;;  %v5293_v48 = vadd.f32 -14.703016, %v5277_v52 }
 0x6f0   :  { %6894 = vlog2.f32 %v5211_v3  ;;  %v5310_v16 = vsub.f32 0.0, %v5294_v55 }
 0x6f1   :  { %6896 = vlog2.f32 %v5214_v59  ;;  %v5309_v30 = vsub.f32 0.0, %v5293_v48 }
 0x6f2   :  { %v6891_v27 = vpop.eup %6890 }
 0x6f3   :  { %v5250_v24 = vmul.f32 0.6931472, %v6891_v27  ;;  %v6893_v10 = vpop.eup %6892  ;;  %v5325_v11 = vadd.f32 %v5310_v16, %v5309_v30 }
 0x6f4   :  { %v5252_v57 = vmul.f32 0.6931472, %v6893_v10 }
 0x6f5   :  { %v5279_v4 = vadd.f32 %v5250_v24, %v12551_v49 }
 0x6f6   :  { %v5220_v58 = vpop.xlane.xlu1 %5219  ;;  %v5280_v19 = vadd.f32 %v5252_v57, %v12547_v41 }
 0x6f7   :  { %v5217_v7 = vpop.xlane.xlu0 %5216  ;;  %v5295_v32 = vadd.f32 -14.703016, %v5279_v4 }
 0x6f8   :  { %6898 = vlog2.f32 %v5217_v7  ;;  %v5296_v34 = vadd.f32 -14.703016, %v5280_v19 }
 0x6f9   :  { %6900 = vlog2.f32 %v5220_v58  ;;  %v5311_v23 = vsub.f32 0.0, %v5295_v32 }
 0x6fa   :  { %v6895_v56 = vpop.eup %6894  ;;  %v5312_v41 = vsub.f32 0.0, %v5296_v34 }
 0x6fb   :  { %v5254_v40 = vmul.f32 0.6931472, %v6895_v56  ;;  %v6897_v54 = vpop.eup %6896  ;;  %v5326_v36 = vadd.f32 %v5325_v11, %v5311_v23 }
 0x6fc   :  { %v5256_v49 = vmul.f32 0.6931472, %v6897_v54 }
 0x6fd   :  { %v5281_v63 = vadd.f32 %v5254_v40, %v12560_v47  ;;  %v5327_v17 = vadd.f32 %v5326_v36, %v5312_v41 }
 0x6fe   :  { %v5226_v50 = vpop.xlane.xlu1 %5225  ;;  %v5282_v13 = vadd.f32 %v5256_v49, %v12555_v21 }
 0x6ff   :  { %v5223_v37 = vpop.xlane.xlu0 %5222  ;;  %v5297_v26 = vadd.f32 -14.703016, %v5281_v63 }
 0x700   :  { %6902 = vlog2.f32 %v5223_v37  ;;  %v5298_v15 = vadd.f32 -14.703016, %v5282_v13 }
 0x701   :  { %6904 = vlog2.f32 %v5226_v50  ;;  %v5313_v47 = vsub.f32 0.0, %v5297_v26 }
 0x702   :  { %v6899_v25 = vpop.eup %6898  ;;  %v5314_v20 = vsub.f32 0.0, %v5298_v15 }
 0x703   :  { %v5258_v12 = vmul.f32 0.6931472, %v6899_v25  ;;  %v6901_v9 = vpop.eup %6900  ;;  %v5328_v1 = vadd.f32 %v5327_v17, %v5313_v47 }
 0x704   :  { %v5260_v8 = vmul.f32 0.6931472, %v6901_v9 }
 0x705   :  { %v5283_v53 = vadd.f32 %v5258_v12, %v12570_v46  ;;  %v5329_v27 = vadd.f32 %v5328_v1, %v5314_v20 }
 0x706   :  { %v5232_v31 = vpop.xlane.xlu1 %5231  ;;  %v5284_v62 = vadd.f32 %v5260_v8, %v12565_v39 }
 0x707   :  { %6906 = vlog2.f32 %v5232_v31  ;;  %v5229_v33 = vpop.xlane.xlu0 %5228  ;;  %v5299_v2 = vadd.f32 -14.703016, %v5283_v53 }
 0x708   :  { %6908 = vlog2.f32 %v5229_v33  ;;  %v5300_v59 = vadd.f32 -14.703016, %v5284_v62 }
 0x709   :  { %v5315_v46 = vsub.f32 0.0, %v5299_v2 }
 0x70a   :  { %v6903_v29 = vpop.eup %6902  ;;  %v5316_v10 = vsub.f32 0.0, %v5300_v59 }
 0x70b   :  { %v5262_v6 = vmul.f32 0.6931472, %v6903_v29  ;;  %v6905_v22 = vpop.eup %6904  ;;  %v5330_v24 = vadd.f32 %v5329_v27, %v5315_v46 }
 0x70c   :  { %v5264_v3 = vmul.f32 0.6931472, %v6905_v22 }
 0x70d   :  { %v5285_v0 = vadd.f32 %v5262_v6, %v12580_v42  ;;  %v5331_v4 = vadd.f32 %v5330_v24, %v5316_v10 }
 0x70e   :  { %v5238_v21 = vpop.xlane.xlu1 %5237  ;;  %v5286_v7 = vadd.f32 %v5264_v3, %v12575_v51 }
 0x70f   :  { %6910 = vlog2.f32 %v5238_v21  ;;  %v5235_v60 = vpop.xlane.xlu0 %5234  ;;  %v5301_v61 = vadd.f32 -14.703016, %v5285_v0 }
 0x710   :  { %6912 = vlog2.f32 %v5235_v60  ;;  %v5302_v56 = vadd.f32 -14.703016, %v5286_v7 }
 0x711   :  { %v6907_v18 = vpop.eup %6906  ;;  %v5317_v39 = vsub.f32 0.0, %v5301_v61 }
 0x712   :  { %v6909_v35 = vpop.eup %6908  ;;  %v5268_v52 = vmul.f32 0.6931472, %v6907_v18  ;;  %v5318_v37 = vsub.f32 0.0, %v5302_v56 }
 0x713   :  { %v5266_v28 = vmul.f32 0.6931472, %v6909_v35  ;;  %v5332_v40 = vadd.f32 %v5331_v4, %v5317_v39 }
 0x714   :  { %v5288_v32 = vadd.f32 %v5268_v52, %v12585_v45 }
 0x715   :  { %v5287_v42 = vadd.f32 %v5266_v28, %v12590_v44  ;;  %v5333_v19 = vadd.f32 %v5332_v40, %v5318_v37 }
 0x716   :  { %v5244_v58 = vpop.xlane.xlu1 %5243  ;;  %v5304_v30 = vadd.f32 -14.703016, %v5288_v32 }
 0x717   :  { %v5303_v55 = vadd.f32 -14.703016, %v5287_v42  ;;  %6914 = vlog2.f32 %v5244_v58  ;;  %v5241_v48 = vpop.xlane.xlu0 %5240 }
 0x718   :  { %6916 = vlog2.f32 %v5241_v48  ;;  %v5320_v12 = vsub.f32 0.0, %v5304_v30 }
 0x719   :  { %v6911_v57 = vpop.eup %6910  ;;  %v5319_v51 = vsub.f32 0.0, %v5303_v55 }
 0x71a   :  { %v6913_v50 = vpop.eup %6912  ;;  %v5272_v54 = vmul.f32 0.6931472, %v6911_v57 }
 0x71b   :  { %v5270_v16 = vmul.f32 0.6931472, %v6913_v50  ;;  %v5334_v63 = vadd.f32 %v5333_v19, %v5319_v51 }
 0x71c   :  { %v5290_v25 = vadd.f32 %v5272_v54, %v12595_v43 }
 0x71d   :  { %v5289_v44 = vadd.f32 %v5270_v16, %v12600_v14  ;;  %v5335_v45 = vadd.f32 %v5334_v63, %v5320_v12 }
 0x71e   :  { %v5306_v9 = vadd.f32 -14.703016, %v5290_v25 }
 0x71f   :  { %v5305_v23 = vadd.f32 -14.703016, %v5289_v44 }
 0x720   :  { %v5322_v33 = vsub.f32 0.0, %v5306_v9 }
 0x721   :  { %v6915_v49 = vpop.eup %6914  ;;  %v5321_v11 = vsub.f32 0.0, %v5305_v23 }
 0x722   :  { %v6917_v34 = vpop.eup %6916  ;;  %v5276_v26 = vmul.f32 0.6931472, %v6915_v49 }
 0x723   :  { %v5274_v31 = vmul.f32 0.6931472, %v6917_v34  ;;  %v5336_v13 = vadd.f32 %v5335_v45, %v5321_v11 }
 0x724   :  { %v5292_v36 = vadd.f32 %v5276_v26, %v12605_v38 }
 0x725   :  { %v5291_v53 = vadd.f32 %v5274_v31, %v12610_v5  ;;  %v5337_v47 = vadd.f32 %v5336_v13, %v5322_v33 }
 0x726   :  { %v5308_v41 = vadd.f32 -14.703016, %v5292_v36 }
 0x727   :  { %v5307_v14 = vadd.f32 -14.703016, %v5291_v53 }
 0x728   :  { %v5324_v43 = vsub.f32 0.0, %v5308_v41 }
 0x729   :  { %v5323_v8 = vsub.f32 0.0, %v5307_v14 }
 0x72b   :  { %v5338_v29 = vadd.f32 %v5337_v47, %v5323_v8 }
 0x72d   :  { %v5339_v15 = vadd.f32 %v5338_v29, %v5324_v43 }
 0x72f   :  { %v5340_v17 = vrot.slane %v5339_v15, 4 }
 0x731   :  { %v5341_v2 = vadd.f32 %v5340_v17, %v5339_v15 }
 0x733   :  { %v5342_v6 = vrot.slane %v5341_v2, 2 }
 0x735   :  { %v5343_v22 = vadd.f32 %v5342_v6, %v5341_v2 }
 0x737   :  { %v5344_v1 = vrot.slane %v5343_v22, 1 }
 0x739   :  { %v5345_v62 = vadd.f32 %v5344_v1, %v5343_v22 }
 0x73b   :  { %5346 = vst [vmem:[%s12644_s6] sm:$0x1] %v5345_v62 }
 0x73c   :  { %5351 = vsyncpa [#allocation3], 1 }

</bundles_post_ra>
